<compile_context>
chip_gen: v7x
topology: tpu7x:2x2x1
jax: 0.10.0
libtpu: 0.0.40
codegen_flags: <defaults>
</compile_context>

<pallas_src>
import functools

import numpy as np

import jax
import jax.numpy as jnp
from jax.experimental import pallas as pl
from jax.experimental.pallas import tpu as pltpu

LANE = 128
KSIZE = 5   # conv kernel size for both conv layers


# ----------------------------------------------------------------------------
# Pallas kernels
# ----------------------------------------------------------------------------
def _sigmoid(z):
    # exp -> EUP slot, approx reciprocal -> EUP slot; keeps VALU slots free.
    return pl.reciprocal(1.0 + jnp.exp(-z), approx=True)


def _conv_tower_kernel(col1_ref, w1_ref, b1_ref, p1_ref,
                       sel_ref, w2_ref, b2_ref, p2_ref, o_ref, *, cout2):
    """Fused conv1+sigmoid+pool1+conv2+sigmoid+pool2 for one image.

    col1_ref : (1, 784, 25)     bf16  im2col patches of the padded input image
    w1_ref   : (25, 128)        bf16  conv1 weights, lane-padded (6 valid lanes)
    b1_ref   : (1, 128)         f32   conv1 bias, lane-padded
    p1_ref   : (196, 784)       bf16  constant 0/0.25 avg-pool matrix (28->14)
    sel_ref  : (25, 100, 196)   bf16  per-offset 0/1 row-selection (im2col) mats
    w2_ref   : (25, 128, 128)   bf16  per-offset conv2 weights (rows>=6, cols>=16 zero)
    b2_ref   : (1, 128)         f32   conv2 bias, lane-padded
    p2_ref   : (25, 100)        bf16  constant 0/0.25 avg-pool matrix (10->5)
    o_ref    : (1, 25, cout2)   bf16  pooled conv2 activations (spatial-major)
    """
    # conv1 as matmul + bias + sigmoid (f32 epilogue).
    a1 = jnp.dot(col1_ref[0], w1_ref[...], preferred_element_type=jnp.float32)
    s1 = _sigmoid(a1 + b1_ref[...])                              # (784, 128)
    # 2x2 average pool as matmul.
    pooled1 = jnp.dot(p1_ref[...], s1.astype(jnp.bfloat16),
                      preferred_element_type=jnp.float32)        # (196, 128)
    pooled1_bf = pooled1.astype(jnp.bfloat16)

    # conv2: sum over the 25 kernel offsets.  Each offset gathers its rows of
    # the 14x14 pooled map via an exact 0/1 selection matmul (MXU, no
    # relayout) and multiplies by that offset's (Cin x Cout) weight slab.
    nrows = p2_ref.shape[1]                                      # 100 = 10*10
    acc2 = jnp.zeros((nrows, LANE), jnp.float32)
    for d in range(KSIZE * KSIZE):
        g = jnp.dot(sel_ref[d], pooled1_bf,
                    preferred_element_type=jnp.float32)          # (100, 128)
        acc2 = acc2 + jnp.dot(g.astype(jnp.bfloat16), w2_ref[d],
                              preferred_element_type=jnp.float32)
    s2 = _sigmoid(acc2 + b2_ref[...])                            # (100, 128)
    pooled2 = jnp.dot(p2_ref[...], s2.astype(jnp.bfloat16),
                      preferred_element_type=jnp.float32)        # (25, 128)
    o_ref[0] = pooled2[:, :cout2].astype(o_ref.dtype)


def _mlp_kernel(x_ref, w1_ref, b1_ref, w2_ref, b2_ref, w3_ref, b3_ref, o_ref,
                *, out_features):
    """Fused Linear->Sigmoid->Linear->Sigmoid->Linear (weights resident)."""
    h = jnp.dot(x_ref[...], w1_ref[...], preferred_element_type=jnp.float32)
    h = _sigmoid(h + b1_ref[...])
    h = jnp.dot(h.astype(jnp.bfloat16), w2_ref[...],
                preferred_element_type=jnp.float32)
    h = _sigmoid(h + b2_ref[...])
    h = jnp.dot(h.astype(jnp.bfloat16), w3_ref[...],
                preferred_element_type=jnp.float32)
    h = h + b3_ref[...]
    o_ref[...] = h[:, :out_features].astype(o_ref.dtype)


# ----------------------------------------------------------------------------
# pallas_call wrappers
# ----------------------------------------------------------------------------
def conv_tower(col1, w1, b1, p1, sel, w2, b2, p2, *, cout2):
    """col1: (B, 784, 25) bf16 -> (B, 25, cout2) bf16, both convs fused."""
    B, M1, K1 = col1.shape
    Mp2 = p2.shape[0]
    return pl.pallas_call(
        functools.partial(_conv_tower_kernel, cout2=cout2),
        out_shape=jax.ShapeDtypeStruct((B, Mp2, cout2), jnp.bfloat16),
        grid=(B,),
        in_specs=[
            pl.BlockSpec((1, M1, K1), lambda b: (b, 0, 0)),   # per-image patches
            pl.BlockSpec(w1.shape, lambda b: (0, 0)),         # resident constants
            pl.BlockSpec(b1.shape, lambda b: (0, 0)),
            pl.BlockSpec(p1.shape, lambda b: (0, 0)),
            pl.BlockSpec(sel.shape, lambda b: (0, 0, 0)),
            pl.BlockSpec(w2.shape, lambda b: (0, 0, 0)),
            pl.BlockSpec(b2.shape, lambda b: (0, 0)),
            pl.BlockSpec(p2.shape, lambda b: (0, 0)),
        ],
        out_specs=pl.BlockSpec((1, Mp2, cout2), lambda b: (b, 0, 0)),
        compiler_params=pltpu.CompilerParams(
            dimension_semantics=("parallel",)),
    )(col1, w1, b1, p1, sel, w2, b2, p2)


def mlp_sigmoid(h, w1, b1, w2, b2, w3, b3, *, out_features):
    B = h.shape[0]
    return pl.pallas_call(
        functools.partial(_mlp_kernel, out_features=out_features),
        out_shape=jax.ShapeDtypeStruct((B, out_features), jnp.float32),
        in_specs=[pl.BlockSpec(memory_space=pltpu.MemorySpace.VMEM)] * 7,
        out_specs=pl.BlockSpec(memory_space=pltpu.MemorySpace.VMEM),
    )(h, w1, b1, w2, b2, w3, b3)


# ----------------------------------------------------------------------------
# Host-side glue (conv1 im2col) and one-time parameter layout prep
# ----------------------------------------------------------------------------
def _im2col_nhwc(x, k):
    """x: (B, H, W, C) -> (B, Ho*Wo, k*k*C); patch feature order (kh, kw, c)."""
    B, H, W, C = x.shape
    Ho, Wo = H - k + 1, W - k + 1
    cols = [x[:, di:di + Ho, dj:dj + Wo, :]
            for di in range(k) for dj in range(k)]
    col = jnp.concatenate(cols, axis=-1)          # (B, Ho, Wo, k*k*C)
    return col.reshape(B, Ho * Wo, k * k * C)


def _pool_matrix(ho, wo):
    """Constant (Hp*Wp, Ho*Wo) matrix such that P @ x == 2x2 average pool."""
    hp, wp = ho // 2, wo // 2
    P = np.zeros((hp * wp, ho * wo), np.float32)
    for ph in range(hp):
        for pw in range(wp):
            r = ph * wp + pw
            for dh in (0, 1):
                for dw in (0, 1):
                    P[r, (2 * ph + dh) * wo + (2 * pw + dw)] = 0.25
    return jnp.asarray(P, dtype=jnp.bfloat16)     # 0.25 is exact in bf16


def _select_matrices(hin, win, k):
    """0/1 matrices; S[d] @ featmap gathers the rows for kernel offset d."""
    ho, wo = hin - k + 1, win - k + 1
    S = np.zeros((k * k, ho * wo, hin * win), np.float32)
    for di in range(k):
        for dj in range(k):
            d = di * k + dj
            for i in range(ho):
                for j in range(wo):
                    S[d, i * wo + j, (i + di) * win + (j + dj)] = 1.0
    return jnp.asarray(S, dtype=jnp.bfloat16)     # 0/1 exact in bf16


def _pad_cols(w, n=LANE):
    return jnp.pad(w, ((0, 0), (0, n - w.shape[1])))


def _pad_rows(w, k):
    return jnp.pad(w, ((0, k - w.shape[0]), (0, 0)))


def _prep_bias(b, n=LANE):
    return jnp.pad(b.reshape(1, -1),
                   ((0, 0), (0, n - b.shape[0]))).astype(jnp.float32)


def _prep_conv_w(w):
    """(Cout, Cin, k, k) -> (k*k*Cin, 128) bf16, rows ordered (kh, kw, cin)."""
    cout, cin, k, _ = w.shape
    wm = w.transpose(2, 3, 1, 0).reshape(k * k * cin, cout)
    return _pad_cols(wm).astype(jnp.bfloat16)


def _prep_conv_w_per_offset(w):
    """(Cout, Cin, k, k) -> (k*k, 128, 128) bf16 per-offset slabs.

    Slab d = (di*k+dj) holds w[:, :, di, dj].T in its top-left (Cin, Cout)
    corner; the zero padding kills any junk living in the padded lanes of the
    gathered activations.
    """
    cout, cin, k, _ = w.shape
    slabs = []
    for di in range(k):
        for dj in range(k):
            wd = w[:, :, di, dj].T                       # (cin, cout)
            wd = jnp.pad(wd, ((0, LANE - cin), (0, LANE - cout)))
            slabs.append(wd)
    return jnp.stack(slabs).astype(jnp.bfloat16)         # (k*k, 128, 128)


def prepare_params(p):
    """One-time weight transpose/reorder/pad/bf16 cast (never per forward)."""
    # PyTorch flattens conv features as (c, h, w); our activations are
    # (h*w, c).  Permute fc1 rows once instead of transposing activations.
    fc1 = p["fc1_w"].reshape(16, 5, 5, 120).transpose(1, 2, 0, 3).reshape(400, 120)
    return {
        "c1_w": _prep_conv_w(p["c1_w"]), "c1_b": _prep_bias(p["c1_b"]),
        "c2_w": _prep_conv_w_per_offset(p["c2_w"]), "c2_b": _prep_bias(p["c2_b"]),
        "pool1": _pool_matrix(28, 28), "pool2": _pool_matrix(10, 10),
        "sel2": _select_matrices(14, 14, KSIZE),
        "fc1_w": _pad_cols(fc1).astype(jnp.bfloat16),
        "fc1_b": _prep_bias(p["fc1_b"]),
        # fc2/fc3 inputs live in 128 lanes (extra lanes hold sigmoid(0));
        # zero-pad the extra contraction rows so they contribute nothing.
        "fc2_w": _pad_cols(_pad_rows(p["fc2_w"], LANE)).astype(jnp.bfloat16),
        "fc2_b": _prep_bias(p["fc2_b"]),
        "fc3_w": _pad_cols(_pad_rows(p["fc3_w"], LANE)).astype(jnp.bfloat16),
        "fc3_b": _prep_bias(p["fc3_b"]),
    }


# ----------------------------------------------------------------------------
# Model
# ----------------------------------------------------------------------------
def init_params(key):
    ks = jax.random.split(key, 10)
    s = 0.1
    return {
        "c1_w": jax.random.normal(ks[0], (6, 1, 5, 5), jnp.float32) * s,
        "c1_b": jax.random.normal(ks[1], (6,), jnp.float32) * s,
        "c2_w": jax.random.normal(ks[2], (16, 6, 5, 5), jnp.float32) * s,
        "c2_b": jax.random.normal(ks[3], (16,), jnp.float32) * s,
        "fc1_w": jax.random.normal(ks[4], (400, 120), jnp.float32) * s,
        "fc1_b": jax.random.normal(ks[5], (120,), jnp.float32) * s,
        "fc2_w": jax.random.normal(ks[6], (120, 84), jnp.float32) * s,
        "fc2_b": jax.random.normal(ks[7], (84,), jnp.float32) * s,
        "fc3_w": jax.random.normal(ks[8], (84, 10), jnp.float32) * s,
        "fc3_b": jax.random.normal(ks[9], (10,), jnp.float32) * s,
    }


def cnn_net_forward(prep, x):
    """x: (B, 1, 28, 28) f32 NCHW (like PyTorch) -> (B, 10) f32 logits."""
    B = x.shape[0]
    # conv1 patches (k=5, padding=2), built once in XLA (single small fusion).
    xp = jnp.pad(x, ((0, 0), (0, 0), (2, 2), (2, 2)))
    xp = xp.transpose(0, 2, 3, 1).astype(jnp.bfloat16)              # NHWC bf16
    col1 = _im2col_nhwc(xp, KSIZE)                                  # (B,784,25)
    # Entire conv tower fused in one kernel -> (B, 25, 16) spatial-major.
    h = conv_tower(col1, prep["c1_w"], prep["c1_b"], prep["pool1"],
                   prep["sel2"], prep["c2_w"], prep["c2_b"], prep["pool2"],
                   cout2=16)
    # Flatten (channels-last; fc1 rows were pre-permuted to match) + fused MLP.
    h = h.reshape(B, 400)
    return mlp_sigmoid(h, prep["fc1_w"], prep["fc1_b"],
                       prep["fc2_w"], prep["fc2_b"],
                       prep["fc3_w"], prep["fc3_b"], out_features=10)


if __name__ == "__main__":
    key = jax.random.PRNGKey(0)
    kp, kx = jax.random.split(key)
    params = init_params(kp)
    prep = prepare_params(params)        # one-time layout prep, outside jit
    # LeNet-5 needs 28x28 inputs so the flatten yields 16*5*5 = 400 features.
    x = jax.random.normal(kx, (2, 1, 28, 28), jnp.float32)

    out = jax.jit(cnn_net_forward)(prep, x)
    out = jax.block_until_ready(out)
    assert out.shape == (2, 10) and out.dtype == jnp.float32
    print("KERNEL_OK")
</pallas_src>

<mosaic_0001>
module attributes {stable_mosaic.version = 11 : i64} {
  func.func @_conv_tower_kernel(%arg0: i32, %arg1: memref<1x784x25xbf16, #tpu.memory_space<vmem>>, %arg2: memref<25x128xbf16, #tpu.memory_space<vmem>>, %arg3: memref<1x128xf32, #tpu.memory_space<vmem>>, %arg4: memref<196x784xbf16, #tpu.memory_space<vmem>>, %arg5: memref<25x100x196xbf16, #tpu.memory_space<vmem>>, %arg6: memref<25x128x128xbf16, #tpu.memory_space<vmem>>, %arg7: memref<1x128xf32, #tpu.memory_space<vmem>>, %arg8: memref<25x100xbf16, #tpu.memory_space<vmem>>, %arg9: memref<1x25x16xbf16, #tpu.memory_space<vmem>>) attributes {dimension_semantics = [#tpu.dimension_semantics<parallel>], iteration_bounds = array<i64: 2>, scalar_prefetch = 0 : i64, scratch_operands = 0 : i64, tpu.core_type = #tpu.core_type<tc>, window_params = [{transform_indices = @transform_0, window_bounds = array<i64: 1, 784, 25>}, {pipeline_mode = #tpu.pipeline_mode<synchronous>, transform_indices = @transform_1, window_bounds = array<i64: 25, 128>}, {pipeline_mode = #tpu.pipeline_mode<synchronous>, transform_indices = @transform_2, window_bounds = array<i64: 1, 128>}, {pipeline_mode = #tpu.pipeline_mode<synchronous>, transform_indices = @transform_3, window_bounds = array<i64: 196, 784>}, {pipeline_mode = #tpu.pipeline_mode<synchronous>, transform_indices = @transform_4, window_bounds = array<i64: 25, 100, 196>}, {pipeline_mode = #tpu.pipeline_mode<synchronous>, transform_indices = @transform_5, window_bounds = array<i64: 25, 128, 128>}, {pipeline_mode = #tpu.pipeline_mode<synchronous>, transform_indices = @transform_6, window_bounds = array<i64: 1, 128>}, {pipeline_mode = #tpu.pipeline_mode<synchronous>, transform_indices = @transform_7, window_bounds = array<i64: 25, 100>}, {transform_indices = @transform_8, window_bounds = array<i64: 1, 25, 16>}]} {
    %c0 = arith.constant 0 : index
    %c0_0 = arith.constant 0 : index
    %c0_1 = arith.constant 0 : index
    %0 = vector.load %arg1[%c0, %c0_0, %c0_1] : memref<1x784x25xbf16, #tpu.memory_space<vmem>>, vector<1x784x25xbf16>
    %1 = vector.shape_cast %0 : vector<1x784x25xbf16> to vector<784x25xbf16>
    %c0_2 = arith.constant 0 : index
    %c0_3 = arith.constant 0 : index
    %2 = vector.load %arg2[%c0_2, %c0_3] : memref<25x128xbf16, #tpu.memory_space<vmem>>, vector<25x128xbf16>
    %cst = arith.constant dense<0.000000e+00> : vector<784x128xf32>
    %3 = tpu.matmul %1, %2, %cst {dimension_numbers = #tpu.dot_dimension_numbers<[1], [0], [0], [1], [0, 0, 1, 1], [], []>} : vector<784x25xbf16>, vector<25x128xbf16>, vector<784x128xf32> -> vector<784x128xf32>
    %c0_4 = arith.constant 0 : index
    %c0_5 = arith.constant 0 : index
    %4 = vector.load %arg3[%c0_4, %c0_5] : memref<1x128xf32, #tpu.memory_space<vmem>>, vector<1x128xf32>
    %5 = vector.broadcast %4 : vector<1x128xf32> to vector<784x128xf32>
    %6 = arith.addf %3, %5 : vector<784x128xf32>
    %cst_6 = arith.constant 0.000000e+00 : f32
    %7 = vector.broadcast %cst_6 : f32 to vector<784x128xf32>
    %8 = arith.subf %7, %6 : vector<784x128xf32>
    %9 = math.exp %8 : vector<784x128xf32>
    %cst_7 = arith.constant 1.000000e+00 : f32
    %10 = vector.broadcast %cst_7 : f32 to vector<784x128xf32>
    %11 = arith.addf %10, %9 : vector<784x128xf32>
    %12 = tpu.reciprocal %11 {approx = true} : vector<784x128xf32> -> vector<784x128xf32>
    %c0_8 = arith.constant 0 : index
    %c0_9 = arith.constant 0 : index
    %13 = vector.load %arg4[%c0_8, %c0_9] : memref<196x784xbf16, #tpu.memory_space<vmem>>, vector<196x784xbf16>
    %14 = arith.truncf %12 : vector<784x128xf32> to vector<784x128xbf16>
    %cst_10 = arith.constant dense<0.000000e+00> : vector<196x128xf32>
    %15 = tpu.matmul %13, %14, %cst_10 {dimension_numbers = #tpu.dot_dimension_numbers<[1], [0], [0], [1], [0, 0, 1, 1], [], []>} : vector<196x784xbf16>, vector<784x128xbf16>, vector<196x128xf32> -> vector<196x128xf32>
    %16 = arith.truncf %15 : vector<196x128xf32> to vector<196x128xbf16>
    %cst_11 = arith.constant 0.000000e+00 : f32
    %17 = vector.broadcast %cst_11 : f32 to vector<100x128xf32>
    %c0_12 = arith.constant 0 : index
    %c0_13 = arith.constant 0 : index
    %c0_14 = arith.constant 0 : index
    %18 = vector.load %arg5[%c0_12, %c0_13, %c0_14] : memref<25x100x196xbf16, #tpu.memory_space<vmem>>, vector<1x100x196xbf16>
    %19 = vector.shape_cast %18 : vector<1x100x196xbf16> to vector<100x196xbf16>
    %cst_15 = arith.constant dense<0.000000e+00> : vector<100x128xf32>
    %20 = tpu.matmul %19, %16, %cst_15 {dimension_numbers = #tpu.dot_dimension_numbers<[1], [0], [0], [1], [0, 0, 1, 1], [], []>} : vector<100x196xbf16>, vector<196x128xbf16>, vector<100x128xf32> -> vector<100x128xf32>
    %21 = arith.truncf %20 : vector<100x128xf32> to vector<100x128xbf16>
    %c0_16 = arith.constant 0 : index
    %c0_17 = arith.constant 0 : index
    %c0_18 = arith.constant 0 : index
    %22 = vector.load %arg6[%c0_16, %c0_17, %c0_18] : memref<25x128x128xbf16, #tpu.memory_space<vmem>>, vector<1x128x128xbf16>
    %23 = vector.shape_cast %22 : vector<1x128x128xbf16> to vector<128x128xbf16>
    %cst_19 = arith.constant dense<0.000000e+00> : vector<100x128xf32>
    %24 = tpu.matmul %21, %23, %cst_19 {dimension_numbers = #tpu.dot_dimension_numbers<[1], [0], [0], [1], [0, 0, 1, 1], [], []>} : vector<100x128xbf16>, vector<128x128xbf16>, vector<100x128xf32> -> vector<100x128xf32>
    %25 = arith.addf %17, %24 : vector<100x128xf32>
    %c1 = arith.constant 1 : index
    %c0_20 = arith.constant 0 : index
    %c0_21 = arith.constant 0 : index
    %26 = vector.load %arg5[%c1, %c0_20, %c0_21] : memref<25x100x196xbf16, #tpu.memory_space<vmem>>, vector<1x100x196xbf16>
    %27 = vector.shape_cast %26 : vector<1x100x196xbf16> to vector<100x196xbf16>
    %cst_22 = arith.constant dense<0.000000e+00> : vector<100x128xf32>
    %28 = tpu.matmul %27, %16, %cst_22 {dimension_numbers = #tpu.dot_dimension_numbers<[1], [0], [0], [1], [0, 0, 1, 1], [], []>} : vector<100x196xbf16>, vector<196x128xbf16>, vector<100x128xf32> -> vector<100x128xf32>
    %29 = arith.truncf %28 : vector<100x128xf32> to vector<100x128xbf16>
    %c1_23 = arith.constant 1 : index
    %c0_24 = arith.constant 0 : index
    %c0_25 = arith.constant 0 : index
    %30 = vector.load %arg6[%c1_23, %c0_24, %c0_25] : memref<25x128x128xbf16, #tpu.memory_space<vmem>>, vector<1x128x128xbf16>
    %31 = vector.shape_cast %30 : vector<1x128x128xbf16> to vector<128x128xbf16>
    %cst_26 = arith.constant dense<0.000000e+00> : vector<100x128xf32>
    %32 = tpu.matmul %29, %31, %cst_26 {dimension_numbers = #tpu.dot_dimension_numbers<[1], [0], [0], [1], [0, 0, 1, 1], [], []>} : vector<100x128xbf16>, vector<128x128xbf16>, vector<100x128xf32> -> vector<100x128xf32>
    %33 = arith.addf %25, %32 : vector<100x128xf32>
    %c2 = arith.constant 2 : index
    %c0_27 = arith.constant 0 : index
    %c0_28 = arith.constant 0 : index
    %34 = vector.load %arg5[%c2, %c0_27, %c0_28] : memref<25x100x196xbf16, #tpu.memory_space<vmem>>, vector<1x100x196xbf16>
    %35 = vector.shape_cast %34 : vector<1x100x196xbf16> to vector<100x196xbf16>
    %cst_29 = arith.constant dense<0.000000e+00> : vector<100x128xf32>
    %36 = tpu.matmul %35, %16, %cst_29 {dimension_numbers = #tpu.dot_dimension_numbers<[1], [0], [0], [1], [0, 0, 1, 1], [], []>} : vector<100x196xbf16>, vector<196x128xbf16>, vector<100x128xf32> -> vector<100x128xf32>
    %37 = arith.truncf %36 : vector<100x128xf32> to vector<100x128xbf16>
    %c2_30 = arith.constant 2 : index
    %c0_31 = arith.constant 0 : index
    %c0_32 = arith.constant 0 : index
    %38 = vector.load %arg6[%c2_30, %c0_31, %c0_32] : memref<25x128x128xbf16, #tpu.memory_space<vmem>>, vector<1x128x128xbf16>
    %39 = vector.shape_cast %38 : vector<1x128x128xbf16> to vector<128x128xbf16>
    %cst_33 = arith.constant dense<0.000000e+00> : vector<100x128xf32>
    %40 = tpu.matmul %37, %39, %cst_33 {dimension_numbers = #tpu.dot_dimension_numbers<[1], [0], [0], [1], [0, 0, 1, 1], [], []>} : vector<100x128xbf16>, vector<128x128xbf16>, vector<100x128xf32> -> vector<100x128xf32>
    %41 = arith.addf %33, %40 : vector<100x128xf32>
    %c3 = arith.constant 3 : index
    %c0_34 = arith.constant 0 : index
    %c0_35 = arith.constant 0 : index
    %42 = vector.load %arg5[%c3, %c0_34, %c0_35] : memref<25x100x196xbf16, #tpu.memory_space<vmem>>, vector<1x100x196xbf16>
    %43 = vector.shape_cast %42 : vector<1x100x196xbf16> to vector<100x196xbf16>
    %cst_36 = arith.constant dense<0.000000e+00> : vector<100x128xf32>
    %44 = tpu.matmul %43, %16, %cst_36 {dimension_numbers = #tpu.dot_dimension_numbers<[1], [0], [0], [1], [0, 0, 1, 1], [], []>} : vector<100x196xbf16>, vector<196x128xbf16>, vector<100x128xf32> -> vector<100x128xf32>
    %45 = arith.truncf %44 : vector<100x128xf32> to vector<100x128xbf16>
    %c3_37 = arith.constant 3 : index
    %c0_38 = arith.constant 0 : index
    %c0_39 = arith.constant 0 : index
    %46 = vector.load %arg6[%c3_37, %c0_38, %c0_39] : memref<25x128x128xbf16, #tpu.memory_space<vmem>>, vector<1x128x128xbf16>
    %47 = vector.shape_cast %46 : vector<1x128x128xbf16> to vector<128x128xbf16>
    %cst_40 = arith.constant dense<0.000000e+00> : vector<100x128xf32>
    %48 = tpu.matmul %45, %47, %cst_40 {dimension_numbers = #tpu.dot_dimension_numbers<[1], [0], [0], [1], [0, 0, 1, 1], [], []>} : vector<100x128xbf16>, vector<128x128xbf16>, vector<100x128xf32> -> vector<100x128xf32>
    %49 = arith.addf %41, %48 : vector<100x128xf32>
    %c4 = arith.constant 4 : index
    %c0_41 = arith.constant 0 : index
    %c0_42 = arith.constant 0 : index
    %50 = vector.load %arg5[%c4, %c0_41, %c0_42] : memref<25x100x196xbf16, #tpu.memory_space<vmem>>, vector<1x100x196xbf16>
    %51 = vector.shape_cast %50 : vector<1x100x196xbf16> to vector<100x196xbf16>
    %cst_43 = arith.constant dense<0.000000e+00> : vector<100x128xf32>
    %52 = tpu.matmul %51, %16, %cst_43 {dimension_numbers = #tpu.dot_dimension_numbers<[1], [0], [0], [1], [0, 0, 1, 1], [], []>} : vector<100x196xbf16>, vector<196x128xbf16>, vector<100x128xf32> -> vector<100x128xf32>
    %53 = arith.truncf %52 : vector<100x128xf32> to vector<100x128xbf16>
    %c4_44 = arith.constant 4 : index
    %c0_45 = arith.constant 0 : index
    %c0_46 = arith.constant 0 : index
    %54 = vector.load %arg6[%c4_44, %c0_45, %c0_46] : memref<25x128x128xbf16, #tpu.memory_space<vmem>>, vector<1x128x128xbf16>
    %55 = vector.shape_cast %54 : vector<1x128x128xbf16> to vector<128x128xbf16>
    %cst_47 = arith.constant dense<0.000000e+00> : vector<100x128xf32>
    %56 = tpu.matmul %53, %55, %cst_47 {dimension_numbers = #tpu.dot_dimension_numbers<[1], [0], [0], [1], [0, 0, 1, 1], [], []>} : vector<100x128xbf16>, vector<128x128xbf16>, vector<100x128xf32> -> vector<100x128xf32>
    %57 = arith.addf %49, %56 : vector<100x128xf32>
    %c5 = arith.constant 5 : index
    %c0_48 = arith.constant 0 : index
    %c0_49 = arith.constant 0 : index
    %58 = vector.load %arg5[%c5, %c0_48, %c0_49] : memref<25x100x196xbf16, #tpu.memory_space<vmem>>, vector<1x100x196xbf16>
    %59 = vector.shape_cast %58 : vector<1x100x196xbf16> to vector<100x196xbf16>
    %cst_50 = arith.constant dense<0.000000e+00> : vector<100x128xf32>
    %60 = tpu.matmul %59, %16, %cst_50 {dimension_numbers = #tpu.dot_dimension_numbers<[1], [0], [0], [1], [0, 0, 1, 1], [], []>} : vector<100x196xbf16>, vector<196x128xbf16>, vector<100x128xf32> -> vector<100x128xf32>
    %61 = arith.truncf %60 : vector<100x128xf32> to vector<100x128xbf16>
    %c5_51 = arith.constant 5 : index
    %c0_52 = arith.constant 0 : index
    %c0_53 = arith.constant 0 : index
    %62 = vector.load %arg6[%c5_51, %c0_52, %c0_53] : memref<25x128x128xbf16, #tpu.memory_space<vmem>>, vector<1x128x128xbf16>
    %63 = vector.shape_cast %62 : vector<1x128x128xbf16> to vector<128x128xbf16>
    %cst_54 = arith.constant dense<0.000000e+00> : vector<100x128xf32>
    %64 = tpu.matmul %61, %63, %cst_54 {dimension_numbers = #tpu.dot_dimension_numbers<[1], [0], [0], [1], [0, 0, 1, 1], [], []>} : vector<100x128xbf16>, vector<128x128xbf16>, vector<100x128xf32> -> vector<100x128xf32>
    %65 = arith.addf %57, %64 : vector<100x128xf32>
    %c6 = arith.constant 6 : index
    %c0_55 = arith.constant 0 : index
    %c0_56 = arith.constant 0 : index
    %66 = vector.load %arg5[%c6, %c0_55, %c0_56] : memref<25x100x196xbf16, #tpu.memory_space<vmem>>, vector<1x100x196xbf16>
    %67 = vector.shape_cast %66 : vector<1x100x196xbf16> to vector<100x196xbf16>
    %cst_57 = arith.constant dense<0.000000e+00> : vector<100x128xf32>
    %68 = tpu.matmul %67, %16, %cst_57 {dimension_numbers = #tpu.dot_dimension_numbers<[1], [0], [0], [1], [0, 0, 1, 1], [], []>} : vector<100x196xbf16>, vector<196x128xbf16>, vector<100x128xf32> -> vector<100x128xf32>
    %69 = arith.truncf %68 : vector<100x128xf32> to vector<100x128xbf16>
    %c6_58 = arith.constant 6 : index
    %c0_59 = arith.constant 0 : index
    %c0_60 = arith.constant 0 : index
    %70 = vector.load %arg6[%c6_58, %c0_59, %c0_60] : memref<25x128x128xbf16, #tpu.memory_space<vmem>>, vector<1x128x128xbf16>
    %71 = vector.shape_cast %70 : vector<1x128x128xbf16> to vector<128x128xbf16>
    %cst_61 = arith.constant dense<0.000000e+00> : vector<100x128xf32>
    %72 = tpu.matmul %69, %71, %cst_61 {dimension_numbers = #tpu.dot_dimension_numbers<[1], [0], [0], [1], [0, 0, 1, 1], [], []>} : vector<100x128xbf16>, vector<128x128xbf16>, vector<100x128xf32> -> vector<100x128xf32>
    %73 = arith.addf %65, %72 : vector<100x128xf32>
    %c7 = arith.constant 7 : index
    %c0_62 = arith.constant 0 : index
    %c0_63 = arith.constant 0 : index
    %74 = vector.load %arg5[%c7, %c0_62, %c0_63] : memref<25x100x196xbf16, #tpu.memory_space<vmem>>, vector<1x100x196xbf16>
    %75 = vector.shape_cast %74 : vector<1x100x196xbf16> to vector<100x196xbf16>
    %cst_64 = arith.constant dense<0.000000e+00> : vector<100x128xf32>
    %76 = tpu.matmul %75, %16, %cst_64 {dimension_numbers = #tpu.dot_dimension_numbers<[1], [0], [0], [1], [0, 0, 1, 1], [], []>} : vector<100x196xbf16>, vector<196x128xbf16>, vector<100x128xf32> -> vector<100x128xf32>
    %77 = arith.truncf %76 : vector<100x128xf32> to vector<100x128xbf16>
    %c7_65 = arith.constant 7 : index
    %c0_66 = arith.constant 0 : index
    %c0_67 = arith.constant 0 : index
    %78 = vector.load %arg6[%c7_65, %c0_66, %c0_67] : memref<25x128x128xbf16, #tpu.memory_space<vmem>>, vector<1x128x128xbf16>
    %79 = vector.shape_cast %78 : vector<1x128x128xbf16> to vector<128x128xbf16>
    %cst_68 = arith.constant dense<0.000000e+00> : vector<100x128xf32>
    %80 = tpu.matmul %77, %79, %cst_68 {dimension_numbers = #tpu.dot_dimension_numbers<[1], [0], [0], [1], [0, 0, 1, 1], [], []>} : vector<100x128xbf16>, vector<128x128xbf16>, vector<100x128xf32> -> vector<100x128xf32>
    %81 = arith.addf %73, %80 : vector<100x128xf32>
    %c8 = arith.constant 8 : index
    %c0_69 = arith.constant 0 : index
    %c0_70 = arith.constant 0 : index
    %82 = vector.load %arg5[%c8, %c0_69, %c0_70] : memref<25x100x196xbf16, #tpu.memory_space<vmem>>, vector<1x100x196xbf16>
    %83 = vector.shape_cast %82 : vector<1x100x196xbf16> to vector<100x196xbf16>
    %cst_71 = arith.constant dense<0.000000e+00> : vector<100x128xf32>
    %84 = tpu.matmul %83, %16, %cst_71 {dimension_numbers = #tpu.dot_dimension_numbers<[1], [0], [0], [1], [0, 0, 1, 1], [], []>} : vector<100x196xbf16>, vector<196x128xbf16>, vector<100x128xf32> -> vector<100x128xf32>
    %85 = arith.truncf %84 : vector<100x128xf32> to vector<100x128xbf16>
    %c8_72 = arith.constant 8 : index
    %c0_73 = arith.constant 0 : index
    %c0_74 = arith.constant 0 : index
    %86 = vector.load %arg6[%c8_72, %c0_73, %c0_74] : memref<25x128x128xbf16, #tpu.memory_space<vmem>>, vector<1x128x128xbf16>
    %87 = vector.shape_cast %86 : vector<1x128x128xbf16> to vector<128x128xbf16>
    %cst_75 = arith.constant dense<0.000000e+00> : vector<100x128xf32>
    %88 = tpu.matmul %85, %87, %cst_75 {dimension_numbers = #tpu.dot_dimension_numbers<[1], [0], [0], [1], [0, 0, 1, 1], [], []>} : vector<100x128xbf16>, vector<128x128xbf16>, vector<100x128xf32> -> vector<100x128xf32>
    %89 = arith.addf %81, %88 : vector<100x128xf32>
    %c9 = arith.constant 9 : index
    %c0_76 = arith.constant 0 : index
    %c0_77 = arith.constant 0 : index
    %90 = vector.load %arg5[%c9, %c0_76, %c0_77] : memref<25x100x196xbf16, #tpu.memory_space<vmem>>, vector<1x100x196xbf16>
    %91 = vector.shape_cast %90 : vector<1x100x196xbf16> to vector<100x196xbf16>
    %cst_78 = arith.constant dense<0.000000e+00> : vector<100x128xf32>
    %92 = tpu.matmul %91, %16, %cst_78 {dimension_numbers = #tpu.dot_dimension_numbers<[1], [0], [0], [1], [0, 0, 1, 1], [], []>} : vector<100x196xbf16>, vector<196x128xbf16>, vector<100x128xf32> -> vector<100x128xf32>
    %93 = arith.truncf %92 : vector<100x128xf32> to vector<100x128xbf16>
    %c9_79 = arith.constant 9 : index
    %c0_80 = arith.constant 0 : index
    %c0_81 = arith.constant 0 : index
    %94 = vector.load %arg6[%c9_79, %c0_80, %c0_81] : memref<25x128x128xbf16, #tpu.memory_space<vmem>>, vector<1x128x128xbf16>
    %95 = vector.shape_cast %94 : vector<1x128x128xbf16> to vector<128x128xbf16>
    %cst_82 = arith.constant dense<0.000000e+00> : vector<100x128xf32>
    %96 = tpu.matmul %93, %95, %cst_82 {dimension_numbers = #tpu.dot_dimension_numbers<[1], [0], [0], [1], [0, 0, 1, 1], [], []>} : vector<100x128xbf16>, vector<128x128xbf16>, vector<100x128xf32> -> vector<100x128xf32>
    %97 = arith.addf %89, %96 : vector<100x128xf32>
    %c10 = arith.constant 10 : index
    %c0_83 = arith.constant 0 : index
    %c0_84 = arith.constant 0 : index
    %98 = vector.load %arg5[%c10, %c0_83, %c0_84] : memref<25x100x196xbf16, #tpu.memory_space<vmem>>, vector<1x100x196xbf16>
    %99 = vector.shape_cast %98 : vector<1x100x196xbf16> to vector<100x196xbf16>
    %cst_85 = arith.constant dense<0.000000e+00> : vector<100x128xf32>
    %100 = tpu.matmul %99, %16, %cst_85 {dimension_numbers = #tpu.dot_dimension_numbers<[1], [0], [0], [1], [0, 0, 1, 1], [], []>} : vector<100x196xbf16>, vector<196x128xbf16>, vector<100x128xf32> -> vector<100x128xf32>
    %101 = arith.truncf %100 : vector<100x128xf32> to vector<100x128xbf16>
    %c10_86 = arith.constant 10 : index
    %c0_87 = arith.constant 0 : index
    %c0_88 = arith.constant 0 : index
    %102 = vector.load %arg6[%c10_86, %c0_87, %c0_88] : memref<25x128x128xbf16, #tpu.memory_space<vmem>>, vector<1x128x128xbf16>
    %103 = vector.shape_cast %102 : vector<1x128x128xbf16> to vector<128x128xbf16>
    %cst_89 = arith.constant dense<0.000000e+00> : vector<100x128xf32>
    %104 = tpu.matmul %101, %103, %cst_89 {dimension_numbers = #tpu.dot_dimension_numbers<[1], [0], [0], [1], [0, 0, 1, 1], [], []>} : vector<100x128xbf16>, vector<128x128xbf16>, vector<100x128xf32> -> vector<100x128xf32>
    %105 = arith.addf %97, %104 : vector<100x128xf32>
    %c11 = arith.constant 11 : index
    %c0_90 = arith.constant 0 : index
    %c0_91 = arith.constant 0 : index
    %106 = vector.load %arg5[%c11, %c0_90, %c0_91] : memref<25x100x196xbf16, #tpu.memory_space<vmem>>, vector<1x100x196xbf16>
    %107 = vector.shape_cast %106 : vector<1x100x196xbf16> to vector<100x196xbf16>
    %cst_92 = arith.constant dense<0.000000e+00> : vector<100x128xf32>
    %108 = tpu.matmul %107, %16, %cst_92 {dimension_numbers = #tpu.dot_dimension_numbers<[1], [0], [0], [1], [0, 0, 1, 1], [], []>} : vector<100x196xbf16>, vector<196x128xbf16>, vector<100x128xf32> -> vector<100x128xf32>
    %109 = arith.truncf %108 : vector<100x128xf32> to vector<100x128xbf16>
    %c11_93 = arith.constant 11 : index
    %c0_94 = arith.constant 0 : index
    %c0_95 = arith.constant 0 : index
    %110 = vector.load %arg6[%c11_93, %c0_94, %c0_95] : memref<25x128x128xbf16, #tpu.memory_space<vmem>>, vector<1x128x128xbf16>
    %111 = vector.shape_cast %110 : vector<1x128x128xbf16> to vector<128x128xbf16>
    %cst_96 = arith.constant dense<0.000000e+00> : vector<100x128xf32>
    %112 = tpu.matmul %109, %111, %cst_96 {dimension_numbers = #tpu.dot_dimension_numbers<[1], [0], [0], [1], [0, 0, 1, 1], [], []>} : vector<100x128xbf16>, vector<128x128xbf16>, vector<100x128xf32> -> vector<100x128xf32>
    %113 = arith.addf %105, %112 : vector<100x128xf32>
    %c12 = arith.constant 12 : index
    %c0_97 = arith.constant 0 : index
    %c0_98 = arith.constant 0 : index
    %114 = vector.load %arg5[%c12, %c0_97, %c0_98] : memref<25x100x196xbf16, #tpu.memory_space<vmem>>, vector<1x100x196xbf16>
    %115 = vector.shape_cast %114 : vector<1x100x196xbf16> to vector<100x196xbf16>
    %cst_99 = arith.constant dense<0.000000e+00> : vector<100x128xf32>
    %116 = tpu.matmul %115, %16, %cst_99 {dimension_numbers = #tpu.dot_dimension_numbers<[1], [0], [0], [1], [0, 0, 1, 1], [], []>} : vector<100x196xbf16>, vector<196x128xbf16>, vector<100x128xf32> -> vector<100x128xf32>
    %117 = arith.truncf %116 : vector<100x128xf32> to vector<100x128xbf16>
    %c12_100 = arith.constant 12 : index
    %c0_101 = arith.constant 0 : index
    %c0_102 = arith.constant 0 : index
    %118 = vector.load %arg6[%c12_100, %c0_101, %c0_102] : memref<25x128x128xbf16, #tpu.memory_space<vmem>>, vector<1x128x128xbf16>
    %119 = vector.shape_cast %118 : vector<1x128x128xbf16> to vector<128x128xbf16>
    %cst_103 = arith.constant dense<0.000000e+00> : vector<100x128xf32>
    %120 = tpu.matmul %117, %119, %cst_103 {dimension_numbers = #tpu.dot_dimension_numbers<[1], [0], [0], [1], [0, 0, 1, 1], [], []>} : vector<100x128xbf16>, vector<128x128xbf16>, vector<100x128xf32> -> vector<100x128xf32>
    %121 = arith.addf %113, %120 : vector<100x128xf32>
    %c13 = arith.constant 13 : index
    %c0_104 = arith.constant 0 : index
    %c0_105 = arith.constant 0 : index
    %122 = vector.load %arg5[%c13, %c0_104, %c0_105] : memref<25x100x196xbf16, #tpu.memory_space<vmem>>, vector<1x100x196xbf16>
    %123 = vector.shape_cast %122 : vector<1x100x196xbf16> to vector<100x196xbf16>
    %cst_106 = arith.constant dense<0.000000e+00> : vector<100x128xf32>
    %124 = tpu.matmul %123, %16, %cst_106 {dimension_numbers = #tpu.dot_dimension_numbers<[1], [0], [0], [1], [0, 0, 1, 1], [], []>} : vector<100x196xbf16>, vector<196x128xbf16>, vector<100x128xf32> -> vector<100x128xf32>
    %125 = arith.truncf %124 : vector<100x128xf32> to vector<100x128xbf16>
    %c13_107 = arith.constant 13 : index
    %c0_108 = arith.constant 0 : index
    %c0_109 = arith.constant 0 : index
    %126 = vector.load %arg6[%c13_107, %c0_108, %c0_109] : memref<25x128x128xbf16, #tpu.memory_space<vmem>>, vector<1x128x128xbf16>
    %127 = vector.shape_cast %126 : vector<1x128x128xbf16> to vector<128x128xbf16>
    %cst_110 = arith.constant dense<0.000000e+00> : vector<100x128xf32>
    %128 = tpu.matmul %125, %127, %cst_110 {dimension_numbers = #tpu.dot_dimension_numbers<[1], [0], [0], [1], [0, 0, 1, 1], [], []>} : vector<100x128xbf16>, vector<128x128xbf16>, vector<100x128xf32> -> vector<100x128xf32>
    %129 = arith.addf %121, %128 : vector<100x128xf32>
    %c14 = arith.constant 14 : index
    %c0_111 = arith.constant 0 : index
    %c0_112 = arith.constant 0 : index
    %130 = vector.load %arg5[%c14, %c0_111, %c0_112] : memref<25x100x196xbf16, #tpu.memory_space<vmem>>, vector<1x100x196xbf16>
    %131 = vector.shape_cast %130 : vector<1x100x196xbf16> to vector<100x196xbf16>
    %cst_113 = arith.constant dense<0.000000e+00> : vector<100x128xf32>
    %132 = tpu.matmul %131, %16, %cst_113 {dimension_numbers = #tpu.dot_dimension_numbers<[1], [0], [0], [1], [0, 0, 1, 1], [], []>} : vector<100x196xbf16>, vector<196x128xbf16>, vector<100x128xf32> -> vector<100x128xf32>
    %133 = arith.truncf %132 : vector<100x128xf32> to vector<100x128xbf16>
    %c14_114 = arith.constant 14 : index
    %c0_115 = arith.constant 0 : index
    %c0_116 = arith.constant 0 : index
    %134 = vector.load %arg6[%c14_114, %c0_115, %c0_116] : memref<25x128x128xbf16, #tpu.memory_space<vmem>>, vector<1x128x128xbf16>
    %135 = vector.shape_cast %134 : vector<1x128x128xbf16> to vector<128x128xbf16>
    %cst_117 = arith.constant dense<0.000000e+00> : vector<100x128xf32>
    %136 = tpu.matmul %133, %135, %cst_117 {dimension_numbers = #tpu.dot_dimension_numbers<[1], [0], [0], [1], [0, 0, 1, 1], [], []>} : vector<100x128xbf16>, vector<128x128xbf16>, vector<100x128xf32> -> vector<100x128xf32>
    %137 = arith.addf %129, %136 : vector<100x128xf32>
    %c15 = arith.constant 15 : index
    %c0_118 = arith.constant 0 : index
    %c0_119 = arith.constant 0 : index
    %138 = vector.load %arg5[%c15, %c0_118, %c0_119] : memref<25x100x196xbf16, #tpu.memory_space<vmem>>, vector<1x100x196xbf16>
    %139 = vector.shape_cast %138 : vector<1x100x196xbf16> to vector<100x196xbf16>
    %cst_120 = arith.constant dense<0.000000e+00> : vector<100x128xf32>
    %140 = tpu.matmul %139, %16, %cst_120 {dimension_numbers = #tpu.dot_dimension_numbers<[1], [0], [0], [1], [0, 0, 1, 1], [], []>} : vector<100x196xbf16>, vector<196x128xbf16>, vector<100x128xf32> -> vector<100x128xf32>
    %141 = arith.truncf %140 : vector<100x128xf32> to vector<100x128xbf16>
    %c15_121 = arith.constant 15 : index
    %c0_122 = arith.constant 0 : index
    %c0_123 = arith.constant 0 : index
    %142 = vector.load %arg6[%c15_121, %c0_122, %c0_123] : memref<25x128x128xbf16, #tpu.memory_space<vmem>>, vector<1x128x128xbf16>
    %143 = vector.shape_cast %142 : vector<1x128x128xbf16> to vector<128x128xbf16>
    %cst_124 = arith.constant dense<0.000000e+00> : vector<100x128xf32>
    %144 = tpu.matmul %141, %143, %cst_124 {dimension_numbers = #tpu.dot_dimension_numbers<[1], [0], [0], [1], [0, 0, 1, 1], [], []>} : vector<100x128xbf16>, vector<128x128xbf16>, vector<100x128xf32> -> vector<100x128xf32>
    %145 = arith.addf %137, %144 : vector<100x128xf32>
    %c16 = arith.constant 16 : index
    %c0_125 = arith.constant 0 : index
    %c0_126 = arith.constant 0 : index
    %146 = vector.load %arg5[%c16, %c0_125, %c0_126] : memref<25x100x196xbf16, #tpu.memory_space<vmem>>, vector<1x100x196xbf16>
    %147 = vector.shape_cast %146 : vector<1x100x196xbf16> to vector<100x196xbf16>
    %cst_127 = arith.constant dense<0.000000e+00> : vector<100x128xf32>
    %148 = tpu.matmul %147, %16, %cst_127 {dimension_numbers = #tpu.dot_dimension_numbers<[1], [0], [0], [1], [0, 0, 1, 1], [], []>} : vector<100x196xbf16>, vector<196x128xbf16>, vector<100x128xf32> -> vector<100x128xf32>
    %149 = arith.truncf %148 : vector<100x128xf32> to vector<100x128xbf16>
    %c16_128 = arith.constant 16 : index
    %c0_129 = arith.constant 0 : index
    %c0_130 = arith.constant 0 : index
    %150 = vector.load %arg6[%c16_128, %c0_129, %c0_130] : memref<25x128x128xbf16, #tpu.memory_space<vmem>>, vector<1x128x128xbf16>
    %151 = vector.shape_cast %150 : vector<1x128x128xbf16> to vector<128x128xbf16>
    %cst_131 = arith.constant dense<0.000000e+00> : vector<100x128xf32>
    %152 = tpu.matmul %149, %151, %cst_131 {dimension_numbers = #tpu.dot_dimension_numbers<[1], [0], [0], [1], [0, 0, 1, 1], [], []>} : vector<100x128xbf16>, vector<128x128xbf16>, vector<100x128xf32> -> vector<100x128xf32>
    %153 = arith.addf %145, %152 : vector<100x128xf32>
    %c17 = arith.constant 17 : index
    %c0_132 = arith.constant 0 : index
    %c0_133 = arith.constant 0 : index
    %154 = vector.load %arg5[%c17, %c0_132, %c0_133] : memref<25x100x196xbf16, #tpu.memory_space<vmem>>, vector<1x100x196xbf16>
    %155 = vector.shape_cast %154 : vector<1x100x196xbf16> to vector<100x196xbf16>
    %cst_134 = arith.constant dense<0.000000e+00> : vector<100x128xf32>
    %156 = tpu.matmul %155, %16, %cst_134 {dimension_numbers = #tpu.dot_dimension_numbers<[1], [0], [0], [1], [0, 0, 1, 1], [], []>} : vector<100x196xbf16>, vector<196x128xbf16>, vector<100x128xf32> -> vector<100x128xf32>
    %157 = arith.truncf %156 : vector<100x128xf32> to vector<100x128xbf16>
    %c17_135 = arith.constant 17 : index
    %c0_136 = arith.constant 0 : index
    %c0_137 = arith.constant 0 : index
    %158 = vector.load %arg6[%c17_135, %c0_136, %c0_137] : memref<25x128x128xbf16, #tpu.memory_space<vmem>>, vector<1x128x128xbf16>
    %159 = vector.shape_cast %158 : vector<1x128x128xbf16> to vector<128x128xbf16>
    %cst_138 = arith.constant dense<0.000000e+00> : vector<100x128xf32>
    %160 = tpu.matmul %157, %159, %cst_138 {dimension_numbers = #tpu.dot_dimension_numbers<[1], [0], [0], [1], [0, 0, 1, 1], [], []>} : vector<100x128xbf16>, vector<128x128xbf16>, vector<100x128xf32> -> vector<100x128xf32>
    %161 = arith.addf %153, %160 : vector<100x128xf32>
    %c18 = arith.constant 18 : index
    %c0_139 = arith.constant 0 : index
    %c0_140 = arith.constant 0 : index
    %162 = vector.load %arg5[%c18, %c0_139, %c0_140] : memref<25x100x196xbf16, #tpu.memory_space<vmem>>, vector<1x100x196xbf16>
    %163 = vector.shape_cast %162 : vector<1x100x196xbf16> to vector<100x196xbf16>
    %cst_141 = arith.constant dense<0.000000e+00> : vector<100x128xf32>
    %164 = tpu.matmul %163, %16, %cst_141 {dimension_numbers = #tpu.dot_dimension_numbers<[1], [0], [0], [1], [0, 0, 1, 1], [], []>} : vector<100x196xbf16>, vector<196x128xbf16>, vector<100x128xf32> -> vector<100x128xf32>
    %165 = arith.truncf %164 : vector<100x128xf32> to vector<100x128xbf16>
    %c18_142 = arith.constant 18 : index
    %c0_143 = arith.constant 0 : index
    %c0_144 = arith.constant 0 : index
    %166 = vector.load %arg6[%c18_142, %c0_143, %c0_144] : memref<25x128x128xbf16, #tpu.memory_space<vmem>>, vector<1x128x128xbf16>
    %167 = vector.shape_cast %166 : vector<1x128x128xbf16> to vector<128x128xbf16>
    %cst_145 = arith.constant dense<0.000000e+00> : vector<100x128xf32>
    %168 = tpu.matmul %165, %167, %cst_145 {dimension_numbers = #tpu.dot_dimension_numbers<[1], [0], [0], [1], [0, 0, 1, 1], [], []>} : vector<100x128xbf16>, vector<128x128xbf16>, vector<100x128xf32> -> vector<100x128xf32>
    %169 = arith.addf %161, %168 : vector<100x128xf32>
    %c19 = arith.constant 19 : index
    %c0_146 = arith.constant 0 : index
    %c0_147 = arith.constant 0 : index
    %170 = vector.load %arg5[%c19, %c0_146, %c0_147] : memref<25x100x196xbf16, #tpu.memory_space<vmem>>, vector<1x100x196xbf16>
    %171 = vector.shape_cast %170 : vector<1x100x196xbf16> to vector<100x196xbf16>
    %cst_148 = arith.constant dense<0.000000e+00> : vector<100x128xf32>
    %172 = tpu.matmul %171, %16, %cst_148 {dimension_numbers = #tpu.dot_dimension_numbers<[1], [0], [0], [1], [0, 0, 1, 1], [], []>} : vector<100x196xbf16>, vector<196x128xbf16>, vector<100x128xf32> -> vector<100x128xf32>
    %173 = arith.truncf %172 : vector<100x128xf32> to vector<100x128xbf16>
    %c19_149 = arith.constant 19 : index
    %c0_150 = arith.constant 0 : index
    %c0_151 = arith.constant 0 : index
    %174 = vector.load %arg6[%c19_149, %c0_150, %c0_151] : memref<25x128x128xbf16, #tpu.memory_space<vmem>>, vector<1x128x128xbf16>
    %175 = vector.shape_cast %174 : vector<1x128x128xbf16> to vector<128x128xbf16>
    %cst_152 = arith.constant dense<0.000000e+00> : vector<100x128xf32>
    %176 = tpu.matmul %173, %175, %cst_152 {dimension_numbers = #tpu.dot_dimension_numbers<[1], [0], [0], [1], [0, 0, 1, 1], [], []>} : vector<100x128xbf16>, vector<128x128xbf16>, vector<100x128xf32> -> vector<100x128xf32>
    %177 = arith.addf %169, %176 : vector<100x128xf32>
    %c20 = arith.constant 20 : index
    %c0_153 = arith.constant 0 : index
    %c0_154 = arith.constant 0 : index
    %178 = vector.load %arg5[%c20, %c0_153, %c0_154] : memref<25x100x196xbf16, #tpu.memory_space<vmem>>, vector<1x100x196xbf16>
    %179 = vector.shape_cast %178 : vector<1x100x196xbf16> to vector<100x196xbf16>
    %cst_155 = arith.constant dense<0.000000e+00> : vector<100x128xf32>
    %180 = tpu.matmul %179, %16, %cst_155 {dimension_numbers = #tpu.dot_dimension_numbers<[1], [0], [0], [1], [0, 0, 1, 1], [], []>} : vector<100x196xbf16>, vector<196x128xbf16>, vector<100x128xf32> -> vector<100x128xf32>
    %181 = arith.truncf %180 : vector<100x128xf32> to vector<100x128xbf16>
    %c20_156 = arith.constant 20 : index
    %c0_157 = arith.constant 0 : index
    %c0_158 = arith.constant 0 : index
    %182 = vector.load %arg6[%c20_156, %c0_157, %c0_158] : memref<25x128x128xbf16, #tpu.memory_space<vmem>>, vector<1x128x128xbf16>
    %183 = vector.shape_cast %182 : vector<1x128x128xbf16> to vector<128x128xbf16>
    %cst_159 = arith.constant dense<0.000000e+00> : vector<100x128xf32>
    %184 = tpu.matmul %181, %183, %cst_159 {dimension_numbers = #tpu.dot_dimension_numbers<[1], [0], [0], [1], [0, 0, 1, 1], [], []>} : vector<100x128xbf16>, vector<128x128xbf16>, vector<100x128xf32> -> vector<100x128xf32>
    %185 = arith.addf %177, %184 : vector<100x128xf32>
    %c21 = arith.constant 21 : index
    %c0_160 = arith.constant 0 : index
    %c0_161 = arith.constant 0 : index
    %186 = vector.load %arg5[%c21, %c0_160, %c0_161] : memref<25x100x196xbf16, #tpu.memory_space<vmem>>, vector<1x100x196xbf16>
    %187 = vector.shape_cast %186 : vector<1x100x196xbf16> to vector<100x196xbf16>
    %cst_162 = arith.constant dense<0.000000e+00> : vector<100x128xf32>
    %188 = tpu.matmul %187, %16, %cst_162 {dimension_numbers = #tpu.dot_dimension_numbers<[1], [0], [0], [1], [0, 0, 1, 1], [], []>} : vector<100x196xbf16>, vector<196x128xbf16>, vector<100x128xf32> -> vector<100x128xf32>
    %189 = arith.truncf %188 : vector<100x128xf32> to vector<100x128xbf16>
    %c21_163 = arith.constant 21 : index
    %c0_164 = arith.constant 0 : index
    %c0_165 = arith.constant 0 : index
    %190 = vector.load %arg6[%c21_163, %c0_164, %c0_165] : memref<25x128x128xbf16, #tpu.memory_space<vmem>>, vector<1x128x128xbf16>
    %191 = vector.shape_cast %190 : vector<1x128x128xbf16> to vector<128x128xbf16>
    %cst_166 = arith.constant dense<0.000000e+00> : vector<100x128xf32>
    %192 = tpu.matmul %189, %191, %cst_166 {dimension_numbers = #tpu.dot_dimension_numbers<[1], [0], [0], [1], [0, 0, 1, 1], [], []>} : vector<100x128xbf16>, vector<128x128xbf16>, vector<100x128xf32> -> vector<100x128xf32>
    %193 = arith.addf %185, %192 : vector<100x128xf32>
    %c22 = arith.constant 22 : index
    %c0_167 = arith.constant 0 : index
    %c0_168 = arith.constant 0 : index
    %194 = vector.load %arg5[%c22, %c0_167, %c0_168] : memref<25x100x196xbf16, #tpu.memory_space<vmem>>, vector<1x100x196xbf16>
    %195 = vector.shape_cast %194 : vector<1x100x196xbf16> to vector<100x196xbf16>
    %cst_169 = arith.constant dense<0.000000e+00> : vector<100x128xf32>
    %196 = tpu.matmul %195, %16, %cst_169 {dimension_numbers = #tpu.dot_dimension_numbers<[1], [0], [0], [1], [0, 0, 1, 1], [], []>} : vector<100x196xbf16>, vector<196x128xbf16>, vector<100x128xf32> -> vector<100x128xf32>
    %197 = arith.truncf %196 : vector<100x128xf32> to vector<100x128xbf16>
    %c22_170 = arith.constant 22 : index
    %c0_171 = arith.constant 0 : index
    %c0_172 = arith.constant 0 : index
    %198 = vector.load %arg6[%c22_170, %c0_171, %c0_172] : memref<25x128x128xbf16, #tpu.memory_space<vmem>>, vector<1x128x128xbf16>
    %199 = vector.shape_cast %198 : vector<1x128x128xbf16> to vector<128x128xbf16>
    %cst_173 = arith.constant dense<0.000000e+00> : vector<100x128xf32>
    %200 = tpu.matmul %197, %199, %cst_173 {dimension_numbers = #tpu.dot_dimension_numbers<[1], [0], [0], [1], [0, 0, 1, 1], [], []>} : vector<100x128xbf16>, vector<128x128xbf16>, vector<100x128xf32> -> vector<100x128xf32>
    %201 = arith.addf %193, %200 : vector<100x128xf32>
    %c23 = arith.constant 23 : index
    %c0_174 = arith.constant 0 : index
    %c0_175 = arith.constant 0 : index
    %202 = vector.load %arg5[%c23, %c0_174, %c0_175] : memref<25x100x196xbf16, #tpu.memory_space<vmem>>, vector<1x100x196xbf16>
    %203 = vector.shape_cast %202 : vector<1x100x196xbf16> to vector<100x196xbf16>
    %cst_176 = arith.constant dense<0.000000e+00> : vector<100x128xf32>
    %204 = tpu.matmul %203, %16, %cst_176 {dimension_numbers = #tpu.dot_dimension_numbers<[1], [0], [0], [1], [0, 0, 1, 1], [], []>} : vector<100x196xbf16>, vector<196x128xbf16>, vector<100x128xf32> -> vector<100x128xf32>
    %205 = arith.truncf %204 : vector<100x128xf32> to vector<100x128xbf16>
    %c23_177 = arith.constant 23 : index
    %c0_178 = arith.constant 0 : index
    %c0_179 = arith.constant 0 : index
    %206 = vector.load %arg6[%c23_177, %c0_178, %c0_179] : memref<25x128x128xbf16, #tpu.memory_space<vmem>>, vector<1x128x128xbf16>
    %207 = vector.shape_cast %206 : vector<1x128x128xbf16> to vector<128x128xbf16>
    %cst_180 = arith.constant dense<0.000000e+00> : vector<100x128xf32>
    %208 = tpu.matmul %205, %207, %cst_180 {dimension_numbers = #tpu.dot_dimension_numbers<[1], [0], [0], [1], [0, 0, 1, 1], [], []>} : vector<100x128xbf16>, vector<128x128xbf16>, vector<100x128xf32> -> vector<100x128xf32>
    %209 = arith.addf %201, %208 : vector<100x128xf32>
    %c24 = arith.constant 24 : index
    %c0_181 = arith.constant 0 : index
    %c0_182 = arith.constant 0 : index
    %210 = vector.load %arg5[%c24, %c0_181, %c0_182] : memref<25x100x196xbf16, #tpu.memory_space<vmem>>, vector<1x100x196xbf16>
    %211 = vector.shape_cast %210 : vector<1x100x196xbf16> to vector<100x196xbf16>
    %cst_183 = arith.constant dense<0.000000e+00> : vector<100x128xf32>
    %212 = tpu.matmul %211, %16, %cst_183 {dimension_numbers = #tpu.dot_dimension_numbers<[1], [0], [0], [1], [0, 0, 1, 1], [], []>} : vector<100x196xbf16>, vector<196x128xbf16>, vector<100x128xf32> -> vector<100x128xf32>
    %213 = arith.truncf %212 : vector<100x128xf32> to vector<100x128xbf16>
    %c24_184 = arith.constant 24 : index
    %c0_185 = arith.constant 0 : index
    %c0_186 = arith.constant 0 : index
    %214 = vector.load %arg6[%c24_184, %c0_185, %c0_186] : memref<25x128x128xbf16, #tpu.memory_space<vmem>>, vector<1x128x128xbf16>
    %215 = vector.shape_cast %214 : vector<1x128x128xbf16> to vector<128x128xbf16>
    %cst_187 = arith.constant dense<0.000000e+00> : vector<100x128xf32>
    %216 = tpu.matmul %213, %215, %cst_187 {dimension_numbers = #tpu.dot_dimension_numbers<[1], [0], [0], [1], [0, 0, 1, 1], [], []>} : vector<100x128xbf16>, vector<128x128xbf16>, vector<100x128xf32> -> vector<100x128xf32>
    %217 = arith.addf %209, %216 : vector<100x128xf32>
    %c0_188 = arith.constant 0 : index
    %c0_189 = arith.constant 0 : index
    %218 = vector.load %arg7[%c0_188, %c0_189] : memref<1x128xf32, #tpu.memory_space<vmem>>, vector<1x128xf32>
    %219 = vector.broadcast %218 : vector<1x128xf32> to vector<100x128xf32>
    %220 = arith.addf %217, %219 : vector<100x128xf32>
    %cst_190 = arith.constant 0.000000e+00 : f32
    %221 = vector.broadcast %cst_190 : f32 to vector<100x128xf32>
    %222 = arith.subf %221, %220 : vector<100x128xf32>
    %223 = math.exp %222 : vector<100x128xf32>
    %cst_191 = arith.constant 1.000000e+00 : f32
    %224 = vector.broadcast %cst_191 : f32 to vector<100x128xf32>
    %225 = arith.addf %224, %223 : vector<100x128xf32>
    %226 = tpu.reciprocal %225 {approx = true} : vector<100x128xf32> -> vector<100x128xf32>
    %c0_192 = arith.constant 0 : index
    %c0_193 = arith.constant 0 : index
    %227 = vector.load %arg8[%c0_192, %c0_193] : memref<25x100xbf16, #tpu.memory_space<vmem>>, vector<25x100xbf16>
    %228 = arith.truncf %226 : vector<100x128xf32> to vector<100x128xbf16>
    %cst_194 = arith.constant dense<0.000000e+00> : vector<25x128xf32>
    %229 = tpu.matmul %227, %228, %cst_194 {dimension_numbers = #tpu.dot_dimension_numbers<[1], [0], [0], [1], [0, 0, 1, 1], [], []>} : vector<25x100xbf16>, vector<100x128xbf16>, vector<25x128xf32> -> vector<25x128xf32>
    %230 = vector.extract_strided_slice %229 {offsets = [0, 0], sizes = [25, 16], strides = [1, 1]} : vector<25x128xf32> to vector<25x16xf32>
    %231 = arith.truncf %230 : vector<25x16xf32> to vector<25x16xbf16>
    %c0_195 = arith.constant 0 : index
    %c0_196 = arith.constant 0 : index
    %c0_197 = arith.constant 0 : index
    %232 = vector.load %arg9[%c0_195, %c0_196, %c0_197] : memref<1x25x16xbf16, #tpu.memory_space<vmem>>, vector<1x25x16xbf16>
    %233 = vector.shape_cast %232 : vector<1x25x16xbf16> to vector<25x16xbf16>
    %234 = vector.shape_cast %231 : vector<25x16xbf16> to vector<1x25x16xbf16>
    tpu.vector_store %arg9[%c0_195, %c0_196, %c0_197], %234 {strides = array<i32>} : memref<1x25x16xbf16, #tpu.memory_space<vmem>>, vector<1x25x16xbf16>,
    return
  }
  func.func @transform_0(%arg0: i32) -> (i32, i32, i32) {
    %c0_i32 = arith.constant 0 : i32
    %c0_i32_0 = arith.constant 0 : i32
    %c0_i32_1 = arith.constant 0 : i32
    return %arg0, %c0_i32, %c0_i32_0 : i32, i32, i32
  }
  func.func @transform_1(%arg0: i32) -> (i32, i32) {
    %c0_i32 = arith.constant 0 : i32
    %c0_i32_0 = arith.constant 0 : i32
    %c0_i32_1 = arith.constant 0 : i32
    return %c0_i32, %c0_i32_0 : i32, i32
  }
  func.func @transform_2(%arg0: i32) -> (i32, i32) {
    %c0_i32 = arith.constant 0 : i32
    %c0_i32_0 = arith.constant 0 : i32
    %c0_i32_1 = arith.constant 0 : i32
    return %c0_i32, %c0_i32_0 : i32, i32
  }
  func.func @transform_3(%arg0: i32) -> (i32, i32) {
    %c0_i32 = arith.constant 0 : i32
    %c0_i32_0 = arith.constant 0 : i32
    %c0_i32_1 = arith.constant 0 : i32
    return %c0_i32, %c0_i32_0 : i32, i32
  }
  func.func @transform_4(%arg0: i32) -> (i32, i32, i32) {
    %c0_i32 = arith.constant 0 : i32
    %c0_i32_0 = arith.constant 0 : i32
    %c0_i32_1 = arith.constant 0 : i32
    %c0_i32_2 = arith.constant 0 : i32
    return %c0_i32, %c0_i32_0, %c0_i32_1 : i32, i32, i32
  }
  func.func @transform_5(%arg0: i32) -> (i32, i32, i32) {
    %c0_i32 = arith.constant 0 : i32
    %c0_i32_0 = arith.constant 0 : i32
    %c0_i32_1 = arith.constant 0 : i32
    %c0_i32_2 = arith.constant 0 : i32
    return %c0_i32, %c0_i32_0, %c0_i32_1 : i32, i32, i32
  }
  func.func @transform_6(%arg0: i32) -> (i32, i32) {
    %c0_i32 = arith.constant 0 : i32
    %c0_i32_0 = arith.constant 0 : i32
    %c0_i32_1 = arith.constant 0 : i32
    return %c0_i32, %c0_i32_0 : i32, i32
  }
  func.func @transform_7(%arg0: i32) -> (i32, i32) {
    %c0_i32 = arith.constant 0 : i32
    %c0_i32_0 = arith.constant 0 : i32
    %c0_i32_1 = arith.constant 0 : i32
    return %c0_i32, %c0_i32_0 : i32, i32
  }
  func.func @transform_8(%arg0: i32) -> (i32, i32, i32) {
    %c0_i32 = arith.constant 0 : i32
    %c0_i32_0 = arith.constant 0 : i32
    %c0_i32_1 = arith.constant 0 : i32
    return %arg0, %c0_i32, %c0_i32_0 : i32, i32, i32
  }
}

module attributes {stable_mosaic.version = 11 : i64} {
  func.func @_mlp_kernel(%arg0: memref<2x400xbf16, #tpu.memory_space<vmem>>, %arg1: memref<400x128xbf16, #tpu.memory_space<vmem>>, %arg2: memref<1x128xf32, #tpu.memory_space<vmem>>, %arg3: memref<128x128xbf16, #tpu.memory_space<vmem>>, %arg4: memref<1x128xf32, #tpu.memory_space<vmem>>, %arg5: memref<128x128xbf16, #tpu.memory_space<vmem>>, %arg6: memref<1x128xf32, #tpu.memory_space<vmem>>, %arg7: memref<2x10xf32, #tpu.memory_space<vmem>>) attributes {dimension_semantics = [], scalar_prefetch = 0 : i64, scratch_operands = 0 : i64, tpu.core_type = #tpu.core_type<tc>} {
    %c0 = arith.constant 0 : index
    %c0_0 = arith.constant 0 : index
    %0 = vector.load %arg0[%c0, %c0_0] : memref<2x400xbf16, #tpu.memory_space<vmem>>, vector<2x400xbf16>
    %c0_1 = arith.constant 0 : index
    %c0_2 = arith.constant 0 : index
    %1 = vector.load %arg1[%c0_1, %c0_2] : memref<400x128xbf16, #tpu.memory_space<vmem>>, vector<400x128xbf16>
    %cst = arith.constant dense<0.000000e+00> : vector<2x128xf32>
    %2 = tpu.matmul %0, %1, %cst {dimension_numbers = #tpu.dot_dimension_numbers<[1], [0], [0], [1], [0, 0, 1, 1], [], []>} : vector<2x400xbf16>, vector<400x128xbf16>, vector<2x128xf32> -> vector<2x128xf32>
    %c0_3 = arith.constant 0 : index
    %c0_4 = arith.constant 0 : index
    %3 = vector.load %arg2[%c0_3, %c0_4] : memref<1x128xf32, #tpu.memory_space<vmem>>, vector<1x128xf32>
    %4 = vector.broadcast %3 : vector<1x128xf32> to vector<2x128xf32>
    %5 = arith.addf %2, %4 : vector<2x128xf32>
    %cst_5 = arith.constant 0.000000e+00 : f32
    %6 = vector.broadcast %cst_5 : f32 to vector<2x128xf32>
    %7 = arith.subf %6, %5 : vector<2x128xf32>
    %8 = math.exp %7 : vector<2x128xf32>
    %cst_6 = arith.constant 1.000000e+00 : f32
    %9 = vector.broadcast %cst_6 : f32 to vector<2x128xf32>
    %10 = arith.addf %9, %8 : vector<2x128xf32>
    %11 = tpu.reciprocal %10 {approx = true} : vector<2x128xf32> -> vector<2x128xf32>
    %12 = arith.truncf %11 : vector<2x128xf32> to vector<2x128xbf16>
    %c0_7 = arith.constant 0 : index
    %c0_8 = arith.constant 0 : index
    %13 = vector.load %arg3[%c0_7, %c0_8] : memref<128x128xbf16, #tpu.memory_space<vmem>>, vector<128x128xbf16>
    %cst_9 = arith.constant dense<0.000000e+00> : vector<2x128xf32>
    %14 = tpu.matmul %12, %13, %cst_9 {dimension_numbers = #tpu.dot_dimension_numbers<[1], [0], [0], [1], [0, 0, 1, 1], [], []>} : vector<2x128xbf16>, vector<128x128xbf16>, vector<2x128xf32> -> vector<2x128xf32>
    %c0_10 = arith.constant 0 : index
    %c0_11 = arith.constant 0 : index
    %15 = vector.load %arg4[%c0_10, %c0_11] : memref<1x128xf32, #tpu.memory_space<vmem>>, vector<1x128xf32>
    %16 = vector.broadcast %15 : vector<1x128xf32> to vector<2x128xf32>
    %17 = arith.addf %14, %16 : vector<2x128xf32>
    %cst_12 = arith.constant 0.000000e+00 : f32
    %18 = vector.broadcast %cst_12 : f32 to vector<2x128xf32>
    %19 = arith.subf %18, %17 : vector<2x128xf32>
    %20 = math.exp %19 : vector<2x128xf32>
    %cst_13 = arith.constant 1.000000e+00 : f32
    %21 = vector.broadcast %cst_13 : f32 to vector<2x128xf32>
    %22 = arith.addf %21, %20 : vector<2x128xf32>
    %23 = tpu.reciprocal %22 {approx = true} : vector<2x128xf32> -> vector<2x128xf32>
    %24 = arith.truncf %23 : vector<2x128xf32> to vector<2x128xbf16>
    %c0_14 = arith.constant 0 : index
    %c0_15 = arith.constant 0 : index
    %25 = vector.load %arg5[%c0_14, %c0_15] : memref<128x128xbf16, #tpu.memory_space<vmem>>, vector<128x128xbf16>
    %cst_16 = arith.constant dense<0.000000e+00> : vector<2x128xf32>
    %26 = tpu.matmul %24, %25, %cst_16 {dimension_numbers = #tpu.dot_dimension_numbers<[1], [0], [0], [1], [0, 0, 1, 1], [], []>} : vector<2x128xbf16>, vector<128x128xbf16>, vector<2x128xf32> -> vector<2x128xf32>
    %c0_17 = arith.constant 0 : index
    %c0_18 = arith.constant 0 : index
    %27 = vector.load %arg6[%c0_17, %c0_18] : memref<1x128xf32, #tpu.memory_space<vmem>>, vector<1x128xf32>
    %28 = vector.broadcast %27 : vector<1x128xf32> to vector<2x128xf32>
    %29 = arith.addf %26, %28 : vector<2x128xf32>
    %30 = vector.extract_strided_slice %29 {offsets = [0, 0], sizes = [2, 10], strides = [1, 1]} : vector<2x128xf32> to vector<2x10xf32>
    %c0_19 = arith.constant 0 : index
    %c0_20 = arith.constant 0 : index
    %31 = vector.load %arg7[%c0_19, %c0_20] : memref<2x10xf32, #tpu.memory_space<vmem>>, vector<2x10xf32>
    tpu.vector_store %arg7[%c0_19, %c0_20], %30 {strides = array<i32>} : memref<2x10xf32, #tpu.memory_space<vmem>>, vector<2x10xf32>,
    return
  }
}

</mosaic_0001>

<bundles_post_ra>
// kernel: cnn_net_forward.3
= control target key start
LH: loop header
LB: loop body
LE: loop exit
PB: predicated region body
PF: predicated region fallthrough
CT: control target
= control target key end

     0   :  { %v802_v1 = vmov 0   ;;  %v98_v21 = vlaneseq  ;;  %v803_v26 = vmov 1966171168   ;;  %vm264_vm0 = vcmask 130048   ;;  %s1022_s0 = inlined_call_operand.vmem [shape: bf16[2,400], index: 0, kind: input, shape index: {}]   ;;  %s1023_s1 = inlined_call_operand.vmem [shape: bf16[400,128], index: 1, kind: input, shape index: {}]   ;;  %s1024_s2 = inlined_call_operand.vmem [shape: f32[1,128], index: 2, kind: input, shape index: {}]   ;;  %s1025_s3 = inlined_call_operand.vmem [shape: bf16[128,128], index: 3, kind: input, shape index: {}]   ;;  %s1026_s4 = inlined_call_operand.vmem [shape: f32[1,128], index: 4, kind: input, shape index: {}]   ;;  %s1027_s5 = inlined_call_operand.vmem [shape: bf16[128,128], index: 5, kind: input, shape index: {}]   ;;  %s1028_s6 = inlined_call_operand.vmem [shape: f32[1,128], index: 6, kind: input, shape index: {}]   ;;  %s1029_s7 = inlined_call_operand.hbm [shape: f32[2,10], index: 7, kind: output, shape index: {}]  }
   0x1   :  { %v729_v0 = vld [vmem:[%s1023_s1 + $0x40] sm:$0xff]   ;;  %308 = vmatprep.subr.bf16.mxu1 %v802_v1  ;;  %v732_v4 = vld [vmem:[%s1023_s1 + $0x48] sm:$0xff]   ;;  %v735_v7 = vld [vmem:[%s1023_s1 + $0x50] sm:$0xff]   ;;  %v96_v27 = vunpack.c.l.s4 %v803_v26 }
   0x2   :  { %v730_v2 = vld [vmem:[%s1023_s1 + $0x80] sm:$0xff]   ;;  %644 = vmatprep.subr.bf16.mxu0 %v729_v0  ;;  %v733_v5 = vld [vmem:[%s1023_s1 + $0x88] sm:$0xff]   ;;  %v736_v8 = vld [vmem:[%s1023_s1 + $0x90] sm:$0xff]   ;;  %v99_v28 = vshrl.u32 %v98_v21, 7 }
   0x3   :  { %v731_v3 = vld [vmem:[%s1023_s1] sm:$0xff]   ;;  %309 = vmatpush1.bf16.msra.mxu1 %v730_v2  ;;  %v734_v6 = vld [vmem:[%s1023_s1 + $0x8] sm:$0xff]   ;;  %v737_v9 = vld [vmem:[%s1023_s1 + $0x10] sm:$0xff]   ;;  %v97_v31 = vunpack.c.0.s8 %v96_v27 }
   0x4   :  { %645 = vmatpush3.bf16.msra.mxu0 %v731_v3  ;;  %310 = vmatprep.subr.bf16.mxu1 %v802_v1  ;;  %v738_v10 = vld [vmem:[%s1023_s1 + $0x58] sm:$0xff]   ;;  %v741_v13 = vld [vmem:[%s1023_s1 + $0x60] sm:$0xff]   ;;  %v744_v16 = vld [vmem:[%s1023_s1 + $0x68] sm:$0xff]  }
   0x5   :  { %646 = vmatprep.subr.bf16.mxu0 %v732_v4  ;;  %v739_v11 = vld [vmem:[%s1023_s1 + $0x98] sm:$0xff]   ;;  %v742_v14 = vld [vmem:[%s1023_s1 + $0xa0] sm:$0xff]   ;;  %v745_v17 = vld [vmem:[%s1023_s1 + $0xa8] sm:$0xff]   ;;  %v100_v32 = vsub.s32 %v97_v31, %v99_v28 }
   0x6   :  { %v740_v12 = vld [vmem:[%s1023_s1 + $0x18] sm:$0xff]   ;;  %v743_v15 = vld [vmem:[%s1023_s1 + $0x20] sm:$0xff]   ;;  %v746_v18 = vld [vmem:[%s1023_s1 + $0x28] sm:$0xff]  }
   0x7   :  { %311 = vmatpush1.bf16.msra.mxu1 %v733_v5  ;;  %v747_v19 = vld [vmem:[%s1023_s1 + $0x70] sm:$0xff]   ;;  %v750_v23 = vld [vmem:[%s1023_s1 + $0x78] sm:$0xff]   ;;  %v599_v24 = vld.sshfl [vmem:[%s1022_s0] sm:$0x33 pattern:$0x75316420] }
   0x8   :  { %647 = vmatpush3.bf16.msra.mxu0 %v734_v6  ;;  %312 = vmatprep.subr.bf16.mxu1 %v802_v1  ;;  %v748_v20 = vld [vmem:[%s1023_s1 + $0xb0] sm:$0xff]   ;;  %v751_v25 = vld [vmem:[%s1023_s1 + $0xb8] sm:$0xff]   ;;  %v94_v30 = vcombine.high %v599_v24, %v599_v24  ;;  %v753_v33 = vld [vmem:[%s1023_s1 + $0xc0] sm:$0xff]   ;;  %v101_v35 = vrot.slane %v599_v24, %v100_v32 }
   0x9   :  { %648 = vmatprep.subr.bf16.mxu0 %v735_v7  ;;  %v749_v22 = vld [vmem:[%s1023_s1 + $0x30] sm:$0xff]   ;;  %v752_v29 = vld [vmem:[%s1023_s1 + $0x38] sm:$0xff]  }
   0xa   :  { %v108_v34 = vrot.slane %v94_v30, %v100_v32  ;;  %v109_v37 = vcombine.high %v101_v35, %v101_v35 }
   0xb   :  { %313 = vmatpush1.bf16.msra.mxu1 %v736_v8 }
   0xc   :  { %649 = vmatpush3.bf16.msra.mxu0 %v737_v9  ;;  %314 = vmatprep.subr.bf16.mxu1 %v802_v1  ;;  %v110_v36 = vcombine.high %v108_v34, %v108_v34 }
   0xd   :  { %650 = vmatprep.subr.bf16.mxu0 %v738_v10  ;;  %300 = vmatprep.mubr.bf16.mxu0 %v108_v34 }
   0xe   :  { %625 = vmatprep.mubr.msk.bf16.mxu1 %vm264_vm0, %v110_v36 }
   0xf   :  { %315 = vmatpush1.bf16.msra.mxu1 %v739_v11 }
  0x10   :  { %651 = vmatpush3.bf16.msra.mxu0 %v740_v12  ;;  %316 = vmatprep.subr.bf16.mxu1 %v802_v1 }
  0x11   :  { %652 = vmatprep.subr.bf16.mxu0 %v741_v13 }
  0x13   :  { %317 = vmatpush1.bf16.msra.mxu1 %v742_v14 }
  0x14   :  { %653 = vmatpush3.bf16.msra.mxu0 %v743_v15  ;;  %318 = vmatprep.subr.bf16.mxu1 %v802_v1 }
  0x15   :  { %654 = vmatprep.subr.bf16.mxu0 %v744_v16 }
  0x17   :  { %319 = vmatpush1.bf16.msra.mxu1 %v745_v17 }
  0x18   :  { %655 = vmatpush3.bf16.msra.mxu0 %v746_v18  ;;  %320 = vmatprep.subr.bf16.mxu1 %v802_v1 }
  0x19   :  { %656 = vmatprep.subr.bf16.mxu0 %v747_v19 }
  0x1b   :  { %321 = vmatpush1.bf16.msra.mxu1 %v748_v20 }
  0x1c   :  { %657 = vmatpush3.bf16.msra.mxu0 %v749_v22  ;;  %322 = vmatprep.subr.bf16.mxu1 %v802_v1 }
  0x1d   :  { %658 = vmatprep.subr.bf16.mxu0 %v750_v23 }
  0x1f   :  { %323 = vmatpush1.bf16.msra.mxu1 %v751_v25 }
  0x20   :  { %659 = vmatpush3.bf16.msra.mxu0 %v752_v29  ;;  %324 = vmatprep.subr.bf16.mxu1 %v802_v1 }
  0x23   :  { %301 = vmatmul.mubr.bf16.vlgmr.msra.gmra.mrb[0].mxu0 %v101_v35  ;;  %325 = vmatpush1.bf16.msra.mxu1 %v753_v33 }
  0x24   :  { %12 = vsyncpa [#allocation3], 0  ;;  %v754_v38 = vld [vmem:[%s1025_s3] sm:$0xff]   ;;  %v804_v39 = vmov 0.0   ;;  %v755_v40 = vld [vmem:[%s1025_s3 + $0x8] sm:$0xff]   ;;  %vm805_vm1 = vmmov 0  }
  0x25   :  { %684 = vmatprep.subr.bf16.mxu0 %v804_v39  ;;  %704 = vmatprep.subr.bf16.mxu1 %v804_v39  ;;  %v756_v41 = vld [vmem:[%s1025_s3 + $0x10] sm:$0xff]   ;;  %v757_v42 = vld [vmem:[%s1025_s3 + $0x18] sm:$0xff]   ;;  %v758_v43 = vld [vmem:[%s1025_s3 + $0x20] sm:$0xff]   ;;  %s806_s15 = smov [#allocation2]   ;;  %vm582_vm2 = vcmask 74752  }
  0x26   :  { %341 = vmatmul.mubr.bf16.vlgmr.msra.gmra.mrb[0].mxu1 %v109_v37  ;;  %685 = vmatpush3.bf16.msra.mxu0 %v754_v38  ;;  %v759_v44 = vld [vmem:[%s1025_s3 + $0x28] sm:$0xff]   ;;  %v760_v45 = vld [vmem:[%s1025_s3 + $0x30] sm:$0xff]   ;;  %v761_v46 = vld [vmem:[%s1025_s3 + $0x38] sm:$0xff]  }
  0x27   :  { %686 = vmatprep.subr.bf16.mxu0 %v804_v39  ;;  %700 = vmatprep.mubr.msk.bf16.mxu0 %vm805_vm1, %v804_v39  ;;  %v598_v49 = vld [vmem:[%s1024_s2] ss:$0 sm:$0xff]  ;;  %v763_v2 = vld [vmem:[%s1027_s5 + $0x8] sm:$0xff]   ;;  %v764_v3 = vld [vmem:[%s1027_s5 + $0x10] sm:$0xff]  }
  0x28   :  { %720 = vmatprep.mubr.msk.bf16.mxu1 %vm805_vm1, %v804_v39  ;;  %v762_v1 = vld [vmem:[%s1027_s5] sm:$0xff]   ;;  %v765_v4 = vld [vmem:[%s1027_s5 + $0x18] sm:$0xff]   ;;  %v767_v6 = vld [vmem:[%s1027_s5 + $0x28] sm:$0xff]  }
  0x29   :  { %705 = vmatpush3.bf16.msra.mxu1 %v762_v1  ;;  %v766_v5 = vld [vmem:[%s1027_s5 + $0x20] sm:$0xff]   ;;  %v768_v7 = vld [vmem:[%s1027_s5 + $0x30] sm:$0xff]   ;;  %v769_v8 = vld [vmem:[%s1027_s5 + $0x38] sm:$0xff]  }
  0x2a   :  { %687 = vmatpush3.bf16.msra.mxu0 %v755_v40  ;;  %706 = vmatprep.subr.bf16.mxu1 %v804_v39  ;;  %v626_v9 = vld [vmem:[%s1026_s4] ss:$0 sm:$0xff]  ;;  %s590_s4 = sshll.u32 %s806_s15, 4  ;;  %s591_s4 = int_to_ptr.vmem [resolvable:$true] %s590_s4 }
  0x2b   :  { %688 = vmatprep.subr.bf16.mxu0 %v804_v39  ;;  %v635_v21 = vld [vmem:[%s1028_s6] ss:$0 sm:$0xff]  ;;  %s778_s16 = scalar_lea.vmem %s591_s4, 32  ;;  %p783_p1 = scmp.lt.s32.totalorder %s591_s4, %s591_s4 }
  0x2c   :  { %p779_p0 = scmp.ne.s32.totalorder %s591_s4, %s778_s16  ;;  %p784_p2 = scmp.lt.s32.totalorder %s778_s16, %s778_s16 }
  0x2d   :  { %707 = vmatpush3.bf16.msra.mxu1 %v763_v2 }
  0x2e   :  { %689 = vmatpush3.bf16.msra.mxu0 %v756_v41  ;;  %708 = vmatprep.subr.bf16.mxu1 %v804_v39  ;;  %p785_p3 = por %p784_p2, %p783_p1 }
  0x2f   :  { %690 = vmatprep.subr.bf16.mxu0 %v804_v39 }
  0x30   :  { %p786_p4 = pnand %p785_p3, %p779_p0 }
  0x31   :  { %709 = vmatpush3.bf16.msra.mxu1 %v764_v3 }
  0x32   :  { %691 = vmatpush3.bf16.msra.mxu0 %v757_v42  ;;  %710 = vmatprep.subr.bf16.mxu1 %v804_v39 }
  0x33   :  { %692 = vmatprep.subr.bf16.mxu0 %v804_v39 }
  0x35   :  { %711 = vmatpush3.bf16.msra.mxu1 %v765_v4 }
  0x36   :  { %693 = vmatpush3.bf16.msra.mxu0 %v758_v43  ;;  %712 = vmatprep.subr.bf16.mxu1 %v804_v39 }
  0x37   :  { %694 = vmatprep.subr.bf16.mxu0 %v804_v39 }
  0x39   :  { %713 = vmatpush3.bf16.msra.mxu1 %v766_v5 }
  0x3a   :  { %695 = vmatpush3.bf16.msra.mxu0 %v759_v44  ;;  %714 = vmatprep.subr.bf16.mxu1 %v804_v39 }
  0x3b   :  { %696 = vmatprep.subr.bf16.mxu0 %v804_v39 }
  0x3d   :  { %715 = vmatpush3.bf16.msra.mxu1 %v767_v6 }
  0x3e   :  { %697 = vmatpush3.bf16.msra.mxu0 %v760_v45  ;;  %716 = vmatprep.subr.bf16.mxu1 %v804_v39 }
  0x3f   :  { %698 = vmatprep.subr.bf16.mxu0 %v804_v39 }
  0x41   :  { %717 = vmatpush3.bf16.msra.mxu1 %v768_v7 }
  0x42   :  { %699 = vmatpush3.bf16.msra.mxu0 %v761_v46  ;;  %718 = vmatprep.subr.bf16.mxu1 %v804_v39 }
  0x45   :  { %719 = vmatpush3.bf16.msra.mxu1 %v769_v8 }
  0xf6   :  { %v660_v47 = vpop.f32.mrb[0].mxu0 }
  0xf7   :  { %v661_v48 = vpop.f32.mrb[1].mxu0 }
  0xf8   :  { %v662_v50 = vadd.f32 %v661_v48, %v660_v47  ;;  %v663_v51 = vpop.f32.mrb[2].mxu0 }
  0xf9   :  { %v664_v52 = vpop.f32.mrb[3].mxu0  ;;  %v342_v53 = vpop.f32.mrb[0].mxu1 }
  0xfa   :  { %v303_v54 = vadd.f32 %v662_v50, %v598_v49  ;;  %v344_v55 = vpop.f32.mrb[1].mxu1 }
  0xfb   :  { %v345_v56 = vpop.f32.mrb[2].mxu1 }
  0xfc   :  { %v343_v57 = vadd.f32 %v342_v53, %v303_v54  ;;  %v346_v58 = vpop.f32.mrb[3].mxu1 }
  0xfe   :  { %v348_v59 = vsub.f32 0.0, %v343_v57 }
 0x100   :  { %v349_v60 = vmul.f32 1.442695, %v348_v59 }
 0x102   :  { %770 = vpow2.f32 %v349_v60 }
 0x10c   :  { %v771_v61 = vpop.eup %770 }
 0x10d   :  { %v351_v62 = vadd.f32 1.0, %v771_v61 }
 0x10f   :  { %772 = vrcp.f32 %v351_v62 }
 0x119   :  { %v773_v63 = vpop.eup %772 }
 0x11a   :  { %v353_v0 = vpack.c.bf16 %v773_v63, %v773_v63 }
 0x11c   :  { %701 = vmatmul.mubr.bf16.vlgmr.msra.gmra.mrb[4].mxu0 %v353_v0 }
 0x1ef   :  { %v459_v10 = vpop.f32.mrb[4].mxu0 }
 0x1f0   :  { %v460_v11 = vadd.f32 %v626_v9, %v459_v10  ;;  %v702_v12 = vpop.f32.mrb[5].mxu0 }
 0x1f1   :  { %v462_v13 = vpop.f32.mrb[6].mxu0 }
 0x1f2   :  { %v465_v14 = vsub.f32 0.0, %v460_v11  ;;  %v703_v15 = vpop.f32.mrb[7].mxu0 }
 0x1f4   :  { %v466_v16 = vmul.f32 1.442695, %v465_v14 }
 0x1f6   :  { %774 = vpow2.f32 %v466_v16 }
 0x200   :  { %v775_v17 = vpop.eup %774 }
 0x201   :  { %v468_v18 = vadd.f32 1.0, %v775_v17 }
 0x203   :  { %776 = vrcp.f32 %v468_v18 }
 0x20d   :  { %v777_v19 = vpop.eup %776 }
 0x20e   :  { %v470_v20 = vpack.c.bf16 %v777_v19, %v777_v19 }
 0x210   :  { %721 = vmatmul.mubr.bf16.vlgmr.msra.gmra.mrb[4].mxu1 %v470_v20 }
 0x2e3   :  { %v576_v22 = vpop.f32.mrb[4].mxu1 }
 0x2e4   :  { %v577_v23 = vadd.f32 %v635_v21, %v576_v22  ;;  %v722_v24 = vpop.f32.mrb[5].mxu1 }
 0x2e5   :  { %v579_v25 = vpop.f32.mrb[6].mxu1 }
 0x2e6   :  { %v723_v26 = vpop.f32.mrb[7].mxu1  ;;  %583 = vst.msk [vmem:[#allocation2] sm:$0x3] %vm582_vm2, %v577_v23 }
 0x2e7   :  { %789 = shalt.err (!%p786_p4)
}
 0x2e8   :  { %s790_s6 = scalar_lea.hbm %s1029_s7, 32 }
 0x2e9   :  { %p791_p5 = scmp.ne.s32.totalorder %s1029_s7, %s790_s6  ;;  %p794_p6 = scmp.lt.u32.totalorder %s790_s6, %s1029_s7 }
 0x2eb   :  { %p796_p7 = pnand %p794_p6, %p791_p5 }
 0x2ed   :  { %799 = shalt.err (!%p796_p7)
}
 0x2ee   :  { %593 = dma.vmem_to_hbm [thread:$0]  %s591_s4, 32, %s1029_s7, [#allocation3]  }
 0x2ef   :  { %800 = dma.done.wait [#allocation3], 32  }
 0x2f0   :  { %801 = vsyncadd [#allocation3], 4294967264 }
 0x2f1   :  { %597 = vsyncpa [#allocation3], 1 }

// kernel: cnn_net_forward.2
= control target key start
LH: loop header
LB: loop body
LE: loop exit
PB: predicated region body
PF: predicated region fallthrough
CT: control target
= control target key end

     0   :  { %s17231_s27 = smov 0   ;;  %s22209_s0 = inlined_call_operand.vmem [shape: bf16[2,784,25], index: 0, kind: input, shape index: {}]   ;;  %s22210_s1 = inlined_call_operand.vmem [shape: bf16[25,128], index: 1, kind: input, shape index: {}]   ;;  %s22211_s2 = inlined_call_operand.vmem [shape: f32[1,128], index: 2, kind: input, shape index: {}]   ;;  %s22212_s3 = inlined_call_operand.vmem [shape: bf16[196,784], index: 3, kind: input, shape index: {}]   ;;  %s22213_s4 = inlined_call_operand.vmem [shape: bf16[25,100,196], index: 4, kind: input, shape index: {}]   ;;  %s22214_s5 = inlined_call_operand.vmem [shape: bf16[25,128,128], index: 5, kind: input, shape index: {}]   ;;  %s22215_s6 = inlined_call_operand.vmem [shape: f32[1,128], index: 6, kind: input, shape index: {}]   ;;  %s22216_s7 = inlined_call_operand.vmem [shape: bf16[25,100], index: 7, kind: input, shape index: {}]   ;;  %s22217_s8 = inlined_call_operand.vmem [shape: bf16[2,25,16], index: 8, kind: output, shape index: {}]  }
   0x1 LB: > { %s12055_s28 = sadd.s32 4294967295, %s17180_s27   ;;  %p12059_p0 = scmp.ge.s32.totalorder %s17180_s27, 1  ;;  %s17180_s27 = sphi %s17231_s27, %s18_s27  }
   0x2   : > { %p262_p1 = scmp.lt.s32.totalorder %s17180_s27, 3 }
   0x4   : > { %p263_p2 = pnand %p12059_p0, %p262_p1 }
   0x5   : > { %v15848_v0 = vld [vmem:[%s22210_s1] sm:$0xff] (!%p263_p2)   ;;  %v17182_v1 = vmov (!%p263_p2), 0.0   ;;  %v15849_v2 = vld [vmem:[%s22210_s1 + $0x8] sm:$0x1f] (!%p263_p2)   ;;  %vm820_vm0 = vcmask (!%p263_p2), 1043456   ;;  %vm821_vm1 = vcmask (!%p263_p2), 1044480  }
   0x6   : > { %266 = sbr.rel (%p263_p2) target bundleno = 3356 (0xd1c), region = 52  ;;  %14436 = vmatprep.subr.bf16.mxu0 (!%p263_p2), %v17182_v1  ;;  %p296_p3 = scmp.lt.s32.totalorder (!%p263_p2), %s12055_s28, 1  ;;  %v17183_v3 = vmov (!%p263_p2), 65535   ;;  %vm17184_vm2 = vmmov (!%p263_p2), 0   ;;  %vm672_vm3 = vcmask (!%p263_p2), 203776   ;;  %vm2335_vm4 = vcmask (!%p263_p2), 130048  }
   0x7   : > { %14437 = vmatpush3.bf16.msra.mxu0 (!%p263_p2), %v15848_v0  ;;  %v822_v4 = vsel (!%p263_p2), %vm820_vm0, 4294967295, %v17183_v3  ;;  %14440 = vmatprep.mubr.msk.bf16.mxu0 (!%p263_p2), %vm17184_vm2, %v17182_v1  ;;  %v17365_v34 = vld [vmem:[%s22211_s2] ss:$0 sm:$0xff] (!%p263_p2)  ;;  %vm3005_vm5 = vcmask (!%p263_p2), 556032   ;;  %vm3027_vm6 = vcmask (!%p263_p2), 1041408   ;;  %vm11915_vm7 = vcmask (!%p263_p2), 818176  }
   0x8   : > { %14438 = vmatprep.subr.bf16.mxu0 (!%p263_p2), %v17182_v1  ;;  %v823_v5 = vsel (!%p263_p2), %vm821_vm1, %v822_v4, 0  ;;  %vm11994_vm8 = vcmask (!%p263_p2), 122880   ;;  %vm11995_vm9 = vsmask.f32 (!%p263_p2), 256  ;;  %vm11990_vm10 = vcmask (!%p263_p2), 125952  }
   0x9   : > { %v825_v6 = vand.u32 (!%p263_p2), %v15849_v2, %v823_v5  ;;  %vm11996_vm11 = vmand (!%p263_p2), %vm11994_vm8, %vm11995_vm9 }
   0xb   : > { %14439 = vmatpush3.bf16.msra.mxu0 (!%p263_p2), %v825_v6 }
   0xd   : > { %s22219_s28 = smov (!%p296_p3, %s12055_s28), 1 }
   0xe   : > { %s15835_s11 = smul.u32 392, %s22219_s28  ;;  %s13700_s13 = sshll.u32 %s22219_s28, 4 }
   0xf   : > { %s305_s16 = scalar_lea.vmem %s22217_s8, %s13700_s13 }
  0x10   : > { %s17255_s14 = scalar_lea.vmem %s22209_s0, %s15835_s11 }
  0x11   : > { %v15850_v7 = vld [vmem:[%s17255_s14] sm:$0xff]   ;;  %v15851_v8 = vld [vmem:[%s17255_s14 + $0x8] sm:$0xff]   ;;  %v15852_v9 = vld [vmem:[%s17255_s14 + $0x10] sm:$0xff]  }
  0x12   : > { %14441 = vmatmul.mubr.msk.bf16.vlgmr.msra.gmra.mrb[0].mxu0 %vm672_vm3, %v15850_v7  ;;  %v15853_v10 = vld [vmem:[%s17255_s14 + $0x18] sm:$0xff]   ;;  %v15854_v11 = vld [vmem:[%s17255_s14 + $0x20] sm:$0xff]   ;;  %v15855_v12 = vld [vmem:[%s17255_s14 + $0x28] sm:$0xff]  }
  0x13   : > { %14444 = vmatprep.mubr.msk.bf16.mxu0 %vm17184_vm2, %v17182_v1  ;;  %v15856_v13 = vld [vmem:[%s17255_s14 + $0x30] sm:$0xff]   ;;  %v15857_v14 = vld [vmem:[%s17255_s14 + $0x38] sm:$0xff]   ;;  %v15858_v15 = vld [vmem:[%s17255_s14 + $0x40] sm:$0xff]  }
  0x14   : > { %v15859_v16 = vld [vmem:[%s17255_s14 + $0x48] sm:$0xff]   ;;  %v15860_v17 = vld [vmem:[%s17255_s14 + $0x50] sm:$0xff]   ;;  %v15861_v18 = vld [vmem:[%s17255_s14 + $0x58] sm:$0xff]  }
  0x15   : > { %v15862_v19 = vld [vmem:[%s17255_s14 + $0x60] sm:$0xff]   ;;  %v15863_v20 = vld [vmem:[%s17255_s14 + $0x68] sm:$0xff]   ;;  %v15864_v21 = vld [vmem:[%s17255_s14 + $0x70] sm:$0xff]  }
  0x16   : > { %v15865_v22 = vld [vmem:[%s17255_s14 + $0x78] sm:$0xff]   ;;  %v15866_v23 = vld [vmem:[%s17255_s14 + $0x80] sm:$0xff]   ;;  %v15867_v24 = vld [vmem:[%s17255_s14 + $0x88] sm:$0xff]  }
  0x17   : > { %v15868_v25 = vld [vmem:[%s17255_s14 + $0x90] sm:$0xff]   ;;  %v15869_v26 = vld [vmem:[%s17255_s14 + $0x98] sm:$0xff]   ;;  %v15870_v27 = vld [vmem:[%s17255_s14 + $0xa0] sm:$0xff]  }
  0x18   : > { %v15871_v28 = vld [vmem:[%s17255_s14 + $0xa8] sm:$0xff]   ;;  %v15872_v29 = vld [vmem:[%s17255_s14 + $0xb0] sm:$0xff]   ;;  %v15873_v30 = vld [vmem:[%s17255_s14 + $0xb8] sm:$0xff]  }
  0x19   : > { %v15874_v31 = vld [vmem:[%s17255_s14 + $0xc0] sm:$0xff]   ;;  %v15875_v32 = vld [vmem:[%s17255_s14 + $0xc8] sm:$0xff]   ;;  %v15876_v33 = vld [vmem:[%s17255_s14 + $0xd0] sm:$0xff]  }
  0x1a   : > { %14445 = vmatmul.mubr.msk.bf16.gmra.mrb[4].mxu0 %vm672_vm3, %v15851_v8  ;;  %v15877_v35 = vld [vmem:[%s17255_s14 + $0xd8] sm:$0xff]   ;;  %v15878_v46 = vld [vmem:[%s17255_s14 + $0xe0] sm:$0xff]   ;;  %v15879_v57 = vld [vmem:[%s17255_s14 + $0xe8] sm:$0xff]  }
  0x1b   : > { %14448 = vmatprep.mubr.msk.bf16.mxu0 %vm17184_vm2, %v17182_v1 }
  0x22   : > { %14449 = vmatmul.mubr.msk.bf16.gmra.mrb[8].mxu0 %vm672_vm3, %v15852_v9  ;;  %v15880_v9 = vld [vmem:[%s17255_s14 + $0xf0] sm:$0xff]  }
  0x23   : > { %14452 = vmatprep.mubr.msk.bf16.mxu0 %vm17184_vm2, %v17182_v1 }
  0x2a   : > { %14453 = vmatmul.mubr.msk.bf16.gmra.mrb[12].mxu0 %vm672_vm3, %v15853_v10 }
  0x2b   : > { %14456 = vmatprep.mubr.msk.bf16.mxu0 %vm17184_vm2, %v17182_v1 }
  0x32   : > { %14457 = vmatmul.mubr.msk.bf16.gmra.mrb[16].mxu0 %vm672_vm3, %v15854_v11 }
  0x33   : > { %14460 = vmatprep.mubr.msk.bf16.mxu0 %vm17184_vm2, %v17182_v1 }
  0x3a   : > { %14461 = vmatmul.mubr.msk.bf16.gmra.mrb[20].mxu0 %vm672_vm3, %v15855_v12 }
  0x3b   : > { %14464 = vmatprep.mubr.msk.bf16.mxu0 %vm17184_vm2, %v17182_v1 }
  0x42   : > { %14465 = vmatmul.mubr.msk.bf16.gmra.mrb[24].mxu0 %vm672_vm3, %v15856_v13 }
  0x43   : > { %14468 = vmatprep.mubr.msk.bf16.mxu0 %vm17184_vm2, %v17182_v1 }
  0x4a   : > { %14469 = vmatmul.mubr.msk.bf16.gmra.mrb[28].mxu0 %vm672_vm3, %v15857_v14 }
  0x4b   : > { %14472 = vmatprep.mubr.msk.bf16.mxu0 %vm17184_vm2, %v17182_v1 }
  0x52   : > { %14473 = vmatmul.mubr.msk.bf16.gmra.mrb[32].mxu0 %vm672_vm3, %v15858_v15 }
  0x53   : > { %14476 = vmatprep.mubr.msk.bf16.mxu0 %vm17184_vm2, %v17182_v1 }
  0x5a   : > { %14477 = vmatmul.mubr.msk.bf16.gmra.mrb[36].mxu0 %vm672_vm3, %v15859_v16 }
  0x5b   : > { %14480 = vmatprep.mubr.msk.bf16.mxu0 %vm17184_vm2, %v17182_v1 }
  0x62   : > { %14481 = vmatmul.mubr.msk.bf16.gmra.mrb[40].mxu0 %vm672_vm3, %v15860_v17 }
  0x63   : > { %14484 = vmatprep.mubr.msk.bf16.mxu0 %vm17184_vm2, %v17182_v1 }
  0x6a   : > { %14485 = vmatmul.mubr.msk.bf16.gmra.mrb[44].mxu0 %vm672_vm3, %v15861_v18 }
  0x6b   : > { %14488 = vmatprep.mubr.msk.bf16.mxu0 %vm17184_vm2, %v17182_v1 }
  0x72   : > { %14489 = vmatmul.mubr.msk.bf16.gmra.mrb[48].mxu0 %vm672_vm3, %v15862_v19 }
  0x73   : > { %14492 = vmatprep.mubr.msk.bf16.mxu0 %vm17184_vm2, %v17182_v1 }
  0x7a   : > { %14493 = vmatmul.mubr.msk.bf16.gmra.mrb[52].mxu0 %vm672_vm3, %v15863_v20 }
  0x7b   : > { %14496 = vmatprep.mubr.msk.bf16.mxu0 %vm17184_vm2, %v17182_v1 }
  0x82   : > { %14497 = vmatmul.mubr.msk.bf16.gmra.mrb[56].mxu0 %vm672_vm3, %v15864_v21 }
  0x83   : > { %14500 = vmatprep.mubr.msk.bf16.mxu0 %vm17184_vm2, %v17182_v1 }
  0x8a   : > { %14501 = vmatmul.mubr.msk.bf16.gmra.mrb[60].mxu0 %vm672_vm3, %v15865_v22 }
  0x8b   : > { %14504 = vmatprep.mubr.msk.bf16.mxu0 %vm17184_vm2, %v17182_v1 }
  0x92   : > { %14505 = vmatmul.mubr.msk.bf16.gmra.mrb[64].mxu0 %vm672_vm3, %v15866_v23 }
  0x93   : > { %14508 = vmatprep.mubr.msk.bf16.mxu0 %vm17184_vm2, %v17182_v1 }
  0x9a   : > { %14509 = vmatmul.mubr.msk.bf16.gmra.mrb[68].mxu0 %vm672_vm3, %v15867_v24 }
  0x9b   : > { %14512 = vmatprep.mubr.msk.bf16.mxu0 %vm17184_vm2, %v17182_v1 }
  0xa2   : > { %14513 = vmatmul.mubr.msk.bf16.gmra.mrb[72].mxu0 %vm672_vm3, %v15868_v25  ;;  %v15881_v25 = vld [vmem:[%s17255_s14 + $0xf8] sm:$0xff]  }
  0xa3   : > { %14516 = vmatprep.mubr.msk.bf16.mxu0 %vm17184_vm2, %v17182_v1 }
  0xaa   : > { %14517 = vmatmul.mubr.msk.bf16.gmra.mrb[76].mxu0 %vm672_vm3, %v15869_v26 }
  0xab   : > { %14520 = vmatprep.mubr.msk.bf16.mxu0 %vm17184_vm2, %v17182_v1 }
  0xb2   : > { %14521 = vmatmul.mubr.msk.bf16.gmra.mrb[80].mxu0 %vm672_vm3, %v15870_v27 }
  0xb3   : > { %14524 = vmatprep.mubr.msk.bf16.mxu0 %vm17184_vm2, %v17182_v1 }
  0xba   : > { %14525 = vmatmul.mubr.msk.bf16.gmra.mrb[84].mxu0 %vm672_vm3, %v15871_v28 }
  0xbb   : > { %14528 = vmatprep.mubr.msk.bf16.mxu0 %vm17184_vm2, %v17182_v1 }
  0xc2   : > { %14529 = vmatmul.mubr.msk.bf16.gmra.mrb[88].mxu0 %vm672_vm3, %v15872_v29 }
  0xc3   : > { %14532 = vmatprep.mubr.msk.bf16.mxu0 %vm17184_vm2, %v17182_v1 }
  0xca   : > { %14533 = vmatmul.mubr.msk.bf16.gmra.mrb[92].mxu0 %vm672_vm3, %v15873_v30 }
  0xcb   : > { %14536 = vmatprep.mubr.msk.bf16.mxu0 %vm17184_vm2, %v17182_v1 }
  0xd2   : > { %14537 = vmatmul.mubr.msk.bf16.gmra.mrb[96].mxu0 %vm672_vm3, %v15874_v31 }
  0xd3   : > { %14540 = vmatprep.mubr.msk.bf16.mxu0 %vm17184_vm2, %v17182_v1 }
  0xda   : > { %14541 = vmatmul.mubr.msk.bf16.gmra.mrb[100].mxu0 %vm672_vm3, %v15875_v32 }
  0xdb   : > { %14544 = vmatprep.mubr.msk.bf16.mxu0 %vm17184_vm2, %v17182_v1 }
  0xe2   : > { %14545 = vmatmul.mubr.msk.bf16.gmra.mrb[104].mxu0 %vm672_vm3, %v15876_v33 }
  0xe3   : > { %14548 = vmatprep.mubr.msk.bf16.mxu0 %vm17184_vm2, %v17182_v1 }
  0xe5   : > { %v861_v36 = vpop.f32.mrb[0].mxu0 }
  0xe6   : > { %v862_v37 = vadd.f32 %v17365_v34, %v861_v36  ;;  %v14442_v38 = vpop.f32.mrb[1].mxu0 }
  0xe7   : > { %v864_v39 = vpop.f32.mrb[2].mxu0 }
  0xe8   : > { %v1252_v40 = vsub.f32 0.0, %v862_v37  ;;  %v865_v41 = vadd.f32 %v17365_v34, %v864_v39  ;;  %v14443_v42 = vpop.f32.mrb[3].mxu0 }
  0xea   : > { %v1350_v43 = vmul.f32 1.442695, %v1252_v40  ;;  %v1253_v44 = vsub.f32 0.0, %v865_v41  ;;  %14549 = vmatmul.mubr.msk.bf16.gmra.mrb[108].mxu0 %vm672_vm3, %v15877_v35 }
  0xeb   : > { %14552 = vmatprep.mubr.msk.bf16.mxu0 %vm17184_vm2, %v17182_v1 }
  0xec   : > { %16728 = vpow2.f32 %v1350_v43  ;;  %v1352_v45 = vmul.f32 1.442695, %v1253_v44  ;;  %v15882_v44 = vld [vmem:[%s17255_s14 + $0x100] sm:$0xff]  }
  0xed   : > { %v869_v47 = vpop.f32.mrb[4].mxu0 }
  0xee   : > { %16730 = vpow2.f32 %v1352_v45  ;;  %v870_v48 = vadd.f32 %v17365_v34, %v869_v47  ;;  %v14446_v49 = vpop.f32.mrb[5].mxu0 }
  0xef   : > { %v872_v50 = vpop.f32.mrb[6].mxu0 }
  0xf0   : > { %v1254_v51 = vsub.f32 0.0, %v870_v48  ;;  %v873_v52 = vadd.f32 %v17365_v34, %v872_v50  ;;  %v14447_v53 = vpop.f32.mrb[7].mxu0 }
  0xf2   : > { %v1354_v54 = vmul.f32 1.442695, %v1254_v51  ;;  %v1255_v55 = vsub.f32 0.0, %v873_v52  ;;  %14553 = vmatmul.mubr.msk.bf16.gmra.mrb[112].mxu0 %vm672_vm3, %v15878_v46 }
  0xf3   : > { %14556 = vmatprep.mubr.msk.bf16.mxu0 %vm17184_vm2, %v17182_v1 }
  0xf4   : > { %16732 = vpow2.f32 %v1354_v54  ;;  %v1356_v56 = vmul.f32 1.442695, %v1255_v55 }
  0xf5   : > { %v877_v58 = vpop.f32.mrb[8].mxu0 }
  0xf6   : > { %v16729_v59 = vpop.eup %16728  ;;  %16734 = vpow2.f32 %v1356_v56  ;;  %v878_v60 = vadd.f32 %v17365_v34, %v877_v58  ;;  %v14450_v61 = vpop.f32.mrb[9].mxu0 }
  0xf7   : > { %v1546_v62 = vadd.f32 1.0, %v16729_v59  ;;  %v880_v63 = vpop.f32.mrb[10].mxu0 }
  0xf8   : > { %v16731_v0 = vpop.eup %16730  ;;  %v1256_v2 = vsub.f32 0.0, %v878_v60  ;;  %v881_v3 = vadd.f32 %v17365_v34, %v880_v63  ;;  %v14451_v4 = vpop.f32.mrb[11].mxu0 }
  0xf9   : > { %v1547_v5 = vadd.f32 1.0, %v16731_v0  ;;  %16736 = vrcp.f32 %v1546_v62  ;;  %v15883_v62 = vld [vmem:[%s17255_s14 + $0x108] sm:$0xff]  }
  0xfa   : > { %v1358_v6 = vmul.f32 1.442695, %v1256_v2  ;;  %v1257_v7 = vsub.f32 0.0, %v881_v3  ;;  %14557 = vmatmul.mubr.msk.bf16.gmra.mrb[116].mxu0 %vm672_vm3, %v15879_v57 }
  0xfb   : > { %16738 = vrcp.f32 %v1547_v5  ;;  %14560 = vmatprep.mubr.msk.bf16.mxu0 %vm17184_vm2, %v17182_v1 }
  0xfc   : > { %16740 = vpow2.f32 %v1358_v6  ;;  %v1360_v8 = vmul.f32 1.442695, %v1257_v7 }
  0xfd   : > { %v885_v10 = vpop.f32.mrb[12].mxu0 }
  0xfe   : > { %v16733_v11 = vpop.eup %16732  ;;  %16742 = vpow2.f32 %v1360_v8  ;;  %v886_v12 = vadd.f32 %v17365_v34, %v885_v10  ;;  %v14454_v13 = vpop.f32.mrb[13].mxu0 }
  0xff   : > { %v1548_v14 = vadd.f32 1.0, %v16733_v11  ;;  %v888_v15 = vpop.f32.mrb[14].mxu0  ;;  %v15900_v13 = vld [vmem:[%s22212_s3 + $0x4] ss:$28 sps:$4 sm:$0xff]  }
 0x100   : > { %v16735_v16 = vpop.eup %16734  ;;  %v1258_v17 = vsub.f32 0.0, %v886_v12  ;;  %v889_v18 = vadd.f32 %v17365_v34, %v888_v15  ;;  %v14455_v19 = vpop.f32.mrb[15].mxu0  ;;  %2407 = vmatprep.mubr.bf16.mxu1 %v15900_v13 }
 0x101   : > { %v1549_v20 = vadd.f32 1.0, %v16735_v16  ;;  %16744 = vrcp.f32 %v1548_v14 }
 0x102   : > { %v1362_v21 = vmul.f32 1.442695, %v1258_v17  ;;  %v1259_v22 = vsub.f32 0.0, %v889_v18  ;;  %14561 = vmatmul.mubr.msk.bf16.gmra.mrb[120].mxu0 %vm672_vm3, %v15880_v9  ;;  %v15884_v18 = vld [vmem:[%s17255_s14 + $0x110] sm:$0xff]  }
 0x103   : > { %16746 = vrcp.f32 %v1549_v20  ;;  %14564 = vmatprep.mubr.msk.bf16.mxu0 %vm17184_vm2, %v17182_v1  ;;  %v17394_v23 = vpop.eup %16736 }
 0x104   : > { %16748 = vpow2.f32 %v1362_v21  ;;  %v1364_v24 = vmul.f32 1.442695, %v1259_v22 }
 0x105   : > { %v17397_v26 = vpop.eup %16738  ;;  %v893_v27 = vpop.f32.mrb[16].mxu0 }
 0x106   : > { %v16741_v28 = vpop.eup %16740  ;;  %16750 = vpow2.f32 %v1364_v24  ;;  %v894_v29 = vadd.f32 %v17365_v34, %v893_v27  ;;  %v14458_v30 = vpop.f32.mrb[17].mxu0  ;;  %v1842_v31 = vpack.c.bf16 %v17397_v26, %v17394_v23 }
 0x107   : > { %v1550_v32 = vadd.f32 1.0, %v16741_v28  ;;  %v896_v33 = vpop.f32.mrb[18].mxu0 }
 0x108   : > { %v16743_v35 = vpop.eup %16742  ;;  %v1260_v36 = vsub.f32 0.0, %v894_v29  ;;  %v897_v37 = vadd.f32 %v17365_v34, %v896_v33  ;;  %v14459_v38 = vpop.f32.mrb[19].mxu0 }
 0x109   : > { %v1551_v39 = vadd.f32 1.0, %v16743_v35  ;;  %16752 = vrcp.f32 %v1550_v32 }
 0x10a   : > { %v1366_v40 = vmul.f32 1.442695, %v1260_v36  ;;  %v1261_v41 = vsub.f32 0.0, %v897_v37  ;;  %14565 = vmatmul.mubr.msk.bf16.gmra.mrb[124].mxu0 %vm672_vm3, %v15881_v25 }
 0x10b   : > { %16754 = vrcp.f32 %v1551_v39  ;;  %14568 = vmatprep.mubr.msk.bf16.mxu0 %vm17184_vm2, %v17182_v1  ;;  %v17406_v42 = vpop.eup %16744 }
 0x10c   : > { %16756 = vpow2.f32 %v1366_v40  ;;  %v1368_v43 = vmul.f32 1.442695, %v1261_v41  ;;  %v15885_v40 = vld [vmem:[%s17255_s14 + $0x118] sm:$0xff]  }
 0x10d   : > { %v17409_v45 = vpop.eup %16746  ;;  %v901_v46 = vpop.f32.mrb[20].mxu0 }
 0x10e   : > { %v16749_v47 = vpop.eup %16748  ;;  %16758 = vpow2.f32 %v1368_v43  ;;  %v902_v48 = vadd.f32 %v17365_v34, %v901_v46  ;;  %v14462_v49 = vpop.f32.mrb[21].mxu0  ;;  %v1843_v50 = vpack.c.bf16 %v17409_v45, %v17406_v42 }
 0x10f   : > { %v1552_v51 = vadd.f32 1.0, %v16749_v47  ;;  %v904_v52 = vpop.f32.mrb[22].mxu0 }
 0x110   : > { %v16751_v53 = vpop.eup %16750  ;;  %v1262_v54 = vsub.f32 0.0, %v902_v48  ;;  %v905_v55 = vadd.f32 %v17365_v34, %v904_v52  ;;  %v14463_v56 = vpop.f32.mrb[23].mxu0 }
 0x111   : > { %v1553_v57 = vadd.f32 1.0, %v16751_v53  ;;  %16760 = vrcp.f32 %v1552_v51 }
 0x112   : > { %v1370_v58 = vmul.f32 1.442695, %v1262_v54  ;;  %v1263_v59 = vsub.f32 0.0, %v905_v55  ;;  %14569 = vmatmul.mubr.msk.bf16.gmra.mrb[128].mxu0 %vm672_vm3, %v15882_v44 }
 0x113   : > { %16762 = vrcp.f32 %v1553_v57  ;;  %14572 = vmatprep.mubr.msk.bf16.mxu0 %vm17184_vm2, %v17182_v1  ;;  %v17418_v60 = vpop.eup %16752 }
 0x114   : > { %16764 = vpow2.f32 %v1370_v58  ;;  %v1372_v61 = vmul.f32 1.442695, %v1263_v59 }
 0x115   : > { %v17421_v63 = vpop.eup %16754  ;;  %v909_v0 = vpop.f32.mrb[24].mxu0 }
 0x116   : > { %v16757_v2 = vpop.eup %16756  ;;  %16766 = vpow2.f32 %v1372_v61  ;;  %v910_v3 = vadd.f32 %v17365_v34, %v909_v0  ;;  %v14466_v4 = vpop.f32.mrb[25].mxu0  ;;  %v1844_v5 = vpack.c.bf16 %v17421_v63, %v17418_v60 }
 0x117   : > { %v1554_v6 = vadd.f32 1.0, %v16757_v2  ;;  %v912_v7 = vpop.f32.mrb[26].mxu0 }
 0x118   : > { %v16759_v8 = vpop.eup %16758  ;;  %v1264_v9 = vsub.f32 0.0, %v910_v3  ;;  %v913_v10 = vadd.f32 %v17365_v34, %v912_v7  ;;  %v14467_v11 = vpop.f32.mrb[27].mxu0 }
 0x119   : > { %v1555_v12 = vadd.f32 1.0, %v16759_v8  ;;  %16768 = vrcp.f32 %v1554_v6 }
 0x11a   : > { %v1374_v14 = vmul.f32 1.442695, %v1264_v9  ;;  %v1265_v15 = vsub.f32 0.0, %v913_v10  ;;  %14573 = vmatmul.mubr.msk.bf16.gmra.mrb[132].mxu0 %vm672_vm3, %v15883_v62  ;;  %v15886_v62 = vld [vmem:[%s17255_s14 + $0x120] sm:$0xff]  }
 0x11b   : > { %16770 = vrcp.f32 %v1555_v12  ;;  %14576 = vmatprep.mubr.msk.bf16.mxu0 %vm17184_vm2, %v17182_v1  ;;  %v17433_v16 = vpop.eup %16760 }
 0x11c   : > { %16772 = vpow2.f32 %v1374_v14  ;;  %v1376_v17 = vmul.f32 1.442695, %v1265_v15 }
 0x11d   : > { %v17436_v19 = vpop.eup %16762  ;;  %v917_v20 = vpop.f32.mrb[28].mxu0 }
 0x11e   : > { %v16765_v21 = vpop.eup %16764  ;;  %16774 = vpow2.f32 %v1376_v17  ;;  %v918_v22 = vadd.f32 %v17365_v34, %v917_v20  ;;  %v14470_v24 = vpop.f32.mrb[29].mxu0  ;;  %v1845_v25 = vpack.c.bf16 %v17436_v19, %v17433_v16 }
 0x11f   : > { %v1556_v27 = vadd.f32 1.0, %v16765_v21  ;;  %v920_v28 = vpop.f32.mrb[30].mxu0  ;;  %v15887_v21 = vld [vmem:[%s17255_s14 + $0x128] sm:$0xff]  }
 0x120   : > { %v16767_v29 = vpop.eup %16766  ;;  %v1266_v30 = vsub.f32 0.0, %v918_v22  ;;  %v921_v32 = vadd.f32 %v17365_v34, %v920_v28  ;;  %v14471_v33 = vpop.f32.mrb[31].mxu0 }
 0x121   : > { %v1557_v35 = vadd.f32 1.0, %v16767_v29  ;;  %16776 = vrcp.f32 %v1556_v27 }
 0x122   : > { %v1378_v36 = vmul.f32 1.442695, %v1266_v30  ;;  %v1267_v37 = vsub.f32 0.0, %v921_v32  ;;  %14577 = vmatmul.mubr.msk.bf16.gmra.mrb[136].mxu0 %vm672_vm3, %v15884_v18 }
 0x123   : > { %16778 = vrcp.f32 %v1557_v35  ;;  %14580 = vmatprep.mubr.msk.bf16.mxu0 %vm17184_vm2, %v17182_v1  ;;  %v17445_v38 = vpop.eup %16768 }
 0x124   : > { %16780 = vpow2.f32 %v1378_v36  ;;  %v1380_v39 = vmul.f32 1.442695, %v1267_v37 }
 0x125   : > { %v17448_v41 = vpop.eup %16770  ;;  %v925_v43 = vpop.f32.mrb[32].mxu0 }
 0x126   : > { %v16773_v44 = vpop.eup %16772  ;;  %16782 = vpow2.f32 %v1380_v39  ;;  %v926_v46 = vadd.f32 %v17365_v34, %v925_v43  ;;  %v14474_v47 = vpop.f32.mrb[33].mxu0  ;;  %v1846_v48 = vpack.c.bf16 %v17448_v41, %v17445_v38 }
 0x127   : > { %v1558_v49 = vadd.f32 1.0, %v16773_v44  ;;  %v928_v51 = vpop.f32.mrb[34].mxu0 }
 0x128   : > { %v16775_v52 = vpop.eup %16774  ;;  %v1268_v53 = vsub.f32 0.0, %v926_v46  ;;  %v929_v54 = vadd.f32 %v17365_v34, %v928_v51  ;;  %v14475_v55 = vpop.f32.mrb[35].mxu0 }
 0x129   : > { %v1559_v56 = vadd.f32 1.0, %v16775_v52  ;;  %16784 = vrcp.f32 %v1558_v49  ;;  %v15888_v55 = vld [vmem:[%s17255_s14 + $0x130] sm:$0xff]  }
 0x12a   : > { %v1382_v57 = vmul.f32 1.442695, %v1268_v53  ;;  %v1269_v58 = vsub.f32 0.0, %v929_v54  ;;  %14581 = vmatmul.mubr.msk.bf16.gmra.mrb[140].mxu0 %vm672_vm3, %v15885_v40 }
 0x12b   : > { %16786 = vrcp.f32 %v1559_v56  ;;  %14584 = vmatprep.mubr.msk.bf16.mxu0 %vm17184_vm2, %v17182_v1  ;;  %v17457_v59 = vpop.eup %16776 }
 0x12c   : > { %16788 = vpow2.f32 %v1382_v57  ;;  %v1384_v61 = vmul.f32 1.442695, %v1269_v58 }
 0x12d   : > { %v17460_v0 = vpop.eup %16778  ;;  %v933_v2 = vpop.f32.mrb[36].mxu0 }
 0x12e   : > { %v16781_v3 = vpop.eup %16780  ;;  %16790 = vpow2.f32 %v1384_v61  ;;  %v934_v4 = vadd.f32 %v17365_v34, %v933_v2  ;;  %v14478_v6 = vpop.f32.mrb[37].mxu0  ;;  %v1847_v7 = vpack.c.bf16 %v17460_v0, %v17457_v59 }
 0x12f   : > { %v1560_v8 = vadd.f32 1.0, %v16781_v3  ;;  %v936_v9 = vpop.f32.mrb[38].mxu0 }
 0x130   : > { %v16783_v10 = vpop.eup %16782  ;;  %v1270_v11 = vsub.f32 0.0, %v934_v4  ;;  %v937_v12 = vadd.f32 %v17365_v34, %v936_v9  ;;  %v14479_v13 = vpop.f32.mrb[39].mxu0 }
 0x131   : > { %v1561_v14 = vadd.f32 1.0, %v16783_v10  ;;  %16792 = vrcp.f32 %v1560_v8 }
 0x132   : > { %v1386_v15 = vmul.f32 1.442695, %v1270_v11  ;;  %v1271_v17 = vsub.f32 0.0, %v937_v12  ;;  %14585 = vmatmul.mubr.msk.bf16.gmra.mrb[144].mxu0 %vm672_vm3, %v15886_v62 }
 0x133   : > { %16794 = vrcp.f32 %v1561_v14  ;;  %14588 = vmatprep.mubr.msk.bf16.mxu0 %vm17184_vm2, %v17182_v1  ;;  %v17469_v18 = vpop.eup %16784 }
 0x134   : > { %16796 = vpow2.f32 %v1386_v15  ;;  %v1388_v20 = vmul.f32 1.442695, %v1271_v17 }
 0x135   : > { %v17472_v22 = vpop.eup %16786  ;;  %v941_v24 = vpop.f32.mrb[40].mxu0 }
 0x136   : > { %v16789_v27 = vpop.eup %16788  ;;  %16798 = vpow2.f32 %v1388_v20  ;;  %v942_v28 = vadd.f32 %v17365_v34, %v941_v24  ;;  %v14482_v29 = vpop.f32.mrb[41].mxu0  ;;  %v1848_v30 = vpack.c.bf16 %v17472_v22, %v17469_v18  ;;  %v15889_v20 = vld [vmem:[%s17255_s14 + $0x138] sm:$0xff]  }
 0x137   : > { %v1562_v32 = vadd.f32 1.0, %v16789_v27  ;;  %v944_v33 = vpop.f32.mrb[42].mxu0 }
 0x138   : > { %v16791_v35 = vpop.eup %16790  ;;  %v1272_v36 = vsub.f32 0.0, %v942_v28  ;;  %v945_v37 = vadd.f32 %v17365_v34, %v944_v33  ;;  %v14483_v39 = vpop.f32.mrb[43].mxu0 }
 0x139   : > { %v1563_v40 = vadd.f32 1.0, %v16791_v35  ;;  %16800 = vrcp.f32 %v1562_v32 }
 0x13a   : > { %v1390_v43 = vmul.f32 1.442695, %v1272_v36  ;;  %v1273_v44 = vsub.f32 0.0, %v945_v37  ;;  %14589 = vmatmul.mubr.msk.bf16.gmra.mrb[148].mxu0 %vm672_vm3, %v15887_v21 }
 0x13b   : > { %16802 = vrcp.f32 %v1563_v40  ;;  %14592 = vmatprep.mubr.msk.bf16.mxu0 %vm17184_vm2, %v17182_v1  ;;  %v17481_v46 = vpop.eup %16792 }
 0x13c   : > { %16804 = vpow2.f32 %v1390_v43  ;;  %v1392_v47 = vmul.f32 1.442695, %v1273_v44 }
 0x13d   : > { %v17483_v49 = vpop.eup %16794  ;;  %v949_v51 = vpop.f32.mrb[44].mxu0 }
 0x13e   : > { %v16797_v52 = vpop.eup %16796  ;;  %16806 = vpow2.f32 %v1392_v47  ;;  %v950_v53 = vadd.f32 %v17365_v34, %v949_v51  ;;  %v14486_v54 = vpop.f32.mrb[45].mxu0  ;;  %v1849_v56 = vpack.c.bf16 %v17483_v49, %v17481_v46  ;;  %v15890_v47 = vld [vmem:[%s17255_s14 + $0x140] sm:$0xff]  }
 0x13f   : > { %v1564_v57 = vadd.f32 1.0, %v16797_v52  ;;  %v952_v58 = vpop.f32.mrb[46].mxu0 }
 0x140   : > { %v16799_v61 = vpop.eup %16798  ;;  %v1274_v62 = vsub.f32 0.0, %v950_v53  ;;  %v953_v2 = vadd.f32 %v17365_v34, %v952_v58  ;;  %v14487_v3 = vpop.f32.mrb[47].mxu0  ;;  %v17496_v34 = vld [vmem:[%s22211_s2] ss:$0 sm:$0xff] }
 0x141   : > { %v1565_v4 = vadd.f32 1.0, %v16799_v61  ;;  %16808 = vrcp.f32 %v1564_v57 }
 0x142   : > { %v1394_v6 = vmul.f32 1.442695, %v1274_v62  ;;  %v1275_v8 = vsub.f32 0.0, %v953_v2  ;;  %14593 = vmatmul.mubr.msk.bf16.gmra.mrb[152].mxu0 %vm672_vm3, %v15888_v55 }
 0x143   : > { %16810 = vrcp.f32 %v1565_v4  ;;  %14596 = vmatprep.mubr.msk.bf16.mxu0 %vm17184_vm2, %v17182_v1  ;;  %v16801_v9 = vpop.eup %16800 }
 0x144   : > { %16812 = vpow2.f32 %v1394_v6  ;;  %v1396_v10 = vmul.f32 1.442695, %v1275_v8 }
 0x145   : > { %v16803_v11 = vpop.eup %16802  ;;  %v957_v12 = vpop.f32.mrb[48].mxu0 }
 0x146   : > { %v16805_v13 = vpop.eup %16804  ;;  %16814 = vpow2.f32 %v1396_v10  ;;  %v958_v14 = vadd.f32 %v17496_v34, %v957_v12  ;;  %v14490_v15 = vpop.f32.mrb[49].mxu0  ;;  %v1850_v17 = vpack.c.bf16 %v16803_v11, %v16801_v9  ;;  %v15891_v9 = vld [vmem:[%s17255_s14 + $0x148] sm:$0xff]  }
 0x147   : > { %v1566_v21 = vadd.f32 1.0, %v16805_v13  ;;  %v960_v24 = vpop.f32.mrb[50].mxu0 }
 0x148   : > { %v16807_v27 = vpop.eup %16806  ;;  %v1276_v28 = vsub.f32 0.0, %v958_v14  ;;  %v961_v29 = vadd.f32 %v17496_v34, %v960_v24  ;;  %v14491_v32 = vpop.f32.mrb[51].mxu0  ;;  %13756 = vmatprep.subr.bf16.mxu1 %v1850_v17 }
 0x149   : > { %v1567_v33 = vadd.f32 1.0, %v16807_v27  ;;  %13757 = vmatpush3.bf16.msra.mxu1 %v1842_v31  ;;  %16816 = vrcp.f32 %v1566_v21 }
 0x14a   : > { %v1398_v35 = vmul.f32 1.442695, %v1276_v28  ;;  %v1277_v36 = vsub.f32 0.0, %v961_v29  ;;  %14597 = vmatmul.mubr.msk.bf16.gmra.mrb[156].mxu0 %vm672_vm3, %v15889_v20 }
 0x14b   : > { %16818 = vrcp.f32 %v1567_v33  ;;  %14600 = vmatprep.mubr.msk.bf16.mxu0 %vm17184_vm2, %v17182_v1  ;;  %v16809_v37 = vpop.eup %16808  ;;  %v15892_v33 = vld [vmem:[%s17255_s14 + $0x150] sm:$0xff]  }
 0x14c   : > { %16820 = vpow2.f32 %v1398_v35  ;;  %v1400_v39 = vmul.f32 1.442695, %v1277_v36 }
 0x14d   : > { %v16811_v40 = vpop.eup %16810  ;;  %v965_v43 = vpop.f32.mrb[52].mxu0 }
 0x14e   : > { %v16813_v44 = vpop.eup %16812  ;;  %16822 = vpow2.f32 %v1400_v39  ;;  %v966_v23 = vadd.f32 %v17496_v34, %v965_v43  ;;  %v14494_v26 = vpop.f32.mrb[53].mxu0  ;;  %v1851_v31 = vpack.c.bf16 %v16811_v40, %v16809_v37 }
 0x14f   : > { %v1568_v51 = vadd.f32 1.0, %v16813_v44  ;;  %v968_v52 = vpop.f32.mrb[54].mxu0 }
 0x150   : > { %v16815_v53 = vpop.eup %16814  ;;  %v1278_v54 = vsub.f32 0.0, %v966_v23  ;;  %v969_v55 = vadd.f32 %v17496_v34, %v968_v52  ;;  %v14495_v57 = vpop.f32.mrb[55].mxu0  ;;  %13758 = vmatprep.subr.bf16.mxu1 %v1851_v31 }
 0x151   : > { %v1569_v58 = vadd.f32 1.0, %v16815_v53  ;;  %13759 = vmatpush3.bf16.msra.mxu1 %v1843_v50  ;;  %16824 = vrcp.f32 %v1568_v51 }
 0x152   : > { %v1402_v61 = vmul.f32 1.442695, %v1278_v54  ;;  %v1279_v62 = vsub.f32 0.0, %v969_v55  ;;  %14601 = vmatmul.mubr.msk.bf16.gmra.mrb[160].mxu0 %vm672_vm3, %v15890_v47  ;;  %v15893_v54 = vld [vmem:[%s17255_s14 + $0x158] sm:$0xff]  }
 0x153   : > { %16826 = vrcp.f32 %v1569_v58  ;;  %14604 = vmatprep.mubr.msk.bf16.mxu0 %vm17184_vm2, %v17182_v1  ;;  %v16817_v2 = vpop.eup %16816 }
 0x154   : > { %16828 = vpow2.f32 %v1402_v61  ;;  %v1404_v3 = vmul.f32 1.442695, %v1279_v62 }
 0x155   : > { %v16819_v4 = vpop.eup %16818  ;;  %v973_v6 = vpop.f32.mrb[56].mxu0 }
 0x156   : > { %v16821_v8 = vpop.eup %16820  ;;  %16830 = vpow2.f32 %v1404_v3  ;;  %v974_v42 = vadd.f32 %v17496_v34, %v973_v6  ;;  %v14498_v45 = vpop.f32.mrb[57].mxu0  ;;  %v1852_v50 = vpack.c.bf16 %v16819_v4, %v16817_v2 }
 0x157   : > { %v1570_v10 = vadd.f32 1.0, %v16821_v8  ;;  %v976_v11 = vpop.f32.mrb[58].mxu0 }
 0x158   : > { %v16823_v12 = vpop.eup %16822  ;;  %v1280_v13 = vsub.f32 0.0, %v974_v42  ;;  %v977_v14 = vadd.f32 %v17496_v34, %v976_v11  ;;  %v14499_v15 = vpop.f32.mrb[59].mxu0  ;;  %13760 = vmatprep.subr.bf16.mxu1 %v1852_v50 }
 0x159   : > { %v1571_v17 = vadd.f32 1.0, %v16823_v12  ;;  %13761 = vmatpush3.bf16.msra.mxu1 %v1844_v5  ;;  %16832 = vrcp.f32 %v1570_v10  ;;  %v15894_v10 = vld [vmem:[%s17255_s14 + $0x160] sm:$0xff]  }
 0x15a   : > { %v1406_v20 = vmul.f32 1.442695, %v1280_v13  ;;  %v1281_v21 = vsub.f32 0.0, %v977_v14  ;;  %14605 = vmatmul.mubr.msk.bf16.gmra.mrb[164].mxu0 %vm672_vm3, %v15891_v9 }
 0x15b   : > { %16834 = vrcp.f32 %v1571_v17  ;;  %14608 = vmatprep.mubr.msk.bf16.mxu0 %vm17184_vm2, %v17182_v1  ;;  %v16825_v24 = vpop.eup %16824 }
 0x15c   : > { %16836 = vpow2.f32 %v1406_v20  ;;  %v1408_v27 = vmul.f32 1.442695, %v1281_v21 }
 0x15d   : > { %v16827_v28 = vpop.eup %16826  ;;  %v981_v29 = vpop.f32.mrb[60].mxu0 }
 0x15e   : > { %v16829_v32 = vpop.eup %16828  ;;  %16838 = vpow2.f32 %v1408_v27  ;;  %v982_v60 = vadd.f32 %v17496_v34, %v981_v29  ;;  %v14502_v63 = vpop.f32.mrb[61].mxu0  ;;  %v1853_v5 = vpack.c.bf16 %v16827_v28, %v16825_v24 }
 0x15f   : > { %v1572_v35 = vadd.f32 1.0, %v16829_v32  ;;  %v984_v36 = vpop.f32.mrb[62].mxu0  ;;  %v15895_v63 = vld [vmem:[%s17255_s14 + $0x168] sm:$0xff]  }
 0x160   : > { %v16831_v37 = vpop.eup %16830  ;;  %v1282_v39 = vsub.f32 0.0, %v982_v60  ;;  %v985_v40 = vadd.f32 %v17496_v34, %v984_v36  ;;  %v14503_v43 = vpop.f32.mrb[63].mxu0  ;;  %13762 = vmatprep.subr.bf16.mxu1 %v1853_v5 }
 0x161   : > { %v1573_v44 = vadd.f32 1.0, %v16831_v37  ;;  %13763 = vmatpush3.bf16.msra.mxu1 %v1845_v25  ;;  %16840 = vrcp.f32 %v1572_v35 }
 0x162   : > { %v1410_v23 = vmul.f32 1.442695, %v1282_v39  ;;  %v1283_v26 = vsub.f32 0.0, %v985_v40  ;;  %14609 = vmatmul.mubr.msk.bf16.gmra.mrb[168].mxu0 %vm672_vm3, %v15892_v33 }
 0x163   : > { %16842 = vrcp.f32 %v1573_v44  ;;  %14612 = vmatprep.mubr.msk.bf16.mxu0 %vm17184_vm2, %v17182_v1  ;;  %v16833_v31 = vpop.eup %16832 }
 0x164   : > { %16844 = vpow2.f32 %v1410_v23  ;;  %v1412_v47 = vmul.f32 1.442695, %v1283_v26 }
 0x165   : > { %v16835_v51 = vpop.eup %16834  ;;  %v989_v52 = vpop.f32.mrb[64].mxu0 }
 0x166   : > { %v16837_v53 = vpop.eup %16836  ;;  %16846 = vpow2.f32 %v1412_v47  ;;  %v990_v16 = vadd.f32 %v17496_v34, %v989_v52  ;;  %v14506_v19 = vpop.f32.mrb[65].mxu0  ;;  %v1854_v25 = vpack.c.bf16 %v16835_v51, %v16833_v31  ;;  %v15896_v52 = vld [vmem:[%s17255_s14 + $0x170] sm:$0xff]  }
 0x167   : > { %v1574_v55 = vadd.f32 1.0, %v16837_v53  ;;  %v992_v57 = vpop.f32.mrb[66].mxu0 }
 0x168   : > { %v16839_v58 = vpop.eup %16838  ;;  %v1284_v61 = vsub.f32 0.0, %v990_v16  ;;  %v993_v62 = vadd.f32 %v17496_v34, %v992_v57  ;;  %v14507_v2 = vpop.f32.mrb[67].mxu0  ;;  %13764 = vmatprep.subr.bf16.mxu1 %v1854_v25  ;;  %v15898_v57 = vld [vmem:[%s22212_s3] ss:$28 sps:$4 sm:$0xff]  }
 0x169   : > { %v1575_v3 = vadd.f32 1.0, %v16839_v58  ;;  %13765 = vmatpush3.bf16.msra.mxu1 %v1846_v48  ;;  %16848 = vrcp.f32 %v1574_v55 }
 0x16a   : > { %v1414_v4 = vmul.f32 1.442695, %v1284_v61  ;;  %v1285_v6 = vsub.f32 0.0, %v993_v62  ;;  %14613 = vmatmul.mubr.msk.bf16.gmra.mrb[172].mxu0 %vm672_vm3, %v15893_v54  ;;  %v15901_v61 = vld [vmem:[%s22212_s3 + $0x3c] ss:$28 sps:$4 sm:$0xff]  }
 0x16b   : > { %16850 = vrcp.f32 %v1575_v3  ;;  %14616 = vmatprep.mubr.msk.bf16.mxu0 %vm17184_vm2, %v17182_v1  ;;  %v16841_v8 = vpop.eup %16840 }
 0x16c   : > { %16852 = vpow2.f32 %v1414_v4  ;;  %v1416_v42 = vmul.f32 1.442695, %v1285_v6 }
 0x16d   : > { %v16843_v45 = vpop.eup %16842  ;;  %v997_v50 = vpop.f32.mrb[68].mxu0 }
 0x16e   : > { %v16845_v9 = vpop.eup %16844  ;;  %16854 = vpow2.f32 %v1416_v42  ;;  %v998_v38 = vadd.f32 %v17496_v34, %v997_v50  ;;  %v14510_v41 = vpop.f32.mrb[69].mxu0  ;;  %v1855_v48 = vpack.c.bf16 %v16843_v45, %v16841_v8  ;;  %v15897_v42 = vld [vmem:[%s17255_s14 + $0x178] sm:$0xff]  }
 0x16f   : > { %v1576_v11 = vadd.f32 1.0, %v16845_v9  ;;  %v1000_v12 = vpop.f32.mrb[70].mxu0 }
 0x170   : > { %v16847_v13 = vpop.eup %16846  ;;  %v1286_v14 = vsub.f32 0.0, %v998_v38  ;;  %v1001_v15 = vadd.f32 %v17496_v34, %v1000_v12  ;;  %v14511_v17 = vpop.f32.mrb[71].mxu0  ;;  %13766 = vmatprep.subr.bf16.mxu1 %v1855_v48 }
 0x171   : > { %v1577_v20 = vadd.f32 1.0, %v16847_v13  ;;  %13767 = vmatpush3.bf16.msra.mxu1 %v1847_v7  ;;  %16856 = vrcp.f32 %v1576_v11  ;;  %v15903_v11 = vld [vmem:[%s22212_s3 + $0x38] ss:$28 sps:$4 sm:$0xff]  }
 0x172   : > { %v1418_v21 = vmul.f32 1.442695, %v1286_v14  ;;  %v1287_v24 = vsub.f32 0.0, %v1001_v15  ;;  %14617 = vmatmul.mubr.msk.bf16.gmra.mrb[176].mxu0 %vm672_vm3, %v15894_v10  ;;  %v15904_v13 = vld [vmem:[%s22212_s3 + $0x74] ss:$28 sps:$4 sm:$0xff]  }
 0x173   : > { %16858 = vrcp.f32 %v1577_v20  ;;  %14620 = vmatprep.mubr.msk.bf16.mxu0 %vm17184_vm2, %v17182_v1  ;;  %v16849_v27 = vpop.eup %16848 }
 0x174   : > { %16860 = vpow2.f32 %v1418_v21  ;;  %v1420_v28 = vmul.f32 1.442695, %v1287_v24 }
 0x175   : > { %v16851_v29 = vpop.eup %16850  ;;  %v1005_v32 = vpop.f32.mrb[72].mxu0 }
 0x176   : > { %v16853_v60 = vpop.eup %16852  ;;  %16862 = vpow2.f32 %v1420_v28  ;;  %v1006_v59 = vadd.f32 %v17496_v34, %v1005_v32  ;;  %v14514_v0 = vpop.f32.mrb[73].mxu0  ;;  %v1856_v7 = vpack.c.bf16 %v16851_v29, %v16849_v27 }
 0x177   : > { %v1578_v5 = vadd.f32 1.0, %v16853_v60  ;;  %v1008_v33 = vpop.f32.mrb[74].mxu0  ;;  %v15931_v60 = vld [vmem:[%s17255_s14 + $0x180] sm:$0xff]  }
 0x178   : > { %v16855_v35 = vpop.eup %16854  ;;  %v1288_v36 = vsub.f32 0.0, %v1006_v59  ;;  %v1009_v37 = vadd.f32 %v17496_v34, %v1008_v33  ;;  %v14515_v39 = vpop.f32.mrb[75].mxu0  ;;  %13768 = vmatprep.subr.bf16.mxu1 %v1856_v7 }
 0x179   : > { %v1579_v40 = vadd.f32 1.0, %v16855_v35  ;;  %13769 = vmatpush3.bf16.msra.mxu1 %v1848_v30  ;;  %16864 = vrcp.f32 %v1578_v5  ;;  %v15906_v35 = vld [vmem:[%s22212_s3 + $0x70] ss:$28 sps:$4 sm:$0xff]  }
 0x17a   : > { %v1422_v43 = vmul.f32 1.442695, %v1288_v36  ;;  %v1289_v44 = vsub.f32 0.0, %v1009_v37  ;;  %14621 = vmatmul.mubr.msk.bf16.gmra.mrb[180].mxu0 %vm672_vm3, %v15895_v63  ;;  %v15907_v37 = vld [vmem:[%s22212_s3 + $0xac] ss:$28 sps:$4 sm:$0xff]  }
 0x17b   : > { %16866 = vrcp.f32 %v1579_v40  ;;  %14624 = vmatprep.mubr.msk.bf16.mxu0 %vm17184_vm2, %v17182_v1  ;;  %v16857_v23 = vpop.eup %16856 }
 0x17c   : > { %16868 = vpow2.f32 %v1422_v43  ;;  %v1424_v26 = vmul.f32 1.442695, %v1289_v44 }
 0x17d   : > { %v16859_v31 = vpop.eup %16858  ;;  %v1013_v47 = vpop.f32.mrb[76].mxu0 }
 0x17e   : > { %v16861_v51 = vpop.eup %16860  ;;  %16870 = vpow2.f32 %v1424_v26  ;;  %v1014_v18 = vadd.f32 %v17496_v34, %v1013_v47  ;;  %v14518_v22 = vpop.f32.mrb[77].mxu0  ;;  %v1857_v30 = vpack.c.bf16 %v16859_v31, %v16857_v23 }
 0x17f   : > { %v1580_v53 = vadd.f32 1.0, %v16861_v51  ;;  %v1016_v16 = vpop.f32.mrb[78].mxu0 }
 0x180   : > { %v16863_v19 = vpop.eup %16862  ;;  %v1290_v25 = vsub.f32 0.0, %v1014_v18  ;;  %v1017_v54 = vadd.f32 %v17496_v34, %v1016_v16  ;;  %v14519_v55 = vpop.f32.mrb[79].mxu0  ;;  %13770 = vmatprep.subr.bf16.mxu1 %v1857_v30 }
 0x181   : > { %v1581_v58 = vadd.f32 1.0, %v16863_v19  ;;  %13771 = vmatpush3.bf16.msra.mxu1 %v1849_v56  ;;  %16872 = vrcp.f32 %v1580_v53  ;;  %v15910_v55 = vld [vmem:[%s22212_s3 + $0xe4] ss:$28 sps:$4 sm:$0xff]  }
 0x182   : > { %v1426_v62 = vmul.f32 1.442695, %v1290_v25  ;;  %v1291_v2 = vsub.f32 0.0, %v1017_v54  ;;  %14625 = vmatmul.mubr.msk.bf16.gmra.mrb[184].mxu0 %vm672_vm3, %v15896_v52  ;;  %v15909_v25 = vld [vmem:[%s22212_s3 + $0xa8] ss:$28 sps:$4 sm:$0xff]  }
 0x183   : > { %16874 = vrcp.f32 %v1581_v58  ;;  %14628 = vmatprep.mubr.msk.bf16.mxu0 %vm17184_vm2, %v17182_v1  ;;  %v17576_v3 = vpop.eup %16864 }
 0x184   : > { %16876 = vpow2.f32 %v1426_v62  ;;  %v1428_v4 = vmul.f32 1.442695, %v1291_v2  ;;  %2408 = vmatmul.mubr.bf16.vlgmr.msra.gmra.mrb[0].mxu1 %v15898_v57 }
 0x185   : > { %v17578_v46 = vpop.eup %16866  ;;  %v1021_v49 = vpop.f32.mrb[80].mxu0  ;;  %2415 = vmatprep.mubr.bf16.mxu1 %v15901_v61 }
 0x186   : > { %v16869_v56 = vpop.eup %16868  ;;  %16878 = vpow2.f32 %v1428_v4  ;;  %v1022_v6 = vadd.f32 %v17496_v34, %v1021_v49  ;;  %v14522_v8 = vpop.f32.mrb[81].mxu0  ;;  %v1858_v45 = vpack.c.bf16 %v17578_v46, %v17576_v3 }
 0x187   : > { %v1582_v50 = vadd.f32 1.0, %v16869_v56  ;;  %v1024_v9 = vpop.f32.mrb[82].mxu0 }
 0x188   : > { %v16871_v38 = vpop.eup %16870  ;;  %v1292_v41 = vsub.f32 0.0, %v1022_v6  ;;  %v1025_v48 = vadd.f32 %v17496_v34, %v1024_v9  ;;  %v14523_v10 = vpop.f32.mrb[83].mxu0 }
 0x189   : > { %v1583_v12 = vadd.f32 1.0, %v16871_v38  ;;  %16880 = vrcp.f32 %v1582_v50  ;;  %v15912_v10 = vld [vmem:[%s22212_s3 + $0xe0] ss:$28 sps:$4 sm:$0xff]  }
 0x18a   : > { %v1430_v14 = vmul.f32 1.442695, %v1292_v41  ;;  %v1293_v15 = vsub.f32 0.0, %v1025_v48  ;;  %14629 = vmatmul.mubr.msk.bf16.gmra.mrb[188].mxu0 %vm672_vm3, %v15897_v42 }
 0x18b   : > { %16882 = vrcp.f32 %v1583_v12  ;;  %14632 = vmatprep.mubr.msk.bf16.mxu0 %vm17184_vm2, %v17182_v1  ;;  %v17594_v17 = vpop.eup %16872  ;;  %v15913_v12 = vld [vmem:[%s22212_s3 + $0x11c] ss:$28 sps:$4 sm:$0xff]  }
 0x18c   : > { %16884 = vpow2.f32 %v1430_v14  ;;  %v1432_v20 = vmul.f32 1.442695, %v1293_v15  ;;  %2416 = vmatmul.mubr.bf16.gmra.mrb[4].mxu1 %v15903_v11 }
 0x18d   : > { %v17596_v21 = vpop.eup %16874  ;;  %v1029_v24 = vpop.f32.mrb[84].mxu0  ;;  %2423 = vmatprep.mubr.bf16.mxu1 %v15904_v13 }
 0x18e   : > { %v16877_v27 = vpop.eup %16876  ;;  %16886 = vpow2.f32 %v1432_v20  ;;  %v1030_v28 = vadd.f32 %v17496_v34, %v1029_v24  ;;  %v14526_v29 = vpop.f32.mrb[85].mxu0  ;;  %v1859_v32 = vpack.c.bf16 %v17596_v21, %v17594_v17  ;;  %v17719_v17 = vld [vmem:[%s22211_s2] ss:$0 sm:$0xff] }
 0x18f   : > { %v1584_v59 = vadd.f32 1.0, %v16877_v27  ;;  %v1032_v0 = vpop.f32.mrb[86].mxu0 }
 0x190   : > { %v16879_v7 = vpop.eup %16878  ;;  %v1294_v63 = vsub.f32 0.0, %v1030_v28  ;;  %v1033_v5 = vadd.f32 %v17496_v34, %v1032_v0  ;;  %v14527_v33 = vpop.f32.mrb[87].mxu0 }
 0x191   : > { %v1585_v36 = vadd.f32 1.0, %v16879_v7  ;;  %16888 = vrcp.f32 %v1584_v59 }
 0x192   : > { %v1434_v39 = vmul.f32 1.442695, %v1294_v63  ;;  %v1295_v40 = vsub.f32 0.0, %v1033_v5  ;;  %14633 = vmatmul.mubr.msk.bf16.gmra.mrb[192].mxu0 %vm672_vm3, %v15931_v60 }
 0x193   : > { %16890 = vrcp.f32 %v1585_v36  ;;  %v17610_v43 = vpop.eup %16880  ;;  %v15915_v36 = vld [vmem:[%s22212_s3 + $0x118] ss:$28 sps:$4 sm:$0xff]  }
 0x194   : > { %16892 = vpow2.f32 %v1434_v39  ;;  %v1436_v44 = vmul.f32 1.442695, %v1295_v40  ;;  %2424 = vmatmul.mubr.bf16.gmra.mrb[8].mxu1 %v15906_v35  ;;  %v15916_v39 = vld [vmem:[%s22212_s3 + $0x154] ss:$28 sps:$4 sm:$0xff]  }
 0x195   : > { %v17612_v23 = vpop.eup %16882  ;;  %v1037_v26 = vpop.f32.mrb[88].mxu0  ;;  %2431 = vmatprep.mubr.bf16.mxu1 %v15907_v37 }
 0x196   : > { %v16885_v31 = vpop.eup %16884  ;;  %16894 = vpow2.f32 %v1436_v44  ;;  %v1038_v47 = vadd.f32 %v17496_v34, %v1037_v26  ;;  %v14530_v51 = vpop.f32.mrb[89].mxu0  ;;  %v1860_v18 = vpack.c.bf16 %v17612_v23, %v17610_v43 }
 0x197   : > { %v1586_v22 = vadd.f32 1.0, %v16885_v31  ;;  %v1040_v30 = vpop.f32.mrb[90].mxu0 }
 0x198   : > { %v16887_v52 = vpop.eup %16886  ;;  %v1296_v53 = vsub.f32 0.0, %v1038_v47  ;;  %v1041_v16 = vadd.f32 %v17496_v34, %v1040_v30  ;;  %v14531_v19 = vpop.f32.mrb[91].mxu0 }
 0x199   : > { %v1587_v54 = vadd.f32 1.0, %v16887_v52  ;;  %16896 = vrcp.f32 %v1586_v22 }
 0x19a   : > { %v1438_v57 = vmul.f32 1.442695, %v1296_v53  ;;  %v1297_v58 = vsub.f32 0.0, %v1041_v16 }
 0x19b   : > { %16898 = vrcp.f32 %v1587_v54  ;;  %v17624_v61 = vpop.eup %16888 }
 0x19c   : > { %16900 = vpow2.f32 %v1438_v57  ;;  %v1440_v62 = vmul.f32 1.442695, %v1297_v58  ;;  %2432 = vmatmul.mubr.bf16.gmra.mrb[12].mxu1 %v15909_v25  ;;  %v15918_v58 = vld [vmem:[%s22212_s3 + $0x150] ss:$28 sps:$4 sm:$0xff]  }
 0x19d   : > { %v17626_v2 = vpop.eup %16890  ;;  %v1045_v4 = vpop.f32.mrb[92].mxu0  ;;  %2439 = vmatprep.mubr.bf16.mxu1 %v15910_v55 }
 0x19e   : > { %v16893_v49 = vpop.eup %16892  ;;  %16902 = vpow2.f32 %v1440_v62  ;;  %v1046_v56 = vadd.f32 %v17496_v34, %v1045_v4  ;;  %v14534_v6 = vpop.f32.mrb[93].mxu0  ;;  %v1861_v8 = vpack.c.bf16 %v17626_v2, %v17624_v61  ;;  %v15919_v4 = vld [vmem:[%s22212_s3 + $0x18c] ss:$28 sps:$4 sm:$0xff]  }
 0x19f   : > { %v1588_v42 = vadd.f32 1.0, %v16893_v49  ;;  %v1048_v50 = vpop.f32.mrb[94].mxu0 }
 0x1a0   : > { %v16895_v9 = vpop.eup %16894  ;;  %v1298_v38 = vsub.f32 0.0, %v1046_v56  ;;  %v1049_v41 = vadd.f32 %v17496_v34, %v1048_v50  ;;  %v14535_v48 = vpop.f32.mrb[95].mxu0 }
 0x1a1   : > { %v1589_v11 = vadd.f32 1.0, %v16895_v9  ;;  %16904 = vrcp.f32 %v1588_v42 }
 0x1a2   : > { %v1442_v13 = vmul.f32 1.442695, %v1298_v38  ;;  %v1299_v14 = vsub.f32 0.0, %v1049_v41 }
 0x1a3   : > { %16906 = vrcp.f32 %v1589_v11  ;;  %v17638_v15 = vpop.eup %16896 }
 0x1a4   : > { %16908 = vpow2.f32 %v1442_v13  ;;  %v1444_v20 = vmul.f32 1.442695, %v1299_v14  ;;  %2440 = vmatmul.mubr.bf16.gmra.mrb[16].mxu1 %v15912_v10 }
 0x1a5   : > { %v17640_v24 = vpop.eup %16898  ;;  %v1053_v27 = vpop.f32.mrb[96].mxu0  ;;  %2447 = vmatprep.mubr.bf16.mxu1 %v15913_v12 }
 0x1a6   : > { %v16901_v28 = vpop.eup %16900  ;;  %16910 = vpow2.f32 %v1444_v20  ;;  %v1054_v29 = vadd.f32 %v17496_v34, %v1053_v27  ;;  %v14538_v60 = vpop.f32.mrb[97].mxu0  ;;  %v1862_v59 = vpack.c.bf16 %v17640_v24, %v17638_v15 }
 0x1a7   : > { %v1590_v0 = vadd.f32 1.0, %v16901_v28  ;;  %v1056_v7 = vpop.f32.mrb[98].mxu0  ;;  %v15921_v28 = vld [vmem:[%s22212_s3 + $0x188] ss:$28 sps:$4 sm:$0xff]  }
 0x1a8   : > { %v16903_v63 = vpop.eup %16902  ;;  %v1300_v5 = vsub.f32 0.0, %v1054_v29  ;;  %v1057_v33 = vadd.f32 %v17496_v34, %v1056_v7  ;;  %v14539_v35 = vpop.f32.mrb[99].mxu0  ;;  %v15922_v60 = vld [vmem:[%s22212_s3 + $0x1c4] ss:$28 sps:$4 sm:$0xff]  }
 0x1a9   : > { %v1591_v37 = vadd.f32 1.0, %v16903_v63  ;;  %16912 = vrcp.f32 %v1590_v0 }
 0x1aa   : > { %v1446_v40 = vmul.f32 1.442695, %v1300_v5  ;;  %v1301_v44 = vsub.f32 0.0, %v1057_v33 }
 0x1ab   : > { %16914 = vrcp.f32 %v1591_v37  ;;  %v17652_v26 = vpop.eup %16904 }
 0x1ac   : > { %16916 = vpow2.f32 %v1446_v40  ;;  %v1448_v31 = vmul.f32 1.442695, %v1301_v44  ;;  %2448 = vmatmul.mubr.bf16.gmra.mrb[20].mxu1 %v15915_v36 }
 0x1ad   : > { %v17654_v47 = vpop.eup %16906  ;;  %v1061_v51 = vpop.f32.mrb[100].mxu0  ;;  %2455 = vmatprep.mubr.bf16.mxu1 %v15916_v39 }
 0x1ae   : > { %v16909_v22 = vpop.eup %16908  ;;  %16918 = vpow2.f32 %v1448_v31  ;;  %v1062_v30 = vadd.f32 %v17496_v34, %v1061_v51  ;;  %v14542_v52 = vpop.f32.mrb[101].mxu0  ;;  %v1863_v53 = vpack.c.bf16 %v17654_v47, %v17652_v26 }
 0x1af   : > { %v1592_v16 = vadd.f32 1.0, %v16909_v22  ;;  %v1064_v19 = vpop.f32.mrb[102].mxu0 }
 0x1b0   : > { %v16911_v25 = vpop.eup %16910  ;;  %v1302_v54 = vsub.f32 0.0, %v1062_v30  ;;  %v1065_v55 = vadd.f32 %v17496_v34, %v1064_v19  ;;  %v14543_v57 = vpop.f32.mrb[103].mxu0 }
 0x1b1   : > { %v1593_v62 = vadd.f32 1.0, %v16911_v25  ;;  %16920 = vrcp.f32 %v1592_v16  ;;  %v15924_v16 = vld [vmem:[%s22212_s3 + $0x1c0] ss:$28 sps:$4 sm:$0xff]  }
 0x1b2   : > { %v1450_v49 = vmul.f32 1.442695, %v1302_v54  ;;  %v1303_v56 = vsub.f32 0.0, %v1065_v55  ;;  %v15925_v25 = vld [vmem:[%s22212_s3 + $0x1fc] ss:$28 sps:$4 sm:$0xff]  }
 0x1b3   : > { %16922 = vrcp.f32 %v1593_v62  ;;  %v17666_v6 = vpop.eup %16912 }
 0x1b4   : > { %16924 = vpow2.f32 %v1450_v49  ;;  %v1452_v42 = vmul.f32 1.442695, %v1303_v56  ;;  %2456 = vmatmul.mubr.bf16.gmra.mrb[24].mxu1 %v15918_v58 }
 0x1b5   : > { %v17668_v50 = vpop.eup %16914  ;;  %v1069_v9 = vpop.f32.mrb[104].mxu0  ;;  %2463 = vmatprep.mubr.bf16.mxu1 %v15919_v4 }
 0x1b6   : > { %v16917_v38 = vpop.eup %16916  ;;  %16926 = vpow2.f32 %v1452_v42  ;;  %v1070_v41 = vadd.f32 %v17496_v34, %v1069_v9  ;;  %v14546_v48 = vpop.f32.mrb[105].mxu0  ;;  %v1864_v10 = vpack.c.bf16 %v17668_v50, %v17666_v6 }
 0x1b7   : > { %v1594_v11 = vadd.f32 1.0, %v16917_v38  ;;  %v1072_v12 = vpop.f32.mrb[106].mxu0 }
 0x1b8   : > { %v16919_v13 = vpop.eup %16918  ;;  %v1304_v14 = vsub.f32 0.0, %v1070_v41  ;;  %v1073_v20 = vadd.f32 %v17496_v34, %v1072_v12  ;;  %v14547_v27 = vpop.f32.mrb[107].mxu0 }
 0x1b9   : > { %v1595_v29 = vadd.f32 1.0, %v16919_v13  ;;  %16928 = vrcp.f32 %v1594_v11  ;;  %v15928_v27 = vld [vmem:[%s22212_s3 + $0x234] ss:$28 sps:$4 sm:$0xff]  }
 0x1ba   : > { %v1454_v0 = vmul.f32 1.442695, %v1304_v14  ;;  %v1305_v7 = vsub.f32 0.0, %v1073_v20  ;;  %v15927_v14 = vld [vmem:[%s22212_s3 + $0x1f8] ss:$28 sps:$4 sm:$0xff]  }
 0x1bb   : > { %16930 = vrcp.f32 %v1595_v29  ;;  %v17680_v63 = vpop.eup %16920 }
 0x1bc   : > { %16932 = vpow2.f32 %v1454_v0  ;;  %v1456_v5 = vmul.f32 1.442695, %v1305_v7  ;;  %2464 = vmatmul.mubr.bf16.gmra.mrb[28].mxu1 %v15921_v28 }
 0x1bd   : > { %v17682_v33 = vpop.eup %16922  ;;  %v1077_v35 = vpop.f32.mrb[108].mxu0  ;;  %2471 = vmatprep.mubr.bf16.mxu1 %v15922_v60 }
 0x1be   : > { %v16925_v36 = vpop.eup %16924  ;;  %16934 = vpow2.f32 %v1456_v5  ;;  %v1078_v37 = vadd.f32 %v17496_v34, %v1077_v35  ;;  %v14550_v39 = vpop.f32.mrb[109].mxu0  ;;  %v1865_v40 = vpack.c.bf16 %v17682_v33, %v17680_v63 }
 0x1bf   : > { %v1596_v44 = vadd.f32 1.0, %v16925_v36  ;;  %v1080_v31 = vpop.f32.mrb[110].mxu0 }
 0x1c0   : > { %v16927_v51 = vpop.eup %16926  ;;  %v1306_v22 = vsub.f32 0.0, %v1078_v37  ;;  %v1081_v30 = vadd.f32 %v17496_v34, %v1080_v31  ;;  %v14551_v52 = vpop.f32.mrb[111].mxu0 }
 0x1c1   : > { %v1597_v19 = vadd.f32 1.0, %v16927_v51  ;;  %16936 = vrcp.f32 %v1596_v44  ;;  %v15932_v52 = vld [vmem:[%s22212_s3 + $0x26c] ss:$28 sps:$4 sm:$0xff]  }
 0x1c2   : > { %v1458_v54 = vmul.f32 1.442695, %v1306_v22  ;;  %v1307_v55 = vsub.f32 0.0, %v1081_v30  ;;  %v15930_v22 = vld [vmem:[%s22212_s3 + $0x230] ss:$28 sps:$4 sm:$0xff]  }
 0x1c3   : > { %16938 = vrcp.f32 %v1597_v19  ;;  %v16929_v57 = vpop.eup %16928 }
 0x1c4   : > { %16940 = vpow2.f32 %v1458_v54  ;;  %v1460_v58 = vmul.f32 1.442695, %v1307_v55  ;;  %2472 = vmatmul.mubr.bf16.gmra.mrb[32].mxu1 %v15924_v16 }
 0x1c5   : > { %v16931_v62 = vpop.eup %16930  ;;  %v1085_v4 = vpop.f32.mrb[112].mxu0  ;;  %2479 = vmatprep.mubr.bf16.mxu1 %v15925_v25 }
 0x1c6   : > { %v16933_v49 = vpop.eup %16932  ;;  %16942 = vpow2.f32 %v1460_v58  ;;  %v1086_v56 = vadd.f32 %v17496_v34, %v1085_v4  ;;  %v14554_v42 = vpop.f32.mrb[113].mxu0  ;;  %v1866_v9 = vpack.c.bf16 %v16931_v62, %v16929_v57  ;;  %v1838_v62 = vld [vmem:[%s22212_s3 + $0x2a0] sm:$0x33] }
 0x1c7   : > { %v1598_v38 = vadd.f32 1.0, %v16933_v49  ;;  %v1088_v41 = vpop.f32.mrb[114].mxu0 }
 0x1c8   : > { %v16935_v48 = vpop.eup %16934  ;;  %v1308_v11 = vsub.f32 0.0, %v1086_v56  ;;  %v1089_v12 = vadd.f32 %v17496_v34, %v1088_v41  ;;  %v14555_v13 = vpop.f32.mrb[115].mxu0  ;;  %13850 = vmatprep.subr.bf16.mxu1 %v1866_v9  ;;  %v15934_v41 = vld [vmem:[%s22212_s3 + $0x268] ss:$28 sps:$4 sm:$0xff]  }
 0x1c9   : > { %v1599_v20 = vadd.f32 1.0, %v16935_v48  ;;  %13851 = vmatpush3.bf16.msra.mxu1 %v1858_v45  ;;  %16944 = vrcp.f32 %v1598_v38 }
 0x1ca   : > { %v1462_v28 = vmul.f32 1.442695, %v1308_v11  ;;  %v1309_v29 = vsub.f32 0.0, %v1089_v12  ;;  %v12249_v11 = vcombine.high %v1838_v62, %v1838_v62 }
 0x1cb   : > { %16946 = vrcp.f32 %v1599_v20  ;;  %v16937_v60 = vpop.eup %16936 }
 0x1cc   : > { %16948 = vpow2.f32 %v1462_v28  ;;  %v1464_v0 = vmul.f32 1.442695, %v1309_v29  ;;  %2480 = vmatmul.mubr.bf16.gmra.mrb[36].mxu1 %v15927_v14 }
 0x1cd   : > { %v16939_v7 = vpop.eup %16938  ;;  %v1093_v5 = vpop.f32.mrb[116].mxu0  ;;  %2487 = vmatprep.mubr.bf16.mxu1 %v15928_v27 }
 0x1ce   : > { %v16941_v35 = vpop.eup %16940  ;;  %16950 = vpow2.f32 %v1464_v0  ;;  %v1094_v3 = vadd.f32 %v17496_v34, %v1093_v5  ;;  %v14558_v46 = vpop.f32.mrb[117].mxu0  ;;  %v1867_v45 = vpack.c.bf16 %v16939_v7, %v16937_v60 }
 0x1cf   : > { %v1600_v36 = vadd.f32 1.0, %v16941_v35  ;;  %v1096_v37 = vpop.f32.mrb[118].mxu0  ;;  %v12248_v46 = vcombine.low %v1838_v62, %v1838_v62 }
 0x1d0   : > { %v16943_v39 = vpop.eup %16942  ;;  %v1310_v44 = vsub.f32 0.0, %v1094_v3  ;;  %v1097_v31 = vadd.f32 %v17496_v34, %v1096_v37  ;;  %v14559_v51 = vpop.f32.mrb[119].mxu0  ;;  %13852 = vmatprep.subr.bf16.mxu1 %v1867_v45 }
 0x1d1   : > { %v1601_v30 = vadd.f32 1.0, %v16943_v39  ;;  %13853 = vmatpush3.bf16.msra.mxu1 %v1859_v32  ;;  %16952 = vrcp.f32 %v1600_v36  ;;  %v15939_v36 = vld [vmem:[%s22212_s3 + $0xc] ss:$28 sps:$4 sm:$0xff]  }
 0x1d2   : > { %v1466_v16 = vmul.f32 1.442695, %v1310_v44  ;;  %v1311_v19 = vsub.f32 0.0, %v1097_v31 }
 0x1d3   : > { %16954 = vrcp.f32 %v1601_v30  ;;  %v16945_v34 = vpop.eup %16944 }
 0x1d4   : > { %16956 = vpow2.f32 %v1466_v16  ;;  %v1468_v25 = vmul.f32 1.442695, %v1311_v19  ;;  %2488 = vmatmul.mubr.bf16.gmra.mrb[40].mxu1 %v15930_v22 }
 0x1d5   : > { %v16947_v54 = vpop.eup %16946  ;;  %v1101_v55 = vpop.f32.mrb[120].mxu0  ;;  %2495 = vmatprep.mubr.bf16.mxu1 %v15932_v52 }
 0x1d6   : > { %v16949_v57 = vpop.eup %16948  ;;  %16958 = vpow2.f32 %v1468_v25  ;;  %v1102_v21 = vadd.f32 %v17719_v17, %v1101_v55  ;;  %v14562_v32 = vpop.f32.mrb[121].mxu0  ;;  %v1868_v58 = vpack.c.bf16 %v16947_v54, %v16945_v34 }
 0x1d7   : > { %v1602_v4 = vadd.f32 1.0, %v16949_v57  ;;  %v1104_v49 = vpop.f32.mrb[122].mxu0 }
 0x1d8   : > { %v16951_v56 = vpop.eup %16950  ;;  %v1312_v42 = vsub.f32 0.0, %v1102_v21  ;;  %v1105_v9 = vadd.f32 %v17719_v17, %v1104_v49  ;;  %v14563_v38 = vpop.f32.mrb[123].mxu0  ;;  %13854 = vmatprep.subr.bf16.mxu1 %v1868_v58 }
 0x1d9   : > { %v1603_v48 = vadd.f32 1.0, %v16951_v56  ;;  %13855 = vmatpush3.bf16.msra.mxu1 %v1860_v18  ;;  %16960 = vrcp.f32 %v1602_v4 }
 0x1da   : > { %v1470_v12 = vmul.f32 1.442695, %v1312_v42  ;;  %v1313_v13 = vsub.f32 0.0, %v1105_v9 }
 0x1db   : > { %16962 = vrcp.f32 %v1603_v48  ;;  %v16953_v14 = vpop.eup %16952 }
 0x1dc   : > { %16964 = vpow2.f32 %v1470_v12  ;;  %v1472_v20 = vmul.f32 1.442695, %v1313_v13  ;;  %2496 = vmatmul.mubr.bf16.gmra.mrb[44].mxu1 %v15934_v41 }
 0x1dd   : > { %v16955_v27 = vpop.eup %16954  ;;  %v1109_v28 = vpop.f32.mrb[124].mxu0  ;;  %2503 = vmatprep.mubr.bf16.mxu1 %v12249_v11 }
 0x1de   : > { %v16957_v29 = vpop.eup %16956  ;;  %16966 = vpow2.f32 %v1472_v20  ;;  %v1110_v60 = vadd.f32 %v17719_v17, %v1109_v28  ;;  %v14566_v0 = vpop.f32.mrb[125].mxu0  ;;  %v1869_v7 = vpack.c.bf16 %v16955_v27, %v16953_v14 }
 0x1df   : > { %v1604_v43 = vadd.f32 1.0, %v16957_v29  ;;  %v1112_v23 = vpop.f32.mrb[126].mxu0 }
 0x1e0   : > { %v16959_v18 = vpop.eup %16958  ;;  %v1314_v5 = vsub.f32 0.0, %v1110_v60  ;;  %v1113_v35 = vadd.f32 %v17719_v17, %v1112_v23  ;;  %v14567_v3 = vpop.f32.mrb[127].mxu0  ;;  %13856 = vmatprep.subr.bf16.mxu1 %v1869_v7 }
 0x1e1   : > { %v1605_v45 = vadd.f32 1.0, %v16959_v18  ;;  %13857 = vmatpush3.bf16.msra.mxu1 %v1861_v8  ;;  %16968 = vrcp.f32 %v1604_v43 }
 0x1e2   : > { %v1474_v37 = vmul.f32 1.442695, %v1314_v5  ;;  %v1315_v39 = vsub.f32 0.0, %v1113_v35 }
 0x1e3   : > { %16970 = vrcp.f32 %v1605_v45  ;;  %v16961_v44 = vpop.eup %16960 }
 0x1e4   : > { %16972 = vpow2.f32 %v1474_v37  ;;  %v1476_v31 = vmul.f32 1.442695, %v1315_v39  ;;  %2504 = vmatmul.mubr.bf16.gmra.mrb[48].mxu1 %v12248_v46 }
 0x1e5   : > { %v16963_v51 = vpop.eup %16962  ;;  %v1117_v22 = vpop.f32.mrb[128].mxu0  ;;  %2543 = vmatprep.mubr.bf16.mxu1 %v15939_v36 }
 0x1e6   : > { %v16965_v30 = vpop.eup %16964  ;;  %16974 = vpow2.f32 %v1476_v31  ;;  %v1118_v61 = vadd.f32 %v17719_v17, %v1117_v22  ;;  %v14570_v2 = vpop.f32.mrb[129].mxu0  ;;  %v1870_v8 = vpack.c.bf16 %v16963_v51, %v16961_v44 }
 0x1e7   : > { %v1606_v52 = vadd.f32 1.0, %v16965_v30  ;;  %v1120_v16 = vpop.f32.mrb[130].mxu0  ;;  %v15937_v2 = vld [vmem:[%s22212_s3 + $0x8] ss:$28 sps:$4 sm:$0xff]  }
 0x1e8   : > { %v16967_v19 = vpop.eup %16966  ;;  %v1316_v34 = vsub.f32 0.0, %v1118_v61  ;;  %v1121_v25 = vadd.f32 %v17719_v17, %v1120_v16  ;;  %v14571_v54 = vpop.f32.mrb[131].mxu0  ;;  %13858 = vmatprep.subr.bf16.mxu1 %v1870_v8 }
 0x1e9   : > { %v1607_v55 = vadd.f32 1.0, %v16967_v19  ;;  %13859 = vmatpush3.bf16.msra.mxu1 %v1862_v59  ;;  %16976 = vrcp.f32 %v1606_v52  ;;  %v15940_v52 = vld [vmem:[%s22212_s3 + $0x44] ss:$28 sps:$4 sm:$0xff]  }
 0x1ea   : > { %v1478_v57 = vmul.f32 1.442695, %v1316_v34  ;;  %v1317_v21 = vsub.f32 0.0, %v1121_v25 }
 0x1eb   : > { %16978 = vrcp.f32 %v1607_v55  ;;  %v16969_v32 = vpop.eup %16968 }
 0x1ec   : > { %16980 = vpow2.f32 %v1478_v57  ;;  %v1480_v58 = vmul.f32 1.442695, %v1317_v21 }
 0x1ed   : > { %v16971_v62 = vpop.eup %16970  ;;  %v1125_v4 = vpop.f32.mrb[132].mxu0 }
 0x1ee   : > { %v16973_v49 = vpop.eup %16972  ;;  %16982 = vpow2.f32 %v1480_v58  ;;  %v1126_v56 = vadd.f32 %v17719_v17, %v1125_v4  ;;  %v14574_v42 = vpop.f32.mrb[133].mxu0  ;;  %v1871_v9 = vpack.c.bf16 %v16971_v62, %v16969_v32 }
 0x1ef   : > { %v1608_v38 = vadd.f32 1.0, %v16973_v49  ;;  %v1128_v41 = vpop.f32.mrb[134].mxu0 }
 0x1f0   : > { %v16975_v48 = vpop.eup %16974  ;;  %v1318_v15 = vsub.f32 0.0, %v1126_v56  ;;  %v1129_v24 = vadd.f32 %v17719_v17, %v1128_v41  ;;  %v14575_v59 = vpop.f32.mrb[135].mxu0  ;;  %13860 = vmatprep.subr.bf16.mxu1 %v1871_v9  ;;  %v15942_v56 = vld [vmem:[%s22212_s3 + $0x40] ss:$28 sps:$4 sm:$0xff]  }
 0x1f1   : > { %v1609_v11 = vadd.f32 1.0, %v16975_v48  ;;  %13861 = vmatpush3.bf16.msra.mxu1 %v1863_v53  ;;  %16984 = vrcp.f32 %v1608_v38  ;;  %v15943_v9 = vld [vmem:[%s22212_s3 + $0x7c] ss:$28 sps:$4 sm:$0xff]  }
 0x1f2   : > { %v1482_v12 = vmul.f32 1.442695, %v1318_v15  ;;  %v1319_v13 = vsub.f32 0.0, %v1129_v24 }
 0x1f3   : > { %16986 = vrcp.f32 %v1609_v11  ;;  %v16977_v14 = vpop.eup %16976 }
 0x1f4   : > { %16988 = vpow2.f32 %v1482_v12  ;;  %v1484_v20 = vmul.f32 1.442695, %v1319_v13 }
 0x1f5   : > { %v16979_v27 = vpop.eup %16978  ;;  %v1133_v28 = vpop.f32.mrb[136].mxu0 }
 0x1f6   : > { %v16981_v29 = vpop.eup %16980  ;;  %16990 = vpow2.f32 %v1484_v20  ;;  %v1134_v60 = vadd.f32 %v17719_v17, %v1133_v28  ;;  %v14578_v0 = vpop.f32.mrb[137].mxu0  ;;  %v1872_v7 = vpack.c.bf16 %v16979_v27, %v16977_v14 }
 0x1f7   : > { %v1610_v43 = vadd.f32 1.0, %v16981_v29  ;;  %v1136_v23 = vpop.f32.mrb[138].mxu0 }
 0x1f8   : > { %v16983_v18 = vpop.eup %16982  ;;  %v1320_v26 = vsub.f32 0.0, %v1134_v60  ;;  %v1137_v47 = vadd.f32 %v17719_v17, %v1136_v23  ;;  %v14579_v53 = vpop.f32.mrb[139].mxu0  ;;  %13862 = vmatprep.subr.bf16.mxu1 %v1872_v7  ;;  %v15945_v7 = vld [vmem:[%s22212_s3 + $0x78] ss:$28 sps:$4 sm:$0xff]  }
 0x1f9   : > { %v1611_v5 = vadd.f32 1.0, %v16983_v18  ;;  %13863 = vmatpush3.bf16.msra.mxu1 %v1864_v10  ;;  %16992 = vrcp.f32 %v1610_v43  ;;  %v15946_v23 = vld [vmem:[%s22212_s3 + $0xb4] ss:$28 sps:$4 sm:$0xff]  }
 0x1fa   : > { %v1486_v35 = vmul.f32 1.442695, %v1320_v26  ;;  %v1321_v3 = vsub.f32 0.0, %v1137_v47 }
 0x1fb   : > { %16994 = vrcp.f32 %v1611_v5  ;;  %v16985_v46 = vpop.eup %16984 }
 0x1fc   : > { %16996 = vpow2.f32 %v1486_v35  ;;  %v1488_v45 = vmul.f32 1.442695, %v1321_v3 }
 0x1fd   : > { %v16987_v36 = vpop.eup %16986  ;;  %v1141_v37 = vpop.f32.mrb[140].mxu0 }
 0x1fe   : > { %v16989_v39 = vpop.eup %16988  ;;  %16998 = vpow2.f32 %v1488_v45  ;;  %v1142_v44 = vadd.f32 %v17719_v17, %v1141_v37  ;;  %v14582_v31 = vpop.f32.mrb[141].mxu0  ;;  %v1873_v51 = vpack.c.bf16 %v16987_v36, %v16985_v46 }
 0x1ff   : > { %v1612_v22 = vadd.f32 1.0, %v16989_v39  ;;  %v1144_v30 = vpop.f32.mrb[142].mxu0 }
 0x200   : > { %v16991_v61 = vpop.eup %16990  ;;  %v1322_v6 = vsub.f32 0.0, %v1142_v44  ;;  %v1145_v50 = vadd.f32 %v17719_v17, %v1144_v30  ;;  %v14583_v10 = vpop.f32.mrb[143].mxu0  ;;  %13864 = vmatprep.subr.bf16.mxu1 %v1873_v51  ;;  %v15948_v30 = vld [vmem:[%s22212_s3 + $0xb0] ss:$28 sps:$4 sm:$0xff]  }
 0x201   : > { %v1613_v8 = vadd.f32 1.0, %v16991_v61  ;;  %13865 = vmatpush3.bf16.msra.mxu1 %v1865_v40  ;;  %17000 = vrcp.f32 %v1612_v22 }
 0x202   : > { %v1490_v16 = vmul.f32 1.442695, %v1322_v6  ;;  %v1323_v19 = vsub.f32 0.0, %v1145_v50  ;;  %v15949_v6 = vld [vmem:[%s22212_s3 + $0xec] ss:$28 sps:$4 sm:$0xff]  }
 0x203   : > { %17002 = vrcp.f32 %v1613_v8  ;;  %v17766_v34 = vpop.eup %16992 }
 0x204   : > { %17004 = vpow2.f32 %v1490_v16  ;;  %v1492_v25 = vmul.f32 1.442695, %v1323_v19  ;;  %2544 = vmatmul.mubr.bf16.vlgmr.msra.gmra.mrb[52].mxu1 %v15937_v2 }
 0x205   : > { %v17768_v54 = vpop.eup %16994  ;;  %v1149_v55 = vpop.f32.mrb[144].mxu0  ;;  %2551 = vmatprep.mubr.bf16.mxu1 %v15940_v52 }
 0x206   : > { %v16997_v57 = vpop.eup %16996  ;;  %17006 = vpow2.f32 %v1492_v25  ;;  %v1150_v63 = vadd.f32 %v17719_v17, %v1149_v55  ;;  %v14586_v33 = vpop.f32.mrb[145].mxu0  ;;  %v1874_v40 = vpack.c.bf16 %v17768_v54, %v17766_v34 }
 0x207   : > { %v1614_v21 = vadd.f32 1.0, %v16997_v57  ;;  %v1152_v32 = vpop.f32.mrb[146].mxu0 }
 0x208   : > { %v16999_v58 = vpop.eup %16998  ;;  %v1324_v62 = vsub.f32 0.0, %v1150_v63  ;;  %v1153_v4 = vadd.f32 %v17719_v17, %v1152_v32  ;;  %v14587_v49 = vpop.f32.mrb[147].mxu0 }
 0x209   : > { %v1615_v42 = vadd.f32 1.0, %v16999_v58  ;;  %17008 = vrcp.f32 %v1614_v21 }
 0x20a   : > { %v1494_v38 = vmul.f32 1.442695, %v1324_v62  ;;  %v1325_v41 = vsub.f32 0.0, %v1153_v4  ;;  %v15951_v4 = vld [vmem:[%s22212_s3 + $0xe8] ss:$28 sps:$4 sm:$0xff]  }
 0x20b   : > { %17010 = vrcp.f32 %v1615_v42  ;;  %v17780_v48 = vpop.eup %17000 }
 0x20c   : > { %17012 = vpow2.f32 %v1494_v38  ;;  %v1496_v15 = vmul.f32 1.442695, %v1325_v41  ;;  %2552 = vmatmul.mubr.bf16.gmra.mrb[56].mxu1 %v15942_v56  ;;  %v15952_v56 = vld [vmem:[%s22212_s3 + $0x124] ss:$28 sps:$4 sm:$0xff]  }
 0x20d   : > { %v17782_v24 = vpop.eup %17002  ;;  %v1157_v59 = vpop.f32.mrb[148].mxu0  ;;  %2559 = vmatprep.mubr.bf16.mxu1 %v15943_v9 }
 0x20e   : > { %v17005_v11 = vpop.eup %17004  ;;  %17014 = vpow2.f32 %v1496_v15  ;;  %v1158_v12 = vadd.f32 %v17719_v17, %v1157_v59  ;;  %v14590_v13 = vpop.f32.mrb[149].mxu0  ;;  %v1875_v14 = vpack.c.bf16 %v17782_v24, %v17780_v48 }
 0x20f   : > { %v1616_v20 = vadd.f32 1.0, %v17005_v11  ;;  %v1160_v27 = vpop.f32.mrb[150].mxu0 }
 0x210   : > { %v17007_v28 = vpop.eup %17006  ;;  %v1326_v29 = vsub.f32 0.0, %v1158_v12  ;;  %v1161_v60 = vadd.f32 %v17719_v17, %v1160_v27  ;;  %v14591_v0 = vpop.f32.mrb[151].mxu0 }
 0x211   : > { %v1617_v43 = vadd.f32 1.0, %v17007_v28  ;;  %17016 = vrcp.f32 %v1616_v20 }
 0x212   : > { %v1498_v18 = vmul.f32 1.442695, %v1326_v29  ;;  %v1327_v26 = vsub.f32 0.0, %v1161_v60 }
 0x213   : > { %17018 = vrcp.f32 %v1617_v43  ;;  %v17794_v47 = vpop.eup %17008  ;;  %v15954_v43 = vld [vmem:[%s22212_s3 + $0x120] ss:$28 sps:$4 sm:$0xff]  }
 0x214   : > { %17020 = vpow2.f32 %v1498_v18  ;;  %v1500_v53 = vmul.f32 1.442695, %v1327_v26  ;;  %2560 = vmatmul.mubr.bf16.gmra.mrb[60].mxu1 %v15945_v7  ;;  %v15955_v18 = vld [vmem:[%s22212_s3 + $0x15c] ss:$28 sps:$4 sm:$0xff]  }
 0x215   : > { %v17796_v5 = vpop.eup %17010  ;;  %v1165_v35 = vpop.f32.mrb[152].mxu0  ;;  %2567 = vmatprep.mubr.bf16.mxu1 %v15946_v23 }
 0x216   : > { %v17013_v3 = vpop.eup %17012  ;;  %17022 = vpow2.f32 %v1500_v53  ;;  %v1166_v46 = vadd.f32 %v17719_v17, %v1165_v35  ;;  %v14594_v45 = vpop.f32.mrb[153].mxu0  ;;  %v1876_v36 = vpack.c.bf16 %v17796_v5, %v17794_v47 }
 0x217   : > { %v1618_v37 = vadd.f32 1.0, %v17013_v3  ;;  %v1168_v39 = vpop.f32.mrb[154].mxu0 }
 0x218   : > { %v17015_v44 = vpop.eup %17014  ;;  %v1328_v31 = vsub.f32 0.0, %v1166_v46  ;;  %v1169_v51 = vadd.f32 %v17719_v17, %v1168_v39  ;;  %v14595_v22 = vpop.f32.mrb[155].mxu0 }
 0x219   : > { %v1619_v61 = vadd.f32 1.0, %v17015_v44  ;;  %17024 = vrcp.f32 %v1618_v37 }
 0x21a   : > { %v1502_v50 = vmul.f32 1.442695, %v1328_v31  ;;  %v1329_v10 = vsub.f32 0.0, %v1169_v51 }
 0x21b   : > { %17026 = vrcp.f32 %v1619_v61  ;;  %v17808_v2 = vpop.eup %17016 }
 0x21c   : > { %17028 = vpow2.f32 %v1502_v50  ;;  %v1504_v8 = vmul.f32 1.442695, %v1329_v10  ;;  %2568 = vmatmul.mubr.bf16.gmra.mrb[64].mxu1 %v15948_v30  ;;  %v15957_v10 = vld [vmem:[%s22212_s3 + $0x158] ss:$28 sps:$4 sm:$0xff]  }
 0x21d   : > { %v17810_v52 = vpop.eup %17018  ;;  %v1173_v16 = vpop.f32.mrb[156].mxu0  ;;  %2575 = vmatprep.mubr.bf16.mxu1 %v15949_v6 }
 0x21e   : > { %v17021_v19 = vpop.eup %17020  ;;  %17030 = vpow2.f32 %v1504_v8  ;;  %v1174_v25 = vadd.f32 %v17719_v17, %v1173_v16  ;;  %v14598_v55 = vpop.f32.mrb[157].mxu0  ;;  %v1877_v57 = vpack.c.bf16 %v17810_v52, %v17808_v2  ;;  %v15958_v16 = vld [vmem:[%s22212_s3 + $0x194] ss:$28 sps:$4 sm:$0xff]  }
 0x21f   : > { %v1620_v63 = vadd.f32 1.0, %v17021_v19  ;;  %v1176_v33 = vpop.f32.mrb[158].mxu0 }
 0x220   : > { %v17023_v21 = vpop.eup %17022  ;;  %v1330_v32 = vsub.f32 0.0, %v1174_v25  ;;  %v1177_v58 = vadd.f32 %v17719_v17, %v1176_v33  ;;  %v14599_v62 = vpop.f32.mrb[159].mxu0 }
 0x221   : > { %v1621_v49 = vadd.f32 1.0, %v17023_v21  ;;  %17032 = vrcp.f32 %v1620_v63 }
 0x222   : > { %v1506_v42 = vmul.f32 1.442695, %v1330_v32  ;;  %v1331_v9 = vsub.f32 0.0, %v1177_v58 }
 0x223   : > { %17034 = vrcp.f32 %v1621_v49  ;;  %v17822_v38 = vpop.eup %17024 }
 0x224   : > { %17036 = vpow2.f32 %v1506_v42  ;;  %v1508_v41 = vmul.f32 1.442695, %v1331_v9  ;;  %2576 = vmatmul.mubr.bf16.gmra.mrb[68].mxu1 %v15951_v4 }
 0x225   : > { %v17824_v15 = vpop.eup %17026  ;;  %v1181_v59 = vpop.f32.mrb[160].mxu0  ;;  %2583 = vmatprep.mubr.bf16.mxu1 %v15952_v56 }
 0x226   : > { %v17029_v11 = vpop.eup %17028  ;;  %17038 = vpow2.f32 %v1508_v41  ;;  %v1182_v12 = vadd.f32 %v17719_v17, %v1181_v59  ;;  %v14602_v13 = vpop.f32.mrb[161].mxu0  ;;  %v1878_v20 = vpack.c.bf16 %v17824_v15, %v17822_v38 }
 0x227   : > { %v1622_v27 = vadd.f32 1.0, %v17029_v11  ;;  %v1184_v28 = vpop.f32.mrb[162].mxu0  ;;  %v15960_v11 = vld [vmem:[%s22212_s3 + $0x190] ss:$28 sps:$4 sm:$0xff]  }
 0x228   : > { %v17031_v29 = vpop.eup %17030  ;;  %v1332_v60 = vsub.f32 0.0, %v1182_v12  ;;  %v1185_v0 = vadd.f32 %v17719_v17, %v1184_v28  ;;  %v14603_v7 = vpop.f32.mrb[163].mxu0  ;;  %v15961_v13 = vld [vmem:[%s22212_s3 + $0x1cc] ss:$28 sps:$4 sm:$0xff]  }
 0x229   : > { %v1623_v23 = vadd.f32 1.0, %v17031_v29  ;;  %17040 = vrcp.f32 %v1622_v27 }
 0x22a   : > { %v1510_v26 = vmul.f32 1.442695, %v1332_v60  ;;  %v1333_v53 = vsub.f32 0.0, %v1185_v0 }
 0x22b   : > { %17042 = vrcp.f32 %v1623_v23  ;;  %v17836_v35 = vpop.eup %17032 }
 0x22c   : > { %17044 = vpow2.f32 %v1510_v26  ;;  %v1512_v3 = vmul.f32 1.442695, %v1333_v53  ;;  %2584 = vmatmul.mubr.bf16.gmra.mrb[72].mxu1 %v15954_v43 }
 0x22d   : > { %v17838_v46 = vpop.eup %17034  ;;  %v1189_v45 = vpop.f32.mrb[164].mxu0  ;;  %2591 = vmatprep.mubr.bf16.mxu1 %v15955_v18 }
 0x22e   : > { %v17037_v37 = vpop.eup %17036  ;;  %17046 = vpow2.f32 %v1512_v3  ;;  %v1190_v39 = vadd.f32 %v17719_v17, %v1189_v45  ;;  %v14606_v44 = vpop.f32.mrb[165].mxu0  ;;  %v1879_v31 = vpack.c.bf16 %v17838_v46, %v17836_v35 }
 0x22f   : > { %v1624_v51 = vadd.f32 1.0, %v17037_v37  ;;  %v1192_v22 = vpop.f32.mrb[166].mxu0 }
 0x230   : > { %v17039_v30 = vpop.eup %17038  ;;  %v1334_v61 = vsub.f32 0.0, %v1190_v39  ;;  %v1193_v6 = vadd.f32 %v17719_v17, %v1192_v22  ;;  %v14607_v50 = vpop.f32.mrb[167].mxu0 }
 0x231   : > { %v1625_v8 = vadd.f32 1.0, %v17039_v30  ;;  %17048 = vrcp.f32 %v1624_v51  ;;  %v15963_v51 = vld [vmem:[%s22212_s3 + $0x1c8] ss:$28 sps:$4 sm:$0xff]  }
 0x232   : > { %v1514_v19 = vmul.f32 1.442695, %v1334_v61  ;;  %v1335_v25 = vsub.f32 0.0, %v1193_v6  ;;  %v15964_v30 = vld [vmem:[%s22212_s3 + $0x204] ss:$28 sps:$4 sm:$0xff]  }
 0x233   : > { %17050 = vrcp.f32 %v1625_v8  ;;  %v17850_v55 = vpop.eup %17040 }
 0x234   : > { %17052 = vpow2.f32 %v1514_v19  ;;  %v1516_v63 = vmul.f32 1.442695, %v1335_v25  ;;  %2592 = vmatmul.mubr.bf16.gmra.mrb[76].mxu1 %v15957_v10 }
 0x235   : > { %v17852_v33 = vpop.eup %17042  ;;  %v1197_v21 = vpop.f32.mrb[168].mxu0  ;;  %2599 = vmatprep.mubr.bf16.mxu1 %v15958_v16 }
 0x236   : > { %v17045_v32 = vpop.eup %17044  ;;  %17054 = vpow2.f32 %v1516_v63  ;;  %v1198_v58 = vadd.f32 %v17719_v17, %v1197_v21  ;;  %v14610_v62 = vpop.f32.mrb[169].mxu0  ;;  %v1880_v4 = vpack.c.bf16 %v17852_v33, %v17850_v55  ;;  %v15978_v33 = vld [vmem:[%s22212_s3 + $0x4c] ss:$28 sps:$4 sm:$0xff]  }
 0x237   : > { %v1626_v49 = vadd.f32 1.0, %v17045_v32  ;;  %v1200_v56 = vpop.f32.mrb[170].mxu0 }
 0x238   : > { %v17047_v42 = vpop.eup %17046  ;;  %v1336_v9 = vsub.f32 0.0, %v1198_v58  ;;  %v1201_v41 = vadd.f32 %v17719_v17, %v1200_v56  ;;  %v14611_v59 = vpop.f32.mrb[171].mxu0 }
 0x239   : > { %v1627_v12 = vadd.f32 1.0, %v17047_v42  ;;  %17056 = vrcp.f32 %v1626_v49  ;;  %v15967_v59 = vld [vmem:[%s22212_s3 + $0x23c] ss:$28 sps:$4 sm:$0xff]  }
 0x23a   : > { %v1518_v27 = vmul.f32 1.442695, %v1336_v9  ;;  %v1337_v28 = vsub.f32 0.0, %v1201_v41  ;;  %v15966_v9 = vld [vmem:[%s22212_s3 + $0x200] ss:$28 sps:$4 sm:$0xff]  }
 0x23b   : > { %17058 = vrcp.f32 %v1627_v12  ;;  %v17864_v29 = vpop.eup %17048 }
 0x23c   : > { %17060 = vpow2.f32 %v1518_v27  ;;  %v1520_v60 = vmul.f32 1.442695, %v1337_v28  ;;  %2600 = vmatmul.mubr.bf16.gmra.mrb[80].mxu1 %v15960_v11 }
 0x23d   : > { %v17866_v0 = vpop.eup %17050  ;;  %v1205_v7 = vpop.f32.mrb[172].mxu0  ;;  %2607 = vmatprep.mubr.bf16.mxu1 %v15961_v13 }
 0x23e   : > { %v17053_v43 = vpop.eup %17052  ;;  %17062 = vpow2.f32 %v1520_v60  ;;  %v1206_v23 = vadd.f32 %v17719_v17, %v1205_v7  ;;  %v14614_v18 = vpop.f32.mrb[173].mxu0  ;;  %v1881_v26 = vpack.c.bf16 %v17866_v0, %v17864_v29  ;;  %v15980_v29 = vld [vmem:[%s22212_s3 + $0x48] ss:$28 sps:$4 sm:$0xff]  }
 0x23f   : > { %v1628_v53 = vadd.f32 1.0, %v17053_v43  ;;  %v1208_v3 = vpop.f32.mrb[174].mxu0 }
 0x240   : > { %v17055_v45 = vpop.eup %17054  ;;  %v1338_v37 = vsub.f32 0.0, %v1206_v23  ;;  %v1209_v39 = vadd.f32 %v17719_v17, %v1208_v3  ;;  %v14615_v44 = vpop.f32.mrb[175].mxu0 }
 0x241   : > { %v1629_v22 = vadd.f32 1.0, %v17055_v45  ;;  %17064 = vrcp.f32 %v1628_v53  ;;  %v15970_v44 = vld [vmem:[%s22212_s3 + $0x274] ss:$28 sps:$4 sm:$0xff]  }
 0x242   : > { %v1522_v61 = vmul.f32 1.442695, %v1338_v37  ;;  %v1339_v6 = vsub.f32 0.0, %v1209_v39  ;;  %v15969_v37 = vld [vmem:[%s22212_s3 + $0x238] ss:$28 sps:$4 sm:$0xff]  }
 0x243   : > { %17066 = vrcp.f32 %v1629_v22  ;;  %v17057_v50 = vpop.eup %17056 }
 0x244   : > { %17068 = vpow2.f32 %v1522_v61  ;;  %v1524_v10 = vmul.f32 1.442695, %v1339_v6  ;;  %2608 = vmatmul.mubr.bf16.gmra.mrb[84].mxu1 %v15963_v51 }
 0x245   : > { %v17059_v8 = vpop.eup %17058  ;;  %v1213_v16 = vpop.f32.mrb[176].mxu0  ;;  %2615 = vmatprep.mubr.bf16.mxu1 %v15964_v30 }
 0x246   : > { %v17061_v19 = vpop.eup %17060  ;;  %17070 = vpow2.f32 %v1524_v10  ;;  %v1214_v25 = vadd.f32 %v17719_v17, %v1213_v16  ;;  %v14618_v63 = vpop.f32.mrb[177].mxu0  ;;  %v1882_v21 = vpack.c.bf16 %v17059_v8, %v17057_v50  ;;  %v1839_v8 = vld [vmem:[%s22212_s3 + $0x2a8] sm:$0x33] }
 0x247   : > { %v1630_v32 = vadd.f32 1.0, %v17061_v19  ;;  %v1216_v58 = vpop.f32.mrb[178].mxu0 }
 0x248   : > { %v17063_v62 = vpop.eup %17062  ;;  %v1340_v49 = vsub.f32 0.0, %v1214_v25  ;;  %v1217_v56 = vadd.f32 %v17719_v17, %v1216_v58  ;;  %v14619_v42 = vpop.f32.mrb[179].mxu0  ;;  %13944 = vmatprep.subr.bf16.mxu1 %v1882_v21 }
 0x249   : > { %v1631_v41 = vadd.f32 1.0, %v17063_v62  ;;  %13945 = vmatpush3.bf16.msra.mxu1 %v1874_v40  ;;  %17072 = vrcp.f32 %v1630_v32  ;;  %v15972_v62 = vld [vmem:[%s22212_s3 + $0x270] ss:$28 sps:$4 sm:$0xff]   ;;  %v12251_v42 = vcombine.high %v1839_v8, %v1839_v8 }
 0x24a   : > { %v1526_v11 = vmul.f32 1.442695, %v1340_v49  ;;  %v1341_v12 = vsub.f32 0.0, %v1217_v56 }
 0x24b   : > { %17074 = vrcp.f32 %v1631_v41  ;;  %v17065_v13 = vpop.eup %17064 }
 0x24c   : > { %17076 = vpow2.f32 %v1526_v11  ;;  %v1528_v27 = vmul.f32 1.442695, %v1341_v12  ;;  %2616 = vmatmul.mubr.bf16.gmra.mrb[88].mxu1 %v15966_v9 }
 0x24d   : > { %v17067_v28 = vpop.eup %17066  ;;  %v1221_v60 = vpop.f32.mrb[180].mxu0  ;;  %2623 = vmatprep.mubr.bf16.mxu1 %v15967_v59 }
 0x24e   : > { %v17069_v7 = vpop.eup %17068  ;;  %17078 = vpow2.f32 %v1528_v27  ;;  %v1222_v34 = vadd.f32 %v17719_v17, %v1221_v60  ;;  %v14622_v54 = vpop.f32.mrb[181].mxu0  ;;  %v1883_v40 = vpack.c.bf16 %v17067_v28, %v17065_v13 }
 0x24f   : > { %v1632_v43 = vadd.f32 1.0, %v17069_v7  ;;  %v1224_v23 = vpop.f32.mrb[182].mxu0 }
 0x250   : > { %v17071_v18 = vpop.eup %17070  ;;  %v1342_v53 = vsub.f32 0.0, %v1222_v34  ;;  %v1225_v3 = vadd.f32 %v17719_v17, %v1224_v23  ;;  %v14623_v45 = vpop.f32.mrb[183].mxu0  ;;  %13946 = vmatprep.subr.bf16.mxu1 %v1883_v40 }
 0x251   : > { %v1633_v39 = vadd.f32 1.0, %v17071_v18  ;;  %13947 = vmatpush3.bf16.msra.mxu1 %v1875_v14  ;;  %17080 = vrcp.f32 %v1632_v43  ;;  %v12250_v45 = vcombine.low %v1839_v8, %v1839_v8 }
 0x252   : > { %v1530_v51 = vmul.f32 1.442695, %v1342_v53  ;;  %v1343_v22 = vsub.f32 0.0, %v1225_v3 }
 0x253   : > { %17082 = vrcp.f32 %v1633_v39  ;;  %v17073_v30 = vpop.eup %17072 }
 0x254   : > { %17084 = vpow2.f32 %v1530_v51  ;;  %v1532_v61 = vmul.f32 1.442695, %v1343_v22  ;;  %2624 = vmatmul.mubr.bf16.gmra.mrb[92].mxu1 %v15969_v37 }
 0x255   : > { %v17075_v6 = vpop.eup %17074  ;;  %v1229_v50 = vpop.f32.mrb[184].mxu0  ;;  %2631 = vmatprep.mubr.bf16.mxu1 %v15970_v44  ;;  %v15977_v44 = vld [vmem:[%s22212_s3 + $0x14] ss:$28 sps:$4 sm:$0xff]  }
 0x256   : > { %v17077_v10 = vpop.eup %17076  ;;  %17086 = vpow2.f32 %v1532_v61  ;;  %v1230_v48 = vadd.f32 %v17719_v17, %v1229_v50  ;;  %v14626_v24 = vpop.f32.mrb[185].mxu0  ;;  %v1884_v14 = vpack.c.bf16 %v17075_v6, %v17073_v30 }
 0x257   : > { %v1634_v16 = vadd.f32 1.0, %v17077_v10  ;;  %v1232_v19 = vpop.f32.mrb[186].mxu0  ;;  %v13772_v25 = vpop.f32.mrb[0].mxu1 }
 0x258   : > { %v17079_v63 = vpop.eup %17078  ;;  %v1344_v21 = vsub.f32 0.0, %v1230_v48  ;;  %v1233_v32 = vadd.f32 %v17719_v17, %v1232_v19  ;;  %v14627_v58 = vpop.f32.mrb[187].mxu0  ;;  %13948 = vmatprep.subr.bf16.mxu1 %v1884_v14 }
 0x259   : > { %v13773_v49 = vpop.f32.mrb[1].mxu1  ;;  %v1635_v56 = vadd.f32 1.0, %v17079_v63  ;;  %13949 = vmatpush3.bf16.msra.mxu1 %v1876_v36  ;;  %17088 = vrcp.f32 %v1634_v16 }
 0x25a   : > { %v17911_v9 = vadd.f32 %v13773_v49, %v13772_v25  ;;  %v13775_v41 = vpop.f32.mrb[2].mxu1  ;;  %v1534_v59 = vmul.f32 1.442695, %v1344_v21  ;;  %v1345_v11 = vsub.f32 0.0, %v1233_v32 }
 0x25b   : > { %v13776_v12 = vpop.f32.mrb[3].mxu1  ;;  %17090 = vrcp.f32 %v1635_v56  ;;  %v17081_v27 = vpop.eup %17080 }
 0x25c   : > { %v17913_v13 = vadd.f32 %v13776_v12, %v13775_v41  ;;  %17092 = vpow2.f32 %v1534_v59  ;;  %v1536_v28 = vmul.f32 1.442695, %v1345_v11  ;;  %2632 = vmatmul.mubr.bf16.gmra.mrb[96].mxu1 %v15972_v62 }
 0x25d   : > { %v17083_v60 = vpop.eup %17082  ;;  %v1237_v7 = vpop.f32.mrb[188].mxu0  ;;  %2639 = vmatprep.mubr.bf16.mxu1 %v12251_v42 }
 0x25e   : > { %v17085_v47 = vpop.eup %17084  ;;  %17094 = vpow2.f32 %v1536_v28  ;;  %v1238_v5 = vadd.f32 %v17719_v17, %v1237_v7  ;;  %v14630_v36 = vpop.f32.mrb[189].mxu0  ;;  %v1885_v34 = vpack.c.bf16 %v17083_v60, %v17081_v27 }
 0x25f   : > { %v1636_v54 = vadd.f32 1.0, %v17085_v47  ;;  %v1240_v40 = vpop.f32.mrb[190].mxu0  ;;  %v13778_v43 = vpop.f32.mrb[4].mxu1 }
 0x260   : > { %v17087_v23 = vpop.eup %17086  ;;  %v1346_v18 = vsub.f32 0.0, %v1238_v5  ;;  %v1241_v53 = vadd.f32 %v17719_v17, %v1240_v40  ;;  %v14631_v3 = vpop.f32.mrb[191].mxu0  ;;  %13950 = vmatprep.subr.bf16.mxu1 %v1885_v34 }
 0x261   : > { %v13779_v37 = vpop.f32.mrb[5].mxu1  ;;  %v1637_v39 = vadd.f32 1.0, %v17087_v23  ;;  %13951 = vmatpush3.bf16.msra.mxu1 %v1877_v57  ;;  %17096 = vrcp.f32 %v1636_v54 }
 0x262   : > { %v17923_v51 = vadd.f32 %v13779_v37, %v13778_v43  ;;  %v13781_v22 = vpop.f32.mrb[6].mxu1  ;;  %v1538_v30 = vmul.f32 1.442695, %v1346_v18  ;;  %v1347_v61 = vsub.f32 0.0, %v1241_v53 }
 0x263   : > { %v13782_v6 = vpop.f32.mrb[7].mxu1  ;;  %17098 = vrcp.f32 %v1637_v39  ;;  %v17089_v10 = vpop.eup %17088 }
 0x264   : > { %v17925_v50 = vadd.f32 %v13782_v6, %v13781_v22  ;;  %17100 = vpow2.f32 %v1538_v30  ;;  %v1540_v48 = vmul.f32 1.442695, %v1347_v61  ;;  %2640 = vmatmul.mubr.bf16.gmra.mrb[100].mxu1 %v12250_v45 }
 0x265   : > { %v17091_v2 = vpop.eup %17090  ;;  %2679 = vmatprep.mubr.bf16.mxu1 %v15977_v44  ;;  %v1245_v52 = vpop.f32.mrb[192].mxu0 }
 0x266   : > { %v17093_v57 = vpop.eup %17092  ;;  %17102 = vpow2.f32 %v1540_v48  ;;  %v1886_v24 = vpack.c.bf16 %v17091_v2, %v17089_v10  ;;  %v1246_v14 = vadd.f32 %v17719_v17, %v1245_v52  ;;  %v14634_v8 = vpop.f32.mrb[193].mxu0  ;;  %v15975_v48 = vld [vmem:[%s22212_s3 + $0x10] ss:$28 sps:$4 sm:$0xff]  }
 0x267   : > { %v1638_v16 = vadd.f32 1.0, %v17093_v57  ;;  %v13784_v19 = vpop.f32.mrb[8].mxu1  ;;  %v1248_v25 = vpop.f32.mrb[194].mxu0 }
 0x268   : > { %v17095_v63 = vpop.eup %17094  ;;  %13952 = vmatprep.subr.bf16.mxu1 %v1886_v24  ;;  %v13785_v21 = vpop.f32.mrb[9].mxu1  ;;  %v1348_v32 = vsub.f32 0.0, %v1246_v14  ;;  %v1249_v58 = vadd.f32 %v17719_v17, %v1248_v25 }
 0x269   : > { %v14635_v62 = vpop.f32.mrb[195].mxu0  ;;  %v1639_v49 = vadd.f32 1.0, %v17095_v63  ;;  %13953 = vmatpush3.bf16.msra.mxu1 %v1878_v20  ;;  %v17932_v56 = vadd.f32 %v13785_v21, %v13784_v19  ;;  %v13787_v42 = vpop.f32.mrb[10].mxu1  ;;  %17104 = vrcp.f32 %v1638_v16 }
 0x26a   : > { %v13788_v41 = vpop.f32.mrb[11].mxu1  ;;  %v1542_v59 = vmul.f32 1.442695, %v1348_v32  ;;  %v1349_v11 = vsub.f32 0.0, %v1249_v58  ;;  %v15983_v58 = vld [vmem:[%s22212_s3 + $0x80] ss:$28 sps:$4 sm:$0xff]  }
 0x26b   : > { %17106 = vrcp.f32 %v1639_v49  ;;  %v17934_v12 = vadd.f32 %v13788_v41, %v13787_v42  ;;  %v17097_v27 = vpop.eup %17096  ;;  %v15984_v49 = vld [vmem:[%s22212_s3 + $0xbc] ss:$28 sps:$4 sm:$0xff]  }
 0x26c   : > { %17108 = vpow2.f32 %v1542_v59  ;;  %v1544_v28 = vmul.f32 1.442695, %v1349_v11 }
 0x26d   : > { %v17099_v17 = vpop.eup %17098 }
 0x26e   : > { %v17101_v60 = vpop.eup %17100  ;;  %v1887_v7 = vpack.c.bf16 %v17099_v17, %v17097_v27  ;;  %17110 = vpow2.f32 %v1544_v28  ;;  %v15986_v28 = vld [vmem:[%s22212_s3 + $0xb8] ss:$28 sps:$4 sm:$0xff]  }
 0x26f   : > { %v1640_v47 = vadd.f32 1.0, %v17101_v60  ;;  %v13790_v38 = vpop.f32.mrb[12].mxu1  ;;  %v15987_v60 = vld [vmem:[%s22212_s3 + $0xf4] ss:$28 sps:$4 sm:$0xff]  }
 0x270   : > { %v17103_v15 = vpop.eup %17102  ;;  %13954 = vmatprep.subr.bf16.mxu1 %v1887_v7  ;;  %v13791_v20 = vpop.f32.mrb[13].mxu1 }
 0x271   : > { %v1641_v5 = vadd.f32 1.0, %v17103_v15  ;;  %13955 = vmatpush3.bf16.msra.mxu1 %v1879_v31  ;;  %v17939_v36 = vadd.f32 %v13791_v20, %v13790_v38  ;;  %v13793_v34 = vpop.f32.mrb[14].mxu1  ;;  %17112 = vrcp.f32 %v1640_v47 }
 0x272   : > { %v13794_v54 = vpop.f32.mrb[15].mxu1 }
 0x273   : > { %17114 = vrcp.f32 %v1641_v5  ;;  %v17941_v40 = vadd.f32 %v13794_v54, %v13793_v34  ;;  %v17105_v43 = vpop.eup %17104  ;;  %v15989_v5 = vld [vmem:[%s22212_s3 + $0xf0] ss:$28 sps:$4 sm:$0xff]  }
 0x274   : > { %v15990_v54 = vld [vmem:[%s22212_s3 + $0x12c] ss:$28 sps:$4 sm:$0xff]  }
 0x275   : > { %v17107_v23 = vpop.eup %17106 }
 0x276   : > { %v17109_v18 = vpop.eup %17108  ;;  %v1888_v53 = vpack.c.bf16 %v17107_v23, %v17105_v43 }
 0x277   : > { %v13796_v3 = vpop.f32.mrb[16].mxu1  ;;  %v1642_v45 = vadd.f32 1.0, %v17109_v18 }
 0x278   : > { %v17111_v37 = vpop.eup %17110  ;;  %13956 = vmatprep.subr.bf16.mxu1 %v1888_v53  ;;  %v13797_v39 = vpop.f32.mrb[17].mxu1 }
 0x279   : > { %13957 = vmatpush3.bf16.msra.mxu1 %v1880_v4  ;;  %v17946_v35 = vadd.f32 %v13797_v39, %v13796_v3  ;;  %v13799_v46 = vpop.f32.mrb[18].mxu1  ;;  %17116 = vrcp.f32 %v1642_v45  ;;  %v1643_v31 = vadd.f32 1.0, %v17111_v37  ;;  %v15992_v45 = vld [vmem:[%s22212_s3 + $0x128] ss:$28 sps:$4 sm:$0xff]  }
 0x27a   : > { %v13800_v44 = vpop.f32.mrb[19].mxu1  ;;  %v15993_v39 = vld [vmem:[%s22212_s3 + $0x164] ss:$28 sps:$4 sm:$0xff]  }
 0x27b   : > { %v17948_v22 = vadd.f32 %v13800_v44, %v13799_v46  ;;  %17118 = vrcp.f32 %v1643_v31  ;;  %v17113_v30 = vpop.eup %17112 }
 0x27d   : > { %v17115_v61 = vpop.eup %17114 }
 0x27e   : > { %v1889_v6 = vpack.c.bf16 %v17115_v61, %v17113_v30 }
 0x27f   : > { %v13802_v10 = vpop.f32.mrb[20].mxu1 }
 0x280   : > { %13958 = vmatprep.subr.bf16.mxu1 %v1889_v6  ;;  %v13803_v55 = vpop.f32.mrb[21].mxu1  ;;  %v15995_v6 = vld [vmem:[%s22212_s3 + $0x160] ss:$28 sps:$4 sm:$0xff]  }
 0x281   : > { %13959 = vmatpush3.bf16.msra.mxu1 %v1881_v26  ;;  %v17959_v4 = vadd.f32 %v13803_v55, %v13802_v10  ;;  %v13805_v2 = vpop.f32.mrb[22].mxu1  ;;  %v15981_v26 = vld [vmem:[%s22212_s3 + $0x84] ss:$28 sps:$4 sm:$0xff]  }
 0x282   : > { %v13806_v52 = vpop.f32.mrb[23].mxu1  ;;  %14636 = vmatprep.subr.bf16.mxu1 %v17182_v1 }
 0x283   : > { %v17117_v57 = vpop.eup %17116  ;;  %v17962_v24 = vadd.f32 %v13806_v52, %v13805_v2 }
 0x284   : > { %2680 = vmatmul.mubr.bf16.vlgmr.msra.gmra.mrb[104].mxu1 %v15975_v48  ;;  %v15996_v48 = vld [vmem:[%s22212_s3 + $0x19c] ss:$28 sps:$4 sm:$0xff]  }
 0x285   : > { %v17119_v14 = vpop.eup %17118  ;;  %2687 = vmatprep.mubr.bf16.mxu1 %v15978_v33 }
 0x286   : > { %v1890_v8 = vpack.c.bf16 %v17119_v14, %v17117_v57  ;;  %v15998_v14 = vld [vmem:[%s22212_s3 + $0x198] ss:$28 sps:$4 sm:$0xff]  }
 0x287   : > { %v13808_v16 = vpop.f32.mrb[24].mxu1 }
 0x288   : > { %v13809_v0 = vpop.f32.mrb[25].mxu1  ;;  %14637 = vmatpush3.bf16.msra.mxu1 %v1890_v8 }
 0x289   : > { %v17970_v19 = vadd.f32 %v13809_v0, %v13808_v16  ;;  %v13811_v25 = vpop.f32.mrb[26].mxu1  ;;  %v15999_v16 = vld [vmem:[%s22212_s3 + $0x1d4] ss:$28 sps:$4 sm:$0xff]  }
 0x28a   : > { %v13812_v63 = vpop.f32.mrb[27].mxu1 }
 0x28b   : > { %v17972_v21 = vadd.f32 %v13812_v63, %v13811_v25  ;;  %v16001_v25 = vld [vmem:[%s22212_s3 + $0x1d0] ss:$28 sps:$4 sm:$0xff]  }
 0x28c   : > { %2688 = vmatmul.mubr.bf16.gmra.mrb[108].mxu1 %v15980_v29  ;;  %v16002_v63 = vld [vmem:[%s22212_s3 + $0x20c] ss:$28 sps:$4 sm:$0xff]  }
 0x28d   : > { %2695 = vmatprep.mubr.bf16.mxu1 %v15981_v26 }
 0x28f   : > { %v13814_v32 = vpop.f32.mrb[28].mxu1 }
 0x290   : > { %v13815_v62 = vpop.f32.mrb[29].mxu1 }
 0x291   : > { %v17980_v42 = vadd.f32 %v13815_v62, %v13814_v32  ;;  %v13817_v41 = vpop.f32.mrb[30].mxu1  ;;  %v16004_v32 = vld [vmem:[%s22212_s3 + $0x208] ss:$28 sps:$4 sm:$0xff]   ;;  %v16007_v62 = vld [vmem:[%s22212_s3 + $0x240] ss:$28 sps:$4 sm:$0xff]  }
 0x292   : > { %v13818_v59 = vpop.f32.mrb[31].mxu1 }
 0x293   : > { %v17982_v11 = vadd.f32 %v13818_v59, %v13817_v41  ;;  %v1840_v41 = vld [vmem:[%s22212_s3 + $0x2b0] sm:$0x33] }
 0x294   : > { %2696 = vmatmul.mubr.bf16.gmra.mrb[112].mxu1 %v15983_v58  ;;  %v16005_v58 = vld [vmem:[%s22212_s3 + $0x244] ss:$28 sps:$4 sm:$0xff]  }
 0x295   : > { %2703 = vmatprep.mubr.bf16.mxu1 %v15984_v49  ;;  %v16008_v49 = vld [vmem:[%s22212_s3 + $0x27c] ss:$28 sps:$4 sm:$0xff]  }
 0x297   : > { %v13820_v27 = vpop.f32.mrb[32].mxu1 }
 0x298   : > { %v13821_v17 = vpop.f32.mrb[33].mxu1 }
 0x299   : > { %v17990_v7 = vadd.f32 %v13821_v17, %v13820_v27  ;;  %v13823_v47 = vpop.f32.mrb[34].mxu1 }
 0x29a   : > { %v13824_v38 = vpop.f32.mrb[35].mxu1 }
 0x29b   : > { %v17992_v15 = vadd.f32 %v13824_v38, %v13823_v47  ;;  %v12253_v47 = vcombine.high %v1840_v41, %v1840_v41 }
 0x29c   : > { %2704 = vmatmul.mubr.bf16.gmra.mrb[116].mxu1 %v15986_v28  ;;  %v16010_v28 = vld [vmem:[%s22212_s3 + $0x278] ss:$28 sps:$4 sm:$0xff]  }
 0x29d   : > { %2711 = vmatprep.mubr.bf16.mxu1 %v15987_v60 }
 0x29f   : > { %v13826_v20 = vpop.f32.mrb[36].mxu1 }
 0x2a0   : > { %v13827_v34 = vpop.f32.mrb[37].mxu1 }
 0x2a1   : > { %v18000_v43 = vadd.f32 %v13827_v34, %v13826_v20  ;;  %v13829_v23 = vpop.f32.mrb[38].mxu1 }
 0x2a2   : > { %v13830_v18 = vpop.f32.mrb[39].mxu1 }
 0x2a3   : > { %v18002_v53 = vadd.f32 %v13830_v18, %v13829_v23  ;;  %v12252_v18 = vcombine.low %v1840_v41, %v1840_v41 }
 0x2a4   : > { %2712 = vmatmul.mubr.bf16.gmra.mrb[120].mxu1 %v15989_v5 }
 0x2a5   : > { %2719 = vmatprep.mubr.bf16.mxu1 %v15990_v54 }
 0x2a7   : > { %v13832_v3 = vpop.f32.mrb[40].mxu1 }
 0x2a8   : > { %v13833_v37 = vpop.f32.mrb[41].mxu1 }
 0x2a9   : > { %v18010_v46 = vadd.f32 %v13833_v37, %v13832_v3  ;;  %v13835_v31 = vpop.f32.mrb[42].mxu1 }
 0x2aa   : > { %v13836_v44 = vpop.f32.mrb[43].mxu1 }
 0x2ab   : > { %v18012_v30 = vadd.f32 %v13836_v44, %v13835_v31 }
 0x2ac   : > { %2720 = vmatmul.mubr.bf16.gmra.mrb[124].mxu1 %v15992_v45 }
 0x2ad   : > { %2727 = vmatprep.mubr.bf16.mxu1 %v15993_v39 }
 0x2af   : > { %v13838_v61 = vpop.f32.mrb[44].mxu1 }
 0x2b0   : > { %v13839_v10 = vpop.f32.mrb[45].mxu1 }
 0x2b1   : > { %v18020_v55 = vadd.f32 %v13839_v10, %v13838_v61  ;;  %v13841_v33 = vpop.f32.mrb[46].mxu1  ;;  %v16013_v61 = vld [vmem:[%s22212_s3 + $0x18] ss:$28 sps:$4 sm:$0xff]  }
 0x2b2   : > { %v13842_v2 = vpop.f32.mrb[47].mxu1 }
 0x2b3   : > { %v18022_v52 = vadd.f32 %v13842_v2, %v13841_v33 }
 0x2b4   : > { %2728 = vmatmul.mubr.bf16.gmra.mrb[128].mxu1 %v15995_v6 }
 0x2b5   : > { %2735 = vmatprep.mubr.bf16.mxu1 %v15996_v48 }
 0x2b7   : > { %v13844_v57 = vpop.f32.mrb[48].mxu1 }
 0x2b8   : > { %v13845_v8 = vpop.f32.mrb[49].mxu1 }
 0x2b9   : > { %v18030_v29 = vadd.f32 %v13845_v8, %v13844_v57  ;;  %v13847_v0 = vpop.f32.mrb[50].mxu1 }
 0x2ba   : > { %v13848_v26 = vpop.f32.mrb[51].mxu1 }
 0x2bc   : > { %2736 = vmatmul.mubr.bf16.gmra.mrb[132].mxu1 %v15998_v14  ;;  %v16014_v14 = vld [vmem:[%s22212_s3 + $0x50] ss:$28 sps:$4 sm:$0xff]  }
 0x2bd   : > { %2743 = vmatprep.mubr.bf16.mxu1 %v15999_v16 }
 0x2c4   : > { %2744 = vmatmul.mubr.bf16.gmra.mrb[136].mxu1 %v16001_v25 }
 0x2c5   : > { %2751 = vmatprep.mubr.bf16.mxu1 %v16002_v63 }
 0x2cc   : > { %2752 = vmatmul.mubr.bf16.gmra.mrb[140].mxu1 %v16004_v32  ;;  %v16015_v32 = vld [vmem:[%s22212_s3 + $0x88] ss:$28 sps:$4 sm:$0xff]  }
 0x2cd   : > { %2759 = vmatprep.mubr.bf16.mxu1 %v16005_v58 }
 0x2d4   : > { %2760 = vmatmul.mubr.bf16.gmra.mrb[144].mxu1 %v16007_v62 }
 0x2d5   : > { %2767 = vmatprep.mubr.bf16.mxu1 %v16008_v49 }
 0x2d7   : > { %v13866_v59 = vpop.f32.mrb[52].mxu1 }
 0x2d8   : > { %v13867_v27 = vpop.f32.mrb[53].mxu1 }
 0x2d9   : > { %v13868_v17 = vadd.f32 %v13867_v27, %v13866_v59  ;;  %v13869_v60 = vpop.f32.mrb[54].mxu1 }
 0x2da   : > { %v13870_v38 = vpop.f32.mrb[55].mxu1 }
 0x2db   : > { %v18057_v20 = vadd.f32 %v13868_v17, %v17911_v9  ;;  %v13871_v5 = vadd.f32 %v13870_v38, %v13869_v60 }
 0x2dc   : > { %2768 = vmatmul.mubr.bf16.gmra.mrb[148].mxu1 %v16010_v28  ;;  %v16016_v28 = vld [vmem:[%s22212_s3 + $0xc0] ss:$28 sps:$4 sm:$0xff]  }
 0x2dd   : > { %v18060_v34 = vadd.f32 %v13871_v5, %v17913_v13  ;;  %2775 = vmatprep.mubr.bf16.mxu1 %v12253_v47 }
 0x2df   : > { %v13872_v54 = vpop.f32.mrb[56].mxu1 }
 0x2e0   : > { %v13873_v23 = vpop.f32.mrb[57].mxu1 }
 0x2e1   : > { %v13874_v3 = vadd.f32 %v13873_v23, %v13872_v54  ;;  %v13875_v45 = vpop.f32.mrb[58].mxu1  ;;  %v16017_v23 = vld [vmem:[%s22212_s3 + $0xf8] ss:$28 sps:$4 sm:$0xff]  }
 0x2e2   : > { %v13876_v37 = vpop.f32.mrb[59].mxu1 }
 0x2e3   : > { %v18063_v39 = vadd.f32 %v13874_v3, %v17923_v51  ;;  %v13877_v31 = vadd.f32 %v13876_v37, %v13875_v45 }
 0x2e4   : > { %2776 = vmatmul.mubr.bf16.gmra.mrb[152].mxu1 %v12252_v18 }
 0x2e5   : > { %v18066_v9 = vadd.f32 %v13877_v31, %v17925_v50  ;;  %14638 = vmatprep.mubr.msk.bf16.mxu1 %vm17184_vm2, %v17182_v1 }
 0x2e7   : > { %v13878_v13 = vpop.f32.mrb[60].mxu1 }
 0x2e8   : > { %v13879_v44 = vpop.f32.mrb[61].mxu1 }
 0x2e9   : > { %v13880_v6 = vadd.f32 %v13879_v44, %v13878_v13  ;;  %v13881_v10 = vpop.f32.mrb[62].mxu1  ;;  %v16018_v44 = vld [vmem:[%s22212_s3 + $0x130] ss:$28 sps:$4 sm:$0xff]  }
 0x2ea   : > { %v13882_v48 = vpop.f32.mrb[63].mxu1 }
 0x2eb   : > { %v18074_v51 = vadd.f32 %v13880_v6, %v17932_v56  ;;  %v13883_v33 = vadd.f32 %v13882_v48, %v13881_v10 }
 0x2ec   : > { %14639 = vmatmul.mubr.msk.bf16.vlgmr.msra.gmra.mrb[156].mxu1 %vm2335_vm4, %v16013_v61 }
 0x2ed   : > { %v18078_v50 = vadd.f32 %v13883_v33, %v17934_v12  ;;  %14642 = vmatprep.mubr.msk.bf16.mxu1 %vm17184_vm2, %v17182_v1 }
 0x2ef   : > { %v13884_v2 = vpop.f32.mrb[64].mxu1 }
 0x2f0   : > { %v13885_v57 = vpop.f32.mrb[65].mxu1 }
 0x2f1   : > { %v13886_v8 = vadd.f32 %v13885_v57, %v13884_v2  ;;  %v13887_v16 = vpop.f32.mrb[66].mxu1  ;;  %v16019_v57 = vld [vmem:[%s22212_s3 + $0x168] ss:$28 sps:$4 sm:$0xff]  }
 0x2f2   : > { %v13888_v0 = vpop.f32.mrb[67].mxu1 }
 0x2f3   : > { %v18086_v56 = vadd.f32 %v13886_v8, %v17939_v36  ;;  %v13889_v26 = vadd.f32 %v13888_v0, %v13887_v16 }
 0x2f4   : > { %14643 = vmatmul.mubr.msk.bf16.gmra.mrb[160].mxu1 %vm2335_vm4, %v16014_v14 }
 0x2f5   : > { %v18090_v12 = vadd.f32 %v13889_v26, %v17941_v40  ;;  %14646 = vmatprep.mubr.msk.bf16.mxu1 %vm17184_vm2, %v17182_v1 }
 0x2f7   : > { %v13890_v25 = vpop.f32.mrb[68].mxu1 }
 0x2f8   : > { %v13891_v63 = vpop.f32.mrb[69].mxu1 }
 0x2f9   : > { %v13892_v58 = vadd.f32 %v13891_v63, %v13890_v25  ;;  %v13893_v62 = vpop.f32.mrb[70].mxu1  ;;  %v16020_v63 = vld [vmem:[%s22212_s3 + $0x1a0] ss:$28 sps:$4 sm:$0xff]  }
 0x2fa   : > { %v13894_v49 = vpop.f32.mrb[71].mxu1 }
 0x2fb   : > { %v18098_v36 = vadd.f32 %v13892_v58, %v17946_v35  ;;  %v13895_v41 = vadd.f32 %v13894_v49, %v13893_v62 }
 0x2fc   : > { %14647 = vmatmul.mubr.msk.bf16.gmra.mrb[164].mxu1 %vm2335_vm4, %v16015_v32 }
 0x2fd   : > { %v18102_v40 = vadd.f32 %v13895_v41, %v17948_v22  ;;  %14650 = vmatprep.mubr.msk.bf16.mxu1 %vm17184_vm2, %v17182_v1 }
 0x2ff   : > { %v13896_v59 = vpop.f32.mrb[72].mxu1 }
 0x300   : > { %v13897_v27 = vpop.f32.mrb[73].mxu1 }
 0x301   : > { %v13898_v17 = vadd.f32 %v13897_v27, %v13896_v59  ;;  %v13899_v60 = vpop.f32.mrb[74].mxu1  ;;  %v16021_v27 = vld [vmem:[%s22212_s3 + $0x1d8] ss:$28 sps:$4 sm:$0xff]  }
 0x302   : > { %v13900_v47 = vpop.f32.mrb[75].mxu1 }
 0x303   : > { %v18110_v35 = vadd.f32 %v13898_v17, %v17959_v4  ;;  %v13901_v38 = vadd.f32 %v13900_v47, %v13899_v60 }
 0x304   : > { %14651 = vmatmul.mubr.msk.bf16.gmra.mrb[168].mxu1 %vm2335_vm4, %v16016_v28 }
 0x305   : > { %v18114_v22 = vadd.f32 %v13901_v38, %v17962_v24  ;;  %14654 = vmatprep.mubr.msk.bf16.mxu1 %vm17184_vm2, %v17182_v1 }
 0x307   : > { %v13902_v5 = vpop.f32.mrb[76].mxu1 }
 0x308   : > { %v13903_v54 = vpop.f32.mrb[77].mxu1 }
 0x309   : > { %v13904_v18 = vadd.f32 %v13903_v54, %v13902_v5  ;;  %v13905_v3 = vpop.f32.mrb[78].mxu1  ;;  %v16022_v54 = vld [vmem:[%s22212_s3 + $0x210] ss:$28 sps:$4 sm:$0xff]  }
 0x30a   : > { %v13906_v45 = vpop.f32.mrb[79].mxu1 }
 0x30b   : > { %v18122_v4 = vadd.f32 %v13904_v18, %v17970_v19  ;;  %v13907_v37 = vadd.f32 %v13906_v45, %v13905_v3 }
 0x30c   : > { %14655 = vmatmul.mubr.msk.bf16.gmra.mrb[172].mxu1 %vm2335_vm4, %v16017_v23 }
 0x30d   : > { %v18126_v24 = vadd.f32 %v13907_v37, %v17972_v21  ;;  %14658 = vmatprep.mubr.msk.bf16.mxu1 %vm17184_vm2, %v17182_v1 }
 0x30f   : > { %v13908_v31 = vpop.f32.mrb[80].mxu1 }
 0x310   : > { %v13909_v13 = vpop.f32.mrb[81].mxu1 }
 0x311   : > { %v13910_v61 = vadd.f32 %v13909_v13, %v13908_v31  ;;  %v13911_v6 = vpop.f32.mrb[82].mxu1  ;;  %v16023_v13 = vld [vmem:[%s22212_s3 + $0x248] ss:$28 sps:$4 sm:$0xff]  }
 0x312   : > { %v13912_v10 = vpop.f32.mrb[83].mxu1 }
 0x313   : > { %v18134_v19 = vadd.f32 %v13910_v61, %v17980_v42  ;;  %v13913_v48 = vadd.f32 %v13912_v10, %v13911_v6  ;;  %v17185_v10 = vmov 0  }
 0x314   : > { %14659 = vmatmul.mubr.msk.bf16.gmra.mrb[176].mxu1 %vm2335_vm4, %v16018_v44  ;;  %3031 = vmatprep.subr.bf16.mxu0 %v17185_v10 }
 0x315   : > { %v18138_v21 = vadd.f32 %v13913_v48, %v17982_v11  ;;  %14662 = vmatprep.mubr.msk.bf16.mxu1 %vm17184_vm2, %v17182_v1  ;;  %15808 = vmatprep.subr.bf16.mxu1 %v17185_v10 }
 0x317   : > { %v13914_v33 = vpop.f32.mrb[84].mxu1 }
 0x318   : > { %v13915_v2 = vpop.f32.mrb[85].mxu1 }
 0x319   : > { %v13916_v14 = vadd.f32 %v13915_v2, %v13914_v33  ;;  %v13917_v8 = vpop.f32.mrb[86].mxu1 }
 0x31a   : > { %v13918_v16 = vpop.f32.mrb[87].mxu1 }
 0x31b   : > { %v18146_v42 = vadd.f32 %v13916_v14, %v17990_v7  ;;  %v13919_v0 = vadd.f32 %v13918_v16, %v13917_v8 }
 0x31c   : > { %14663 = vmatmul.mubr.msk.bf16.gmra.mrb[180].mxu1 %vm2335_vm4, %v16019_v57 }
 0x31d   : > { %v18150_v11 = vadd.f32 %v13919_v0, %v17992_v15  ;;  %14666 = vmatprep.mubr.msk.bf16.mxu1 %vm17184_vm2, %v17182_v1 }
 0x31f   : > { %v13920_v26 = vpop.f32.mrb[88].mxu1 }
 0x320   : > { %v13921_v25 = vpop.f32.mrb[89].mxu1 }
 0x321   : > { %v13922_v32 = vadd.f32 %v13921_v25, %v13920_v26  ;;  %v13923_v58 = vpop.f32.mrb[90].mxu1 }
 0x322   : > { %v13924_v62 = vpop.f32.mrb[91].mxu1 }
 0x323   : > { %v18158_v7 = vadd.f32 %v13922_v32, %v18000_v43  ;;  %v13925_v49 = vadd.f32 %v13924_v62, %v13923_v58 }
 0x324   : > { %14667 = vmatmul.mubr.msk.bf16.gmra.mrb[184].mxu1 %vm2335_vm4, %v16020_v63 }
 0x325   : > { %v18162_v15 = vadd.f32 %v13925_v49, %v18002_v53  ;;  %14670 = vmatprep.mubr.msk.bf16.mxu1 %vm17184_vm2, %v17182_v1 }
 0x327   : > { %v13926_v41 = vpop.f32.mrb[92].mxu1 }
 0x328   : > { %v13927_v59 = vpop.f32.mrb[93].mxu1 }
 0x329   : > { %v13928_v28 = vadd.f32 %v13927_v59, %v13926_v41  ;;  %v13929_v17 = vpop.f32.mrb[94].mxu1 }
 0x32a   : > { %v13930_v60 = vpop.f32.mrb[95].mxu1 }
 0x32b   : > { %v18170_v43 = vadd.f32 %v13928_v28, %v18010_v46  ;;  %v13931_v47 = vadd.f32 %v13930_v60, %v13929_v17 }
 0x32c   : > { %14671 = vmatmul.mubr.msk.bf16.gmra.mrb[188].mxu1 %vm2335_vm4, %v16021_v27 }
 0x32d   : > { %v18174_v53 = vadd.f32 %v13931_v47, %v18012_v30  ;;  %14674 = vmatprep.mubr.msk.bf16.mxu1 %vm17184_vm2, %v17182_v1 }
 0x32f   : > { %v13932_v38 = vpop.f32.mrb[96].mxu1 }
 0x330   : > { %v13933_v5 = vpop.f32.mrb[97].mxu1 }
 0x331   : > { %v13934_v23 = vadd.f32 %v13933_v5, %v13932_v38  ;;  %v13935_v18 = vpop.f32.mrb[98].mxu1 }
 0x332   : > { %v13936_v3 = vpop.f32.mrb[99].mxu1 }
 0x333   : > { %v18182_v46 = vadd.f32 %v13934_v23, %v18020_v55  ;;  %v13937_v45 = vadd.f32 %v13936_v3, %v13935_v18 }
 0x334   : > { %14675 = vmatmul.mubr.msk.bf16.gmra.mrb[192].mxu1 %vm2335_vm4, %v16022_v54 }
 0x335   : > { %v18186_v30 = vadd.f32 %v13937_v45, %v18022_v52  ;;  %14678 = vmatprep.mubr.msk.bf16.mxu1 %vm17184_vm2, %v17182_v1  ;;  %v16024_v52 = vld [vmem:[%s22212_s3 + $0x280] ss:$28 sps:$4 sm:$0xff]  }
 0x337   : > { %v13938_v37 = vpop.f32.mrb[100].mxu1 }
 0x338   : > { %v13939_v31 = vpop.f32.mrb[101].mxu1 }
 0x339   : > { %v13940_v44 = vadd.f32 %v13939_v31, %v13938_v37  ;;  %v13941_v61 = vpop.f32.mrb[102].mxu1 }
 0x33a   : > { %v13942_v6 = vpop.f32.mrb[103].mxu1 }
 0x33b   : > { %v18194_v55 = vadd.f32 %v13940_v44, %v18030_v29  ;;  %v16025_v29 = vld [vmem:[%s22212_s3 + $0x2b8] ss:$0 sps:$4 sm:$0x33]  }
 0x33c   : > { %14679 = vmatmul.mubr.msk.bf16.gmra.mrb[196].mxu1 %vm2335_vm4, %v16023_v13 }
 0x33d   : > { %14682 = vmatprep.mubr.msk.bf16.mxu1 %vm17184_vm2, %v17182_v1 }
 0x344   : > { %14683 = vmatmul.mubr.msk.bf16.gmra.mrb[200].mxu1 %vm2335_vm4, %v16024_v52 }
 0x345   : > { %14686 = vmatprep.mubr.msk.bf16.mxu1 %vm17184_vm2, %v17182_v1 }
 0x34c   : > { %14687 = vmatmul.mubr.msk.bf16.gmra.mrb[204].mxu1 %vm2335_vm4, %v16025_v29 }
 0x357   : > { %v13960_v48 = vpop.f32.mrb[104].mxu1 }
 0x358   : > { %v13961_v33 = vpop.f32.mrb[105].mxu1 }
 0x359   : > { %v13962_v2 = vadd.f32 %v13961_v33, %v13960_v48  ;;  %v13963_v57 = vpop.f32.mrb[106].mxu1 }
 0x35a   : > { %v13964_v14 = vpop.f32.mrb[107].mxu1 }
 0x35b   : > { %v13965_v8 = vadd.f32 %v13964_v14, %v13963_v57  ;;  %v18212_v16 = vadd.f32 %v13962_v2, %v18057_v20 }
 0x35d   : > { %v18215_v0 = vadd.f32 %v13965_v8, %v18060_v34 }
 0x35f   : > { %v13966_v26 = vpop.f32.mrb[108].mxu1 }
 0x360   : > { %v13967_v25 = vpop.f32.mrb[109].mxu1 }
 0x361   : > { %v13968_v63 = vadd.f32 %v13967_v25, %v13966_v26  ;;  %v13969_v32 = vpop.f32.mrb[110].mxu1 }
 0x362   : > { %v13970_v58 = vpop.f32.mrb[111].mxu1 }
 0x363   : > { %v13971_v62 = vadd.f32 %v13970_v58, %v13969_v32  ;;  %v18218_v49 = vadd.f32 %v13968_v63, %v18063_v39 }
 0x365   : > { %v18221_v41 = vadd.f32 %v13971_v62, %v18066_v9 }
 0x367   : > { %v13972_v59 = vpop.f32.mrb[112].mxu1 }
 0x368   : > { %v13973_v27 = vpop.f32.mrb[113].mxu1 }
 0x369   : > { %v13974_v28 = vadd.f32 %v13973_v27, %v13972_v59  ;;  %v13975_v20 = vpop.f32.mrb[114].mxu1 }
 0x36a   : > { %v13976_v17 = vpop.f32.mrb[115].mxu1 }
 0x36b   : > { %v13977_v60 = vadd.f32 %v13976_v17, %v13975_v20  ;;  %v18224_v34 = vadd.f32 %v13974_v28, %v18074_v51 }
 0x36d   : > { %v18227_v47 = vadd.f32 %v13977_v60, %v18078_v50 }
 0x36f   : > { %v13978_v38 = vpop.f32.mrb[116].mxu1 }
 0x370   : > { %v13979_v5 = vpop.f32.mrb[117].mxu1 }
 0x371   : > { %v13980_v54 = vadd.f32 %v13979_v5, %v13978_v38  ;;  %v13981_v39 = vpop.f32.mrb[118].mxu1 }
 0x372   : > { %v13982_v23 = vpop.f32.mrb[119].mxu1 }
 0x373   : > { %v13983_v18 = vadd.f32 %v13982_v23, %v13981_v39  ;;  %v18230_v9 = vadd.f32 %v13980_v54, %v18086_v56 }
 0x375   : > { %v18233_v3 = vadd.f32 %v13983_v18, %v18090_v12 }
 0x377   : > { %v13984_v45 = vpop.f32.mrb[120].mxu1 }
 0x378   : > { %v13985_v37 = vpop.f32.mrb[121].mxu1 }
 0x379   : > { %v13986_v31 = vadd.f32 %v13985_v37, %v13984_v45  ;;  %v13987_v51 = vpop.f32.mrb[122].mxu1 }
 0x37a   : > { %v13988_v13 = vpop.f32.mrb[123].mxu1 }
 0x37b   : > { %v13989_v44 = vadd.f32 %v13988_v13, %v13987_v51  ;;  %v18236_v50 = vadd.f32 %v13986_v31, %v18098_v36 }
 0x37d   : > { %v18239_v61 = vadd.f32 %v13989_v44, %v18102_v40 }
 0x37f   : > { %v13990_v6 = vpop.f32.mrb[124].mxu1 }
 0x380   : > { %v13991_v52 = vpop.f32.mrb[125].mxu1 }
 0x381   : > { %v13992_v29 = vadd.f32 %v13991_v52, %v13990_v6  ;;  %v13993_v56 = vpop.f32.mrb[126].mxu1 }
 0x382   : > { %v13994_v48 = vpop.f32.mrb[127].mxu1 }
 0x383   : > { %v13995_v33 = vadd.f32 %v13994_v48, %v13993_v56  ;;  %v18242_v12 = vadd.f32 %v13992_v29, %v18110_v35 }
 0x385   : > { %v18245_v2 = vadd.f32 %v13995_v33, %v18114_v22 }
 0x387   : > { %v13996_v57 = vpop.f32.mrb[128].mxu1 }
 0x388   : > { %v13997_v14 = vpop.f32.mrb[129].mxu1 }
 0x389   : > { %v13998_v8 = vadd.f32 %v13997_v14, %v13996_v57  ;;  %v13999_v36 = vpop.f32.mrb[130].mxu1 }
 0x38a   : > { %v14000_v26 = vpop.f32.mrb[131].mxu1 }
 0x38b   : > { %v14001_v25 = vadd.f32 %v14000_v26, %v13999_v36  ;;  %v18248_v40 = vadd.f32 %v13998_v8, %v18122_v4 }
 0x38d   : > { %v18251_v63 = vadd.f32 %v14001_v25, %v18126_v24 }
 0x38f   : > { %v14002_v32 = vpop.f32.mrb[132].mxu1 }
 0x390   : > { %v14003_v58 = vpop.f32.mrb[133].mxu1 }
 0x391   : > { %v14004_v62 = vadd.f32 %v14003_v58, %v14002_v32  ;;  %v14005_v35 = vpop.f32.mrb[134].mxu1 }
 0x392   : > { %v14006_v59 = vpop.f32.mrb[135].mxu1 }
 0x393   : > { %v14007_v27 = vadd.f32 %v14006_v59, %v14005_v35  ;;  %v18254_v22 = vadd.f32 %v14004_v62, %v18134_v19 }
 0x395   : > { %v18257_v28 = vadd.f32 %v14007_v27, %v18138_v21 }
 0x397   : > { %v14008_v20 = vpop.f32.mrb[136].mxu1 }
 0x398   : > { %v14009_v17 = vpop.f32.mrb[137].mxu1 }
 0x399   : > { %v14010_v60 = vadd.f32 %v14009_v17, %v14008_v20  ;;  %v14011_v4 = vpop.f32.mrb[138].mxu1 }
 0x39a   : > { %v14012_v38 = vpop.f32.mrb[139].mxu1 }
 0x39b   : > { %v14013_v5 = vadd.f32 %v14012_v38, %v14011_v4  ;;  %v18260_v24 = vadd.f32 %v14010_v60, %v18146_v42  ;;  %v16028_v42 = vld [vmem:[%s22213_s4 + $0x4] ss:$8 sps:$4 sm:$0xff]  }
 0x39c   : > { %12282 = vmatprep.mubr.msk.bf16.mxu0 %vm3005_vm5, %v16028_v42 }
 0x39d   : > { %v18263_v54 = vadd.f32 %v14013_v5, %v18150_v11 }
 0x39f   : > { %v14014_v39 = vpop.f32.mrb[140].mxu1 }
 0x3a0   : > { %v14015_v23 = vpop.f32.mrb[141].mxu1 }
 0x3a1   : > { %v14016_v18 = vadd.f32 %v14015_v23, %v14014_v39  ;;  %v14017_v19 = vpop.f32.mrb[142].mxu1 }
 0x3a2   : > { %v14018_v45 = vpop.f32.mrb[143].mxu1 }
 0x3a3   : > { %v14019_v37 = vadd.f32 %v14018_v45, %v14017_v19  ;;  %v18266_v21 = vadd.f32 %v14016_v18, %v18158_v7 }
 0x3a5   : > { %v18269_v31 = vadd.f32 %v14019_v37, %v18162_v15 }
 0x3a7   : > { %v14020_v51 = vpop.f32.mrb[144].mxu1 }
 0x3a8   : > { %v14021_v11 = vpop.f32.mrb[145].mxu1 }
 0x3a9   : > { %v14022_v13 = vadd.f32 %v14021_v11, %v14020_v51  ;;  %v14023_v44 = vpop.f32.mrb[146].mxu1 }
 0x3aa   : > { %v14024_v6 = vpop.f32.mrb[147].mxu1 }
 0x3ab   : > { %v14025_v52 = vadd.f32 %v14024_v6, %v14023_v44  ;;  %v18276_v29 = vadd.f32 %v14022_v13, %v18170_v43 }
 0x3ad   : > { %v18279_v7 = vadd.f32 %v14025_v52, %v18174_v53 }
 0x3af   : > { %v14026_v15 = vpop.f32.mrb[148].mxu1 }
 0x3b0   : > { %v14027_v56 = vpop.f32.mrb[149].mxu1 }
 0x3b1   : > { %v14028_v48 = vadd.f32 %v14027_v56, %v14026_v15  ;;  %v14029_v33 = vpop.f32.mrb[150].mxu1 }
 0x3b2   : > { %v14030_v57 = vpop.f32.mrb[151].mxu1 }
 0x3b3   : > { %v14031_v14 = vadd.f32 %v14030_v57, %v14029_v33  ;;  %v18282_v8 = vadd.f32 %v14028_v48, %v18182_v46 }
 0x3b5   : > { %v18285_v36 = vadd.f32 %v14031_v14, %v18186_v30 }
 0x3b7   : > { %v14032_v26 = vpop.f32.mrb[152].mxu1 }
 0x3b8   : > { %v14033_v25 = vpop.f32.mrb[153].mxu1 }
 0x3b9   : > { %v14034_v32 = vadd.f32 %v14033_v25, %v14032_v26  ;;  %v14035_v43 = vpop.f32.mrb[154].mxu1 }
 0x3ba   : > { %v14036_v58 = vpop.f32.mrb[155].mxu1 }
 0x3bb   : > { %v18288_v53 = vadd.f32 %v14034_v32, %v18194_v55 }
 0x3bf   : > { %v2817_v62 = vpop.f32.mrb[156].mxu1 }
 0x3c0   : > { %v2818_v35 = vadd.f32 %v2817_v62, %v18212_v16  ;;  %v14640_v59 = vpop.f32.mrb[157].mxu1 }
 0x3c1   : > { %v2820_v27 = vpop.f32.mrb[158].mxu1 }
 0x3c2   : > { %v2821_v20 = vadd.f32 %v2820_v27, %v18215_v0  ;;  %v14641_v46 = vpop.f32.mrb[159].mxu1 }
 0x3c4   : > { %v18292_v17 = vpack.c.bf16 %v2821_v20, %v2818_v35 }
 0x3c6   : > { %3032 = vmatpush1.bf16.msra.mxu0 %v18292_v17  ;;  %15821 = vmatpush1.bf16.msra.mxu1 %v18292_v17 }
 0x3c7   : > { %v2825_v30 = vpop.f32.mrb[160].mxu1  ;;  %3033 = vmatprep.subr.bf16.mxu0 %v17185_v10  ;;  %15809 = vmatprep.subr.bf16.mxu1 %v17185_v10 }
 0x3c8   : > { %v2826_v55 = vadd.f32 %v2825_v30, %v18218_v49  ;;  %v14644_v60 = vpop.f32.mrb[161].mxu1 }
 0x3c9   : > { %v2828_v16 = vpop.f32.mrb[162].mxu1 }
 0x3ca   : > { %v2829_v4 = vadd.f32 %v2828_v16, %v18221_v41  ;;  %v14645_v38 = vpop.f32.mrb[163].mxu1 }
 0x3cc   : > { %v18300_v0 = vpack.c.bf16 %v2829_v4, %v2826_v55 }
 0x3ce   : > { %3034 = vmatpush1.bf16.msra.mxu0 %v18300_v0  ;;  %15822 = vmatpush1.bf16.msra.mxu1 %v18300_v0 }
 0x3cf   : > { %v2833_v5 = vpop.f32.mrb[164].mxu1  ;;  %3035 = vmatprep.subr.bf16.mxu0 %v17185_v10  ;;  %15810 = vmatprep.subr.bf16.mxu1 %v17185_v10 }
 0x3d0   : > { %v2834_v39 = vadd.f32 %v2833_v5, %v18224_v34  ;;  %v14648_v23 = vpop.f32.mrb[165].mxu1 }
 0x3d1   : > { %v2836_v49 = vpop.f32.mrb[166].mxu1 }
 0x3d2   : > { %v2837_v18 = vadd.f32 %v2836_v49, %v18227_v47  ;;  %v14649_v19 = vpop.f32.mrb[167].mxu1 }
 0x3d4   : > { %v18308_v41 = vpack.c.bf16 %v2837_v18, %v2834_v39 }
 0x3d6   : > { %3036 = vmatpush1.bf16.msra.mxu0 %v18308_v41  ;;  %15823 = vmatpush1.bf16.msra.mxu1 %v18308_v41 }
 0x3d7   : > { %v2841_v45 = vpop.f32.mrb[168].mxu1  ;;  %3037 = vmatprep.subr.bf16.mxu0 %v17185_v10  ;;  %15811 = vmatprep.subr.bf16.mxu1 %v17185_v10 }
 0x3d8   : > { %v2842_v37 = vadd.f32 %v2841_v45, %v18230_v9  ;;  %v14652_v42 = vpop.f32.mrb[169].mxu1 }
 0x3d9   : > { %v2844_v34 = vpop.f32.mrb[170].mxu1 }
 0x3da   : > { %v2845_v51 = vadd.f32 %v2844_v34, %v18233_v3  ;;  %v14653_v11 = vpop.f32.mrb[171].mxu1 }
 0x3dc   : > { %v18316_v47 = vpack.c.bf16 %v2845_v51, %v2842_v37 }
 0x3de   : > { %3038 = vmatpush1.bf16.msra.mxu0 %v18316_v47  ;;  %15824 = vmatpush1.bf16.msra.mxu1 %v18316_v47 }
 0x3df   : > { %v2849_v13 = vpop.f32.mrb[172].mxu1  ;;  %3039 = vmatprep.subr.bf16.mxu0 %v17185_v10  ;;  %15812 = vmatprep.subr.bf16.mxu1 %v17185_v10 }
 0x3e0   : > { %v2850_v44 = vadd.f32 %v2849_v13, %v18236_v50  ;;  %v14656_v6 = vpop.f32.mrb[173].mxu1 }
 0x3e1   : > { %v2852_v9 = vpop.f32.mrb[174].mxu1 }
 0x3e2   : > { %v2853_v52 = vadd.f32 %v2852_v9, %v18239_v61  ;;  %v14657_v15 = vpop.f32.mrb[175].mxu1 }
 0x3e4   : > { %v18324_v3 = vpack.c.bf16 %v2853_v52, %v2850_v44 }
 0x3e6   : > { %3040 = vmatpush1.bf16.msra.mxu0 %v18324_v3  ;;  %15825 = vmatpush1.bf16.msra.mxu1 %v18324_v3 }
 0x3e7   : > { %v2857_v56 = vpop.f32.mrb[176].mxu1  ;;  %3041 = vmatprep.subr.bf16.mxu0 %v17185_v10  ;;  %15813 = vmatprep.subr.bf16.mxu1 %v17185_v10 }
 0x3e8   : > { %v2858_v48 = vadd.f32 %v2857_v56, %v18242_v12  ;;  %v14660_v33 = vpop.f32.mrb[177].mxu1  ;;  %v16057_v12 = vld [vmem:[%s22213_s4 + $0x9c] ss:$8 sps:$4 sm:$0xff]  }
 0x3e9   : > { %v2860_v50 = vpop.f32.mrb[178].mxu1  ;;  %12319 = vmatprep.mubr.msk.bf16.mxu1 %vm3005_vm5, %v16057_v12  ;;  %v16055_v33 = vld [vmem:[%s22213_s4 + $0x98] ss:$8 sps:$4 sm:$0xff]  }
 0x3ea   : > { %v2861_v57 = vadd.f32 %v2860_v50, %v18245_v2  ;;  %v14661_v14 = vpop.f32.mrb[179].mxu1  ;;  %v16058_v50 = vld [vmem:[%s22213_s4 + $0xac] ss:$8 sps:$4 sm:$0xff]   ;;  %v16034_v12 = vld [vmem:[%s22213_s4 + $0x20] ss:$8 sps:$4 sm:$0xff]  }
 0x3eb   : > { %v16060_v14 = vld [vmem:[%s22213_s4 + $0xa8] ss:$8 sps:$4 sm:$0xff]  }
 0x3ec   : > { %v18332_v61 = vpack.c.bf16 %v2861_v57, %v2858_v48  ;;  %v16026_v48 = vld [vmem:[%s22213_s4] ss:$8 sps:$4 sm:$0xff]   ;;  %v16031_v57 = vld [vmem:[%s22213_s4 + $0x10] ss:$8 sps:$4 sm:$0xff]  }
 0x3ee   : > { %3042 = vmatpush1.bf16.msra.mxu0 %v18332_v61  ;;  %15826 = vmatpush1.bf16.msra.mxu1 %v18332_v61 }
 0x3ef   : > { %v2865_v26 = vpop.f32.mrb[180].mxu1  ;;  %3043 = vmatprep.subr.bf16.mxu0 %v17185_v10  ;;  %15814 = vmatprep.subr.bf16.mxu1 %v17185_v10 }
 0x3f0   : > { %v2866_v25 = vadd.f32 %v2865_v26, %v18248_v40  ;;  %v14664_v32 = vpop.f32.mrb[181].mxu1  ;;  %v16032_v26 = vld [vmem:[%s22213_s4 + $0x24] ss:$8 sps:$4 sm:$0xff]  }
 0x3f1   : > { %v2868_v2 = vpop.f32.mrb[182].mxu1  ;;  %v12301_v32 = vld [vmem:[%s22213_s4 + $0xc8] sm:$0x33] }
 0x3f2   : > { %v2869_v43 = vadd.f32 %v2868_v2, %v18251_v63  ;;  %v14665_v58 = vpop.f32.mrb[183].mxu1  ;;  %v16063_v2 = vld [vmem:[%s22213_s4 + $0xb8] ss:$8 sps:$4 sm:$0xff]  }
 0x3f3   : > { %v12315_v58 = vcombine.high %v12301_v32, %v12301_v32 }
 0x3f4   : > { %v18344_v62 = vpack.c.bf16 %v2869_v43, %v2866_v25  ;;  %v16061_v25 = vld [vmem:[%s22213_s4 + $0xbc] ss:$8 sps:$4 sm:$0xff]  }
 0x3f5   : > { %v16035_v43 = vld [vmem:[%s22213_s4 + $0x34] ss:$8 sps:$4 sm:$0xff]  }
 0x3f6   : > { %3044 = vmatpush1.bf16.msra.mxu0 %v18344_v62  ;;  %15827 = vmatpush1.bf16.msra.mxu1 %v18344_v62 }
 0x3f7   : > { %v2873_v35 = vpop.f32.mrb[184].mxu1  ;;  %3045 = vmatprep.subr.bf16.mxu0 %v17185_v10  ;;  %15815 = vmatprep.subr.bf16.mxu1 %v17185_v10 }
 0x3f8   : > { %v2874_v40 = vadd.f32 %v2873_v35, %v18254_v22  ;;  %v14668_v59 = vpop.f32.mrb[185].mxu1  ;;  %v16037_v35 = vld [vmem:[%s22213_s4 + $0x30] ss:$8 sps:$4 sm:$0xff]  }
 0x3f9   : > { %v2876_v27 = vpop.f32.mrb[186].mxu1  ;;  %v16038_v59 = vld [vmem:[%s22213_s4 + $0x44] ss:$8 sps:$4 sm:$0xff]  }
 0x3fa   : > { %v2877_v63 = vadd.f32 %v2876_v27, %v18257_v28  ;;  %v14669_v20 = vpop.f32.mrb[187].mxu1  ;;  %v16040_v27 = vld [vmem:[%s22213_s4 + $0x40] ss:$8 sps:$4 sm:$0xff]  }
 0x3fb   : > { %v2944_v20 = vld [vmem:[%s22213_s4 + $0x60] sm:$0x33] }
 0x3fc   : > { %v18352_v46 = vpack.c.bf16 %v2877_v63, %v2874_v40  ;;  %v12314_v40 = vcombine.low %v12301_v32, %v12301_v32  ;;  %v16041_v63 = vld [vmem:[%s22213_s4 + $0x54] ss:$8 sps:$4 sm:$0xff]  }
 0x3fe   : > { %3046 = vmatpush1.bf16.msra.mxu0 %v18352_v46  ;;  %15828 = vmatpush1.bf16.msra.mxu1 %v18352_v46 }
 0x3ff   : > { %v2881_v30 = vpop.f32.mrb[188].mxu1  ;;  %3047 = vmatprep.subr.bf16.mxu0 %v17185_v10  ;;  %15816 = vmatprep.subr.bf16.mxu1 %v17185_v10 }
 0x400   : > { %v2882_v55 = vadd.f32 %v2881_v30, %v18260_v24  ;;  %v14672_v60 = vpop.f32.mrb[189].mxu1  ;;  %v16043_v30 = vld [vmem:[%s22213_s4 + $0x50] ss:$8 sps:$4 sm:$0xff]  }
 0x401   : > { %v2884_v22 = vpop.f32.mrb[190].mxu1  ;;  %v12280_v60 = vcombine.low %v2944_v20, %v2944_v20 }
 0x402   : > { %v2885_v16 = vadd.f32 %v2884_v22, %v18263_v54  ;;  %v14673_v4 = vpop.f32.mrb[191].mxu1  ;;  %v16048_v22 = vld [vmem:[%s22213_s4 + $0x6c] ss:$8 sps:$4 sm:$0xff]  }
 0x403   : > { %v16049_v4 = vld [vmem:[%s22213_s4 + $0x7c] ss:$8 sps:$4 sm:$0xff]  }
 0x404   : > { %v18360_v28 = vpack.c.bf16 %v2885_v16, %v2882_v55  ;;  %v12281_v55 = vcombine.high %v2944_v20, %v2944_v20  ;;  %v16046_v16 = vld [vmem:[%s22213_s4 + $0x68] ss:$8 sps:$4 sm:$0xff]  }
 0x406   : > { %3048 = vmatpush1.bf16.msra.mxu0 %v18360_v28  ;;  %15829 = vmatpush1.bf16.msra.mxu1 %v18360_v28 }
 0x407   : > { %v2889_v38 = vpop.f32.mrb[192].mxu1  ;;  %3049 = vmatprep.subr.bf16.mxu0 %v17185_v10  ;;  %15817 = vmatprep.subr.bf16.mxu1 %v17185_v10 }
 0x408   : > { %v2890_v5 = vadd.f32 %v2889_v38, %v18266_v21  ;;  %v14676_v39 = vpop.f32.mrb[193].mxu1  ;;  %v16123_v38 = vld [vmem:[%s22214_s5] sm:$0xff]  }
 0x409   : > { %v2892_v24 = vpop.f32.mrb[194].mxu1  ;;  %v16124_v39 = vld [vmem:[%s22214_s5 + $0x8] sm:$0xff]  }
 0x40a   : > { %v2893_v23 = vadd.f32 %v2892_v24, %v18269_v31  ;;  %v14677_v49 = vpop.f32.mrb[195].mxu1  ;;  %v16052_v24 = vld [vmem:[%s22213_s4 + $0x8c] ss:$8 sps:$4 sm:$0xff]  }
 0x40b   : > { %v16054_v49 = vld [vmem:[%s22213_s4 + $0x88] ss:$8 sps:$4 sm:$0xff]  }
 0x40c   : > { %v18368_v54 = vpack.c.bf16 %v2893_v23, %v2890_v5  ;;  %v16051_v5 = vld [vmem:[%s22213_s4 + $0x78] ss:$8 sps:$4 sm:$0xff]   ;;  %v16128_v23 = vld [vmem:[%s22214_s5 + $0x10] sm:$0xff]  }
 0x40e   : > { %3050 = vmatpush1.bf16.msra.mxu0 %v18368_v54  ;;  %15830 = vmatpush1.bf16.msra.mxu1 %v18368_v54 }
 0x40f   : > { %v2897_v18 = vpop.f32.mrb[196].mxu1  ;;  %3051 = vmatprep.subr.bf16.mxu0 %v17185_v10  ;;  %15818 = vmatprep.subr.bf16.mxu1 %v17185_v10 }
 0x410   : > { %v2898_v19 = vadd.f32 %v2897_v18, %v18276_v29  ;;  %v14680_v45 = vpop.f32.mrb[197].mxu1  ;;  %v16129_v18 = vld [vmem:[%s22214_s5 + $0x18] sm:$0xff]  }
 0x411   : > { %v2900_v21 = vpop.f32.mrb[198].mxu1  ;;  %v16134_v45 = vld [vmem:[%s22214_s5 + $0x28] sm:$0xff]  }
 0x412   : > { %v2901_v37 = vadd.f32 %v2900_v21, %v18279_v7  ;;  %v14681_v42 = vpop.f32.mrb[199].mxu1  ;;  %v16138_v21 = vld [vmem:[%s22214_s5 + $0x30] sm:$0xff]  }
 0x413   : > { %v16139_v42 = vld [vmem:[%s22214_s5 + $0x38] sm:$0xff]  }
 0x414   : > { %v18376_v31 = vpack.c.bf16 %v2901_v37, %v2898_v19  ;;  %v16133_v19 = vld [vmem:[%s22214_s5 + $0x20] sm:$0xff]  }
 0x415   : > { %v16066_v37 = vld [vmem:[%s22214_s5 + $0x40] sm:$0xff]  }
 0x416   : > { %3052 = vmatpush1.bf16.msra.mxu0 %v18376_v31  ;;  %15831 = vmatpush1.bf16.msra.mxu1 %v18376_v31 }
 0x417   : > { %v2905_v34 = vpop.f32.mrb[200].mxu1  ;;  %3053 = vmatprep.subr.bf16.mxu0 %v17185_v10  ;;  %15819 = vmatprep.subr.bf16.mxu1 %v17185_v10 }
 0x418   : > { %v2906_v51 = vadd.f32 %v2905_v34, %v18282_v8  ;;  %v14684_v11 = vpop.f32.mrb[201].mxu1  ;;  %v16067_v34 = vld [vmem:[%s22214_s5 + $0x48] sm:$0xff]  }
 0x419   : > { %v2908_v29 = vpop.f32.mrb[202].mxu1  ;;  %v16069_v11 = vld [vmem:[%s22214_s5 + $0x58] sm:$0xff]  }
 0x41a   : > { %v2909_v13 = vadd.f32 %v2908_v29, %v18285_v36  ;;  %v14685_v44 = vpop.f32.mrb[203].mxu1  ;;  %v16070_v29 = vld [vmem:[%s22214_s5 + $0x60] sm:$0xff]  }
 0x41b   : > { %v16072_v44 = vld [vmem:[%s22214_s5 + $0x70] sm:$0xff]  }
 0x41c   : > { %v18384_v7 = vpack.c.bf16 %v2909_v13, %v2906_v51  ;;  %v16068_v51 = vld [vmem:[%s22214_s5 + $0x50] sm:$0xff]   ;;  %v16071_v13 = vld [vmem:[%s22214_s5 + $0x68] sm:$0xff]  }
 0x41e   : > { %3054 = vmatpush1.bf16.msra.mxu0 %v18384_v7  ;;  %15832 = vmatpush1.bf16.msra.mxu1 %v18384_v7 }
 0x41f   : > { %v2913_v6 = vpop.f32.mrb[204].mxu1  ;;  %3055 = vmatprep.subr.bf16.mxu0 %v17185_v10  ;;  %15820 = vmatprep.subr.bf16.mxu1 %v17185_v10 }
 0x420   : > { %v2914_v9 = vadd.f32 %v2913_v6, %v18288_v53  ;;  %v14688_v52 = vpop.f32.mrb[205].mxu1  ;;  %v16029_v53 = vld [vmem:[%s22213_s4 + $0x14] ss:$8 sps:$4 sm:$0xff]  }
 0x421   : > { %v2916_v8 = vpop.f32.mrb[206].mxu1  ;;  %v16073_v6 = vld [vmem:[%s22214_s5 + $0x78] sm:$0xff]  }
 0x422   : > { %v2931_v15 = vpack.c.bf16 %v2914_v9, %v2914_v9  ;;  %v14689_v56 = vpop.f32.mrb[207].mxu1 }
 0x424   : > { %v18392_v36 = vsel %vm3027_vm6, %v2931_v15, 0 }
 0x425   : > { %3056 = vmatpush1.bf16.msra.mxu0 %v18392_v36  ;;  %15833 = vmatpush1.bf16.msra.mxu1 %v18392_v36 }
 0x426   : > { %3237 = vmatprep.subr.bf16.mxu0 %v17185_v10  ;;  %14734 = vmatprep.subr.bf16.mxu1 %v17182_v1 }
 0x428   : > { %3064 = vmatmul.mubr.bf16.vlgmr.msra.gmra.mrb[196].mxu0 %v16026_v48  ;;  %3294 = vmatmul.mubr.bf16.vlgmr.msra.gmra.mrb[208].mxu1 %v16055_v33 }
 0x429   : > { %3238 = vmatpush1.bf16.msra.mxu0 %v18292_v17  ;;  %12283 = vmatprep.mubr.msk.bf16.mxu0 %vm3005_vm5, %v16029_v53 }
 0x42a   : > { %3239 = vmatprep.subr.bf16.mxu0 %v17185_v10  ;;  %12320 = vmatprep.mubr.msk.bf16.mxu1 %vm3005_vm5, %v16058_v50 }
 0x42b   : > { %14735 = vmatpush3.bf16.msra.mxu1 %v16123_v38 }
 0x42c   : > { %14736 = vmatprep.subr.bf16.mxu1 %v17182_v1 }
 0x42d   : > { %3240 = vmatpush1.bf16.msra.mxu0 %v18300_v0 }
 0x42e   : > { %3241 = vmatprep.subr.bf16.mxu0 %v17185_v10 }
 0x42f   : > { %14737 = vmatpush3.bf16.msra.mxu1 %v16124_v39 }
 0x430   : > { %3072 = vmatmul.mubr.bf16.gmra.mrb[200].mxu0 %v16031_v57  ;;  %3302 = vmatmul.mubr.bf16.gmra.mrb[212].mxu1 %v16060_v14 }
 0x431   : > { %3242 = vmatpush1.bf16.msra.mxu0 %v18308_v41  ;;  %12284 = vmatprep.mubr.msk.bf16.mxu0 %vm3005_vm5, %v16032_v26 }
 0x432   : > { %3243 = vmatprep.subr.bf16.mxu0 %v17185_v10  ;;  %12321 = vmatprep.mubr.msk.bf16.mxu1 %vm3005_vm5, %v16061_v25 }
 0x433   : > { %14738 = vmatprep.subr.bf16.mxu1 %v17182_v1 }
 0x434   : > { %14739 = vmatpush3.bf16.msra.mxu1 %v16128_v23 }
 0x435   : > { %3244 = vmatpush1.bf16.msra.mxu0 %v18316_v47  ;;  %14740 = vmatprep.subr.bf16.mxu1 %v17182_v1 }
 0x436   : > { %3245 = vmatprep.subr.bf16.mxu0 %v17185_v10 }
 0x438   : > { %3080 = vmatmul.mubr.bf16.gmra.mrb[204].mxu0 %v16034_v12  ;;  %3310 = vmatmul.mubr.bf16.gmra.mrb[216].mxu1 %v16063_v2 }
 0x439   : > { %3246 = vmatpush1.bf16.msra.mxu0 %v18324_v3  ;;  %12285 = vmatprep.mubr.msk.bf16.mxu0 %vm3005_vm5, %v16035_v43 }
 0x43a   : > { %3247 = vmatprep.subr.bf16.mxu0 %v17185_v10  ;;  %12322 = vmatprep.mubr.msk.bf16.mxu1 %vm3005_vm5, %v12315_v58 }
 0x43b   : > { %14741 = vmatpush3.bf16.msra.mxu1 %v16129_v18 }
 0x43c   : > { %14742 = vmatprep.subr.bf16.mxu1 %v17182_v1 }
 0x43d   : > { %3248 = vmatpush1.bf16.msra.mxu0 %v18332_v61 }
 0x43e   : > { %3249 = vmatprep.subr.bf16.mxu0 %v17185_v10 }
 0x43f   : > { %14743 = vmatpush3.bf16.msra.mxu1 %v16133_v19 }
 0x440   : > { %3088 = vmatmul.mubr.bf16.gmra.mrb[208].mxu0 %v16037_v35  ;;  %3318 = vmatmul.mubr.bf16.gmra.mrb[220].mxu1 %v12314_v40 }
 0x441   : > { %3250 = vmatpush1.bf16.msra.mxu0 %v18344_v62  ;;  %12286 = vmatprep.mubr.msk.bf16.mxu0 %vm3005_vm5, %v16038_v59 }
 0x442   : > { %3251 = vmatprep.subr.bf16.mxu0 %v17185_v10  ;;  %14750 = vmatprep.mubr.msk.bf16.mxu1 %vm17184_vm2, %v17182_v1 }
 0x443   : > { %14744 = vmatprep.subr.bf16.mxu1 %v17182_v1 }
 0x444   : > { %14745 = vmatpush3.bf16.msra.mxu1 %v16134_v45 }
 0x445   : > { %3252 = vmatpush1.bf16.msra.mxu0 %v18352_v46  ;;  %14746 = vmatprep.subr.bf16.mxu1 %v17182_v1 }
 0x446   : > { %3253 = vmatprep.subr.bf16.mxu0 %v17185_v10 }
 0x448   : > { %3096 = vmatmul.mubr.bf16.gmra.mrb[212].mxu0 %v16040_v27  ;;  %14747 = vmatpush3.bf16.msra.mxu1 %v16138_v21 }
 0x449   : > { %3254 = vmatpush1.bf16.msra.mxu0 %v18360_v28  ;;  %12287 = vmatprep.mubr.msk.bf16.mxu0 %vm3005_vm5, %v16041_v63 }
 0x44a   : > { %3255 = vmatprep.subr.bf16.mxu0 %v17185_v10  ;;  %14748 = vmatprep.subr.bf16.mxu1 %v17182_v1 }
 0x44c   : > { %14749 = vmatpush3.bf16.msra.mxu1 %v16139_v42 }
 0x44d   : > { %3256 = vmatpush1.bf16.msra.mxu0 %v18368_v54  ;;  %14778 = vmatprep.subr.bf16.mxu1 %v17182_v1 }
 0x44e   : > { %3257 = vmatprep.subr.bf16.mxu0 %v17185_v10 }
 0x450   : > { %3104 = vmatmul.mubr.bf16.gmra.mrb[216].mxu0 %v16043_v30 }
 0x451   : > { %3258 = vmatpush1.bf16.msra.mxu0 %v18376_v31  ;;  %12288 = vmatprep.mubr.msk.bf16.mxu0 %vm3005_vm5, %v12281_v55 }
 0x452   : > { %3259 = vmatprep.subr.bf16.mxu0 %v17185_v10 }
 0x455   : > { %3260 = vmatpush1.bf16.msra.mxu0 %v18384_v7 }
 0x456   : > { %3261 = vmatprep.subr.bf16.mxu0 %v17185_v10 }
 0x458   : > { %3112 = vmatmul.mubr.bf16.gmra.mrb[220].mxu0 %v12280_v60 }
 0x459   : > { %3262 = vmatpush1.bf16.msra.mxu0 %v18392_v36  ;;  %12316 = vmatprep.mubr.msk.bf16.mxu0 %vm3005_vm5, %v16048_v22 }
 0x45a   : > { %14690 = vmatprep.subr.bf16.mxu0 %v17182_v1 }
 0x460   : > { %3270 = vmatmul.mubr.bf16.vlgmr.msra.gmra.mrb[224].mxu0 %v16046_v16 }
 0x461   : > { %12317 = vmatprep.mubr.msk.bf16.mxu0 %vm3005_vm5, %v16049_v4  ;;  %14691 = vmatpush3.bf16.msra.mxu0 %v16066_v37 }
 0x462   : > { %14692 = vmatprep.subr.bf16.mxu0 %v17182_v1 }
 0x465   : > { %14693 = vmatpush3.bf16.msra.mxu0 %v16067_v34 }
 0x466   : > { %14694 = vmatprep.subr.bf16.mxu0 %v17182_v1 }
 0x468   : > { %3278 = vmatmul.mubr.bf16.gmra.mrb[228].mxu0 %v16051_v5 }
 0x469   : > { %12318 = vmatprep.mubr.msk.bf16.mxu0 %vm3005_vm5, %v16052_v24  ;;  %14695 = vmatpush3.bf16.msra.mxu0 %v16068_v51 }
 0x46a   : > { %14696 = vmatprep.subr.bf16.mxu0 %v17182_v1 }
 0x46d   : > { %14697 = vmatpush3.bf16.msra.mxu0 %v16069_v11 }
 0x46e   : > { %14698 = vmatprep.subr.bf16.mxu0 %v17182_v1 }
 0x470   : > { %3286 = vmatmul.mubr.bf16.gmra.mrb[232].mxu0 %v16054_v49 }
 0x471   : > { %14706 = vmatprep.mubr.msk.bf16.mxu0 %vm17184_vm2, %v17182_v1  ;;  %14699 = vmatpush3.bf16.msra.mxu0 %v16070_v29 }
 0x472   : > { %14700 = vmatprep.subr.bf16.mxu0 %v17182_v1 }
 0x475   : > { %14701 = vmatpush3.bf16.msra.mxu0 %v16071_v13 }
 0x476   : > { %14702 = vmatprep.subr.bf16.mxu0 %v17182_v1 }
 0x479   : > { %14703 = vmatpush3.bf16.msra.mxu0 %v16072_v44 }
 0x47a   : > { %14704 = vmatprep.subr.bf16.mxu0 %v17182_v1 }
 0x47d   : > { %14705 = vmatpush3.bf16.msra.mxu0 %v16073_v6 }
 0x47e   : > { %3716 = vmatprep.subr.bf16.mxu0 %v17185_v10 }
 0x4fb   : > { %v3065_v9 = vpop.f32.mrb[196].mxu0  ;;  %v18576_v52 = vpop.f32.mrb[208].mxu1 }
 0x4fc   : > { %v3067_v8 = vpop.f32.mrb[197].mxu0  ;;  %v3297_v15 = vpop.f32.mrb[209].mxu1 }
 0x4fd   : > { %v3068_v56 = vpop.f32.mrb[198].mxu0  ;;  %v18578_v48 = vpop.f32.mrb[210].mxu1 }
 0x4fe   : > { %v3119_v33 = vpack.c.bf16 %v3068_v56, %v3065_v9  ;;  %v3070_v53 = vpop.f32.mrb[199].mxu0  ;;  %v3328_v50 = vpack.c.bf16 %v18578_v48, %v18576_v52  ;;  %v3300_v57 = vpop.f32.mrb[211].mxu1  ;;  %v16076_v48 = vld [vmem:[%s22213_s4 + $0xd4] ss:$8 sps:$4 sm:$0xff]  }
 0x500   : > { %14751 = vmatmul.mubr.bf16.vlgmr.msra.gmra.mrb[224].mxu1 %v3119_v33 }
 0x501   : > { %14754 = vmatprep.mubr.msk.bf16.mxu1 %vm17184_vm2, %v17182_v1 }
 0x503   : > { %v3073_v14 = vpop.f32.mrb[200].mxu0  ;;  %v18584_v26 = vpop.f32.mrb[212].mxu1 }
 0x504   : > { %v3075_v25 = vpop.f32.mrb[201].mxu0  ;;  %v3305_v32 = vpop.f32.mrb[213].mxu1 }
 0x505   : > { %v3076_v12 = vpop.f32.mrb[202].mxu0  ;;  %v18586_v2 = vpop.f32.mrb[214].mxu1 }
 0x506   : > { %v3120_v43 = vpack.c.bf16 %v3076_v12, %v3073_v14  ;;  %v3078_v58 = vpop.f32.mrb[203].mxu0  ;;  %v3329_v35 = vpack.c.bf16 %v18586_v2, %v18584_v26  ;;  %v3308_v40 = vpop.f32.mrb[215].mxu1  ;;  %v16079_v26 = vld [vmem:[%s22213_s4 + $0xe4] ss:$8 sps:$4 sm:$0xff]   ;;  %v16077_v2 = vld [vmem:[%s22213_s4 + $0xe0] ss:$8 sps:$4 sm:$0xff]  }
 0x508   : > { %14755 = vmatmul.mubr.bf16.gmra.mrb[228].mxu1 %v3120_v43 }
 0x509   : > { %14758 = vmatprep.mubr.msk.bf16.mxu1 %vm17184_vm2, %v17182_v1 }
 0x50b   : > { %v3081_v59 = vpop.f32.mrb[204].mxu0  ;;  %v18592_v27 = vpop.f32.mrb[216].mxu1 }
 0x50c   : > { %v3083_v63 = vpop.f32.mrb[205].mxu0  ;;  %v3313_v20 = vpop.f32.mrb[217].mxu1 }
 0x50d   : > { %v3084_v30 = vpop.f32.mrb[206].mxu0  ;;  %v18594_v55 = vpop.f32.mrb[218].mxu1 }
 0x50e   : > { %v3121_v60 = vpack.c.bf16 %v3084_v30, %v3081_v59  ;;  %v3086_v22 = vpop.f32.mrb[207].mxu0  ;;  %v3330_v16 = vpack.c.bf16 %v18594_v55, %v18592_v27  ;;  %v3316_v4 = vpop.f32.mrb[219].mxu1  ;;  %v16080_v27 = vld [vmem:[%s22213_s4 + $0xf0] ss:$8 sps:$4 sm:$0xff]   ;;  %v16085_v55 = vld [vmem:[%s22213_s4 + $0x104] ss:$8 sps:$4 sm:$0xff]  }
 0x50f   : > { %v16088_v4 = vld [vmem:[%s22213_s4 + $0x114] ss:$8 sps:$4 sm:$0xff]  }
 0x510   : > { %14759 = vmatmul.mubr.bf16.gmra.mrb[232].mxu1 %v3121_v60 }
 0x511   : > { %14762 = vmatprep.mubr.msk.bf16.mxu1 %vm17184_vm2, %v17182_v1 }
 0x513   : > { %v3089_v38 = vpop.f32.mrb[208].mxu0  ;;  %v18600_v5 = vpop.f32.mrb[220].mxu1 }
 0x514   : > { %v3091_v39 = vpop.f32.mrb[209].mxu0  ;;  %v3321_v24 = vpop.f32.mrb[221].mxu1  ;;  %v3331_v52 = vpack.c.bf16 %v18600_v5, %v18600_v5  ;;  %v16091_v5 = vld [vmem:[%s22213_s4 + $0x124] ss:$8 sps:$4 sm:$0xff]  }
 0x515   : > { %v3092_v23 = vpop.f32.mrb[210].mxu0  ;;  %v3322_v49 = vpop.f32.mrb[222].mxu1  ;;  %v12367_v39 = vld [vmem:[%s22213_s4 + $0x130] sm:$0x33]  ;;  %v16089_v24 = vld [vmem:[%s22213_s4 + $0x120] ss:$8 sps:$4 sm:$0xff]  }
 0x516   : > { %v3122_v18 = vpack.c.bf16 %v3092_v23, %v3089_v38  ;;  %v3094_v19 = vpop.f32.mrb[211].mxu0  ;;  %v3323_v45 = vpop.f32.mrb[223].mxu1  ;;  %v16086_v38 = vld [vmem:[%s22213_s4 + $0x110] ss:$8 sps:$4 sm:$0xff]   ;;  %v12381_v23 = vcombine.high %v12367_v39, %v12367_v39  ;;  %v12380_v49 = vcombine.low %v12367_v39, %v12367_v39 }
 0x517   : > { %v16094_v19 = vld [vmem:[%s22213_s4 + $0x138] ss:$8 sps:$4 sm:$0xff]   ;;  %v16099_v45 = vld [vmem:[%s22213_s4 + $0x14c] ss:$8 sps:$4 sm:$0xff]  }
 0x518   : > { %14763 = vmatmul.mubr.bf16.gmra.mrb[236].mxu1 %v3122_v18  ;;  %v16096_v18 = vld [vmem:[%s22213_s4 + $0x13c] ss:$8 sps:$4 sm:$0xff]  }
 0x519   : > { %14766 = vmatprep.mubr.msk.bf16.mxu1 %vm17184_vm2, %v17182_v1 }
 0x51b   : > { %v3097_v21 = vpop.f32.mrb[212].mxu0 }
 0x51c   : > { %v3099_v37 = vpop.f32.mrb[213].mxu0 }
 0x51d   : > { %v3100_v42 = vpop.f32.mrb[214].mxu0  ;;  %v16097_v37 = vld [vmem:[%s22213_s4 + $0x148] ss:$8 sps:$4 sm:$0xff]  }
 0x51e   : > { %v3123_v34 = vpack.c.bf16 %v3100_v42, %v3097_v21  ;;  %v3102_v51 = vpop.f32.mrb[215].mxu0  ;;  %v16151_v21 = vld [vmem:[%s22214_s5 + $0x80] sm:$0xff]   ;;  %v16152_v42 = vld [vmem:[%s22214_s5 + $0x88] sm:$0xff]  }
 0x51f   : > { %14779 = vmatpush3.bf16.msra.mxu1 %v16151_v21  ;;  %v16156_v51 = vld [vmem:[%s22214_s5 + $0x90] sm:$0xff]  }
 0x520   : > { %14767 = vmatmul.mubr.bf16.gmra.mrb[240].mxu1 %v3123_v34  ;;  %14780 = vmatprep.subr.bf16.mxu1 %v17182_v1  ;;  %v16102_v34 = vld [vmem:[%s22213_s4 + $0x15c] ss:$8 sps:$4 sm:$0xff]  }
 0x521   : > { %14770 = vmatprep.mubr.msk.bf16.mxu1 %vm17184_vm2, %v17182_v1 }
 0x523   : > { %v3105_v11 = vpop.f32.mrb[216].mxu0  ;;  %14781 = vmatpush3.bf16.msra.mxu1 %v16152_v42 }
 0x524   : > { %v3107_v29 = vpop.f32.mrb[217].mxu0  ;;  %14782 = vmatprep.subr.bf16.mxu1 %v17182_v1 }
 0x525   : > { %v3108_v13 = vpop.f32.mrb[218].mxu0  ;;  %v16157_v29 = vld [vmem:[%s22214_s5 + $0x98] sm:$0xff]  }
 0x526   : > { %v3124_v44 = vpack.c.bf16 %v3108_v13, %v3105_v11  ;;  %v3110_v6 = vpop.f32.mrb[219].mxu0  ;;  %v16100_v11 = vld [vmem:[%s22213_s4 + $0x158] ss:$8 sps:$4 sm:$0xff]   ;;  %v16105_v13 = vld [vmem:[%s22213_s4 + $0x16c] ss:$8 sps:$4 sm:$0xff]  }
 0x527   : > { %14783 = vmatpush3.bf16.msra.mxu1 %v16156_v51  ;;  %v16103_v6 = vld [vmem:[%s22213_s4 + $0x168] ss:$8 sps:$4 sm:$0xff]  }
 0x528   : > { %14771 = vmatmul.mubr.bf16.gmra.mrb[244].mxu1 %v3124_v44  ;;  %14784 = vmatprep.subr.bf16.mxu1 %v17182_v1  ;;  %v16161_v44 = vld [vmem:[%s22214_s5 + $0xa0] sm:$0xff]  }
 0x529   : > { %14774 = vmatprep.mubr.msk.bf16.mxu1 %vm17184_vm2, %v17182_v1 }
 0x52b   : > { %v3113_v9 = vpop.f32.mrb[220].mxu0  ;;  %14785 = vmatpush3.bf16.msra.mxu1 %v16157_v29  ;;  %v12483_v29 = vld [vmem:[%s22213_s4 + $0x200] sm:$0x33] }
 0x52c   : > { %v3115_v8 = vpop.f32.mrb[221].mxu0  ;;  %v3125_v56 = vpack.c.bf16 %v3113_v9, %v3113_v9  ;;  %14786 = vmatprep.subr.bf16.mxu1 %v17182_v1  ;;  %v16162_v9 = vld [vmem:[%s22214_s5 + $0xa8] sm:$0xff]  }
 0x52d   : > { %v3116_v15 = vpop.f32.mrb[222].mxu0  ;;  %v16108_v8 = vld [vmem:[%s22213_s4 + $0x17c] ss:$8 sps:$4 sm:$0xff]  }
 0x52e   : > { %v3117_v33 = vpop.f32.mrb[223].mxu0  ;;  %v16166_v15 = vld [vmem:[%s22214_s5 + $0xb0] sm:$0xff]  }
 0x52f   : > { %14787 = vmatpush3.bf16.msra.mxu1 %v16161_v44  ;;  %v16167_v33 = vld [vmem:[%s22214_s5 + $0xb8] sm:$0xff]  }
 0x530   : > { %14775 = vmatmul.mubr.bf16.gmra.mrb[248].mxu1 %v3125_v56  ;;  %14788 = vmatprep.subr.bf16.mxu1 %v17182_v1  ;;  %v16106_v56 = vld [vmem:[%s22213_s4 + $0x178] ss:$8 sps:$4 sm:$0xff]  }
 0x531   : > { %14794 = vmatprep.mubr.msk.bf16.mxu1 %vm17184_vm2, %v17182_v1  ;;  %v16135_v44 = vld [vmem:[%s22213_s4 + $0x1f0] ss:$8 sps:$4 sm:$0xff]  }
 0x533   : > { %v3271_v53 = vpop.f32.mrb[224].mxu0  ;;  %14789 = vmatpush3.bf16.msra.mxu1 %v16162_v9  ;;  %v12497_v9 = vcombine.high %v12483_v29, %v12483_v29 }
 0x534   : > { %v3273_v57 = vpop.f32.mrb[225].mxu0  ;;  %14790 = vmatprep.subr.bf16.mxu1 %v17182_v1 }
 0x535   : > { %v3274_v14 = vpop.f32.mrb[226].mxu0  ;;  %v12425_v57 = vld [vmem:[%s22213_s4 + $0x198] sm:$0x33] }
 0x536   : > { %v3325_v25 = vpack.c.bf16 %v3274_v14, %v3271_v53  ;;  %v3276_v32 = vpop.f32.mrb[227].mxu0  ;;  %v16111_v53 = vld [vmem:[%s22213_s4 + $0x18c] ss:$8 sps:$4 sm:$0xff]   ;;  %v16109_v14 = vld [vmem:[%s22213_s4 + $0x188] ss:$8 sps:$4 sm:$0xff]  }
 0x537   : > { %14791 = vmatpush3.bf16.msra.mxu1 %v16166_v15 }
 0x538   : > { %14707 = vmatmul.mubr.bf16.vlgmr.msra.gmra.mrb[236].mxu0 %v3325_v25  ;;  %14792 = vmatprep.subr.bf16.mxu1 %v17182_v1  ;;  %v12439_v25 = vcombine.high %v12425_v57, %v12425_v57 }
 0x539   : > { %3717 = vmatpush1.bf16.msra.mxu0 %v18292_v17  ;;  %14710 = vmatprep.mubr.msk.bf16.mxu0 %vm17184_vm2, %v17182_v1 }
 0x53a   : > { %3718 = vmatprep.subr.bf16.mxu0 %v17185_v10 }
 0x53b   : > { %v3279_v12 = vpop.f32.mrb[228].mxu0  ;;  %14793 = vmatpush3.bf16.msra.mxu1 %v16167_v33  ;;  %v12496_v33 = vcombine.low %v12483_v29, %v12483_v29 }
 0x53c   : > { %v3281_v43 = vpop.f32.mrb[229].mxu0  ;;  %14822 = vmatprep.subr.bf16.mxu1 %v17182_v1 }
 0x53d   : > { %3719 = vmatpush1.bf16.msra.mxu0 %v18300_v0  ;;  %v3282_v58 = vpop.f32.mrb[230].mxu0 }
 0x53e   : > { %v3326_v40 = vpack.c.bf16 %v3282_v58, %v3279_v12  ;;  %3720 = vmatprep.subr.bf16.mxu0 %v17185_v10  ;;  %v3284_v59 = vpop.f32.mrb[231].mxu0  ;;  %v12438_v12 = vcombine.low %v12425_v57, %v12425_v57  ;;  %v16116_v58 = vld [vmem:[%s22213_s4 + $0x1a4] ss:$8 sps:$4 sm:$0xff]  }
 0x540   : > { %14711 = vmatmul.mubr.bf16.gmra.mrb[240].mxu0 %v3326_v40 }
 0x541   : > { %3721 = vmatpush1.bf16.msra.mxu0 %v18308_v41  ;;  %14714 = vmatprep.mubr.msk.bf16.mxu0 %vm17184_vm2, %v17182_v1 }
 0x542   : > { %3722 = vmatprep.subr.bf16.mxu0 %v17185_v10 }
 0x543   : > { %v3287_v63 = vpop.f32.mrb[232].mxu0 }
 0x544   : > { %v3289_v20 = vpop.f32.mrb[233].mxu0 }
 0x545   : > { %3723 = vmatpush1.bf16.msra.mxu0 %v18316_v47  ;;  %v3290_v30 = vpop.f32.mrb[234].mxu0  ;;  %v16114_v20 = vld [vmem:[%s22213_s4 + $0x1a0] ss:$8 sps:$4 sm:$0xff]  }
 0x546   : > { %v3327_v60 = vpack.c.bf16 %v3290_v30, %v3287_v63  ;;  %3724 = vmatprep.subr.bf16.mxu0 %v17185_v10  ;;  %v3292_v22 = vpop.f32.mrb[235].mxu0 }
 0x548   : > { %14715 = vmatmul.mubr.bf16.gmra.mrb[244].mxu0 %v3327_v60  ;;  %v16119_v60 = vld [vmem:[%s22213_s4 + $0x1b4] ss:$8 sps:$4 sm:$0xff]  }
 0x549   : > { %3725 = vmatpush1.bf16.msra.mxu0 %v18324_v3  ;;  %14718 = vmatprep.mubr.msk.bf16.mxu0 %vm17184_vm2, %v17182_v1 }
 0x54a   : > { %3726 = vmatprep.subr.bf16.mxu0 %v17185_v10 }
 0x54d   : > { %3727 = vmatpush1.bf16.msra.mxu0 %v18332_v61 }
 0x54e   : > { %3728 = vmatprep.subr.bf16.mxu0 %v17185_v10 }
 0x550   : > { %14719 = vmatmul.mubr.bf16.gmra.mrb[248].mxu0 %v3328_v50  ;;  %v16074_v50 = vld [vmem:[%s22213_s4 + $0xd0] ss:$8 sps:$4 sm:$0xff]  }
 0x551   : > { %3729 = vmatpush1.bf16.msra.mxu0 %v18344_v62  ;;  %14722 = vmatprep.mubr.msk.bf16.mxu0 %vm17184_vm2, %v17182_v1 }
 0x552   : > { %3730 = vmatprep.subr.bf16.mxu0 %v17185_v10 }
 0x555   : > { %3731 = vmatpush1.bf16.msra.mxu0 %v18352_v46 }
 0x556   : > { %3732 = vmatprep.subr.bf16.mxu0 %v17185_v10 }
 0x558   : > { %14723 = vmatmul.mubr.bf16.gmra.mrb[252].mxu0 %v3329_v35  ;;  %v16082_v35 = vld [vmem:[%s22213_s4 + $0xf4] ss:$8 sps:$4 sm:$0xff]  }
 0x559   : > { %3733 = vmatpush1.bf16.msra.mxu0 %v18360_v28  ;;  %14726 = vmatprep.mubr.msk.bf16.mxu0 %vm17184_vm2, %v17182_v1 }
 0x55a   : > { %3734 = vmatprep.subr.bf16.mxu0 %v17185_v10 }
 0x55d   : > { %3735 = vmatpush1.bf16.msra.mxu0 %v18368_v54 }
 0x55e   : > { %3736 = vmatprep.subr.bf16.mxu0 %v17185_v10 }
 0x560   : > { %14727 = vmatmul.mubr.bf16.gmra.mrb[0].mxu0 %v3330_v16  ;;  %v16083_v16 = vld [vmem:[%s22213_s4 + $0x100] ss:$8 sps:$4 sm:$0xff]  }
 0x561   : > { %3737 = vmatpush1.bf16.msra.mxu0 %v18376_v31  ;;  %14730 = vmatprep.mubr.msk.bf16.mxu0 %vm17184_vm2, %v17182_v1 }
 0x562   : > { %3738 = vmatprep.subr.bf16.mxu0 %v17185_v10 }
 0x565   : > { %3739 = vmatpush1.bf16.msra.mxu0 %v18384_v7 }
 0x566   : > { %3740 = vmatprep.subr.bf16.mxu0 %v17185_v10 }
 0x568   : > { %14731 = vmatmul.mubr.bf16.gmra.mrb[4].mxu0 %v3331_v52 }
 0x569   : > { %3741 = vmatpush1.bf16.msra.mxu0 %v18392_v36  ;;  %12382 = vmatprep.mubr.msk.bf16.mxu0 %vm3005_vm5, %v16076_v48 }
 0x56a   : > { %4072 = vmatprep.subr.bf16.mxu0 %v17185_v10 }
 0x570   : > { %3749 = vmatmul.mubr.bf16.vlgmr.msra.gmra.mrb[8].mxu0 %v16074_v50  ;;  %v16117_v50 = vld [vmem:[%s22213_s4 + $0x1b0] ss:$8 sps:$4 sm:$0xff]  }
 0x571   : > { %4073 = vmatpush1.bf16.msra.mxu0 %v18292_v17  ;;  %12383 = vmatprep.mubr.msk.bf16.mxu0 %vm3005_vm5, %v16079_v26 }
 0x572   : > { %4074 = vmatprep.subr.bf16.mxu0 %v17185_v10 }
 0x575   : > { %4075 = vmatpush1.bf16.msra.mxu0 %v18300_v0 }
 0x576   : > { %4076 = vmatprep.subr.bf16.mxu0 %v17185_v10 }
 0x578   : > { %3757 = vmatmul.mubr.bf16.gmra.mrb[12].mxu0 %v16077_v2  ;;  %v16122_v2 = vld [vmem:[%s22213_s4 + $0x1c4] ss:$8 sps:$4 sm:$0xff]  }
 0x579   : > { %4077 = vmatpush1.bf16.msra.mxu0 %v18308_v41  ;;  %12384 = vmatprep.mubr.msk.bf16.mxu0 %vm3005_vm5, %v16082_v35 }
 0x57a   : > { %4078 = vmatprep.subr.bf16.mxu0 %v17185_v10 }
 0x57d   : > { %4079 = vmatpush1.bf16.msra.mxu0 %v18316_v47 }
 0x57e   : > { %4080 = vmatprep.subr.bf16.mxu0 %v17185_v10 }
 0x580   : > { %3765 = vmatmul.mubr.bf16.gmra.mrb[16].mxu0 %v16080_v27 }
 0x581   : > { %4081 = vmatpush1.bf16.msra.mxu0 %v18324_v3  ;;  %12385 = vmatprep.mubr.msk.bf16.mxu0 %vm3005_vm5, %v16085_v55 }
 0x582   : > { %4082 = vmatprep.subr.bf16.mxu0 %v17185_v10 }
 0x585   : > { %4083 = vmatpush1.bf16.msra.mxu0 %v18332_v61 }
 0x586   : > { %4084 = vmatprep.subr.bf16.mxu0 %v17185_v10 }
 0x588   : > { %3773 = vmatmul.mubr.bf16.gmra.mrb[20].mxu0 %v16083_v16  ;;  %v16120_v16 = vld [vmem:[%s22213_s4 + $0x1c0] ss:$8 sps:$4 sm:$0xff]  }
 0x589   : > { %4085 = vmatpush1.bf16.msra.mxu0 %v18344_v62  ;;  %12386 = vmatprep.mubr.msk.bf16.mxu0 %vm3005_vm5, %v16088_v4 }
 0x58a   : > { %4086 = vmatprep.subr.bf16.mxu0 %v17185_v10 }
 0x58d   : > { %4087 = vmatpush1.bf16.msra.mxu0 %v18352_v46 }
 0x58e   : > { %4088 = vmatprep.subr.bf16.mxu0 %v17185_v10 }
 0x590   : > { %3781 = vmatmul.mubr.bf16.gmra.mrb[24].mxu0 %v16086_v38  ;;  %v16127_v38 = vld [vmem:[%s22213_s4 + $0x1d4] ss:$8 sps:$4 sm:$0xff]  }
 0x591   : > { %4089 = vmatpush1.bf16.msra.mxu0 %v18360_v28  ;;  %12387 = vmatprep.mubr.msk.bf16.mxu0 %vm3005_vm5, %v16091_v5 }
 0x592   : > { %4090 = vmatprep.subr.bf16.mxu0 %v17185_v10 }
 0x595   : > { %4091 = vmatpush1.bf16.msra.mxu0 %v18368_v54 }
 0x596   : > { %4092 = vmatprep.subr.bf16.mxu0 %v17185_v10 }
 0x598   : > { %3789 = vmatmul.mubr.bf16.gmra.mrb[28].mxu0 %v16089_v24 }
 0x599   : > { %4093 = vmatpush1.bf16.msra.mxu0 %v18376_v31  ;;  %12388 = vmatprep.mubr.msk.bf16.mxu0 %vm3005_vm5, %v12381_v23  ;;  %v16125_v23 = vld [vmem:[%s22213_s4 + $0x1d0] ss:$8 sps:$4 sm:$0xff]  }
 0x59a   : > { %4094 = vmatprep.subr.bf16.mxu0 %v17185_v10 }
 0x59d   : > { %4095 = vmatpush1.bf16.msra.mxu0 %v18384_v7 }
 0x59e   : > { %4096 = vmatprep.subr.bf16.mxu0 %v17185_v10 }
 0x5a0   : > { %3797 = vmatmul.mubr.bf16.gmra.mrb[32].mxu0 %v12380_v49 }
 0x5a1   : > { %4097 = vmatpush1.bf16.msra.mxu0 %v18392_v36  ;;  %12440 = vmatprep.mubr.msk.bf16.mxu0 %vm3005_vm5, %v16096_v18  ;;  %v16132_v18 = vld [vmem:[%s22213_s4 + $0x1e4] ss:$8 sps:$4 sm:$0xff]  }
 0x5a2   : > { %4428 = vmatprep.subr.bf16.mxu0 %v17185_v10 }
 0x5a8   : > { %4105 = vmatmul.mubr.bf16.vlgmr.msra.gmra.mrb[36].mxu0 %v16094_v19 }
 0x5a9   : > { %4429 = vmatpush1.bf16.msra.mxu0 %v18292_v17  ;;  %12441 = vmatprep.mubr.msk.bf16.mxu0 %vm3005_vm5, %v16099_v45 }
 0x5aa   : > { %4430 = vmatprep.subr.bf16.mxu0 %v17185_v10 }
 0x5ad   : > { %4431 = vmatpush1.bf16.msra.mxu0 %v18300_v0 }
 0x5ae   : > { %4432 = vmatprep.subr.bf16.mxu0 %v17185_v10 }
 0x5b0   : > { %4113 = vmatmul.mubr.bf16.gmra.mrb[40].mxu0 %v16097_v37  ;;  %v16130_v37 = vld [vmem:[%s22213_s4 + $0x1e0] ss:$8 sps:$4 sm:$0xff]  }
 0x5b1   : > { %4433 = vmatpush1.bf16.msra.mxu0 %v18308_v41  ;;  %12442 = vmatprep.mubr.msk.bf16.mxu0 %vm3005_vm5, %v16102_v34  ;;  %v16137_v34 = vld [vmem:[%s22213_s4 + $0x1f4] ss:$8 sps:$4 sm:$0xff]  }
 0x5b2   : > { %4434 = vmatprep.subr.bf16.mxu0 %v17185_v10 }
 0x5b5   : > { %4435 = vmatpush1.bf16.msra.mxu0 %v18316_v47 }
 0x5b6   : > { %4436 = vmatprep.subr.bf16.mxu0 %v17185_v10 }
 0x5b8   : > { %4121 = vmatmul.mubr.bf16.gmra.mrb[44].mxu0 %v16100_v11 }
 0x5b9   : > { %4437 = vmatpush1.bf16.msra.mxu0 %v18324_v3  ;;  %12443 = vmatprep.mubr.msk.bf16.mxu0 %vm3005_vm5, %v16105_v13 }
 0x5ba   : > { %4438 = vmatprep.subr.bf16.mxu0 %v17185_v10 }
 0x5bd   : > { %4439 = vmatpush1.bf16.msra.mxu0 %v18332_v61 }
 0x5be   : > { %4440 = vmatprep.subr.bf16.mxu0 %v17185_v10 }
 0x5c0   : > { %4129 = vmatmul.mubr.bf16.gmra.mrb[48].mxu0 %v16103_v6 }
 0x5c1   : > { %4441 = vmatpush1.bf16.msra.mxu0 %v18344_v62  ;;  %12444 = vmatprep.mubr.msk.bf16.mxu0 %vm3005_vm5, %v16108_v8 }
 0x5c2   : > { %4442 = vmatprep.subr.bf16.mxu0 %v17185_v10 }
 0x5c5   : > { %4443 = vmatpush1.bf16.msra.mxu0 %v18352_v46 }
 0x5c6   : > { %4444 = vmatprep.subr.bf16.mxu0 %v17185_v10 }
 0x5c8   : > { %4137 = vmatmul.mubr.bf16.gmra.mrb[52].mxu0 %v16106_v56 }
 0x5c9   : > { %4445 = vmatpush1.bf16.msra.mxu0 %v18360_v28  ;;  %12445 = vmatprep.mubr.msk.bf16.mxu0 %vm3005_vm5, %v16111_v53 }
 0x5ca   : > { %4446 = vmatprep.subr.bf16.mxu0 %v17185_v10 }
 0x5cd   : > { %4447 = vmatpush1.bf16.msra.mxu0 %v18368_v54 }
 0x5ce   : > { %4448 = vmatprep.subr.bf16.mxu0 %v17185_v10 }
 0x5d0   : > { %4145 = vmatmul.mubr.bf16.gmra.mrb[56].mxu0 %v16109_v14  ;;  %v16144_v14 = vld [vmem:[%s22213_s4 + $0x20c] ss:$8 sps:$4 sm:$0xff]  }
 0x5d1   : > { %4449 = vmatpush1.bf16.msra.mxu0 %v18376_v31  ;;  %12446 = vmatprep.mubr.msk.bf16.mxu0 %vm3005_vm5, %v12439_v25 }
 0x5d2   : > { %4450 = vmatprep.subr.bf16.mxu0 %v17185_v10 }
 0x5d3   : > { %v18831_v32 = vpop.f32.mrb[224].mxu1 }
 0x5d4   : > { %v14752_v43 = vpop.f32.mrb[225].mxu1 }
 0x5d5   : > { %4451 = vmatpush1.bf16.msra.mxu0 %v18384_v7  ;;  %v18837_v40 = vpop.f32.mrb[226].mxu1 }
 0x5d6   : > { %4452 = vmatprep.subr.bf16.mxu0 %v17185_v10  ;;  %v14753_v59 = vpop.f32.mrb[227].mxu1 }
 0x5d8   : > { %4153 = vmatmul.mubr.bf16.gmra.mrb[60].mxu0 %v12438_v12 }
 0x5d9   : > { %4453 = vmatpush1.bf16.msra.mxu0 %v18392_v36  ;;  %12498 = vmatprep.mubr.msk.bf16.mxu0 %vm3005_vm5, %v16116_v58  ;;  %v16142_v58 = vld [vmem:[%s22213_s4 + $0x208] ss:$8 sps:$4 sm:$0xff]  }
 0x5da   : > { %4784 = vmatprep.subr.bf16.mxu0 %v17185_v10 }
 0x5db   : > { %v18843_v63 = vpop.f32.mrb[228].mxu1 }
 0x5dc   : > { %v14756_v30 = vpop.f32.mrb[229].mxu1 }
 0x5dd   : > { %v18851_v22 = vpop.f32.mrb[230].mxu1 }
 0x5de   : > { %v14757_v52 = vpop.f32.mrb[231].mxu1 }
 0x5e0   : > { %4461 = vmatmul.mubr.bf16.vlgmr.msra.gmra.mrb[64].mxu0 %v16114_v20 }
 0x5e1   : > { %4785 = vmatpush1.bf16.msra.mxu0 %v18292_v17  ;;  %12499 = vmatprep.mubr.msk.bf16.mxu0 %vm3005_vm5, %v16119_v60 }
 0x5e2   : > { %4786 = vmatprep.subr.bf16.mxu0 %v17185_v10 }
 0x5e3   : > { %v18856_v48 = vpop.f32.mrb[232].mxu1 }
 0x5e4   : > { %v14760_v26 = vpop.f32.mrb[233].mxu1 }
 0x5e5   : > { %4787 = vmatpush1.bf16.msra.mxu0 %v18300_v0  ;;  %v18865_v35 = vpop.f32.mrb[234].mxu1 }
 0x5e6   : > { %4788 = vmatprep.subr.bf16.mxu0 %v17185_v10  ;;  %v14761_v27 = vpop.f32.mrb[235].mxu1 }
 0x5e8   : > { %4469 = vmatmul.mubr.bf16.gmra.mrb[68].mxu0 %v16117_v50 }
 0x5e9   : > { %4789 = vmatpush1.bf16.msra.mxu0 %v18308_v41  ;;  %12500 = vmatprep.mubr.msk.bf16.mxu0 %vm3005_vm5, %v16122_v2 }
 0x5ea   : > { %4790 = vmatprep.subr.bf16.mxu0 %v17185_v10 }
 0x5eb   : > { %v18871_v55 = vpop.f32.mrb[236].mxu1 }
 0x5ec   : > { %v14764_v4 = vpop.f32.mrb[237].mxu1 }
 0x5ed   : > { %4791 = vmatpush1.bf16.msra.mxu0 %v18316_v47  ;;  %v18880_v5 = vpop.f32.mrb[238].mxu1 }
 0x5ee   : > { %4792 = vmatprep.subr.bf16.mxu0 %v17185_v10  ;;  %v14765_v39 = vpop.f32.mrb[239].mxu1 }
 0x5f0   : > { %4477 = vmatmul.mubr.bf16.gmra.mrb[72].mxu0 %v16120_v16 }
 0x5f1   : > { %4793 = vmatpush1.bf16.msra.mxu0 %v18324_v3  ;;  %12501 = vmatprep.mubr.msk.bf16.mxu0 %vm3005_vm5, %v16127_v38  ;;  %v16148_v38 = vld [vmem:[%s22213_s4 + $0x228] ss:$8 sps:$4 sm:$0xff]  }
 0x5f2   : > { %4794 = vmatprep.subr.bf16.mxu0 %v17185_v10 }
 0x5f3   : > { %v18886_v24 = vpop.f32.mrb[240].mxu1 }
 0x5f4   : > { %v14768_v49 = vpop.f32.mrb[241].mxu1 }
 0x5f5   : > { %4795 = vmatpush1.bf16.msra.mxu0 %v18332_v61  ;;  %v18895_v19 = vpop.f32.mrb[242].mxu1 }
 0x5f6   : > { %4796 = vmatprep.subr.bf16.mxu0 %v17185_v10  ;;  %v14769_v45 = vpop.f32.mrb[243].mxu1 }
 0x5f8   : > { %4485 = vmatmul.mubr.bf16.gmra.mrb[76].mxu0 %v16125_v23 }
 0x5f9   : > { %4797 = vmatpush1.bf16.msra.mxu0 %v18344_v62  ;;  %12502 = vmatprep.mubr.msk.bf16.mxu0 %vm3005_vm5, %v16132_v18 }
 0x5fa   : > { %4798 = vmatprep.subr.bf16.mxu0 %v17185_v10 }
 0x5fb   : > { %v18901_v21 = vpop.f32.mrb[244].mxu1 }
 0x5fc   : > { %v14772_v42 = vpop.f32.mrb[245].mxu1 }
 0x5fd   : > { %4799 = vmatpush1.bf16.msra.mxu0 %v18352_v46  ;;  %v18910_v51 = vpop.f32.mrb[246].mxu1 }
 0x5fe   : > { %4800 = vmatprep.subr.bf16.mxu0 %v17185_v10  ;;  %v14773_v11 = vpop.f32.mrb[247].mxu1 }
 0x600   : > { %4493 = vmatmul.mubr.bf16.gmra.mrb[80].mxu0 %v16130_v37  ;;  %v16153_v37 = vld [vmem:[%s22213_s4 + $0x238] ss:$8 sps:$4 sm:$0xff]  }
 0x601   : > { %4801 = vmatpush1.bf16.msra.mxu0 %v18360_v28  ;;  %12503 = vmatprep.mubr.msk.bf16.mxu0 %vm3005_vm5, %v16137_v34 }
 0x602   : > { %4802 = vmatprep.subr.bf16.mxu0 %v17185_v10 }
 0x603   : > { %v18919_v13 = vpop.f32.mrb[248].mxu1 }
 0x604   : > { %v14776_v6 = vpop.f32.mrb[249].mxu1 }
 0x605   : > { %4803 = vmatpush1.bf16.msra.mxu0 %v18368_v54  ;;  %v3618_v8 = vpop.f32.mrb[250].mxu1  ;;  %v16158_v6 = vld [vmem:[%s22213_s4 + $0x248] ss:$8 sps:$4 sm:$0xff]  }
 0x606   : > { %4804 = vmatprep.subr.bf16.mxu0 %v17185_v10  ;;  %v14777_v15 = vpop.f32.mrb[251].mxu1 }
 0x607   : > { %v16165_v15 = vld [vmem:[%s22213_s4 + $0x25c] ss:$8 sps:$4 sm:$0xff]  }
 0x608   : > { %4501 = vmatmul.mubr.bf16.gmra.mrb[84].mxu0 %v16135_v44 }
 0x609   : > { %4805 = vmatpush1.bf16.msra.mxu0 %v18376_v31  ;;  %12504 = vmatprep.mubr.msk.bf16.mxu0 %vm3005_vm5, %v12497_v9 }
 0x60a   : > { %4806 = vmatprep.subr.bf16.mxu0 %v17185_v10 }
 0x60b   : > { %v3431_v56 = vpop.f32.mrb[236].mxu0 }
 0x60c   : > { %v14708_v53 = vpop.f32.mrb[237].mxu0  ;;  %v18930_v57 = vadd.f32 %v18831_v32, %v3431_v56 }
 0x60d   : > { %4807 = vmatpush1.bf16.msra.mxu0 %v18384_v7  ;;  %v3434_v25 = vpop.f32.mrb[238].mxu0 }
 0x60e   : > { %4808 = vmatprep.subr.bf16.mxu0 %v17185_v10  ;;  %v14709_v12 = vpop.f32.mrb[239].mxu0  ;;  %v18938_v43 = vadd.f32 %v18837_v40, %v3434_v25  ;;  %v16147_v40 = vld [vmem:[%s22213_s4 + $0x21c] ss:$8 sps:$4 sm:$0xff]  }
 0x610   : > { %4509 = vmatmul.mubr.bf16.gmra.mrb[88].mxu0 %v12496_v33 }
 0x611   : > { %4809 = vmatpush1.bf16.msra.mxu0 %v18392_v36  ;;  %12556 = vmatprep.mubr.msk.bf16.mxu0 %vm3005_vm5, %v16144_v14  ;;  %v16163_v14 = vld [vmem:[%s22213_s4 + $0x258] ss:$8 sps:$4 sm:$0xff]  }
 0x612   : > { %5140 = vmatprep.subr.bf16.mxu0 %v17185_v10 }
 0x613   : > { %v3439_v32 = vpop.f32.mrb[240].mxu0 }
 0x614   : > { %v14712_v59 = vpop.f32.mrb[241].mxu0  ;;  %v18947_v20 = vadd.f32 %v18843_v63, %v3439_v32  ;;  %v16145_v63 = vld [vmem:[%s22213_s4 + $0x218] ss:$8 sps:$4 sm:$0xff]  }
 0x615   : > { %v3442_v30 = vpop.f32.mrb[242].mxu0 }
 0x616   : > { %v14713_v60 = vpop.f32.mrb[243].mxu0  ;;  %v18953_v52 = vadd.f32 %v18851_v22, %v3442_v30  ;;  %v16150_v22 = vld [vmem:[%s22213_s4 + $0x22c] ss:$8 sps:$4 sm:$0xff]  }
 0x618   : > { %4817 = vmatmul.mubr.bf16.vlgmr.msra.gmra.mrb[92].mxu0 %v16142_v58 }
 0x619   : > { %5141 = vmatpush1.bf16.msra.mxu0 %v18292_v17  ;;  %12557 = vmatprep.mubr.msk.bf16.mxu0 %vm3005_vm5, %v16147_v40 }
 0x61a   : > { %5142 = vmatprep.subr.bf16.mxu0 %v17185_v10 }
 0x61b   : > { %v3447_v50 = vpop.f32.mrb[244].mxu0 }
 0x61c   : > { %v14716_v26 = vpop.f32.mrb[245].mxu0  ;;  %v18962_v2 = vadd.f32 %v18856_v48, %v3447_v50 }
 0x61d   : > { %5143 = vmatpush1.bf16.msra.mxu0 %v18300_v0  ;;  %v3450_v27 = vpop.f32.mrb[246].mxu0  ;;  %v16179_v26 = vld [vmem:[%s22214_s5 + $0xc0] sm:$0xff]  }
 0x61e   : > { %5144 = vmatprep.subr.bf16.mxu0 %v17185_v10  ;;  %v14717_v16 = vpop.f32.mrb[247].mxu0  ;;  %v18970_v4 = vadd.f32 %v18865_v35, %v3450_v27  ;;  %v16155_v35 = vld [vmem:[%s22213_s4 + $0x23c] ss:$8 sps:$4 sm:$0xff]   ;;  %v16180_v27 = vld [vmem:[%s22214_s5 + $0xc8] sm:$0xff]  }
 0x620   : > { %4825 = vmatmul.mubr.bf16.gmra.mrb[96].mxu0 %v16145_v63  ;;  %v16172_v63 = vld [vmem:[%s22213_s4 + $0x274] ss:$8 sps:$4 sm:$0xff]  }
 0x621   : > { %5145 = vmatpush1.bf16.msra.mxu0 %v18308_v41  ;;  %12558 = vmatprep.mubr.msk.bf16.mxu0 %vm3005_vm5, %v16150_v22 }
 0x622   : > { %5146 = vmatprep.subr.bf16.mxu0 %v17185_v10 }
 0x623   : > { %v3455_v48 = vpop.f32.mrb[248].mxu0 }
 0x624   : > { %v14720_v39 = vpop.f32.mrb[249].mxu0  ;;  %v18979_v23 = vadd.f32 %v18871_v55, %v3455_v48  ;;  %v16170_v48 = vld [vmem:[%s22213_s4 + $0x270] ss:$8 sps:$4 sm:$0xff]  }
 0x625   : > { %5147 = vmatpush1.bf16.msra.mxu0 %v18316_v47  ;;  %v3458_v49 = vpop.f32.mrb[250].mxu0 }
 0x626   : > { %5148 = vmatprep.subr.bf16.mxu0 %v17185_v10  ;;  %v14721_v18 = vpop.f32.mrb[251].mxu0  ;;  %v18987_v45 = vadd.f32 %v18880_v5, %v3458_v49  ;;  %v16160_v5 = vld [vmem:[%s22213_s4 + $0x24c] ss:$8 sps:$4 sm:$0xff]  }
 0x627   : > { %v16175_v49 = vld [vmem:[%s22213_s4 + $0x284] ss:$8 sps:$4 sm:$0xff]   ;;  %v16184_v18 = vld [vmem:[%s22214_s5 + $0xd0] sm:$0xff]  }
 0x628   : > { %4833 = vmatmul.mubr.bf16.gmra.mrb[100].mxu0 %v16148_v38 }
 0x629   : > { %5149 = vmatpush1.bf16.msra.mxu0 %v18324_v3  ;;  %12559 = vmatprep.mubr.msk.bf16.mxu0 %vm3005_vm5, %v16155_v35 }
 0x62a   : > { %5150 = vmatprep.subr.bf16.mxu0 %v17185_v10 }
 0x62b   : > { %v3463_v55 = vpop.f32.mrb[252].mxu0 }
 0x62c   : > { %v14724_v42 = vpop.f32.mrb[253].mxu0  ;;  %v18996_v34 = vadd.f32 %v18886_v24, %v3463_v55 }
 0x62d   : > { %5151 = vmatpush1.bf16.msra.mxu0 %v18332_v61  ;;  %v3466_v11 = vpop.f32.mrb[254].mxu0  ;;  %v16173_v42 = vld [vmem:[%s22213_s4 + $0x280] ss:$8 sps:$4 sm:$0xff]  }
 0x62e   : > { %5152 = vmatprep.subr.bf16.mxu0 %v17185_v10  ;;  %v14725_v29 = vpop.f32.mrb[255].mxu0  ;;  %v19004_v44 = vadd.f32 %v18895_v19, %v3466_v11 }
 0x630   : > { %4841 = vmatmul.mubr.bf16.gmra.mrb[104].mxu0 %v16153_v37 }
 0x631   : > { %5153 = vmatpush1.bf16.msra.mxu0 %v18344_v62  ;;  %12560 = vmatprep.mubr.msk.bf16.mxu0 %vm3005_vm5, %v16160_v5 }
 0x632   : > { %5154 = vmatprep.subr.bf16.mxu0 %v17185_v10 }
 0x633   : > { %v3471_v24 = vpop.f32.mrb[0].mxu0 }
 0x634   : > { %v14728_v9 = vpop.f32.mrb[1].mxu0  ;;  %v19013_v8 = vadd.f32 %v18901_v21, %v3471_v24  ;;  %v12541_v21 = vld [vmem:[%s22213_s4 + $0x268] sm:$0x33]  ;;  %v16178_v24 = vld [vmem:[%s22213_s4 + $0x294] ss:$8 sps:$4 sm:$0xff]  }
 0x635   : > { %5155 = vmatpush1.bf16.msra.mxu0 %v18352_v46  ;;  %v3474_v19 = vpop.f32.mrb[2].mxu0  ;;  %v12555_v32 = vcombine.high %v12541_v21, %v12541_v21  ;;  %v12554_v30 = vcombine.low %v12541_v21, %v12541_v21 }
 0x636   : > { %5156 = vmatprep.subr.bf16.mxu0 %v17185_v10  ;;  %v14729_v56 = vpop.f32.mrb[3].mxu0  ;;  %v19021_v33 = vadd.f32 %v18910_v51, %v3474_v19  ;;  %v16189_v19 = vld [vmem:[%s22214_s5 + $0xe0] sm:$0xff]  }
 0x637   : > { %v16176_v56 = vld [vmem:[%s22213_s4 + $0x290] ss:$8 sps:$4 sm:$0xff]  }
 0x638   : > { %4849 = vmatmul.mubr.bf16.gmra.mrb[108].mxu0 %v16158_v6  ;;  %v16185_v6 = vld [vmem:[%s22214_s5 + $0xd8] sm:$0xff]  }
 0x639   : > { %5157 = vmatpush1.bf16.msra.mxu0 %v18360_v28  ;;  %12561 = vmatprep.mubr.msk.bf16.mxu0 %vm3005_vm5, %v16165_v15 }
 0x63a   : > { %5158 = vmatprep.subr.bf16.mxu0 %v17185_v10 }
 0x63b   : > { %v3479_v53 = vpop.f32.mrb[4].mxu0 }
 0x63c   : > { %v14732_v25 = vpop.f32.mrb[5].mxu0  ;;  %v19033_v51 = vadd.f32 %v18919_v13, %v3479_v53 }
 0x63d   : > { %5159 = vmatpush1.bf16.msra.mxu0 %v18368_v54  ;;  %v3482_v12 = vpop.f32.mrb[6].mxu0  ;;  %v16183_v25 = vld [vmem:[%s22213_s4 + $0x2a4] ss:$8 sps:$4 sm:$0xff]  }
 0x63e   : > { %5160 = vmatprep.subr.bf16.mxu0 %v17185_v10  ;;  %v14733_v58 = vpop.f32.mrb[7].mxu0  ;;  %v16190_v12 = vld [vmem:[%s22214_s5 + $0xe8] sm:$0xff]  }
 0x640   : > { %4857 = vmatmul.mubr.bf16.gmra.mrb[112].mxu0 %v16163_v14 }
 0x641   : > { %5161 = vmatpush1.bf16.msra.mxu0 %v18376_v31  ;;  %12562 = vmatprep.mubr.msk.bf16.mxu0 %vm3005_vm5, %v12555_v32 }
 0x642   : > { %5162 = vmatprep.subr.bf16.mxu0 %v17185_v10 }
 0x643   : > { %v3750_v59 = vpop.f32.mrb[8].mxu0 }
 0x644   : > { %v3752_v40 = vpop.f32.mrb[9].mxu0 }
 0x645   : > { %5163 = vmatpush1.bf16.msra.mxu0 %v18384_v7  ;;  %v3753_v13 = vpop.f32.mrb[10].mxu0 }
 0x646   : > { %v3804_v60 = vpack.c.bf16 %v3753_v13, %v3750_v59  ;;  %5164 = vmatprep.subr.bf16.mxu0 %v17185_v10  ;;  %v3755_v50 = vpop.f32.mrb[11].mxu0  ;;  %v16181_v59 = vld [vmem:[%s22213_s4 + $0x2a0] ss:$8 sps:$4 sm:$0xff]  }
 0x647   : > { %v16194_v50 = vld [vmem:[%s22214_s5 + $0xf0] sm:$0xff]  }
 0x648   : > { %14795 = vmatmul.mubr.bf16.vlgmr.msra.gmra.mrb[252].mxu1 %v3804_v60  ;;  %4865 = vmatmul.mubr.bf16.gmra.mrb[116].mxu0 %v12554_v30  ;;  %v16188_v60 = vld [vmem:[%s22213_s4 + $0x2b4] ss:$8 sps:$4 sm:$0xff]  }
 0x649   : > { %5165 = vmatpush1.bf16.msra.mxu0 %v18392_v36  ;;  %14798 = vmatprep.mubr.msk.bf16.mxu1 %vm17184_vm2, %v17182_v1 }
 0x64a   : > { %12614 = vmatprep.mubr.msk.bf16.mxu0 %vm3005_vm5, %v16172_v63  ;;  %5496 = vmatprep.subr.bf16.mxu0 %v17185_v10 }
 0x64b   : > { %v3758_v22 = vpop.f32.mrb[12].mxu0  ;;  %14823 = vmatpush3.bf16.msra.mxu1 %v16179_v26  ;;  %v16195_v26 = vld [vmem:[%s22214_s5 + $0xf8] sm:$0xff]  }
 0x64c   : > { %v3760_v16 = vpop.f32.mrb[13].mxu0  ;;  %14824 = vmatprep.subr.bf16.mxu1 %v17182_v1 }
 0x64d   : > { %v3761_v38 = vpop.f32.mrb[14].mxu0 }
 0x64e   : > { %v3805_v39 = vpack.c.bf16 %v3761_v38, %v3758_v22  ;;  %v3763_v35 = vpop.f32.mrb[15].mxu0 }
 0x64f   : > { %14825 = vmatpush3.bf16.msra.mxu1 %v16180_v27  ;;  %v16186_v27 = vld [vmem:[%s22213_s4 + $0x2b0] ss:$8 sps:$4 sm:$0xff]  }
 0x650   : > { %14799 = vmatmul.mubr.bf16.gmra.mrb[0].mxu1 %v3805_v39  ;;  %5173 = vmatmul.mubr.bf16.vlgmr.msra.gmra.mrb[120].mxu0 %v16170_v48  ;;  %v16193_v39 = vld [vmem:[%s22213_s4 + $0x2c4] ss:$8 sps:$4 sm:$0xff]  }
 0x651   : > { %5497 = vmatpush1.bf16.msra.mxu0 %v18292_v17  ;;  %14802 = vmatprep.mubr.msk.bf16.mxu1 %vm17184_vm2, %v17182_v1 }
 0x652   : > { %5498 = vmatprep.subr.bf16.mxu0 %v17185_v10  ;;  %12615 = vmatprep.mubr.msk.bf16.mxu0 %vm3005_vm5, %v16175_v49  ;;  %v12599_v49 = vld [vmem:[%s22213_s4 + $0x2d0] sm:$0x33] }
 0x653   : > { %v3766_v55 = vpop.f32.mrb[16].mxu0  ;;  %14826 = vmatprep.subr.bf16.mxu1 %v17182_v1 }
 0x654   : > { %v3768_v37 = vpop.f32.mrb[17].mxu0  ;;  %14827 = vmatpush3.bf16.msra.mxu1 %v16184_v18  ;;  %v16191_v18 = vld [vmem:[%s22213_s4 + $0x2c0] ss:$8 sps:$4 sm:$0xff]  }
 0x655   : > { %5499 = vmatpush1.bf16.msra.mxu0 %v18300_v0  ;;  %v3769_v5 = vpop.f32.mrb[18].mxu0  ;;  %14828 = vmatprep.subr.bf16.mxu1 %v17182_v1 }
 0x656   : > { %v3806_v11 = vpack.c.bf16 %v3769_v5, %v3766_v55  ;;  %5500 = vmatprep.subr.bf16.mxu0 %v17185_v10  ;;  %v3771_v29 = vpop.f32.mrb[19].mxu0 }
 0x658   : > { %14803 = vmatmul.mubr.bf16.gmra.mrb[4].mxu1 %v3806_v11  ;;  %5181 = vmatmul.mubr.bf16.gmra.mrb[124].mxu0 %v16173_v42  ;;  %v12613_v11 = vcombine.high %v12599_v49, %v12599_v49 }
 0x659   : > { %5501 = vmatpush1.bf16.msra.mxu0 %v18308_v41  ;;  %14806 = vmatprep.mubr.msk.bf16.mxu1 %vm17184_vm2, %v17182_v1 }
 0x65a   : > { %5502 = vmatprep.subr.bf16.mxu0 %v17185_v10  ;;  %12616 = vmatprep.mubr.msk.bf16.mxu0 %vm3005_vm5, %v16178_v24 }
 0x65b   : > { %v3774_v9 = vpop.f32.mrb[20].mxu0  ;;  %14829 = vmatpush3.bf16.msra.mxu1 %v16185_v6  ;;  %v12612_v6 = vcombine.low %v12599_v49, %v12599_v49 }
 0x65c   : > { %v3776_v15 = vpop.f32.mrb[21].mxu0  ;;  %14830 = vmatprep.subr.bf16.mxu1 %v17182_v1 }
 0x65d   : > { %5503 = vmatpush1.bf16.msra.mxu0 %v18316_v47  ;;  %v3777_v21 = vpop.f32.mrb[22].mxu0 }
 0x65e   : > { %v3807_v53 = vpack.c.bf16 %v3777_v21, %v3774_v9  ;;  %5504 = vmatprep.subr.bf16.mxu0 %v17185_v10  ;;  %v3779_v14 = vpop.f32.mrb[23].mxu0  ;;  %v16207_v21 = vld [vmem:[%s22214_s5 + $0x100] sm:$0xff]  }
 0x65f   : > { %14831 = vmatpush3.bf16.msra.mxu1 %v16189_v19  ;;  %v16208_v14 = vld [vmem:[%s22214_s5 + $0x108] sm:$0xff]  }
 0x660   : > { %14807 = vmatmul.mubr.bf16.gmra.mrb[8].mxu1 %v3807_v53  ;;  %5189 = vmatmul.mubr.bf16.gmra.mrb[128].mxu0 %v16176_v56  ;;  %v16200_v56 = vld [vmem:[%s22213_s4 + $0x2dc] ss:$8 sps:$4 sm:$0xff]  }
 0x661   : > { %5505 = vmatpush1.bf16.msra.mxu0 %v18324_v3  ;;  %14810 = vmatprep.mubr.msk.bf16.mxu1 %vm17184_vm2, %v17182_v1 }
 0x662   : > { %5506 = vmatprep.subr.bf16.mxu0 %v17185_v10  ;;  %12617 = vmatprep.mubr.msk.bf16.mxu0 %vm3005_vm5, %v16183_v25 }
 0x663   : > { %v3782_v32 = vpop.f32.mrb[24].mxu0  ;;  %14832 = vmatprep.subr.bf16.mxu1 %v17182_v1 }
 0x664   : > { %v3784_v58 = vpop.f32.mrb[25].mxu0  ;;  %14833 = vmatpush3.bf16.msra.mxu1 %v16190_v12  ;;  %v16198_v12 = vld [vmem:[%s22213_s4 + $0x2d8] ss:$8 sps:$4 sm:$0xff]  }
 0x665   : > { %5507 = vmatpush1.bf16.msra.mxu0 %v18332_v61  ;;  %v3785_v40 = vpop.f32.mrb[26].mxu0  ;;  %14834 = vmatprep.subr.bf16.mxu1 %v17182_v1 }
 0x666   : > { %v3808_v30 = vpack.c.bf16 %v3785_v40, %v3782_v32  ;;  %5508 = vmatprep.subr.bf16.mxu0 %v17185_v10  ;;  %v3787_v13 = vpop.f32.mrb[27].mxu0  ;;  %v16203_v40 = vld [vmem:[%s22213_s4 + $0x2ec] ss:$8 sps:$4 sm:$0xff]  }
 0x668   : > { %14811 = vmatmul.mubr.bf16.gmra.mrb[12].mxu1 %v3808_v30  ;;  %5197 = vmatmul.mubr.bf16.gmra.mrb[132].mxu0 %v16181_v59  ;;  %v16212_v30 = vld [vmem:[%s22214_s5 + $0x110] sm:$0xff]  }
 0x669   : > { %5509 = vmatpush1.bf16.msra.mxu0 %v18344_v62  ;;  %14814 = vmatprep.mubr.msk.bf16.mxu1 %vm17184_vm2, %v17182_v1 }
 0x66a   : > { %5510 = vmatprep.subr.bf16.mxu0 %v17185_v10  ;;  %12618 = vmatprep.mubr.msk.bf16.mxu0 %vm3005_vm5, %v16188_v60 }
 0x66b   : > { %v3790_v63 = vpop.f32.mrb[28].mxu0  ;;  %14835 = vmatpush3.bf16.msra.mxu1 %v16194_v50  ;;  %v16201_v50 = vld [vmem:[%s22213_s4 + $0x2e8] ss:$8 sps:$4 sm:$0xff]  }
 0x66c   : > { %v3792_v22 = vpop.f32.mrb[29].mxu0  ;;  %14836 = vmatprep.subr.bf16.mxu1 %v17182_v1 }
 0x66d   : > { %5511 = vmatpush1.bf16.msra.mxu0 %v18352_v46  ;;  %v3793_v16 = vpop.f32.mrb[30].mxu0 }
 0x66e   : > { %v3809_v48 = vpack.c.bf16 %v3793_v16, %v3790_v63  ;;  %5512 = vmatprep.subr.bf16.mxu0 %v17185_v10  ;;  %v3795_v38 = vpop.f32.mrb[31].mxu0  ;;  %v16213_v16 = vld [vmem:[%s22214_s5 + $0x118] sm:$0xff]  }
 0x66f   : > { %14837 = vmatpush3.bf16.msra.mxu1 %v16195_v26  ;;  %v16217_v38 = vld [vmem:[%s22214_s5 + $0x120] sm:$0xff]  }
 0x670   : > { %14815 = vmatmul.mubr.bf16.gmra.mrb[16].mxu1 %v3809_v48  ;;  %5205 = vmatmul.mubr.bf16.gmra.mrb[136].mxu0 %v16186_v27  ;;  %v16206_v27 = vld [vmem:[%s22213_s4 + $0x2fc] ss:$8 sps:$4 sm:$0xff]  }
 0x671   : > { %5513 = vmatpush1.bf16.msra.mxu0 %v18360_v28  ;;  %14818 = vmatprep.mubr.msk.bf16.mxu1 %vm17184_vm2, %v17182_v1 }
 0x672   : > { %5514 = vmatprep.subr.bf16.mxu0 %v17185_v10  ;;  %12619 = vmatprep.mubr.msk.bf16.mxu0 %vm3005_vm5, %v16193_v39 }
 0x673   : > { %v3798_v35 = vpop.f32.mrb[32].mxu0  ;;  %14866 = vmatprep.subr.bf16.mxu1 %v17182_v1 }
 0x674   : > { %v3800_v55 = vpop.f32.mrb[33].mxu0  ;;  %v3810_v42 = vpack.c.bf16 %v3798_v35, %v3798_v35  ;;  %v16204_v35 = vld [vmem:[%s22213_s4 + $0x2f8] ss:$8 sps:$4 sm:$0xff]  }
 0x675   : > { %5515 = vmatpush1.bf16.msra.mxu0 %v18368_v54  ;;  %v3801_v37 = vpop.f32.mrb[34].mxu0 }
 0x676   : > { %5516 = vmatprep.subr.bf16.mxu0 %v17185_v10  ;;  %v3802_v5 = vpop.f32.mrb[35].mxu0  ;;  %v16211_v37 = vld [vmem:[%s22213_s4 + $0x30c] ss:$8 sps:$4 sm:$0xff]  }
 0x678   : > { %14819 = vmatmul.mubr.bf16.gmra.mrb[20].mxu1 %v3810_v42  ;;  %5213 = vmatmul.mubr.bf16.gmra.mrb[140].mxu0 %v16191_v18  ;;  %v16218_v42 = vld [vmem:[%s22214_s5 + $0x128] sm:$0xff]  }
 0x679   : > { %5517 = vmatpush1.bf16.msra.mxu0 %v18376_v31  ;;  %14838 = vmatprep.mubr.msk.bf16.mxu1 %vm17184_vm2, %v17182_v1 }
 0x67a   : > { %5518 = vmatprep.subr.bf16.mxu0 %v17185_v10  ;;  %12620 = vmatprep.mubr.msk.bf16.mxu0 %vm3005_vm5, %v12613_v11 }
 0x67b   : > { %v4106_v29 = vpop.f32.mrb[36].mxu0 }
 0x67c   : > { %v4108_v24 = vpop.f32.mrb[37].mxu0 }
 0x67d   : > { %5519 = vmatpush1.bf16.msra.mxu0 %v18384_v7  ;;  %v4109_v9 = vpop.f32.mrb[38].mxu0 }
 0x67e   : > { %v4160_v19 = vpack.c.bf16 %v4109_v9, %v4106_v29  ;;  %5520 = vmatprep.subr.bf16.mxu0 %v17185_v10  ;;  %v4111_v15 = vpop.f32.mrb[39].mxu0  ;;  %v16209_v29 = vld [vmem:[%s22213_s4 + $0x308] ss:$8 sps:$4 sm:$0xff]  }
 0x67f   : > { %v16222_v15 = vld [vmem:[%s22214_s5 + $0x130] sm:$0xff]  }
 0x680   : > { %14839 = vmatmul.mubr.bf16.vlgmr.msra.gmra.mrb[24].mxu1 %v4160_v19  ;;  %5221 = vmatmul.mubr.bf16.gmra.mrb[144].mxu0 %v12612_v6  ;;  %v16216_v19 = vld [vmem:[%s22213_s4 + $0x31c] ss:$8 sps:$4 sm:$0xff]  }
 0x681   : > { %5521 = vmatpush1.bf16.msra.mxu0 %v18392_v36  ;;  %14842 = vmatprep.mubr.msk.bf16.mxu1 %vm17184_vm2, %v17182_v1 }
 0x682   : > { %12672 = vmatprep.mubr.msk.bf16.mxu0 %vm3005_vm5, %v16200_v56  ;;  %5852 = vmatprep.subr.bf16.mxu0 %v17185_v10 }
 0x683   : > { %v4114_v53 = vpop.f32.mrb[40].mxu0  ;;  %14867 = vmatpush3.bf16.msra.mxu1 %v16207_v21  ;;  %v16223_v21 = vld [vmem:[%s22214_s5 + $0x138] sm:$0xff]  }
 0x684   : > { %v4116_v25 = vpop.f32.mrb[41].mxu0  ;;  %14868 = vmatprep.subr.bf16.mxu1 %v17182_v1 }
 0x685   : > { %v4117_v32 = vpop.f32.mrb[42].mxu0 }
 0x686   : > { %v4161_v58 = vpack.c.bf16 %v4117_v32, %v4114_v53  ;;  %v4119_v59 = vpop.f32.mrb[43].mxu0 }
 0x687   : > { %14869 = vmatpush3.bf16.msra.mxu1 %v16208_v14  ;;  %v16214_v14 = vld [vmem:[%s22213_s4 + $0x318] ss:$8 sps:$4 sm:$0xff]  }
 0x688   : > { %14843 = vmatmul.mubr.bf16.gmra.mrb[28].mxu1 %v4161_v58  ;;  %5529 = vmatmul.mubr.bf16.vlgmr.msra.gmra.mrb[148].mxu0 %v16198_v12  ;;  %v16221_v58 = vld [vmem:[%s22213_s4 + $0x32c] ss:$8 sps:$4 sm:$0xff]  }
 0x689   : > { %5853 = vmatpush1.bf16.msra.mxu0 %v18292_v17  ;;  %14846 = vmatprep.mubr.msk.bf16.mxu1 %vm17184_vm2, %v17182_v1 }
 0x68a   : > { %5854 = vmatprep.subr.bf16.mxu0 %v17185_v10  ;;  %12673 = vmatprep.mubr.msk.bf16.mxu0 %vm3005_vm5, %v16203_v40  ;;  %v12657_v40 = vld [vmem:[%s22213_s4 + $0x338] sm:$0x33] }
 0x68b   : > { %v4122_v13 = vpop.f32.mrb[44].mxu0  ;;  %14870 = vmatprep.subr.bf16.mxu1 %v17182_v1 }
 0x68c   : > { %v4124_v60 = vpop.f32.mrb[45].mxu0  ;;  %14871 = vmatpush3.bf16.msra.mxu1 %v16212_v30  ;;  %v16219_v30 = vld [vmem:[%s22213_s4 + $0x328] ss:$8 sps:$4 sm:$0xff]  }
 0x68d   : > { %5855 = vmatpush1.bf16.msra.mxu0 %v18300_v0  ;;  %v4125_v63 = vpop.f32.mrb[46].mxu0  ;;  %14872 = vmatprep.subr.bf16.mxu1 %v17182_v1 }
 0x68e   : > { %v4162_v26 = vpack.c.bf16 %v4125_v63, %v4122_v13  ;;  %5856 = vmatprep.subr.bf16.mxu0 %v17185_v10  ;;  %v4127_v22 = vpop.f32.mrb[47].mxu0 }
 0x690   : > { %14847 = vmatmul.mubr.bf16.gmra.mrb[32].mxu1 %v4162_v26  ;;  %5537 = vmatmul.mubr.bf16.gmra.mrb[152].mxu0 %v16201_v50  ;;  %v12671_v26 = vcombine.high %v12657_v40, %v12657_v40 }
 0x691   : > { %5857 = vmatpush1.bf16.msra.mxu0 %v18308_v41  ;;  %14850 = vmatprep.mubr.msk.bf16.mxu1 %vm17184_vm2, %v17182_v1 }
 0x692   : > { %5858 = vmatprep.subr.bf16.mxu0 %v17185_v10  ;;  %12674 = vmatprep.mubr.msk.bf16.mxu0 %vm3005_vm5, %v16206_v27 }
 0x693   : > { %v4130_v48 = vpop.f32.mrb[48].mxu0  ;;  %14873 = vmatpush3.bf16.msra.mxu1 %v16213_v16  ;;  %v12670_v16 = vcombine.low %v12657_v40, %v12657_v40 }
 0x694   : > { %v4132_v39 = vpop.f32.mrb[49].mxu0  ;;  %14874 = vmatprep.subr.bf16.mxu1 %v17182_v1 }
 0x695   : > { %5859 = vmatpush1.bf16.msra.mxu0 %v18316_v47  ;;  %v4133_v49 = vpop.f32.mrb[50].mxu0 }
 0x696   : > { %v4163_v18 = vpack.c.bf16 %v4133_v49, %v4130_v48  ;;  %5860 = vmatprep.subr.bf16.mxu0 %v17185_v10  ;;  %v4135_v55 = vpop.f32.mrb[51].mxu0  ;;  %v16235_v49 = vld [vmem:[%s22214_s5 + $0x140] sm:$0xff]  }
 0x697   : > { %14875 = vmatpush3.bf16.msra.mxu1 %v16217_v38  ;;  %v16236_v55 = vld [vmem:[%s22214_s5 + $0x148] sm:$0xff]  }
 0x698   : > { %14851 = vmatmul.mubr.bf16.gmra.mrb[36].mxu1 %v4163_v18  ;;  %5545 = vmatmul.mubr.bf16.gmra.mrb[156].mxu0 %v16204_v35  ;;  %v16228_v35 = vld [vmem:[%s22213_s4 + $0x344] ss:$8 sps:$4 sm:$0xff]  }
 0x699   : > { %5861 = vmatpush1.bf16.msra.mxu0 %v18324_v3  ;;  %14854 = vmatprep.mubr.msk.bf16.mxu1 %vm17184_vm2, %v17182_v1 }
 0x69a   : > { %5862 = vmatprep.subr.bf16.mxu0 %v17185_v10  ;;  %12675 = vmatprep.mubr.msk.bf16.mxu0 %vm3005_vm5, %v16211_v37 }
 0x69b   : > { %v4138_v5 = vpop.f32.mrb[52].mxu0  ;;  %14876 = vmatprep.subr.bf16.mxu1 %v17182_v1 }
 0x69c   : > { %v4140_v11 = vpop.f32.mrb[53].mxu0  ;;  %14877 = vmatpush3.bf16.msra.mxu1 %v16218_v42  ;;  %v16226_v42 = vld [vmem:[%s22213_s4 + $0x340] ss:$8 sps:$4 sm:$0xff]  }
 0x69d   : > { %5863 = vmatpush1.bf16.msra.mxu0 %v18332_v61  ;;  %v4141_v24 = vpop.f32.mrb[54].mxu0  ;;  %14878 = vmatprep.subr.bf16.mxu1 %v17182_v1 }
 0x69e   : > { %v4164_v6 = vpack.c.bf16 %v4141_v24, %v4138_v5  ;;  %5864 = vmatprep.subr.bf16.mxu0 %v17185_v10  ;;  %v4143_v9 = vpop.f32.mrb[55].mxu0  ;;  %v16231_v24 = vld [vmem:[%s22213_s4 + $0x354] ss:$8 sps:$4 sm:$0xff]  }
 0x6a0   : > { %14855 = vmatmul.mubr.bf16.gmra.mrb[40].mxu1 %v4164_v6  ;;  %5553 = vmatmul.mubr.bf16.gmra.mrb[160].mxu0 %v16209_v29  ;;  %v16240_v6 = vld [vmem:[%s22214_s5 + $0x150] sm:$0xff]  }
 0x6a1   : > { %5865 = vmatpush1.bf16.msra.mxu0 %v18344_v62  ;;  %14858 = vmatprep.mubr.msk.bf16.mxu1 %vm17184_vm2, %v17182_v1 }
 0x6a2   : > { %5866 = vmatprep.subr.bf16.mxu0 %v17185_v10  ;;  %12676 = vmatprep.mubr.msk.bf16.mxu0 %vm3005_vm5, %v16216_v19 }
 0x6a3   : > { %v4146_v56 = vpop.f32.mrb[56].mxu0  ;;  %14879 = vmatpush3.bf16.msra.mxu1 %v16222_v15  ;;  %v16229_v15 = vld [vmem:[%s22213_s4 + $0x350] ss:$8 sps:$4 sm:$0xff]  }
 0x6a4   : > { %v4148_v53 = vpop.f32.mrb[57].mxu0  ;;  %14880 = vmatprep.subr.bf16.mxu1 %v17182_v1 }
 0x6a5   : > { %5867 = vmatpush1.bf16.msra.mxu0 %v18352_v46  ;;  %v4149_v25 = vpop.f32.mrb[58].mxu0 }
 0x6a6   : > { %v4165_v12 = vpack.c.bf16 %v4149_v25, %v4146_v56  ;;  %5868 = vmatprep.subr.bf16.mxu0 %v17185_v10  ;;  %v4151_v32 = vpop.f32.mrb[59].mxu0  ;;  %v16241_v25 = vld [vmem:[%s22214_s5 + $0x158] sm:$0xff]  }
 0x6a7   : > { %14881 = vmatpush3.bf16.msra.mxu1 %v16223_v21  ;;  %v16245_v32 = vld [vmem:[%s22214_s5 + $0x160] sm:$0xff]  }
 0x6a8   : > { %14859 = vmatmul.mubr.bf16.gmra.mrb[44].mxu1 %v4165_v12  ;;  %5561 = vmatmul.mubr.bf16.gmra.mrb[164].mxu0 %v16214_v14  ;;  %v16234_v14 = vld [vmem:[%s22213_s4 + $0x364] ss:$8 sps:$4 sm:$0xff]  }
 0x6a9   : > { %5869 = vmatpush1.bf16.msra.mxu0 %v18360_v28  ;;  %14862 = vmatprep.mubr.msk.bf16.mxu1 %vm17184_vm2, %v17182_v1 }
 0x6aa   : > { %5870 = vmatprep.subr.bf16.mxu0 %v17185_v10  ;;  %12677 = vmatprep.mubr.msk.bf16.mxu0 %vm3005_vm5, %v16221_v58 }
 0x6ab   : > { %v4154_v59 = vpop.f32.mrb[60].mxu0  ;;  %14910 = vmatprep.subr.bf16.mxu1 %v17182_v1 }
 0x6ac   : > { %v4156_v13 = vpop.f32.mrb[61].mxu0  ;;  %v4166_v50 = vpack.c.bf16 %v4154_v59, %v4154_v59  ;;  %v16232_v59 = vld [vmem:[%s22213_s4 + $0x360] ss:$8 sps:$4 sm:$0xff]  }
 0x6ad   : > { %5871 = vmatpush1.bf16.msra.mxu0 %v18368_v54  ;;  %v4157_v60 = vpop.f32.mrb[62].mxu0 }
 0x6ae   : > { %5872 = vmatprep.subr.bf16.mxu0 %v17185_v10  ;;  %v4158_v63 = vpop.f32.mrb[63].mxu0  ;;  %v16239_v60 = vld [vmem:[%s22213_s4 + $0x374] ss:$8 sps:$4 sm:$0xff]  }
 0x6b0   : > { %14863 = vmatmul.mubr.bf16.gmra.mrb[48].mxu1 %v4166_v50  ;;  %5569 = vmatmul.mubr.bf16.gmra.mrb[168].mxu0 %v16219_v30  ;;  %v16246_v50 = vld [vmem:[%s22214_s5 + $0x168] sm:$0xff]  }
 0x6b1   : > { %5873 = vmatpush1.bf16.msra.mxu0 %v18376_v31  ;;  %14882 = vmatprep.mubr.msk.bf16.mxu1 %vm17184_vm2, %v17182_v1 }
 0x6b2   : > { %5874 = vmatprep.subr.bf16.mxu0 %v17185_v10  ;;  %12678 = vmatprep.mubr.msk.bf16.mxu0 %vm3005_vm5, %v12671_v26 }
 0x6b3   : > { %v4462_v22 = vpop.f32.mrb[64].mxu0 }
 0x6b4   : > { %v4464_v27 = vpop.f32.mrb[65].mxu0 }
 0x6b5   : > { %5875 = vmatpush1.bf16.msra.mxu0 %v18384_v7  ;;  %v4465_v48 = vpop.f32.mrb[66].mxu0 }
 0x6b6   : > { %v4516_v38 = vpack.c.bf16 %v4465_v48, %v4462_v22  ;;  %5876 = vmatprep.subr.bf16.mxu0 %v17185_v10  ;;  %v4467_v39 = vpop.f32.mrb[67].mxu0  ;;  %v16237_v22 = vld [vmem:[%s22213_s4 + $0x370] ss:$8 sps:$4 sm:$0xff]  }
 0x6b7   : > { %v16250_v39 = vld [vmem:[%s22214_s5 + $0x170] sm:$0xff]  }
 0x6b8   : > { %14883 = vmatmul.mubr.bf16.vlgmr.msra.gmra.mrb[52].mxu1 %v4516_v38  ;;  %5577 = vmatmul.mubr.bf16.gmra.mrb[172].mxu0 %v12670_v16  ;;  %v16244_v38 = vld [vmem:[%s22213_s4 + $0x384] ss:$8 sps:$4 sm:$0xff]  }
 0x6b9   : > { %5877 = vmatpush1.bf16.msra.mxu0 %v18392_v36  ;;  %14886 = vmatprep.mubr.msk.bf16.mxu1 %vm17184_vm2, %v17182_v1 }
 0x6ba   : > { %12730 = vmatprep.mubr.msk.bf16.mxu0 %vm3005_vm5, %v16228_v35  ;;  %6208 = vmatprep.subr.bf16.mxu0 %v17185_v10 }
 0x6bb   : > { %v4470_v18 = vpop.f32.mrb[68].mxu0  ;;  %14911 = vmatpush3.bf16.msra.mxu1 %v16235_v49  ;;  %v16251_v49 = vld [vmem:[%s22214_s5 + $0x178] sm:$0xff]  }
 0x6bc   : > { %v4472_v37 = vpop.f32.mrb[69].mxu0  ;;  %14912 = vmatprep.subr.bf16.mxu1 %v17182_v1 }
 0x6bd   : > { %v4473_v5 = vpop.f32.mrb[70].mxu0 }
 0x6be   : > { %v4517_v11 = vpack.c.bf16 %v4473_v5, %v4470_v18  ;;  %v4475_v29 = vpop.f32.mrb[71].mxu0 }
 0x6bf   : > { %14913 = vmatpush3.bf16.msra.mxu1 %v16236_v55  ;;  %v16242_v55 = vld [vmem:[%s22213_s4 + $0x380] ss:$8 sps:$4 sm:$0xff]  }
 0x6c0   : > { %14887 = vmatmul.mubr.bf16.gmra.mrb[56].mxu1 %v4517_v11  ;;  %5885 = vmatmul.mubr.bf16.vlgmr.msra.gmra.mrb[176].mxu0 %v16226_v42  ;;  %v16249_v11 = vld [vmem:[%s22213_s4 + $0x394] ss:$8 sps:$4 sm:$0xff]  }
 0x6c1   : > { %6209 = vmatpush1.bf16.msra.mxu0 %v18292_v17  ;;  %14890 = vmatprep.mubr.msk.bf16.mxu1 %vm17184_vm2, %v17182_v1 }
 0x6c2   : > { %6210 = vmatprep.subr.bf16.mxu0 %v17185_v10  ;;  %12731 = vmatprep.mubr.msk.bf16.mxu0 %vm3005_vm5, %v16231_v24  ;;  %v12715_v24 = vld [vmem:[%s22213_s4 + $0x3a0] sm:$0x33] }
 0x6c3   : > { %v4478_v9 = vpop.f32.mrb[72].mxu0  ;;  %14914 = vmatprep.subr.bf16.mxu1 %v17182_v1 }
 0x6c4   : > { %v4480_v19 = vpop.f32.mrb[73].mxu0  ;;  %14915 = vmatpush3.bf16.msra.mxu1 %v16240_v6  ;;  %v16247_v6 = vld [vmem:[%s22213_s4 + $0x390] ss:$8 sps:$4 sm:$0xff]  }
 0x6c5   : > { %6211 = vmatpush1.bf16.msra.mxu0 %v18300_v0  ;;  %v4481_v56 = vpop.f32.mrb[74].mxu0  ;;  %14916 = vmatprep.subr.bf16.mxu1 %v17182_v1 }
 0x6c6   : > { %v4518_v21 = vpack.c.bf16 %v4481_v56, %v4478_v9  ;;  %6212 = vmatprep.subr.bf16.mxu0 %v17185_v10  ;;  %v4483_v53 = vpop.f32.mrb[75].mxu0 }
 0x6c8   : > { %14891 = vmatmul.mubr.bf16.gmra.mrb[60].mxu1 %v4518_v21  ;;  %5893 = vmatmul.mubr.bf16.gmra.mrb[180].mxu0 %v16229_v15  ;;  %v12729_v21 = vcombine.high %v12715_v24, %v12715_v24 }
 0x6c9   : > { %6213 = vmatpush1.bf16.msra.mxu0 %v18308_v41  ;;  %14894 = vmatprep.mubr.msk.bf16.mxu1 %vm17184_vm2, %v17182_v1 }
 0x6ca   : > { %6214 = vmatprep.subr.bf16.mxu0 %v17185_v10  ;;  %12732 = vmatprep.mubr.msk.bf16.mxu0 %vm3005_vm5, %v16234_v14 }
 0x6cb   : > { %v4486_v12 = vpop.f32.mrb[76].mxu0  ;;  %14917 = vmatpush3.bf16.msra.mxu1 %v16241_v25  ;;  %v12728_v25 = vcombine.low %v12715_v24, %v12715_v24 }
 0x6cc   : > { %v4488_v58 = vpop.f32.mrb[77].mxu0  ;;  %14918 = vmatprep.subr.bf16.mxu1 %v17182_v1 }
 0x6cd   : > { %6215 = vmatpush1.bf16.msra.mxu0 %v18316_v47  ;;  %v4489_v40 = vpop.f32.mrb[78].mxu0 }
 0x6ce   : > { %v4519_v30 = vpack.c.bf16 %v4489_v40, %v4486_v12  ;;  %6216 = vmatprep.subr.bf16.mxu0 %v17185_v10  ;;  %v4491_v13 = vpop.f32.mrb[79].mxu0  ;;  %v16263_v40 = vld [vmem:[%s22214_s5 + $0x180] sm:$0xff]  }
 0x6cf   : > { %14919 = vmatpush3.bf16.msra.mxu1 %v16245_v32  ;;  %v16264_v13 = vld [vmem:[%s22214_s5 + $0x188] sm:$0xff]  }
 0x6d0   : > { %14895 = vmatmul.mubr.bf16.gmra.mrb[64].mxu1 %v4519_v30  ;;  %5901 = vmatmul.mubr.bf16.gmra.mrb[184].mxu0 %v16232_v59  ;;  %v16256_v59 = vld [vmem:[%s22213_s4 + $0x3ac] ss:$8 sps:$4 sm:$0xff]  }
 0x6d1   : > { %6217 = vmatpush1.bf16.msra.mxu0 %v18324_v3  ;;  %14898 = vmatprep.mubr.msk.bf16.mxu1 %vm17184_vm2, %v17182_v1 }
 0x6d2   : > { %6218 = vmatprep.subr.bf16.mxu0 %v17185_v10  ;;  %12733 = vmatprep.mubr.msk.bf16.mxu0 %vm3005_vm5, %v16239_v60 }
 0x6d3   : > { %v4494_v63 = vpop.f32.mrb[80].mxu0  ;;  %14920 = vmatprep.subr.bf16.mxu1 %v17182_v1 }
 0x6d4   : > { %v4496_v26 = vpop.f32.mrb[81].mxu0  ;;  %14921 = vmatpush3.bf16.msra.mxu1 %v16246_v50  ;;  %v16254_v50 = vld [vmem:[%s22213_s4 + $0x3a8] ss:$8 sps:$4 sm:$0xff]  }
 0x6d5   : > { %6219 = vmatpush1.bf16.msra.mxu0 %v18332_v61  ;;  %v4497_v27 = vpop.f32.mrb[82].mxu0  ;;  %14922 = vmatprep.subr.bf16.mxu1 %v17182_v1 }
 0x6d6   : > { %v4520_v16 = vpack.c.bf16 %v4497_v27, %v4494_v63  ;;  %6220 = vmatprep.subr.bf16.mxu0 %v17185_v10  ;;  %v4499_v48 = vpop.f32.mrb[83].mxu0  ;;  %v16259_v27 = vld [vmem:[%s22213_s4 + $0x3bc] ss:$8 sps:$4 sm:$0xff]  }
 0x6d8   : > { %14899 = vmatmul.mubr.bf16.gmra.mrb[68].mxu1 %v4520_v16  ;;  %5909 = vmatmul.mubr.bf16.gmra.mrb[188].mxu0 %v16237_v22  ;;  %v16268_v16 = vld [vmem:[%s22214_s5 + $0x190] sm:$0xff]  }
 0x6d9   : > { %6221 = vmatpush1.bf16.msra.mxu0 %v18344_v62  ;;  %14902 = vmatprep.mubr.msk.bf16.mxu1 %vm17184_vm2, %v17182_v1 }
 0x6da   : > { %6222 = vmatprep.subr.bf16.mxu0 %v17185_v10  ;;  %12734 = vmatprep.mubr.msk.bf16.mxu0 %vm3005_vm5, %v16244_v38 }
 0x6db   : > { %v4502_v35 = vpop.f32.mrb[84].mxu0  ;;  %14923 = vmatpush3.bf16.msra.mxu1 %v16250_v39  ;;  %v16257_v39 = vld [vmem:[%s22213_s4 + $0x3b8] ss:$8 sps:$4 sm:$0xff]  }
 0x6dc   : > { %v4504_v18 = vpop.f32.mrb[85].mxu0  ;;  %14924 = vmatprep.subr.bf16.mxu1 %v17182_v1 }
 0x6dd   : > { %6223 = vmatpush1.bf16.msra.mxu0 %v18352_v46  ;;  %v4505_v37 = vpop.f32.mrb[86].mxu0 }
 0x6de   : > { %v4521_v42 = vpack.c.bf16 %v4505_v37, %v4502_v35  ;;  %6224 = vmatprep.subr.bf16.mxu0 %v17185_v10  ;;  %v4507_v5 = vpop.f32.mrb[87].mxu0  ;;  %v16269_v37 = vld [vmem:[%s22214_s5 + $0x198] sm:$0xff]  }
 0x6df   : > { %14925 = vmatpush3.bf16.msra.mxu1 %v16251_v49  ;;  %v16273_v5 = vld [vmem:[%s22214_s5 + $0x1a0] sm:$0xff]  }
 0x6e0   : > { %14903 = vmatmul.mubr.bf16.gmra.mrb[72].mxu1 %v4521_v42  ;;  %5917 = vmatmul.mubr.bf16.gmra.mrb[192].mxu0 %v16242_v55  ;;  %v16262_v55 = vld [vmem:[%s22213_s4 + $0x3cc] ss:$8 sps:$4 sm:$0xff]  }
 0x6e1   : > { %6225 = vmatpush1.bf16.msra.mxu0 %v18360_v28  ;;  %14906 = vmatprep.mubr.msk.bf16.mxu1 %vm17184_vm2, %v17182_v1 }
 0x6e2   : > { %6226 = vmatprep.subr.bf16.mxu0 %v17185_v10  ;;  %12735 = vmatprep.mubr.msk.bf16.mxu0 %vm3005_vm5, %v16249_v11 }
 0x6e3   : > { %v4510_v29 = vpop.f32.mrb[88].mxu0  ;;  %14954 = vmatprep.subr.bf16.mxu1 %v17182_v1 }
 0x6e4   : > { %v4512_v9 = vpop.f32.mrb[89].mxu0  ;;  %v4522_v15 = vpack.c.bf16 %v4510_v29, %v4510_v29  ;;  %v16260_v29 = vld [vmem:[%s22213_s4 + $0x3c8] ss:$8 sps:$4 sm:$0xff]  }
 0x6e5   : > { %6227 = vmatpush1.bf16.msra.mxu0 %v18368_v54  ;;  %v4513_v19 = vpop.f32.mrb[90].mxu0 }
 0x6e6   : > { %6228 = vmatprep.subr.bf16.mxu0 %v17185_v10  ;;  %v4514_v56 = vpop.f32.mrb[91].mxu0  ;;  %v16267_v19 = vld [vmem:[%s22213_s4 + $0x3dc] ss:$8 sps:$4 sm:$0xff]  }
 0x6e8   : > { %14907 = vmatmul.mubr.bf16.gmra.mrb[76].mxu1 %v4522_v15  ;;  %5925 = vmatmul.mubr.bf16.gmra.mrb[196].mxu0 %v16247_v6  ;;  %v16274_v15 = vld [vmem:[%s22214_s5 + $0x1a8] sm:$0xff]  }
 0x6e9   : > { %6229 = vmatpush1.bf16.msra.mxu0 %v18376_v31  ;;  %14926 = vmatprep.mubr.msk.bf16.mxu1 %vm17184_vm2, %v17182_v1 }
 0x6ea   : > { %6230 = vmatprep.subr.bf16.mxu0 %v17185_v10  ;;  %12736 = vmatprep.mubr.msk.bf16.mxu0 %vm3005_vm5, %v12729_v21 }
 0x6eb   : > { %v4818_v53 = vpop.f32.mrb[92].mxu0 }
 0x6ec   : > { %v4820_v14 = vpop.f32.mrb[93].mxu0 }
 0x6ed   : > { %6231 = vmatpush1.bf16.msra.mxu0 %v18384_v7  ;;  %v4821_v12 = vpop.f32.mrb[94].mxu0 }
 0x6ee   : > { %v4872_v32 = vpack.c.bf16 %v4821_v12, %v4818_v53  ;;  %6232 = vmatprep.subr.bf16.mxu0 %v17185_v10  ;;  %v4823_v58 = vpop.f32.mrb[95].mxu0  ;;  %v16265_v53 = vld [vmem:[%s22213_s4 + $0x3d8] ss:$8 sps:$4 sm:$0xff]  }
 0x6ef   : > { %v16278_v58 = vld [vmem:[%s22214_s5 + $0x1b0] sm:$0xff]  }
 0x6f0   : > { %14927 = vmatmul.mubr.bf16.vlgmr.msra.gmra.mrb[80].mxu1 %v4872_v32  ;;  %5933 = vmatmul.mubr.bf16.gmra.mrb[200].mxu0 %v12728_v25  ;;  %v16272_v32 = vld [vmem:[%s22213_s4 + $0x3ec] ss:$8 sps:$4 sm:$0xff]  }
 0x6f1   : > { %6233 = vmatpush1.bf16.msra.mxu0 %v18392_v36  ;;  %14930 = vmatprep.mubr.msk.bf16.mxu1 %vm17184_vm2, %v17182_v1 }
 0x6f2   : > { %12788 = vmatprep.mubr.msk.bf16.mxu0 %vm3005_vm5, %v16256_v59  ;;  %6564 = vmatprep.subr.bf16.mxu0 %v17185_v10 }
 0x6f3   : > { %v4826_v30 = vpop.f32.mrb[96].mxu0  ;;  %14955 = vmatpush3.bf16.msra.mxu1 %v16263_v40  ;;  %v16279_v40 = vld [vmem:[%s22214_s5 + $0x1b8] sm:$0xff]  }
 0x6f4   : > { %v4828_v60 = vpop.f32.mrb[97].mxu0  ;;  %14956 = vmatprep.subr.bf16.mxu1 %v17182_v1 }
 0x6f5   : > { %v4829_v63 = vpop.f32.mrb[98].mxu0 }
 0x6f6   : > { %v4873_v26 = vpack.c.bf16 %v4829_v63, %v4826_v30  ;;  %v4831_v22 = vpop.f32.mrb[99].mxu0 }
 0x6f7   : > { %14957 = vmatpush3.bf16.msra.mxu1 %v16264_v13  ;;  %v16270_v13 = vld [vmem:[%s22213_s4 + $0x3e8] ss:$8 sps:$4 sm:$0xff]  }
 0x6f8   : > { %14931 = vmatmul.mubr.bf16.gmra.mrb[84].mxu1 %v4873_v26  ;;  %6241 = vmatmul.mubr.bf16.vlgmr.msra.gmra.mrb[204].mxu0 %v16254_v50  ;;  %v16277_v26 = vld [vmem:[%s22213_s4 + $0x3fc] ss:$8 sps:$4 sm:$0xff]  }
 0x6f9   : > { %6565 = vmatpush1.bf16.msra.mxu0 %v18292_v17  ;;  %14934 = vmatprep.mubr.msk.bf16.mxu1 %vm17184_vm2, %v17182_v1 }
 0x6fa   : > { %6566 = vmatprep.subr.bf16.mxu0 %v17185_v10  ;;  %12789 = vmatprep.mubr.msk.bf16.mxu0 %vm3005_vm5, %v16259_v27 }
 0x6fb   : > { %v4834_v48 = vpop.f32.mrb[100].mxu0  ;;  %14958 = vmatprep.subr.bf16.mxu1 %v17182_v1 }
 0x6fc   : > { %v4836_v38 = vpop.f32.mrb[101].mxu0  ;;  %14959 = vmatpush3.bf16.msra.mxu1 %v16268_v16  ;;  %v12773_v16 = vld [vmem:[%s22213_s4 + $0x408] sm:$0x33] }
 0x6fd   : > { %6567 = vmatpush1.bf16.msra.mxu0 %v18300_v0  ;;  %v4837_v35 = vpop.f32.mrb[102].mxu0  ;;  %14960 = vmatprep.subr.bf16.mxu1 %v17182_v1 }
 0x6fe   : > { %v4874_v49 = vpack.c.bf16 %v4837_v35, %v4834_v48  ;;  %6568 = vmatprep.subr.bf16.mxu0 %v17185_v10  ;;  %v4839_v18 = vpop.f32.mrb[103].mxu0 }
 0x700   : > { %14935 = vmatmul.mubr.bf16.gmra.mrb[88].mxu1 %v4874_v49  ;;  %6249 = vmatmul.mubr.bf16.gmra.mrb[208].mxu0 %v16257_v39  ;;  %v16275_v39 = vld [vmem:[%s22213_s4 + $0x3f8] ss:$8 sps:$4 sm:$0xff]  }
 0x701   : > { %6569 = vmatpush1.bf16.msra.mxu0 %v18308_v41  ;;  %14938 = vmatprep.mubr.msk.bf16.mxu1 %vm17184_vm2, %v17182_v1 }
 0x702   : > { %6570 = vmatprep.subr.bf16.mxu0 %v17185_v10  ;;  %12790 = vmatprep.mubr.msk.bf16.mxu0 %vm3005_vm5, %v16262_v55 }
 0x703   : > { %v4842_v42 = vpop.f32.mrb[104].mxu0  ;;  %14961 = vmatpush3.bf16.msra.mxu1 %v16269_v37 }
 0x704   : > { %v4844_v11 = vpop.f32.mrb[105].mxu0  ;;  %14962 = vmatprep.subr.bf16.mxu1 %v17182_v1 }
 0x705   : > { %6571 = vmatpush1.bf16.msra.mxu0 %v18316_v47  ;;  %v4845_v24 = vpop.f32.mrb[106].mxu0 }
 0x706   : > { %v4875_v6 = vpack.c.bf16 %v4845_v24, %v4842_v42  ;;  %6572 = vmatprep.subr.bf16.mxu0 %v17185_v10  ;;  %v4847_v9 = vpop.f32.mrb[107].mxu0 }
 0x707   : > { %14963 = vmatpush3.bf16.msra.mxu1 %v16273_v5  ;;  %v12786_v9 = vcombine.low %v12773_v16, %v12773_v16 }
 0x708   : > { %14939 = vmatmul.mubr.bf16.gmra.mrb[92].mxu1 %v4875_v6  ;;  %6257 = vmatmul.mubr.bf16.gmra.mrb[212].mxu0 %v16260_v29 }
 0x709   : > { %6573 = vmatpush1.bf16.msra.mxu0 %v18324_v3  ;;  %14942 = vmatprep.mubr.msk.bf16.mxu1 %vm17184_vm2, %v17182_v1 }
 0x70a   : > { %6574 = vmatprep.subr.bf16.mxu0 %v17185_v10  ;;  %12791 = vmatprep.mubr.msk.bf16.mxu0 %vm3005_vm5, %v16267_v19 }
 0x70b   : > { %v4850_v56 = vpop.f32.mrb[108].mxu0  ;;  %14964 = vmatprep.subr.bf16.mxu1 %v17182_v1 }
 0x70c   : > { %v4852_v21 = vpop.f32.mrb[109].mxu0  ;;  %14965 = vmatpush3.bf16.msra.mxu1 %v16274_v15 }
 0x70d   : > { %6575 = vmatpush1.bf16.msra.mxu0 %v18332_v61  ;;  %v4853_v14 = vpop.f32.mrb[110].mxu0  ;;  %14966 = vmatprep.subr.bf16.mxu1 %v17182_v1 }
 0x70e   : > { %v4876_v25 = vpack.c.bf16 %v4853_v14, %v4850_v56  ;;  %6576 = vmatprep.subr.bf16.mxu0 %v17185_v10  ;;  %v4855_v12 = vpop.f32.mrb[111].mxu0 }
 0x710   : > { %14943 = vmatmul.mubr.bf16.gmra.mrb[96].mxu1 %v4876_v25  ;;  %6265 = vmatmul.mubr.bf16.gmra.mrb[216].mxu0 %v16265_v53  ;;  %v16291_v25 = vld [vmem:[%s22214_s5 + $0x1c0] sm:$0xff]  }
 0x711   : > { %6577 = vmatpush1.bf16.msra.mxu0 %v18344_v62  ;;  %14946 = vmatprep.mubr.msk.bf16.mxu1 %vm17184_vm2, %v17182_v1 }
 0x712   : > { %6578 = vmatprep.subr.bf16.mxu0 %v17185_v10  ;;  %12792 = vmatprep.mubr.msk.bf16.mxu0 %vm3005_vm5, %v16272_v32  ;;  %v16292_v32 = vld [vmem:[%s22214_s5 + $0x1c8] sm:$0xff]  }
 0x713   : > { %v4858_v59 = vpop.f32.mrb[112].mxu0  ;;  %14967 = vmatpush3.bf16.msra.mxu1 %v16278_v58 }
 0x714   : > { %v4860_v30 = vpop.f32.mrb[113].mxu0  ;;  %14968 = vmatprep.subr.bf16.mxu1 %v17182_v1 }
 0x715   : > { %6579 = vmatpush1.bf16.msra.mxu0 %v18352_v46  ;;  %v4861_v60 = vpop.f32.mrb[114].mxu0  ;;  %v16282_v30 = vld [vmem:[%s22213_s4 + $0x410] ss:$8 sps:$4 sm:$0xff]  }
 0x716   : > { %v4877_v50 = vpack.c.bf16 %v4861_v60, %v4858_v59  ;;  %6580 = vmatprep.subr.bf16.mxu0 %v17185_v10  ;;  %v4863_v63 = vpop.f32.mrb[115].mxu0 }
 0x717   : > { %14969 = vmatpush3.bf16.msra.mxu1 %v16279_v40 }
 0x718   : > { %14947 = vmatmul.mubr.bf16.gmra.mrb[100].mxu1 %v4877_v50  ;;  %6273 = vmatmul.mubr.bf16.gmra.mrb[220].mxu0 %v16270_v13 }
 0x719   : > { %6581 = vmatpush1.bf16.msra.mxu0 %v18360_v28  ;;  %14950 = vmatprep.mubr.msk.bf16.mxu1 %vm17184_vm2, %v17182_v1 }
 0x71a   : > { %6582 = vmatprep.subr.bf16.mxu0 %v17185_v10  ;;  %12793 = vmatprep.mubr.msk.bf16.mxu0 %vm3005_vm5, %v16277_v26 }
 0x71b   : > { %v3910_v22 = vpop.f32.mrb[252].mxu1  ;;  %v4866_v27 = vpop.f32.mrb[116].mxu0  ;;  %14998 = vmatprep.subr.bf16.mxu1 %v17182_v1 }
 0x71c   : > { %v19503_v48 = vadd.f32 %v3910_v22, %v18930_v57  ;;  %v14796_v38 = vpop.f32.mrb[253].mxu1  ;;  %v4868_v35 = vpop.f32.mrb[117].mxu0  ;;  %v4878_v37 = vpack.c.bf16 %v4866_v27, %v4866_v27  ;;  %v12787_v57 = vcombine.high %v12773_v16, %v12773_v16  ;;  %v16296_v27 = vld [vmem:[%s22214_s5 + $0x1d0] sm:$0xff]  }
 0x71d   : > { %6583 = vmatpush1.bf16.msra.mxu0 %v18368_v54  ;;  %v3913_v49 = vpop.f32.mrb[254].mxu1  ;;  %v4869_v18 = vpop.f32.mrb[118].mxu0 }
 0x71e   : > { %v19510_v55 = vadd.f32 %v3913_v49, %v18938_v43  ;;  %6584 = vmatprep.subr.bf16.mxu0 %v17185_v10  ;;  %v14797_v42 = vpop.f32.mrb[255].mxu1  ;;  %v4870_v5 = vpop.f32.mrb[119].mxu0  ;;  %v16285_v49 = vld [vmem:[%s22213_s4 + $0x420] ss:$8 sps:$4 sm:$0xff]  }
 0x720   : > { %14951 = vmatmul.mubr.bf16.gmra.mrb[104].mxu1 %v4878_v37  ;;  %6281 = vmatmul.mubr.bf16.gmra.mrb[224].mxu0 %v16275_v39 }
 0x721   : > { %6585 = vmatpush1.bf16.msra.mxu0 %v18376_v31  ;;  %14970 = vmatprep.mubr.msk.bf16.mxu1 %vm17184_vm2, %v17182_v1 }
 0x722   : > { %6586 = vmatprep.subr.bf16.mxu0 %v17185_v10  ;;  %12794 = vmatprep.mubr.msk.bf16.mxu0 %vm3005_vm5, %v12787_v57 }
 0x723   : > { %v3918_v11 = vpop.f32.mrb[0].mxu1  ;;  %v5174_v43 = vpop.f32.mrb[120].mxu0 }
 0x724   : > { %v19519_v29 = vadd.f32 %v3918_v11, %v18947_v20  ;;  %v14800_v24 = vpop.f32.mrb[1].mxu1  ;;  %v5176_v6 = vpop.f32.mrb[121].mxu0  ;;  %v16284_v20 = vld [vmem:[%s22213_s4 + $0x414] ss:$8 sps:$4 sm:$0xff]  }
 0x725   : > { %6587 = vmatpush1.bf16.msra.mxu0 %v18384_v7  ;;  %v3921_v19 = vpop.f32.mrb[2].mxu1  ;;  %v5177_v15 = vpop.f32.mrb[122].mxu0  ;;  %v16290_v11 = vld [vmem:[%s22213_s4 + $0x434] ss:$8 sps:$4 sm:$0xff]   ;;  %v16301_v6 = vld [vmem:[%s22214_s5 + $0x1e0] sm:$0xff]  }
 0x726   : > { %v19523_v56 = vadd.f32 %v3921_v19, %v18953_v52  ;;  %v5228_v21 = vpack.c.bf16 %v5177_v15, %v5174_v43  ;;  %6588 = vmatprep.subr.bf16.mxu0 %v17185_v10  ;;  %v14801_v53 = vpop.f32.mrb[3].mxu1  ;;  %v5179_v14 = vpop.f32.mrb[123].mxu0  ;;  %v16297_v43 = vld [vmem:[%s22214_s5 + $0x1d8] sm:$0xff]  }
 0x728   : > { %14971 = vmatmul.mubr.bf16.vlgmr.msra.gmra.mrb[108].mxu1 %v5228_v21  ;;  %6289 = vmatmul.mubr.bf16.gmra.mrb[228].mxu0 %v12786_v9  ;;  %v16288_v21 = vld [vmem:[%s22213_s4 + $0x430] ss:$8 sps:$4 sm:$0xff]  }
 0x729   : > { %6589 = vmatpush1.bf16.msra.mxu0 %v18392_v36  ;;  %14974 = vmatprep.mubr.msk.bf16.mxu1 %vm17184_vm2, %v17182_v1 }
 0x72a   : > { %12846 = vmatprep.mubr.msk.bf16.mxu0 %vm3005_vm5, %v16284_v20  ;;  %6920 = vmatprep.subr.bf16.mxu0 %v17185_v10 }
 0x72b   : > { %v3926_v52 = vpop.f32.mrb[4].mxu1  ;;  %v5182_v12 = vpop.f32.mrb[124].mxu0  ;;  %14999 = vmatpush3.bf16.msra.mxu1 %v16291_v25 }
 0x72c   : > { %v19541_v58 = vadd.f32 %v3926_v52, %v18962_v2  ;;  %v14804_v59 = vpop.f32.mrb[5].mxu1  ;;  %v5184_v40 = vpop.f32.mrb[125].mxu0  ;;  %15000 = vmatprep.subr.bf16.mxu1 %v17182_v1  ;;  %v16287_v2 = vld [vmem:[%s22213_s4 + $0x424] ss:$8 sps:$4 sm:$0xff]  }
 0x72d   : > { %v3929_v13 = vpop.f32.mrb[6].mxu1  ;;  %v5185_v60 = vpop.f32.mrb[126].mxu0 }
 0x72e   : > { %v19548_v50 = vadd.f32 %v3929_v13, %v18970_v4  ;;  %v5229_v63 = vpack.c.bf16 %v5185_v60, %v5182_v12  ;;  %v14805_v26 = vpop.f32.mrb[7].mxu1  ;;  %v5187_v22 = vpop.f32.mrb[127].mxu0  ;;  %v16295_v12 = vld [vmem:[%s22213_s4 + $0x444] ss:$8 sps:$4 sm:$0xff]   ;;  %v16293_v60 = vld [vmem:[%s22213_s4 + $0x440] ss:$8 sps:$4 sm:$0xff]  }
 0x72f   : > { %15001 = vmatpush3.bf16.msra.mxu1 %v16292_v32  ;;  %v16302_v32 = vld [vmem:[%s22214_s5 + $0x1e8] sm:$0xff]  }
 0x730   : > { %14975 = vmatmul.mubr.bf16.gmra.mrb[112].mxu1 %v5229_v63  ;;  %6597 = vmatmul.mubr.bf16.vlgmr.msra.gmra.mrb[232].mxu0 %v16282_v30 }
 0x731   : > { %6921 = vmatpush1.bf16.msra.mxu0 %v18292_v17  ;;  %14978 = vmatprep.mubr.msk.bf16.mxu1 %vm17184_vm2, %v17182_v1 }
 0x732   : > { %6922 = vmatprep.subr.bf16.mxu0 %v17185_v10  ;;  %12847 = vmatprep.mubr.msk.bf16.mxu0 %vm3005_vm5, %v16287_v2 }
 0x733   : > { %v3934_v4 = vpop.f32.mrb[8].mxu1  ;;  %v5190_v16 = vpop.f32.mrb[128].mxu0  ;;  %15002 = vmatprep.subr.bf16.mxu1 %v17182_v1 }
 0x734   : > { %v19563_v38 = vadd.f32 %v3934_v4, %v18979_v23  ;;  %v14808_v39 = vpop.f32.mrb[9].mxu1  ;;  %v5192_v35 = vpop.f32.mrb[129].mxu0  ;;  %15003 = vmatpush3.bf16.msra.mxu1 %v16296_v27  ;;  %v16300_v4 = vld [vmem:[%s22213_s4 + $0x454] ss:$8 sps:$4 sm:$0xff]  }
 0x735   : > { %6923 = vmatpush1.bf16.msra.mxu0 %v18300_v0  ;;  %v3937_v18 = vpop.f32.mrb[10].mxu1  ;;  %v5193_v37 = vpop.f32.mrb[130].mxu0  ;;  %15004 = vmatprep.subr.bf16.mxu1 %v17182_v1  ;;  %v16307_v35 = vld [vmem:[%s22214_s5 + $0x1f8] sm:$0xff]  }
 0x736   : > { %v19571_v42 = vadd.f32 %v3937_v18, %v18987_v45  ;;  %v5230_v5 = vpack.c.bf16 %v5193_v37, %v5190_v16  ;;  %6924 = vmatprep.subr.bf16.mxu0 %v17185_v10  ;;  %v14809_v23 = vpop.f32.mrb[11].mxu1  ;;  %v5195_v57 = vpop.f32.mrb[131].mxu0  ;;  %v16306_v16 = vld [vmem:[%s22214_s5 + $0x1f0] sm:$0xff]  }
 0x737   : > { %v16298_v37 = vld [vmem:[%s22213_s4 + $0x450] ss:$8 sps:$4 sm:$0xff]  }
 0x738   : > { %14979 = vmatmul.mubr.bf16.gmra.mrb[116].mxu1 %v5230_v5  ;;  %6605 = vmatmul.mubr.bf16.gmra.mrb[236].mxu0 %v16285_v49 }
 0x739   : > { %6925 = vmatpush1.bf16.msra.mxu0 %v18308_v41  ;;  %14982 = vmatprep.mubr.msk.bf16.mxu1 %vm17184_vm2, %v17182_v1 }
 0x73a   : > { %6926 = vmatprep.subr.bf16.mxu0 %v17185_v10  ;;  %12848 = vmatprep.mubr.msk.bf16.mxu0 %vm3005_vm5, %v16290_v11 }
 0x73b   : > { %v3942_v45 = vpop.f32.mrb[12].mxu1  ;;  %v5198_v24 = vpop.f32.mrb[132].mxu0  ;;  %15005 = vmatpush3.bf16.msra.mxu1 %v16297_v43 }
 0x73c   : > { %v19589_v9 = vadd.f32 %v3942_v45, %v18996_v34  ;;  %v14812_v19 = vpop.f32.mrb[13].mxu1  ;;  %v5200_v15 = vpop.f32.mrb[133].mxu0  ;;  %15006 = vmatprep.subr.bf16.mxu1 %v17182_v1 }
 0x73d   : > { %6927 = vmatpush1.bf16.msra.mxu0 %v18316_v47  ;;  %v3945_v53 = vpop.f32.mrb[14].mxu1  ;;  %v5201_v14 = vpop.f32.mrb[134].mxu0  ;;  %v12831_v19 = vld [vmem:[%s22213_s4 + $0x470] sm:$0x33] }
 0x73e   : > { %v19597_v20 = vadd.f32 %v3945_v53, %v19004_v44  ;;  %v5231_v25 = vpack.c.bf16 %v5201_v14, %v5198_v24  ;;  %6928 = vmatprep.subr.bf16.mxu0 %v17185_v10  ;;  %v14813_v34 = vpop.f32.mrb[15].mxu1  ;;  %v5203_v52 = vpop.f32.mrb[135].mxu0  ;;  %v16303_v53 = vld [vmem:[%s22213_s4 + $0x460] ss:$8 sps:$4 sm:$0xff]  }
 0x73f   : > { %15007 = vmatpush3.bf16.msra.mxu1 %v16301_v6 }
 0x740   : > { %14983 = vmatmul.mubr.bf16.gmra.mrb[120].mxu1 %v5231_v25  ;;  %6613 = vmatmul.mubr.bf16.gmra.mrb[240].mxu0 %v16288_v21 }
 0x741   : > { %6929 = vmatpush1.bf16.msra.mxu0 %v18324_v3  ;;  %14986 = vmatprep.mubr.msk.bf16.mxu1 %vm17184_vm2, %v17182_v1 }
 0x742   : > { %6930 = vmatprep.subr.bf16.mxu0 %v17185_v10  ;;  %12849 = vmatprep.mubr.msk.bf16.mxu0 %vm3005_vm5, %v16295_v12 }
 0x743   : > { %v3950_v44 = vpop.f32.mrb[16].mxu1  ;;  %v5206_v59 = vpop.f32.mrb[136].mxu0  ;;  %15008 = vmatprep.subr.bf16.mxu1 %v17182_v1 }
 0x744   : > { %v19613_v40 = vadd.f32 %v3950_v44, %v19013_v8  ;;  %v14816_v30 = vpop.f32.mrb[17].mxu1  ;;  %v5208_v13 = vpop.f32.mrb[137].mxu0  ;;  %15009 = vmatpush3.bf16.msra.mxu1 %v16302_v32 }
 0x745   : > { %6931 = vmatpush1.bf16.msra.mxu0 %v18332_v61  ;;  %v3953_v63 = vpop.f32.mrb[18].mxu1  ;;  %v5209_v26 = vpop.f32.mrb[138].mxu0  ;;  %15010 = vmatprep.subr.bf16.mxu1 %v17182_v1 }
 0x746   : > { %v19621_v22 = vadd.f32 %v3953_v63, %v19021_v33  ;;  %v5232_v2 = vpack.c.bf16 %v5209_v26, %v5206_v59  ;;  %6932 = vmatprep.subr.bf16.mxu0 %v17185_v10  ;;  %v14817_v8 = vpop.f32.mrb[19].mxu1  ;;  %v5211_v27 = vpop.f32.mrb[139].mxu0  ;;  %v12844_v63 = vcombine.low %v12831_v19, %v12831_v19 }
 0x748   : > { %14987 = vmatmul.mubr.bf16.gmra.mrb[124].mxu1 %v5232_v2  ;;  %6621 = vmatmul.mubr.bf16.gmra.mrb[244].mxu0 %v16293_v60 }
 0x749   : > { %6933 = vmatpush1.bf16.msra.mxu0 %v18344_v62  ;;  %14990 = vmatprep.mubr.msk.bf16.mxu1 %vm17184_vm2, %v17182_v1 }
 0x74a   : > { %6934 = vmatprep.subr.bf16.mxu0 %v17185_v10  ;;  %12850 = vmatprep.mubr.msk.bf16.mxu0 %vm3005_vm5, %v16300_v4 }
 0x74b   : > { %v3958_v33 = vpop.f32.mrb[20].mxu1  ;;  %v5214_v39 = vpop.f32.mrb[140].mxu0  ;;  %15011 = vmatpush3.bf16.msra.mxu1 %v16306_v16 }
 0x74c   : > { %v19639_v49 = vadd.f32 %v3958_v33, %v19033_v51  ;;  %v5216_v18 = vpop.f32.mrb[141].mxu0  ;;  %v14820_v5 = vpop.f32.mrb[21].mxu1  ;;  %15012 = vmatprep.subr.bf16.mxu1 %v17182_v1  ;;  %v16305_v51 = vld [vmem:[%s22213_s4 + $0x464] ss:$8 sps:$4 sm:$0xff]  }
 0x74d   : > { %6935 = vmatpush1.bf16.msra.mxu0 %v18352_v46  ;;  %v5217_v23 = vpop.f32.mrb[142].mxu0  ;;  %v3961_v57 = vpop.f32.mrb[22].mxu1  ;;  %v16319_v33 = vld [vmem:[%s22214_s5 + $0x200] sm:$0xff]  }
 0x74e   : > { %v5233_v11 = vpack.c.bf16 %v5217_v23, %v5214_v39  ;;  %6936 = vmatprep.subr.bf16.mxu0 %v17185_v10  ;;  %v14821_v43 = vpop.f32.mrb[23].mxu1  ;;  %v5219_v45 = vpop.f32.mrb[143].mxu0  ;;  %v16310_v23 = vld [vmem:[%s22213_s4 + $0x478] ss:$8 sps:$4 sm:$0xff]  }
 0x74f   : > { %15013 = vmatpush3.bf16.msra.mxu1 %v16307_v35  ;;  %v16320_v35 = vld [vmem:[%s22214_s5 + $0x208] sm:$0xff]  }
 0x750   : > { %14991 = vmatmul.mubr.bf16.gmra.mrb[128].mxu1 %v5233_v11  ;;  %6629 = vmatmul.mubr.bf16.gmra.mrb[248].mxu0 %v16298_v37 }
 0x751   : > { %6937 = vmatpush1.bf16.msra.mxu0 %v18360_v28  ;;  %14994 = vmatprep.mubr.msk.bf16.mxu1 %vm17184_vm2, %v17182_v1 }
 0x752   : > { %6938 = vmatprep.subr.bf16.mxu0 %v17185_v10  ;;  %12851 = vmatprep.mubr.msk.bf16.mxu0 %vm3005_vm5, %v16305_v51 }
 0x753   : > { %v4266_v24 = vpop.f32.mrb[24].mxu1  ;;  %v5222_v6 = vpop.f32.mrb[144].mxu0  ;;  %15042 = vmatprep.subr.bf16.mxu1 %v17182_v1 }
 0x754   : > { %v19660_v15 = vadd.f32 %v4266_v24, %v19503_v48  ;;  %v14840_v21 = vpop.f32.mrb[25].mxu1  ;;  %v5224_v14 = vpop.f32.mrb[145].mxu0  ;;  %v5234_v12 = vpack.c.bf16 %v5222_v6, %v5222_v6  ;;  %v12845_v48 = vcombine.high %v12831_v19, %v12831_v19  ;;  %v16324_v6 = vld [vmem:[%s22214_s5 + $0x210] sm:$0xff]  }
 0x755   : > { %6939 = vmatpush1.bf16.msra.mxu0 %v18368_v54  ;;  %v4269_v25 = vpop.f32.mrb[26].mxu1  ;;  %v5225_v34 = vpop.f32.mrb[146].mxu0 }
 0x756   : > { %v19667_v52 = vadd.f32 %v4269_v25, %v19510_v55  ;;  %6940 = vmatprep.subr.bf16.mxu0 %v17185_v10  ;;  %v14841_v32 = vpop.f32.mrb[27].mxu1  ;;  %v5226_v44 = vpop.f32.mrb[147].mxu0  ;;  %v16313_v25 = vld [vmem:[%s22213_s4 + $0x488] ss:$8 sps:$4 sm:$0xff]  }
 0x758   : > { %14995 = vmatmul.mubr.bf16.gmra.mrb[132].mxu1 %v5234_v12  ;;  %6637 = vmatmul.mubr.bf16.gmra.mrb[252].mxu0 %v16303_v53 }
 0x759   : > { %6941 = vmatpush1.bf16.msra.mxu0 %v18376_v31  ;;  %15014 = vmatprep.mubr.msk.bf16.mxu1 %vm17184_vm2, %v17182_v1 }
 0x75a   : > { %6942 = vmatprep.subr.bf16.mxu0 %v17185_v10  ;;  %12852 = vmatprep.mubr.msk.bf16.mxu0 %vm3005_vm5, %v12845_v48 }
 0x75b   : > { %v4274_v59 = vpop.f32.mrb[28].mxu1  ;;  %v5530_v55 = vpop.f32.mrb[148].mxu0 }
 0x75c   : > { %v19676_v30 = vadd.f32 %v4274_v59, %v19519_v29  ;;  %v14844_v13 = vpop.f32.mrb[29].mxu1  ;;  %v5532_v60 = vpop.f32.mrb[149].mxu0  ;;  %v16312_v29 = vld [vmem:[%s22213_s4 + $0x47c] ss:$8 sps:$4 sm:$0xff]  }
 0x75d   : > { %6943 = vmatpush1.bf16.msra.mxu0 %v18384_v7  ;;  %v4277_v26 = vpop.f32.mrb[30].mxu1  ;;  %v5533_v2 = vpop.f32.mrb[150].mxu0  ;;  %v16318_v59 = vld [vmem:[%s22213_s4 + $0x49c] ss:$8 sps:$4 sm:$0xff]  }
 0x75e   : > { %v19680_v8 = vadd.f32 %v4277_v26, %v19523_v56  ;;  %v5584_v27 = vpack.c.bf16 %v5533_v2, %v5530_v55  ;;  %6944 = vmatprep.subr.bf16.mxu0 %v17185_v10  ;;  %v14845_v4 = vpop.f32.mrb[31].mxu1  ;;  %v5535_v16 = vpop.f32.mrb[151].mxu0  ;;  %v16325_v55 = vld [vmem:[%s22214_s5 + $0x218] sm:$0xff]   ;;  %v16329_v60 = vld [vmem:[%s22214_s5 + $0x220] sm:$0xff]  }
 0x760   : > { %15015 = vmatmul.mubr.bf16.vlgmr.msra.gmra.mrb[136].mxu1 %v5584_v27  ;;  %6645 = vmatmul.mubr.bf16.gmra.mrb[0].mxu0 %v12844_v63  ;;  %v16316_v27 = vld [vmem:[%s22213_s4 + $0x498] ss:$8 sps:$4 sm:$0xff]  }
 0x761   : > { %6945 = vmatpush1.bf16.msra.mxu0 %v18392_v36  ;;  %15018 = vmatprep.mubr.msk.bf16.mxu1 %vm17184_vm2, %v17182_v1 }
 0x762   : > { %12904 = vmatprep.mubr.msk.bf16.mxu0 %vm3005_vm5, %v16312_v29  ;;  %7276 = vmatprep.subr.bf16.mxu0 %v17185_v10 }
 0x763   : > { %v4282_v56 = vpop.f32.mrb[32].mxu1  ;;  %v5538_v39 = vpop.f32.mrb[152].mxu0  ;;  %15043 = vmatpush3.bf16.msra.mxu1 %v16319_v33 }
 0x764   : > { %v19698_v18 = vadd.f32 %v4282_v56, %v19541_v58  ;;  %v14848_v37 = vpop.f32.mrb[33].mxu1  ;;  %v5540_v5 = vpop.f32.mrb[153].mxu0  ;;  %15044 = vmatprep.subr.bf16.mxu1 %v17182_v1  ;;  %v16315_v58 = vld [vmem:[%s22213_s4 + $0x48c] ss:$8 sps:$4 sm:$0xff]  }
 0x765   : > { %v4285_v57 = vpop.f32.mrb[34].mxu1  ;;  %v5541_v11 = vpop.f32.mrb[154].mxu0 }
 0x766   : > { %v19705_v43 = vadd.f32 %v4285_v57, %v19548_v50  ;;  %v5585_v45 = vpack.c.bf16 %v5541_v11, %v5538_v39  ;;  %v14849_v51 = vpop.f32.mrb[35].mxu1  ;;  %v5543_v24 = vpop.f32.mrb[155].mxu0  ;;  %v16323_v39 = vld [vmem:[%s22213_s4 + $0x4ac] ss:$8 sps:$4 sm:$0xff]   ;;  %v16321_v11 = vld [vmem:[%s22213_s4 + $0x4a8] ss:$8 sps:$4 sm:$0xff]  }
 0x767   : > { %15045 = vmatpush3.bf16.msra.mxu1 %v16320_v35  ;;  %v16330_v35 = vld [vmem:[%s22214_s5 + $0x228] sm:$0xff]  }
 0x768   : > { %15019 = vmatmul.mubr.bf16.gmra.mrb[140].mxu1 %v5585_v45  ;;  %6953 = vmatmul.mubr.bf16.vlgmr.msra.gmra.mrb[4].mxu0 %v16310_v23 }
 0x769   : > { %7277 = vmatpush1.bf16.msra.mxu0 %v18292_v17  ;;  %15022 = vmatprep.mubr.msk.bf16.mxu1 %vm17184_vm2, %v17182_v1 }
 0x76a   : > { %7278 = vmatprep.subr.bf16.mxu0 %v17185_v10  ;;  %12905 = vmatprep.mubr.msk.bf16.mxu0 %vm3005_vm5, %v16315_v58 }
 0x76b   : > { %v4290_v50 = vpop.f32.mrb[36].mxu1  ;;  %v5546_v19 = vpop.f32.mrb[156].mxu0  ;;  %15046 = vmatprep.subr.bf16.mxu1 %v17182_v1 }
 0x76c   : > { %v19720_v21 = vadd.f32 %v4290_v50, %v19563_v38  ;;  %v14852_v53 = vpop.f32.mrb[37].mxu1  ;;  %v5548_v14 = vpop.f32.mrb[157].mxu0  ;;  %15047 = vmatpush3.bf16.msra.mxu1 %v16324_v6  ;;  %v16328_v50 = vld [vmem:[%s22213_s4 + $0x4bc] ss:$8 sps:$4 sm:$0xff]  }
 0x76d   : > { %7279 = vmatpush1.bf16.msra.mxu0 %v18300_v0  ;;  %v4293_v34 = vpop.f32.mrb[38].mxu1  ;;  %v5549_v12 = vpop.f32.mrb[158].mxu0  ;;  %15048 = vmatprep.subr.bf16.mxu1 %v17182_v1  ;;  %v16335_v14 = vld [vmem:[%s22214_s5 + $0x238] sm:$0xff]  }
 0x76e   : > { %v19728_v32 = vadd.f32 %v4293_v34, %v19571_v42  ;;  %v5586_v44 = vpack.c.bf16 %v5549_v12, %v5546_v19  ;;  %7280 = vmatprep.subr.bf16.mxu0 %v17185_v10  ;;  %v14853_v38 = vpop.f32.mrb[39].mxu1  ;;  %v5551_v48 = vpop.f32.mrb[159].mxu0  ;;  %v16334_v19 = vld [vmem:[%s22214_s5 + $0x230] sm:$0xff]   ;;  %v16326_v12 = vld [vmem:[%s22213_s4 + $0x4b8] ss:$8 sps:$4 sm:$0xff]  }
 0x770   : > { %15023 = vmatmul.mubr.bf16.gmra.mrb[144].mxu1 %v5586_v44  ;;  %6961 = vmatmul.mubr.bf16.gmra.mrb[8].mxu0 %v16313_v25 }
 0x771   : > { %7281 = vmatpush1.bf16.msra.mxu0 %v18308_v41  ;;  %15026 = vmatprep.mubr.msk.bf16.mxu1 %vm17184_vm2, %v17182_v1 }
 0x772   : > { %7282 = vmatprep.subr.bf16.mxu0 %v17185_v10  ;;  %12906 = vmatprep.mubr.msk.bf16.mxu0 %vm3005_vm5, %v16318_v59 }
 0x773   : > { %v4298_v42 = vpop.f32.mrb[40].mxu1  ;;  %v5554_v13 = vpop.f32.mrb[160].mxu0  ;;  %15049 = vmatpush3.bf16.msra.mxu1 %v16325_v55 }
 0x774   : > { %v19746_v63 = vadd.f32 %v4298_v42, %v19589_v9  ;;  %v14856_v26 = vpop.f32.mrb[41].mxu1  ;;  %v5556_v2 = vpop.f32.mrb[161].mxu0  ;;  %15050 = vmatprep.subr.bf16.mxu1 %v17182_v1 }
 0x775   : > { %7283 = vmatpush1.bf16.msra.mxu0 %v18316_v47  ;;  %v4301_v4 = vpop.f32.mrb[42].mxu1  ;;  %v5557_v16 = vpop.f32.mrb[162].mxu0  ;;  %v12889_v26 = vld [vmem:[%s22213_s4 + $0x4d8] sm:$0x33] }
 0x776   : > { %v19754_v29 = vadd.f32 %v4301_v4, %v19597_v20  ;;  %v5587_v33 = vpack.c.bf16 %v5557_v16, %v5554_v13  ;;  %7284 = vmatprep.subr.bf16.mxu0 %v17185_v10  ;;  %v14857_v9 = vpop.f32.mrb[43].mxu1  ;;  %v5559_v56 = vpop.f32.mrb[163].mxu0  ;;  %v16331_v4 = vld [vmem:[%s22213_s4 + $0x4c8] ss:$8 sps:$4 sm:$0xff]  }
 0x777   : > { %15051 = vmatpush3.bf16.msra.mxu1 %v16329_v60 }
 0x778   : > { %15027 = vmatmul.mubr.bf16.gmra.mrb[148].mxu1 %v5587_v33  ;;  %6969 = vmatmul.mubr.bf16.gmra.mrb[12].mxu0 %v16316_v27 }
 0x779   : > { %7285 = vmatpush1.bf16.msra.mxu0 %v18324_v3  ;;  %15030 = vmatprep.mubr.msk.bf16.mxu1 %vm17184_vm2, %v17182_v1 }
 0x77a   : > { %7286 = vmatprep.subr.bf16.mxu0 %v17185_v10  ;;  %12907 = vmatprep.mubr.msk.bf16.mxu0 %vm3005_vm5, %v16323_v39 }
 0x77b   : > { %v4306_v20 = vpop.f32.mrb[44].mxu1  ;;  %v5562_v37 = vpop.f32.mrb[164].mxu0  ;;  %15052 = vmatprep.subr.bf16.mxu1 %v17182_v1 }
 0x77c   : > { %v19770_v5 = vadd.f32 %v4306_v20, %v19613_v40  ;;  %v14860_v23 = vpop.f32.mrb[45].mxu1  ;;  %v5564_v57 = vpop.f32.mrb[165].mxu0  ;;  %15053 = vmatpush3.bf16.msra.mxu1 %v16330_v35 }
 0x77d   : > { %7287 = vmatpush1.bf16.msra.mxu0 %v18332_v61  ;;  %v4309_v45 = vpop.f32.mrb[46].mxu1  ;;  %v5565_v51 = vpop.f32.mrb[166].mxu0  ;;  %15054 = vmatprep.subr.bf16.mxu1 %v17182_v1 }
 0x77e   : > { %v19778_v24 = vadd.f32 %v4309_v45, %v19621_v22  ;;  %v5588_v58 = vpack.c.bf16 %v5565_v51, %v5562_v37  ;;  %7288 = vmatprep.subr.bf16.mxu0 %v17185_v10  ;;  %v14861_v40 = vpop.f32.mrb[47].mxu1  ;;  %v5567_v6 = vpop.f32.mrb[167].mxu0  ;;  %v12902_v45 = vcombine.low %v12889_v26, %v12889_v26 }
 0x780   : > { %15031 = vmatmul.mubr.bf16.gmra.mrb[152].mxu1 %v5588_v58  ;;  %6977 = vmatmul.mubr.bf16.gmra.mrb[16].mxu0 %v16321_v11 }
 0x781   : > { %7289 = vmatpush1.bf16.msra.mxu0 %v18344_v62  ;;  %15034 = vmatprep.mubr.msk.bf16.mxu1 %vm17184_vm2, %v17182_v1 }
 0x782   : > { %7290 = vmatprep.subr.bf16.mxu0 %v17185_v10  ;;  %12908 = vmatprep.mubr.msk.bf16.mxu0 %vm3005_vm5, %v16328_v50 }
 0x783   : > { %v4314_v22 = vpop.f32.mrb[48].mxu1  ;;  %v5570_v53 = vpop.f32.mrb[168].mxu0  ;;  %15055 = vmatpush3.bf16.msra.mxu1 %v16334_v19 }
 0x784   : > { %v19796_v25 = vadd.f32 %v4314_v22, %v19639_v49  ;;  %v5572_v34 = vpop.f32.mrb[169].mxu0  ;;  %v14864_v44 = vpop.f32.mrb[49].mxu1  ;;  %15056 = vmatprep.subr.bf16.mxu1 %v17182_v1  ;;  %v16333_v49 = vld [vmem:[%s22213_s4 + $0x4cc] ss:$8 sps:$4 sm:$0xff]   ;;  %v16347_v22 = vld [vmem:[%s22214_s5 + $0x240] sm:$0xff]  }
 0x785   : > { %7291 = vmatpush1.bf16.msra.mxu0 %v18352_v46  ;;  %v5573_v38 = vpop.f32.mrb[170].mxu0  ;;  %v4317_v48 = vpop.f32.mrb[50].mxu1 }
 0x786   : > { %v5589_v59 = vpack.c.bf16 %v5573_v38, %v5570_v53  ;;  %7292 = vmatprep.subr.bf16.mxu0 %v17185_v10  ;;  %v14865_v55 = vpop.f32.mrb[51].mxu1  ;;  %v5575_v42 = vpop.f32.mrb[171].mxu0  ;;  %v16338_v38 = vld [vmem:[%s22213_s4 + $0x4e0] ss:$8 sps:$4 sm:$0xff]  }
 0x787   : > { %15057 = vmatpush3.bf16.msra.mxu1 %v16335_v14  ;;  %v16348_v14 = vld [vmem:[%s22214_s5 + $0x248] sm:$0xff]  }
 0x788   : > { %15035 = vmatmul.mubr.bf16.gmra.mrb[156].mxu1 %v5589_v59  ;;  %6985 = vmatmul.mubr.bf16.gmra.mrb[20].mxu0 %v16326_v12 }
 0x789   : > { %7293 = vmatpush1.bf16.msra.mxu0 %v18360_v28  ;;  %15038 = vmatprep.mubr.msk.bf16.mxu1 %vm17184_vm2, %v17182_v1 }
 0x78a   : > { %7294 = vmatprep.subr.bf16.mxu0 %v17185_v10  ;;  %12909 = vmatprep.mubr.msk.bf16.mxu0 %vm3005_vm5, %v16333_v49 }
 0x78b   : > { %v4622_v13 = vpop.f32.mrb[52].mxu1  ;;  %v5578_v60 = vpop.f32.mrb[172].mxu0  ;;  %15086 = vmatprep.subr.bf16.mxu1 %v17182_v1 }
 0x78c   : > { %v19817_v2 = vadd.f32 %v4622_v13, %v19660_v15  ;;  %v14884_v27 = vpop.f32.mrb[53].mxu1  ;;  %v5580_v16 = vpop.f32.mrb[173].mxu0  ;;  %v5590_v39 = vpack.c.bf16 %v5578_v60, %v5578_v60  ;;  %v12903_v15 = vcombine.high %v12889_v26, %v12889_v26  ;;  %v16352_v60 = vld [vmem:[%s22214_s5 + $0x250] sm:$0xff]  }
 0x78d   : > { %7295 = vmatpush1.bf16.msra.mxu0 %v18368_v54  ;;  %v4625_v33 = vpop.f32.mrb[54].mxu1  ;;  %v5581_v9 = vpop.f32.mrb[174].mxu0 }
 0x78e   : > { %v19824_v56 = vadd.f32 %v4625_v33, %v19667_v52  ;;  %7296 = vmatprep.subr.bf16.mxu0 %v17185_v10  ;;  %v14885_v35 = vpop.f32.mrb[55].mxu1  ;;  %v5582_v20 = vpop.f32.mrb[175].mxu0  ;;  %v16341_v33 = vld [vmem:[%s22213_s4 + $0x4f0] ss:$8 sps:$4 sm:$0xff]  }
 0x790   : > { %15039 = vmatmul.mubr.bf16.gmra.mrb[160].mxu1 %v5590_v39  ;;  %6993 = vmatmul.mubr.bf16.gmra.mrb[24].mxu0 %v16331_v4 }
 0x791   : > { %7297 = vmatpush1.bf16.msra.mxu0 %v18376_v31  ;;  %15058 = vmatprep.mubr.msk.bf16.mxu1 %vm17184_vm2, %v17182_v1 }
 0x792   : > { %7298 = vmatprep.subr.bf16.mxu0 %v17185_v10  ;;  %12910 = vmatprep.mubr.msk.bf16.mxu0 %vm3005_vm5, %v12903_v15 }
 0x793   : > { %v4630_v37 = vpop.f32.mrb[56].mxu1  ;;  %v5886_v52 = vpop.f32.mrb[176].mxu0 }
 0x794   : > { %v19833_v23 = vadd.f32 %v4630_v37, %v19676_v30  ;;  %v14888_v57 = vpop.f32.mrb[57].mxu1  ;;  %v5888_v11 = vpop.f32.mrb[177].mxu0  ;;  %v16340_v30 = vld [vmem:[%s22213_s4 + $0x4e4] ss:$8 sps:$4 sm:$0xff]  }
 0x795   : > { %7299 = vmatpush1.bf16.msra.mxu0 %v18384_v7  ;;  %v4633_v51 = vpop.f32.mrb[58].mxu1  ;;  %v5889_v58 = vpop.f32.mrb[178].mxu0  ;;  %v16346_v37 = vld [vmem:[%s22213_s4 + $0x504] ss:$8 sps:$4 sm:$0xff]  }
 0x796   : > { %v19837_v40 = vadd.f32 %v4633_v51, %v19680_v8  ;;  %v5940_v6 = vpack.c.bf16 %v5889_v58, %v5886_v52  ;;  %7300 = vmatprep.subr.bf16.mxu0 %v17185_v10  ;;  %v14889_v50 = vpop.f32.mrb[59].mxu1  ;;  %v5891_v19 = vpop.f32.mrb[179].mxu0  ;;  %v16353_v52 = vld [vmem:[%s22214_s5 + $0x258] sm:$0xff]   ;;  %v16357_v11 = vld [vmem:[%s22214_s5 + $0x260] sm:$0xff]  }
 0x798   : > { %15059 = vmatmul.mubr.bf16.vlgmr.msra.gmra.mrb[164].mxu1 %v5940_v6  ;;  %7001 = vmatmul.mubr.bf16.gmra.mrb[28].mxu0 %v12902_v45  ;;  %v16344_v6 = vld [vmem:[%s22213_s4 + $0x500] ss:$8 sps:$4 sm:$0xff]  }
 0x799   : > { %7301 = vmatpush1.bf16.msra.mxu0 %v18392_v36  ;;  %15062 = vmatprep.mubr.msk.bf16.mxu1 %vm17184_vm2, %v17182_v1 }
 0x79a   : > { %12962 = vmatprep.mubr.msk.bf16.mxu0 %vm3005_vm5, %v16340_v30  ;;  %7632 = vmatprep.subr.bf16.mxu0 %v17185_v10 }
 0x79b   : > { %v4638_v8 = vpop.f32.mrb[60].mxu1  ;;  %v5894_v53 = vpop.f32.mrb[180].mxu0  ;;  %15087 = vmatpush3.bf16.msra.mxu1 %v16347_v22 }
 0x79c   : > { %v19855_v34 = vadd.f32 %v4638_v8, %v19698_v18  ;;  %v14892_v12 = vpop.f32.mrb[61].mxu1  ;;  %v5896_v44 = vpop.f32.mrb[181].mxu0  ;;  %15088 = vmatprep.subr.bf16.mxu1 %v17182_v1  ;;  %v16343_v18 = vld [vmem:[%s22213_s4 + $0x4f4] ss:$8 sps:$4 sm:$0xff]  }
 0x79d   : > { %v4641_v48 = vpop.f32.mrb[62].mxu1  ;;  %v5897_v59 = vpop.f32.mrb[182].mxu0 }
 0x79e   : > { %v19862_v55 = vadd.f32 %v4641_v48, %v19705_v43  ;;  %v5941_v42 = vpack.c.bf16 %v5897_v59, %v5894_v53  ;;  %v14893_v49 = vpop.f32.mrb[63].mxu1  ;;  %v5899_v13 = vpop.f32.mrb[183].mxu0  ;;  %v16351_v53 = vld [vmem:[%s22213_s4 + $0x514] ss:$8 sps:$4 sm:$0xff]   ;;  %v16349_v59 = vld [vmem:[%s22213_s4 + $0x510] ss:$8 sps:$4 sm:$0xff]  }
 0x79f   : > { %15089 = vmatpush3.bf16.msra.mxu1 %v16348_v14  ;;  %v16358_v14 = vld [vmem:[%s22214_s5 + $0x268] sm:$0xff]  }
 0x7a0   : > { %15063 = vmatmul.mubr.bf16.gmra.mrb[168].mxu1 %v5941_v42  ;;  %7309 = vmatmul.mubr.bf16.vlgmr.msra.gmra.mrb[32].mxu0 %v16338_v38 }
 0x7a1   : > { %7633 = vmatpush1.bf16.msra.mxu0 %v18292_v17  ;;  %15066 = vmatprep.mubr.msk.bf16.mxu1 %vm17184_vm2, %v17182_v1 }
 0x7a2   : > { %7634 = vmatprep.subr.bf16.mxu0 %v17185_v10  ;;  %12963 = vmatprep.mubr.msk.bf16.mxu0 %vm3005_vm5, %v16343_v18 }
 0x7a3   : > { %v4646_v43 = vpop.f32.mrb[64].mxu1  ;;  %v5902_v26 = vpop.f32.mrb[184].mxu0  ;;  %15090 = vmatprep.subr.bf16.mxu1 %v17182_v1 }
 0x7a4   : > { %v19877_v27 = vadd.f32 %v4646_v43, %v19720_v21  ;;  %v14896_v4 = vpop.f32.mrb[65].mxu1  ;;  %v5904_v16 = vpop.f32.mrb[185].mxu0  ;;  %15091 = vmatpush3.bf16.msra.mxu1 %v16352_v60  ;;  %v16356_v43 = vld [vmem:[%s22213_s4 + $0x524] ss:$8 sps:$4 sm:$0xff]  }
 0x7a5   : > { %7635 = vmatpush1.bf16.msra.mxu0 %v18300_v0  ;;  %v4649_v9 = vpop.f32.mrb[66].mxu1  ;;  %v5905_v39 = vpop.f32.mrb[186].mxu0  ;;  %15092 = vmatprep.subr.bf16.mxu1 %v17182_v1  ;;  %v16363_v16 = vld [vmem:[%s22214_s5 + $0x278] sm:$0xff]  }
 0x7a6   : > { %v19885_v35 = vadd.f32 %v4649_v9, %v19728_v32  ;;  %v5942_v20 = vpack.c.bf16 %v5905_v39, %v5902_v26  ;;  %7636 = vmatprep.subr.bf16.mxu0 %v17185_v10  ;;  %v14897_v21 = vpop.f32.mrb[67].mxu1  ;;  %v5907_v15 = vpop.f32.mrb[187].mxu0  ;;  %v16362_v26 = vld [vmem:[%s22214_s5 + $0x270] sm:$0xff]   ;;  %v16354_v39 = vld [vmem:[%s22213_s4 + $0x520] ss:$8 sps:$4 sm:$0xff]  }
 0x7a8   : > { %15067 = vmatmul.mubr.bf16.gmra.mrb[172].mxu1 %v5942_v20  ;;  %7317 = vmatmul.mubr.bf16.gmra.mrb[36].mxu0 %v16341_v33 }
 0x7a9   : > { %7637 = vmatpush1.bf16.msra.mxu0 %v18308_v41  ;;  %15070 = vmatprep.mubr.msk.bf16.mxu1 %vm17184_vm2, %v17182_v1 }
 0x7aa   : > { %7638 = vmatprep.subr.bf16.mxu0 %v17185_v10  ;;  %12964 = vmatprep.mubr.msk.bf16.mxu0 %vm3005_vm5, %v16346_v37 }
 0x7ab   : > { %v4654_v32 = vpop.f32.mrb[68].mxu1  ;;  %v5910_v57 = vpop.f32.mrb[188].mxu0  ;;  %15093 = vmatpush3.bf16.msra.mxu1 %v16353_v52 }
 0x7ac   : > { %v19903_v45 = vadd.f32 %v4654_v32, %v19746_v63  ;;  %v14900_v51 = vpop.f32.mrb[69].mxu1  ;;  %v5912_v58 = vpop.f32.mrb[189].mxu0  ;;  %15094 = vmatprep.subr.bf16.mxu1 %v17182_v1 }
 0x7ad   : > { %7639 = vmatpush1.bf16.msra.mxu0 %v18316_v47  ;;  %v4657_v50 = vpop.f32.mrb[70].mxu1  ;;  %v5913_v19 = vpop.f32.mrb[190].mxu0  ;;  %v12947_v51 = vld [vmem:[%s22213_s4 + $0x540] sm:$0x33] }
 0x7ae   : > { %v19911_v30 = vadd.f32 %v4657_v50, %v19754_v29  ;;  %v5943_v22 = vpack.c.bf16 %v5913_v19, %v5910_v57  ;;  %7640 = vmatprep.subr.bf16.mxu0 %v17185_v10  ;;  %v14901_v63 = vpop.f32.mrb[71].mxu1  ;;  %v5915_v8 = vpop.f32.mrb[191].mxu0  ;;  %v16359_v50 = vld [vmem:[%s22213_s4 + $0x530] ss:$8 sps:$4 sm:$0xff]  }
 0x7af   : > { %15095 = vmatpush3.bf16.msra.mxu1 %v16357_v11 }
 0x7b0   : > { %15071 = vmatmul.mubr.bf16.gmra.mrb[176].mxu1 %v5943_v22  ;;  %7325 = vmatmul.mubr.bf16.gmra.mrb[40].mxu0 %v16344_v6 }
 0x7b1   : > { %7641 = vmatpush1.bf16.msra.mxu0 %v18324_v3  ;;  %15074 = vmatprep.mubr.msk.bf16.mxu1 %vm17184_vm2, %v17182_v1 }
 0x7b2   : > { %7642 = vmatprep.subr.bf16.mxu0 %v17185_v10  ;;  %12965 = vmatprep.mubr.msk.bf16.mxu0 %vm3005_vm5, %v16351_v53 }
 0x7b3   : > { %v4662_v29 = vpop.f32.mrb[72].mxu1  ;;  %v5918_v12 = vpop.f32.mrb[192].mxu0  ;;  %15096 = vmatprep.subr.bf16.mxu1 %v17182_v1 }
 0x7b4   : > { %v19927_v44 = vadd.f32 %v4662_v29, %v19770_v5  ;;  %v14904_v38 = vpop.f32.mrb[73].mxu1  ;;  %v5920_v48 = vpop.f32.mrb[193].mxu0  ;;  %15097 = vmatpush3.bf16.msra.mxu1 %v16358_v14 }
 0x7b5   : > { %7643 = vmatpush1.bf16.msra.mxu0 %v18332_v61  ;;  %v4665_v42 = vpop.f32.mrb[74].mxu1  ;;  %v5921_v49 = vpop.f32.mrb[194].mxu0  ;;  %15098 = vmatprep.subr.bf16.mxu1 %v17182_v1 }
 0x7b6   : > { %v19935_v13 = vadd.f32 %v4665_v42, %v19778_v24  ;;  %v5944_v18 = vpack.c.bf16 %v5921_v49, %v5918_v12  ;;  %7644 = vmatprep.subr.bf16.mxu0 %v17185_v10  ;;  %v14905_v5 = vpop.f32.mrb[75].mxu1  ;;  %v5923_v60 = vpop.f32.mrb[195].mxu0  ;;  %v12960_v42 = vcombine.low %v12947_v51, %v12947_v51 }
 0x7b8   : > { %15075 = vmatmul.mubr.bf16.gmra.mrb[180].mxu1 %v5944_v18  ;;  %7333 = vmatmul.mubr.bf16.gmra.mrb[44].mxu0 %v16349_v59 }
 0x7b9   : > { %7645 = vmatpush1.bf16.msra.mxu0 %v18344_v62  ;;  %15078 = vmatprep.mubr.msk.bf16.mxu1 %vm17184_vm2, %v17182_v1 }
 0x7ba   : > { %7646 = vmatprep.subr.bf16.mxu0 %v17185_v10  ;;  %12966 = vmatprep.mubr.msk.bf16.mxu0 %vm3005_vm5, %v16356_v43 }
 0x7bb   : > { %v4670_v24 = vpop.f32.mrb[76].mxu1  ;;  %v5926_v4 = vpop.f32.mrb[196].mxu0  ;;  %15099 = vmatpush3.bf16.msra.mxu1 %v16362_v26 }
 0x7bc   : > { %v19953_v33 = vadd.f32 %v4670_v24, %v19796_v25  ;;  %v5928_v9 = vpop.f32.mrb[197].mxu0  ;;  %v14908_v20 = vpop.f32.mrb[77].mxu1  ;;  %15100 = vmatprep.subr.bf16.mxu1 %v17182_v1  ;;  %v16361_v25 = vld [vmem:[%s22213_s4 + $0x534] ss:$8 sps:$4 sm:$0xff]   ;;  %v16375_v24 = vld [vmem:[%s22214_s5 + $0x280] sm:$0xff]  }
 0x7bd   : > { %7647 = vmatpush1.bf16.msra.mxu0 %v18352_v46  ;;  %v5929_v21 = vpop.f32.mrb[198].mxu0  ;;  %v4673_v15 = vpop.f32.mrb[78].mxu1 }
 0x7be   : > { %v5945_v37 = vpack.c.bf16 %v5929_v21, %v5926_v4  ;;  %7648 = vmatprep.subr.bf16.mxu0 %v17185_v10  ;;  %v14909_v52 = vpop.f32.mrb[79].mxu1  ;;  %v5931_v32 = vpop.f32.mrb[199].mxu0  ;;  %v16366_v21 = vld [vmem:[%s22213_s4 + $0x548] ss:$8 sps:$4 sm:$0xff]  }
 0x7bf   : > { %15101 = vmatpush3.bf16.msra.mxu1 %v16363_v16  ;;  %v16376_v16 = vld [vmem:[%s22214_s5 + $0x288] sm:$0xff]  }
 0x7c0   : > { %15079 = vmatmul.mubr.bf16.gmra.mrb[184].mxu1 %v5945_v37  ;;  %7341 = vmatmul.mubr.bf16.gmra.mrb[48].mxu0 %v16354_v39 }
 0x7c1   : > { %7649 = vmatpush1.bf16.msra.mxu0 %v18360_v28  ;;  %15082 = vmatprep.mubr.msk.bf16.mxu1 %vm17184_vm2, %v17182_v1 }
 0x7c2   : > { %7650 = vmatprep.subr.bf16.mxu0 %v17185_v10  ;;  %12967 = vmatprep.mubr.msk.bf16.mxu0 %vm3005_vm5, %v16361_v25 }
 0x7c3   : > { %v4978_v57 = vpop.f32.mrb[80].mxu1  ;;  %v5934_v11 = vpop.f32.mrb[200].mxu0  ;;  %15130 = vmatprep.subr.bf16.mxu1 %v17182_v1 }
 0x7c4   : > { %v19974_v58 = vadd.f32 %v4978_v57, %v19817_v2  ;;  %v14928_v6 = vpop.f32.mrb[81].mxu1  ;;  %v5936_v19 = vpop.f32.mrb[201].mxu0  ;;  %v5946_v53 = vpack.c.bf16 %v5934_v11, %v5934_v11  ;;  %v12961_v2 = vcombine.high %v12947_v51, %v12947_v51  ;;  %v16380_v11 = vld [vmem:[%s22214_s5 + $0x290] sm:$0xff]  }
 0x7c5   : > { %7651 = vmatpush1.bf16.msra.mxu0 %v18368_v54  ;;  %v4981_v22 = vpop.f32.mrb[82].mxu1  ;;  %v5937_v63 = vpop.f32.mrb[202].mxu0 }
 0x7c6   : > { %v19981_v8 = vadd.f32 %v4981_v22, %v19824_v56  ;;  %7652 = vmatprep.subr.bf16.mxu0 %v17185_v10  ;;  %v14929_v14 = vpop.f32.mrb[83].mxu1  ;;  %v5938_v29 = vpop.f32.mrb[203].mxu0  ;;  %v16369_v22 = vld [vmem:[%s22213_s4 + $0x558] ss:$8 sps:$4 sm:$0xff]  }
 0x7c8   : > { %15083 = vmatmul.mubr.bf16.gmra.mrb[188].mxu1 %v5946_v53  ;;  %7349 = vmatmul.mubr.bf16.gmra.mrb[52].mxu0 %v16359_v50 }
 0x7c9   : > { %7653 = vmatpush1.bf16.msra.mxu0 %v18376_v31  ;;  %15102 = vmatprep.mubr.msk.bf16.mxu1 %vm17184_vm2, %v17182_v1 }
 0x7ca   : > { %7654 = vmatprep.subr.bf16.mxu0 %v17185_v10  ;;  %12968 = vmatprep.mubr.msk.bf16.mxu0 %vm3005_vm5, %v12961_v2 }
 0x7cb   : > { %v4986_v12 = vpop.f32.mrb[84].mxu1  ;;  %v6242_v56 = vpop.f32.mrb[204].mxu0 }
 0x7cc   : > { %v19990_v38 = vadd.f32 %v4986_v12, %v19833_v23  ;;  %v14932_v48 = vpop.f32.mrb[85].mxu1  ;;  %v6244_v59 = vpop.f32.mrb[205].mxu0  ;;  %v16368_v23 = vld [vmem:[%s22213_s4 + $0x54c] ss:$8 sps:$4 sm:$0xff]  }
 0x7cd   : > { %7655 = vmatpush1.bf16.msra.mxu0 %v18384_v7  ;;  %v4989_v49 = vpop.f32.mrb[86].mxu1  ;;  %v6245_v18 = vpop.f32.mrb[206].mxu0  ;;  %v16374_v12 = vld [vmem:[%s22213_s4 + $0x56c] ss:$8 sps:$4 sm:$0xff]   ;;  %v16385_v59 = vld [vmem:[%s22214_s5 + $0x2a0] sm:$0xff]  }
 0x7ce   : > { %v19994_v5 = vadd.f32 %v4989_v49, %v19837_v40  ;;  %v6296_v60 = vpack.c.bf16 %v6245_v18, %v6242_v56  ;;  %7656 = vmatprep.subr.bf16.mxu0 %v17185_v10  ;;  %v14933_v43 = vpop.f32.mrb[87].mxu1  ;;  %v6247_v26 = vpop.f32.mrb[207].mxu0  ;;  %v16381_v56 = vld [vmem:[%s22214_s5 + $0x298] sm:$0xff]  }
 0x7d0   : > { %15103 = vmatmul.mubr.bf16.vlgmr.msra.gmra.mrb[192].mxu1 %v6296_v60  ;;  %7357 = vmatmul.mubr.bf16.gmra.mrb[56].mxu0 %v12960_v42  ;;  %v16372_v60 = vld [vmem:[%s22213_s4 + $0x568] ss:$8 sps:$4 sm:$0xff]  }
 0x7d1   : > { %7657 = vmatpush1.bf16.msra.mxu0 %v18392_v36  ;;  %15106 = vmatprep.mubr.msk.bf16.mxu1 %vm17184_vm2, %v17182_v1 }
 0x7d2   : > { %13020 = vmatprep.mubr.msk.bf16.mxu0 %vm3005_vm5, %v16368_v23  ;;  %7988 = vmatprep.subr.bf16.mxu0 %v17185_v10 }
 0x7d3   : > { %v4994_v40 = vpop.f32.mrb[88].mxu1  ;;  %v6250_v4 = vpop.f32.mrb[208].mxu0  ;;  %15131 = vmatpush3.bf16.msra.mxu1 %v16375_v24 }
 0x7d4   : > { %v20012_v9 = vadd.f32 %v4994_v40, %v19855_v34  ;;  %v14936_v39 = vpop.f32.mrb[89].mxu1  ;;  %v6252_v20 = vpop.f32.mrb[209].mxu0  ;;  %15132 = vmatprep.subr.bf16.mxu1 %v17182_v1  ;;  %v16371_v34 = vld [vmem:[%s22213_s4 + $0x55c] ss:$8 sps:$4 sm:$0xff]  }
 0x7d5   : > { %v4997_v15 = vpop.f32.mrb[90].mxu1  ;;  %v6253_v37 = vpop.f32.mrb[210].mxu0 }
 0x7d6   : > { %v20019_v52 = vadd.f32 %v4997_v15, %v19862_v55  ;;  %v6297_v32 = vpack.c.bf16 %v6253_v37, %v6250_v4  ;;  %v14937_v25 = vpop.f32.mrb[91].mxu1  ;;  %v6255_v57 = vpop.f32.mrb[211].mxu0  ;;  %v16379_v4 = vld [vmem:[%s22213_s4 + $0x57c] ss:$8 sps:$4 sm:$0xff]   ;;  %v16377_v37 = vld [vmem:[%s22213_s4 + $0x578] ss:$8 sps:$4 sm:$0xff]  }
 0x7d7   : > { %15133 = vmatpush3.bf16.msra.mxu1 %v16376_v16  ;;  %v16386_v16 = vld [vmem:[%s22214_s5 + $0x2a8] sm:$0xff]  }
 0x7d8   : > { %15107 = vmatmul.mubr.bf16.gmra.mrb[196].mxu1 %v6297_v32  ;;  %7665 = vmatmul.mubr.bf16.vlgmr.msra.gmra.mrb[60].mxu0 %v16366_v21 }
 0x7d9   : > { %7989 = vmatpush1.bf16.msra.mxu0 %v18292_v17  ;;  %15110 = vmatprep.mubr.msk.bf16.mxu1 %vm17184_vm2, %v17182_v1 }
 0x7da   : > { %7990 = vmatprep.subr.bf16.mxu0 %v17185_v10  ;;  %13021 = vmatprep.mubr.msk.bf16.mxu0 %vm3005_vm5, %v16371_v34 }
 0x7db   : > { %v5002_v55 = vpop.f32.mrb[92].mxu1  ;;  %v6258_v51 = vpop.f32.mrb[212].mxu0  ;;  %15134 = vmatprep.subr.bf16.mxu1 %v17182_v1 }
 0x7dc   : > { %v20034_v6 = vadd.f32 %v5002_v55, %v19877_v27  ;;  %v14940_v50 = vpop.f32.mrb[93].mxu1  ;;  %v6260_v19 = vpop.f32.mrb[213].mxu0  ;;  %15135 = vmatpush3.bf16.msra.mxu1 %v16380_v11  ;;  %v16384_v55 = vld [vmem:[%s22213_s4 + $0x58c] ss:$8 sps:$4 sm:$0xff]  }
 0x7dd   : > { %7991 = vmatpush1.bf16.msra.mxu0 %v18300_v0  ;;  %v5005_v63 = vpop.f32.mrb[94].mxu1  ;;  %v6261_v53 = vpop.f32.mrb[214].mxu0  ;;  %15136 = vmatprep.subr.bf16.mxu1 %v17182_v1  ;;  %v16391_v19 = vld [vmem:[%s22214_s5 + $0x2b8] sm:$0xff]  }
 0x7de   : > { %v20042_v14 = vadd.f32 %v5005_v63, %v19885_v35  ;;  %v6298_v29 = vpack.c.bf16 %v6261_v53, %v6258_v51  ;;  %7992 = vmatprep.subr.bf16.mxu0 %v17185_v10  ;;  %v14941_v27 = vpop.f32.mrb[95].mxu1  ;;  %v6263_v2 = vpop.f32.mrb[215].mxu0  ;;  %v16390_v51 = vld [vmem:[%s22214_s5 + $0x2b0] sm:$0xff]  }
 0x7df   : > { %v16382_v53 = vld [vmem:[%s22213_s4 + $0x588] ss:$8 sps:$4 sm:$0xff]  }
 0x7e0   : > { %15111 = vmatmul.mubr.bf16.gmra.mrb[200].mxu1 %v6298_v29  ;;  %7673 = vmatmul.mubr.bf16.gmra.mrb[64].mxu0 %v16369_v22 }
 0x7e1   : > { %7993 = vmatpush1.bf16.msra.mxu0 %v18308_v41  ;;  %15114 = vmatprep.mubr.msk.bf16.mxu1 %vm17184_vm2, %v17182_v1 }
 0x7e2   : > { %7994 = vmatprep.subr.bf16.mxu0 %v17185_v10  ;;  %13022 = vmatprep.mubr.msk.bf16.mxu0 %vm3005_vm5, %v16374_v12 }
 0x7e3   : > { %v5010_v35 = vpop.f32.mrb[96].mxu1  ;;  %v6266_v48 = vpop.f32.mrb[216].mxu0  ;;  %15137 = vmatpush3.bf16.msra.mxu1 %v16381_v56 }
 0x7e4   : > { %v20060_v42 = vadd.f32 %v5010_v35, %v19903_v45  ;;  %v14944_v49 = vpop.f32.mrb[97].mxu1  ;;  %v6268_v18 = vpop.f32.mrb[217].mxu0  ;;  %15138 = vmatprep.subr.bf16.mxu1 %v17182_v1 }
 0x7e5   : > { %7995 = vmatpush1.bf16.msra.mxu0 %v18316_v47  ;;  %v5013_v43 = vpop.f32.mrb[98].mxu1  ;;  %v6269_v26 = vpop.f32.mrb[218].mxu0  ;;  %v13005_v49 = vld [vmem:[%s22213_s4 + $0x5a8] sm:$0x33] }
 0x7e6   : > { %v20068_v23 = vadd.f32 %v5013_v43, %v19911_v30  ;;  %v6299_v24 = vpack.c.bf16 %v6269_v26, %v6266_v48  ;;  %7996 = vmatprep.subr.bf16.mxu0 %v17185_v10  ;;  %v14945_v45 = vpop.f32.mrb[99].mxu1  ;;  %v6271_v40 = vpop.f32.mrb[219].mxu0  ;;  %v16387_v43 = vld [vmem:[%s22213_s4 + $0x598] ss:$8 sps:$4 sm:$0xff]  }
 0x7e7   : > { %15139 = vmatpush3.bf16.msra.mxu1 %v16385_v59 }
 0x7e8   : > { %15115 = vmatmul.mubr.bf16.gmra.mrb[204].mxu1 %v6299_v24  ;;  %7681 = vmatmul.mubr.bf16.gmra.mrb[68].mxu0 %v16372_v60 }
 0x7e9   : > { %7997 = vmatpush1.bf16.msra.mxu0 %v18324_v3  ;;  %15118 = vmatprep.mubr.msk.bf16.mxu1 %vm17184_vm2, %v17182_v1 }
 0x7ea   : > { %7998 = vmatprep.subr.bf16.mxu0 %v17185_v10  ;;  %13023 = vmatprep.mubr.msk.bf16.mxu0 %vm3005_vm5, %v16379_v4 }
 0x7eb   : > { %v5018_v30 = vpop.f32.mrb[100].mxu1  ;;  %v6274_v39 = vpop.f32.mrb[220].mxu0  ;;  %15140 = vmatprep.subr.bf16.mxu1 %v17182_v1 }
 0x7ec   : > { %v20084_v20 = vadd.f32 %v5018_v30, %v19927_v44  ;;  %v14948_v21 = vpop.f32.mrb[101].mxu1  ;;  %v6276_v15 = vpop.f32.mrb[221].mxu0  ;;  %15141 = vmatpush3.bf16.msra.mxu1 %v16386_v16 }
 0x7ed   : > { %7999 = vmatpush1.bf16.msra.mxu0 %v18332_v61  ;;  %v5021_v32 = vpop.f32.mrb[102].mxu1  ;;  %v6277_v25 = vpop.f32.mrb[222].mxu0  ;;  %15142 = vmatprep.subr.bf16.mxu1 %v17182_v1 }
 0x7ee   : > { %v20092_v57 = vadd.f32 %v5021_v32, %v19935_v13  ;;  %v6300_v34 = vpack.c.bf16 %v6277_v25, %v6274_v39  ;;  %8000 = vmatprep.subr.bf16.mxu0 %v17185_v10  ;;  %v14949_v44 = vpop.f32.mrb[103].mxu1  ;;  %v6279_v11 = vpop.f32.mrb[223].mxu0  ;;  %v13018_v32 = vcombine.low %v13005_v49, %v13005_v49 }
 0x7f0   : > { %15119 = vmatmul.mubr.bf16.gmra.mrb[208].mxu1 %v6300_v34  ;;  %7689 = vmatmul.mubr.bf16.gmra.mrb[72].mxu0 %v16377_v37 }
 0x7f1   : > { %8001 = vmatpush1.bf16.msra.mxu0 %v18344_v62  ;;  %15122 = vmatprep.mubr.msk.bf16.mxu1 %vm17184_vm2, %v17182_v1 }
 0x7f2   : > { %8002 = vmatprep.subr.bf16.mxu0 %v17185_v10  ;;  %13024 = vmatprep.mubr.msk.bf16.mxu0 %vm3005_vm5, %v16384_v55 }
 0x7f3   : > { %v5026_v13 = vpop.f32.mrb[104].mxu1  ;;  %v6282_v50 = vpop.f32.mrb[224].mxu0  ;;  %15143 = vmatpush3.bf16.msra.mxu1 %v16390_v51 }
 0x7f4   : > { %v20110_v22 = vadd.f32 %v5026_v13, %v19953_v33  ;;  %v6284_v63 = vpop.f32.mrb[225].mxu0  ;;  %v14952_v29 = vpop.f32.mrb[105].mxu1  ;;  %15144 = vmatprep.subr.bf16.mxu1 %v17182_v1  ;;  %v16389_v33 = vld [vmem:[%s22213_s4 + $0x59c] ss:$8 sps:$4 sm:$0xff]  }
 0x7f5   : > { %8003 = vmatpush1.bf16.msra.mxu0 %v18352_v46  ;;  %v6285_v27 = vpop.f32.mrb[226].mxu0  ;;  %v5029_v2 = vpop.f32.mrb[106].mxu1  ;;  %v16403_v13 = vld [vmem:[%s22214_s5 + $0x2c0] sm:$0xff]  }
 0x7f6   : > { %v6301_v12 = vpack.c.bf16 %v6285_v27, %v6282_v50  ;;  %8004 = vmatprep.subr.bf16.mxu0 %v17185_v10  ;;  %v14953_v56 = vpop.f32.mrb[107].mxu1  ;;  %v6287_v35 = vpop.f32.mrb[227].mxu0  ;;  %v16394_v27 = vld [vmem:[%s22213_s4 + $0x5b0] ss:$8 sps:$4 sm:$0xff]  }
 0x7f7   : > { %15145 = vmatpush3.bf16.msra.mxu1 %v16391_v19  ;;  %v16404_v19 = vld [vmem:[%s22214_s5 + $0x2c8] sm:$0xff]  }
 0x7f8   : > { %15123 = vmatmul.mubr.bf16.gmra.mrb[212].mxu1 %v6301_v12  ;;  %7697 = vmatmul.mubr.bf16.gmra.mrb[76].mxu0 %v16382_v53 }
 0x7f9   : > { %8005 = vmatpush1.bf16.msra.mxu0 %v18360_v28  ;;  %15126 = vmatprep.mubr.msk.bf16.mxu1 %vm17184_vm2, %v17182_v1 }
 0x7fa   : > { %8006 = vmatprep.subr.bf16.mxu0 %v17185_v10  ;;  %13025 = vmatprep.mubr.msk.bf16.mxu0 %vm3005_vm5, %v16389_v33 }
 0x7fb   : > { %v5334_v48 = vpop.f32.mrb[108].mxu1  ;;  %v6290_v59 = vpop.f32.mrb[228].mxu0  ;;  %15174 = vmatprep.subr.bf16.mxu1 %v17182_v1 }
 0x7fc   : > { %v20131_v18 = vadd.f32 %v5334_v48, %v19974_v58  ;;  %v14972_v60 = vpop.f32.mrb[109].mxu1  ;;  %v6292_v26 = vpop.f32.mrb[229].mxu0  ;;  %v6302_v4 = vpack.c.bf16 %v6290_v59, %v6290_v59  ;;  %v13019_v58 = vcombine.high %v13005_v49, %v13005_v49  ;;  %v16408_v59 = vld [vmem:[%s22214_s5 + $0x2d0] sm:$0xff]  }
 0x7fd   : > { %8007 = vmatpush1.bf16.msra.mxu0 %v18368_v54  ;;  %v5337_v24 = vpop.f32.mrb[110].mxu1  ;;  %v6293_v45 = vpop.f32.mrb[230].mxu0 }
 0x7fe   : > { %v20138_v40 = vadd.f32 %v5337_v24, %v19981_v8  ;;  %8008 = vmatprep.subr.bf16.mxu0 %v17185_v10  ;;  %v14973_v16 = vpop.f32.mrb[111].mxu1  ;;  %v6294_v30 = vpop.f32.mrb[231].mxu0  ;;  %v16397_v24 = vld [vmem:[%s22213_s4 + $0x5c0] ss:$8 sps:$4 sm:$0xff]  }
 0x800   : > { %15127 = vmatmul.mubr.bf16.gmra.mrb[216].mxu1 %v6302_v4  ;;  %7705 = vmatmul.mubr.bf16.gmra.mrb[80].mxu0 %v16387_v43 }
 0x801   : > { %8009 = vmatpush1.bf16.msra.mxu0 %v18376_v31  ;;  %15146 = vmatprep.mubr.msk.bf16.mxu1 %vm17184_vm2, %v17182_v1 }
 0x802   : > { %8010 = vmatprep.subr.bf16.mxu0 %v17185_v10  ;;  %13026 = vmatprep.mubr.msk.bf16.mxu0 %vm3005_vm5, %v13019_v58 }
 0x803   : > { %v5342_v39 = vpop.f32.mrb[112].mxu1  ;;  %v6598_v8 = vpop.f32.mrb[232].mxu0 }
 0x804   : > { %v20147_v21 = vadd.f32 %v5342_v39, %v19990_v38  ;;  %v14976_v15 = vpop.f32.mrb[113].mxu1  ;;  %v6600_v37 = vpop.f32.mrb[233].mxu0  ;;  %v16396_v38 = vld [vmem:[%s22213_s4 + $0x5b4] ss:$8 sps:$4 sm:$0xff]  }
 0x805   : > { %8011 = vmatpush1.bf16.msra.mxu0 %v18384_v7  ;;  %v5345_v25 = vpop.f32.mrb[114].mxu1  ;;  %v6601_v34 = vpop.f32.mrb[234].mxu0  ;;  %v16402_v39 = vld [vmem:[%s22213_s4 + $0x5d4] ss:$8 sps:$4 sm:$0xff]   ;;  %v16413_v37 = vld [vmem:[%s22214_s5 + $0x2e0] sm:$0xff]  }
 0x806   : > { %v20151_v44 = vadd.f32 %v5345_v25, %v19994_v5  ;;  %v6652_v11 = vpack.c.bf16 %v6601_v34, %v6598_v8  ;;  %8012 = vmatprep.subr.bf16.mxu0 %v17185_v10  ;;  %v14977_v55 = vpop.f32.mrb[115].mxu1  ;;  %v6603_v51 = vpop.f32.mrb[235].mxu0  ;;  %v16409_v8 = vld [vmem:[%s22214_s5 + $0x2d8] sm:$0xff]  }
 0x808   : > { %15147 = vmatmul.mubr.bf16.vlgmr.msra.gmra.mrb[220].mxu1 %v6652_v11  ;;  %7713 = vmatmul.mubr.bf16.gmra.mrb[84].mxu0 %v13018_v32  ;;  %v16400_v11 = vld [vmem:[%s22213_s4 + $0x5d0] ss:$8 sps:$4 sm:$0xff]  }
 0x809   : > { %8013 = vmatpush1.bf16.msra.mxu0 %v18392_v36  ;;  %15150 = vmatprep.mubr.msk.bf16.mxu1 %vm17184_vm2, %v17182_v1 }
 0x80a   : > { %13078 = vmatprep.mubr.msk.bf16.mxu0 %vm3005_vm5, %v16396_v38  ;;  %8344 = vmatprep.subr.bf16.mxu0 %v17185_v10 }
 0x80b   : > { %v5350_v5 = vpop.f32.mrb[116].mxu1  ;;  %v6606_v50 = vpop.f32.mrb[236].mxu0  ;;  %15175 = vmatpush3.bf16.msra.mxu1 %v16403_v13 }
 0x80c   : > { %v20169_v63 = vadd.f32 %v5350_v5, %v20012_v9  ;;  %v14980_v53 = vpop.f32.mrb[117].mxu1  ;;  %v6608_v29 = vpop.f32.mrb[237].mxu0  ;;  %15176 = vmatprep.subr.bf16.mxu1 %v17182_v1  ;;  %v16399_v9 = vld [vmem:[%s22213_s4 + $0x5c4] ss:$8 sps:$4 sm:$0xff]  }
 0x80d   : > { %v5353_v2 = vpop.f32.mrb[118].mxu1  ;;  %v6609_v12 = vpop.f32.mrb[238].mxu0 }
 0x80e   : > { %v20176_v56 = vadd.f32 %v5353_v2, %v20019_v52  ;;  %v6653_v35 = vpack.c.bf16 %v6609_v12, %v6606_v50  ;;  %v14981_v33 = vpop.f32.mrb[119].mxu1  ;;  %v6611_v48 = vpop.f32.mrb[239].mxu0  ;;  %v16407_v50 = vld [vmem:[%s22213_s4 + $0x5e4] ss:$8 sps:$4 sm:$0xff]   ;;  %v16405_v12 = vld [vmem:[%s22213_s4 + $0x5e0] ss:$8 sps:$4 sm:$0xff]  }
 0x80f   : > { %15177 = vmatpush3.bf16.msra.mxu1 %v16404_v19  ;;  %v16414_v19 = vld [vmem:[%s22214_s5 + $0x2e8] sm:$0xff]  }
 0x810   : > { %15151 = vmatmul.mubr.bf16.gmra.mrb[224].mxu1 %v6653_v35  ;;  %8021 = vmatmul.mubr.bf16.vlgmr.msra.gmra.mrb[88].mxu0 %v16394_v27 }
 0x811   : > { %8345 = vmatpush1.bf16.msra.mxu0 %v18292_v17  ;;  %15154 = vmatprep.mubr.msk.bf16.mxu1 %vm17184_vm2, %v17182_v1 }
 0x812   : > { %8346 = vmatprep.subr.bf16.mxu0 %v17185_v10  ;;  %13079 = vmatprep.mubr.msk.bf16.mxu0 %vm3005_vm5, %v16399_v9 }
 0x813   : > { %v5358_v52 = vpop.f32.mrb[120].mxu1  ;;  %v6614_v49 = vpop.f32.mrb[240].mxu0  ;;  %15178 = vmatprep.subr.bf16.mxu1 %v17182_v1 }
 0x814   : > { %v20191_v60 = vadd.f32 %v5358_v52, %v20034_v6  ;;  %v14984_v43 = vpop.f32.mrb[121].mxu1  ;;  %v6616_v26 = vpop.f32.mrb[241].mxu0  ;;  %15179 = vmatpush3.bf16.msra.mxu1 %v16408_v59  ;;  %v16412_v52 = vld [vmem:[%s22213_s4 + $0x5f4] ss:$8 sps:$4 sm:$0xff]  }
 0x815   : > { %8347 = vmatpush1.bf16.msra.mxu0 %v18300_v0  ;;  %v5361_v45 = vpop.f32.mrb[122].mxu1  ;;  %v6617_v4 = vpop.f32.mrb[242].mxu0  ;;  %15180 = vmatprep.subr.bf16.mxu1 %v17182_v1  ;;  %v16419_v26 = vld [vmem:[%s22214_s5 + $0x2f8] sm:$0xff]  }
 0x816   : > { %v20199_v16 = vadd.f32 %v5361_v45, %v20042_v14  ;;  %v6654_v30 = vpack.c.bf16 %v6617_v4, %v6614_v49  ;;  %8348 = vmatprep.subr.bf16.mxu0 %v17185_v10  ;;  %v14985_v6 = vpop.f32.mrb[123].mxu1  ;;  %v6619_v58 = vpop.f32.mrb[243].mxu0  ;;  %v16418_v49 = vld [vmem:[%s22214_s5 + $0x2f0] sm:$0xff]  }
 0x817   : > { %v16410_v4 = vld [vmem:[%s22213_s4 + $0x5f0] ss:$8 sps:$4 sm:$0xff]  }
 0x818   : > { %15155 = vmatmul.mubr.bf16.gmra.mrb[228].mxu1 %v6654_v30  ;;  %8029 = vmatmul.mubr.bf16.gmra.mrb[92].mxu0 %v16397_v24 }
 0x819   : > { %8349 = vmatpush1.bf16.msra.mxu0 %v18308_v41  ;;  %15158 = vmatprep.mubr.msk.bf16.mxu1 %vm17184_vm2, %v17182_v1 }
 0x81a   : > { %8350 = vmatprep.subr.bf16.mxu0 %v17185_v10  ;;  %13080 = vmatprep.mubr.msk.bf16.mxu0 %vm3005_vm5, %v16402_v39 }
 0x81b   : > { %v5366_v14 = vpop.f32.mrb[124].mxu1  ;;  %v6622_v15 = vpop.f32.mrb[244].mxu0  ;;  %15181 = vmatpush3.bf16.msra.mxu1 %v16409_v8 }
 0x81c   : > { %v20217_v32 = vadd.f32 %v5366_v14, %v20060_v42  ;;  %v14988_v25 = vpop.f32.mrb[125].mxu1  ;;  %v6624_v34 = vpop.f32.mrb[245].mxu0  ;;  %15182 = vmatprep.subr.bf16.mxu1 %v17182_v1 }
 0x81d   : > { %8351 = vmatpush1.bf16.msra.mxu0 %v18316_v47  ;;  %v5369_v55 = vpop.f32.mrb[126].mxu1  ;;  %v6625_v51 = vpop.f32.mrb[246].mxu0  ;;  %v13063_v25 = vld [vmem:[%s22213_s4 + $0x610] sm:$0x33] }
 0x81e   : > { %v20225_v38 = vadd.f32 %v5369_v55, %v20068_v23  ;;  %v6655_v13 = vpack.c.bf16 %v6625_v51, %v6622_v15  ;;  %8352 = vmatprep.subr.bf16.mxu0 %v17185_v10  ;;  %v14989_v42 = vpop.f32.mrb[127].mxu1  ;;  %v6627_v5 = vpop.f32.mrb[247].mxu0  ;;  %v16415_v55 = vld [vmem:[%s22213_s4 + $0x600] ss:$8 sps:$4 sm:$0xff]  }
 0x81f   : > { %15183 = vmatpush3.bf16.msra.mxu1 %v16413_v37 }
 0x820   : > { %15159 = vmatmul.mubr.bf16.gmra.mrb[232].mxu1 %v6655_v13  ;;  %8037 = vmatmul.mubr.bf16.gmra.mrb[96].mxu0 %v16400_v11 }
 0x821   : > { %8353 = vmatpush1.bf16.msra.mxu0 %v18324_v3  ;;  %15162 = vmatprep.mubr.msk.bf16.mxu1 %vm17184_vm2, %v17182_v1 }
 0x822   : > { %8354 = vmatprep.subr.bf16.mxu0 %v17185_v10  ;;  %13081 = vmatprep.mubr.msk.bf16.mxu0 %vm3005_vm5, %v16407_v50 }
 0x823   : > { %v5374_v23 = vpop.f32.mrb[128].mxu1  ;;  %v6630_v53 = vpop.f32.mrb[248].mxu0  ;;  %15184 = vmatprep.subr.bf16.mxu1 %v17182_v1 }
 0x824   : > { %v20241_v29 = vadd.f32 %v5374_v23, %v20084_v20  ;;  %v14992_v27 = vpop.f32.mrb[129].mxu1  ;;  %v6632_v2 = vpop.f32.mrb[249].mxu0  ;;  %15185 = vmatpush3.bf16.msra.mxu1 %v16414_v19 }
 0x825   : > { %8355 = vmatpush1.bf16.msra.mxu0 %v18332_v61  ;;  %v5377_v35 = vpop.f32.mrb[130].mxu1  ;;  %v6633_v33 = vpop.f32.mrb[250].mxu0  ;;  %15186 = vmatprep.subr.bf16.mxu1 %v17182_v1 }
 0x826   : > { %v20249_v48 = vadd.f32 %v5377_v35, %v20092_v57  ;;  %v6656_v9 = vpack.c.bf16 %v6633_v33, %v6630_v53  ;;  %8356 = vmatprep.subr.bf16.mxu0 %v17185_v10  ;;  %v14993_v20 = vpop.f32.mrb[131].mxu1  ;;  %v6635_v59 = vpop.f32.mrb[251].mxu0  ;;  %v13076_v35 = vcombine.low %v13063_v25, %v13063_v25 }
 0x828   : > { %15163 = vmatmul.mubr.bf16.gmra.mrb[236].mxu1 %v6656_v9  ;;  %8045 = vmatmul.mubr.bf16.gmra.mrb[100].mxu0 %v16405_v12 }
 0x829   : > { %8357 = vmatpush1.bf16.msra.mxu0 %v18344_v62  ;;  %15166 = vmatprep.mubr.msk.bf16.mxu1 %vm17184_vm2, %v17182_v1 }
 0x82a   : > { %8358 = vmatprep.subr.bf16.mxu0 %v17185_v10  ;;  %13082 = vmatprep.mubr.msk.bf16.mxu0 %vm3005_vm5, %v16412_v52 }
 0x82b   : > { %v5382_v57 = vpop.f32.mrb[132].mxu1  ;;  %v6638_v43 = vpop.f32.mrb[252].mxu0  ;;  %15187 = vmatpush3.bf16.msra.mxu1 %v16418_v49 }
 0x82c   : > { %v20267_v24 = vadd.f32 %v5382_v57, %v20110_v22  ;;  %v6640_v45 = vpop.f32.mrb[253].mxu0  ;;  %v14996_v30 = vpop.f32.mrb[133].mxu1  ;;  %15188 = vmatprep.subr.bf16.mxu1 %v17182_v1  ;;  %v16417_v22 = vld [vmem:[%s22213_s4 + $0x604] ss:$8 sps:$4 sm:$0xff]  }
 0x82d   : > { %8359 = vmatpush1.bf16.msra.mxu0 %v18352_v46  ;;  %v6641_v6 = vpop.f32.mrb[254].mxu0  ;;  %v5385_v58 = vpop.f32.mrb[134].mxu1  ;;  %v16431_v57 = vld [vmem:[%s22214_s5 + $0x300] sm:$0xff]  }
 0x82e   : > { %v6657_v39 = vpack.c.bf16 %v6641_v6, %v6638_v43  ;;  %8360 = vmatprep.subr.bf16.mxu0 %v17185_v10  ;;  %v14997_v8 = vpop.f32.mrb[135].mxu1  ;;  %v6643_v14 = vpop.f32.mrb[255].mxu0  ;;  %v16422_v6 = vld [vmem:[%s22213_s4 + $0x618] ss:$8 sps:$4 sm:$0xff]  }
 0x82f   : > { %15189 = vmatpush3.bf16.msra.mxu1 %v16419_v26  ;;  %v16432_v26 = vld [vmem:[%s22214_s5 + $0x308] sm:$0xff]  }
 0x830   : > { %15167 = vmatmul.mubr.bf16.gmra.mrb[240].mxu1 %v6657_v39  ;;  %8053 = vmatmul.mubr.bf16.gmra.mrb[104].mxu0 %v16410_v4 }
 0x831   : > { %8361 = vmatpush1.bf16.msra.mxu0 %v18360_v28  ;;  %15170 = vmatprep.mubr.msk.bf16.mxu1 %vm17184_vm2, %v17182_v1 }
 0x832   : > { %8362 = vmatprep.subr.bf16.mxu0 %v17185_v10  ;;  %13083 = vmatprep.mubr.msk.bf16.mxu0 %vm3005_vm5, %v16417_v22 }
 0x833   : > { %v5690_v15 = vpop.f32.mrb[136].mxu1  ;;  %v6646_v37 = vpop.f32.mrb[0].mxu0  ;;  %15218 = vmatprep.subr.bf16.mxu1 %v17182_v1 }
 0x834   : > { %v20288_v34 = vadd.f32 %v5690_v15, %v20131_v18  ;;  %v15016_v11 = vpop.f32.mrb[137].mxu1  ;;  %v6648_v51 = vpop.f32.mrb[1].mxu0  ;;  %v6658_v50 = vpack.c.bf16 %v6646_v37, %v6646_v37  ;;  %v13077_v18 = vcombine.high %v13063_v25, %v13063_v25  ;;  %v16436_v37 = vld [vmem:[%s22214_s5 + $0x310] sm:$0xff]  }
 0x835   : > { %8363 = vmatpush1.bf16.msra.mxu0 %v18368_v54  ;;  %v5693_v13 = vpop.f32.mrb[138].mxu1  ;;  %v6649_v42 = vpop.f32.mrb[2].mxu0 }
 0x836   : > { %v20295_v5 = vadd.f32 %v5693_v13, %v20138_v40  ;;  %8364 = vmatprep.subr.bf16.mxu0 %v17185_v10  ;;  %v15017_v19 = vpop.f32.mrb[139].mxu1  ;;  %v6650_v23 = vpop.f32.mrb[3].mxu0  ;;  %v16425_v13 = vld [vmem:[%s22213_s4 + $0x628] ss:$8 sps:$4 sm:$0xff]  }
 0x838   : > { %15171 = vmatmul.mubr.bf16.gmra.mrb[244].mxu1 %v6658_v50  ;;  %8061 = vmatmul.mubr.bf16.gmra.mrb[108].mxu0 %v16415_v55 }
 0x839   : > { %8365 = vmatpush1.bf16.msra.mxu0 %v18376_v31  ;;  %15190 = vmatprep.mubr.msk.bf16.mxu1 %vm17184_vm2, %v17182_v1 }
 0x83a   : > { %8366 = vmatprep.subr.bf16.mxu0 %v17185_v10  ;;  %13084 = vmatprep.mubr.msk.bf16.mxu0 %vm3005_vm5, %v13077_v18 }
 0x83b   : > { %v5698_v53 = vpop.f32.mrb[140].mxu1  ;;  %v6954_v40 = vpop.f32.mrb[4].mxu0 }
 0x83c   : > { %v20304_v27 = vadd.f32 %v5698_v53, %v20147_v21  ;;  %v15020_v2 = vpop.f32.mrb[141].mxu1  ;;  %v6956_v12 = vpop.f32.mrb[5].mxu0  ;;  %v16424_v21 = vld [vmem:[%s22213_s4 + $0x61c] ss:$8 sps:$4 sm:$0xff]  }
 0x83d   : > { %8367 = vmatpush1.bf16.msra.mxu0 %v18384_v7  ;;  %v5701_v33 = vpop.f32.mrb[142].mxu1  ;;  %v6957_v9 = vpop.f32.mrb[6].mxu0  ;;  %v16430_v53 = vld [vmem:[%s22213_s4 + $0x63c] ss:$8 sps:$4 sm:$0xff]  }
 0x83e   : > { %v20308_v20 = vadd.f32 %v5701_v33, %v20151_v44  ;;  %v7008_v59 = vpack.c.bf16 %v6957_v9, %v6954_v40  ;;  %8368 = vmatprep.subr.bf16.mxu0 %v17185_v10  ;;  %v15021_v52 = vpop.f32.mrb[143].mxu1  ;;  %v6959_v49 = vpop.f32.mrb[7].mxu0  ;;  %v16437_v40 = vld [vmem:[%s22214_s5 + $0x318] sm:$0xff]   ;;  %v16441_v12 = vld [vmem:[%s22214_s5 + $0x320] sm:$0xff]  }
 0x840   : > { %15191 = vmatmul.mubr.bf16.vlgmr.msra.gmra.mrb[248].mxu1 %v7008_v59  ;;  %8069 = vmatmul.mubr.bf16.gmra.mrb[112].mxu0 %v13076_v35  ;;  %v16428_v59 = vld [vmem:[%s22213_s4 + $0x638] ss:$8 sps:$4 sm:$0xff]  }
 0x841   : > { %8369 = vmatpush1.bf16.msra.mxu0 %v18392_v36  ;;  %15194 = vmatprep.mubr.msk.bf16.mxu1 %vm17184_vm2, %v17182_v1 }
 0x842   : > { %13136 = vmatprep.mubr.msk.bf16.mxu0 %vm3005_vm5, %v16424_v21  ;;  %8700 = vmatprep.subr.bf16.mxu0 %v17185_v10 }
 0x843   : > { %v5706_v44 = vpop.f32.mrb[144].mxu1  ;;  %v6962_v43 = vpop.f32.mrb[8].mxu0  ;;  %15219 = vmatpush3.bf16.msra.mxu1 %v16431_v57 }
 0x844   : > { %v20326_v45 = vadd.f32 %v5706_v44, %v20169_v63  ;;  %v15024_v4 = vpop.f32.mrb[145].mxu1  ;;  %v6964_v30 = vpop.f32.mrb[9].mxu0  ;;  %15220 = vmatprep.subr.bf16.mxu1 %v17182_v1  ;;  %v16427_v63 = vld [vmem:[%s22213_s4 + $0x62c] ss:$8 sps:$4 sm:$0xff]  }
 0x845   : > { %v5709_v58 = vpop.f32.mrb[146].mxu1  ;;  %v6965_v39 = vpop.f32.mrb[10].mxu0 }
 0x846   : > { %v20333_v8 = vadd.f32 %v5709_v58, %v20176_v56  ;;  %v7009_v14 = vpack.c.bf16 %v6965_v39, %v6962_v43  ;;  %v15025_v22 = vpop.f32.mrb[147].mxu1  ;;  %v6967_v15 = vpop.f32.mrb[11].mxu0  ;;  %v16435_v43 = vld [vmem:[%s22213_s4 + $0x64c] ss:$8 sps:$4 sm:$0xff]   ;;  %v16433_v39 = vld [vmem:[%s22213_s4 + $0x648] ss:$8 sps:$4 sm:$0xff]  }
 0x847   : > { %15221 = vmatpush3.bf16.msra.mxu1 %v16432_v26  ;;  %v16442_v26 = vld [vmem:[%s22214_s5 + $0x328] sm:$0xff]  }
 0x848   : > { %15195 = vmatmul.mubr.bf16.gmra.mrb[252].mxu1 %v7009_v14  ;;  %8377 = vmatmul.mubr.bf16.vlgmr.msra.gmra.mrb[116].mxu0 %v16422_v6 }
 0x849   : > { %8701 = vmatpush1.bf16.msra.mxu0 %v18292_v17  ;;  %15198 = vmatprep.mubr.msk.bf16.mxu1 %vm17184_vm2, %v17182_v1 }
 0x84a   : > { %8702 = vmatprep.subr.bf16.mxu0 %v17185_v10  ;;  %13137 = vmatprep.mubr.msk.bf16.mxu0 %vm3005_vm5, %v16427_v63 }
 0x84b   : > { %v5714_v56 = vpop.f32.mrb[148].mxu1  ;;  %v6970_v25 = vpop.f32.mrb[12].mxu0  ;;  %15222 = vmatprep.subr.bf16.mxu1 %v17182_v1 }
 0x84c   : > { %v20348_v11 = vadd.f32 %v5714_v56, %v20191_v60  ;;  %v15028_v55 = vpop.f32.mrb[149].mxu1  ;;  %v6972_v51 = vpop.f32.mrb[13].mxu0  ;;  %15223 = vmatpush3.bf16.msra.mxu1 %v16436_v37  ;;  %v16440_v56 = vld [vmem:[%s22213_s4 + $0x65c] ss:$8 sps:$4 sm:$0xff]  }
 0x84d   : > { %8703 = vmatpush1.bf16.msra.mxu0 %v18300_v0  ;;  %v5717_v42 = vpop.f32.mrb[150].mxu1  ;;  %v6973_v50 = vpop.f32.mrb[14].mxu0  ;;  %15224 = vmatprep.subr.bf16.mxu1 %v17182_v1  ;;  %v16447_v51 = vld [vmem:[%s22214_s5 + $0x338] sm:$0xff]  }
 0x84e   : > { %v20356_v19 = vadd.f32 %v5717_v42, %v20199_v16  ;;  %v7010_v23 = vpack.c.bf16 %v6973_v50, %v6970_v25  ;;  %8704 = vmatprep.subr.bf16.mxu0 %v17185_v10  ;;  %v15029_v60 = vpop.f32.mrb[151].mxu1  ;;  %v6975_v18 = vpop.f32.mrb[15].mxu0  ;;  %v16446_v25 = vld [vmem:[%s22214_s5 + $0x330] sm:$0xff]   ;;  %v16438_v50 = vld [vmem:[%s22213_s4 + $0x658] ss:$8 sps:$4 sm:$0xff]  }
 0x850   : > { %15199 = vmatmul.mubr.bf16.gmra.mrb[0].mxu1 %v7010_v23  ;;  %8385 = vmatmul.mubr.bf16.gmra.mrb[120].mxu0 %v16425_v13 }
 0x851   : > { %8705 = vmatpush1.bf16.msra.mxu0 %v18308_v41  ;;  %15202 = vmatprep.mubr.msk.bf16.mxu1 %vm17184_vm2, %v17182_v1 }
 0x852   : > { %8706 = vmatprep.subr.bf16.mxu0 %v17185_v10  ;;  %13138 = vmatprep.mubr.msk.bf16.mxu0 %vm3005_vm5, %v16430_v53 }
 0x853   : > { %v5722_v16 = vpop.f32.mrb[152].mxu1  ;;  %v6978_v2 = vpop.f32.mrb[16].mxu0  ;;  %15225 = vmatpush3.bf16.msra.mxu1 %v16437_v40 }
 0x854   : > { %v20374_v35 = vadd.f32 %v5722_v16, %v20217_v32  ;;  %v15032_v33 = vpop.f32.mrb[153].mxu1  ;;  %v6980_v9 = vpop.f32.mrb[17].mxu0  ;;  %15226 = vmatprep.subr.bf16.mxu1 %v17182_v1 }
 0x855   : > { %8707 = vmatpush1.bf16.msra.mxu0 %v18316_v47  ;;  %v5725_v52 = vpop.f32.mrb[154].mxu1  ;;  %v6981_v49 = vpop.f32.mrb[18].mxu0  ;;  %v13121_v33 = vld [vmem:[%s22213_s4 + $0x678] sm:$0x33] }
 0x856   : > { %v20382_v21 = vadd.f32 %v5725_v52, %v20225_v38  ;;  %v7011_v57 = vpack.c.bf16 %v6981_v49, %v6978_v2  ;;  %8708 = vmatprep.subr.bf16.mxu0 %v17185_v10  ;;  %v15033_v32 = vpop.f32.mrb[155].mxu1  ;;  %v6983_v44 = vpop.f32.mrb[19].mxu0  ;;  %v16443_v52 = vld [vmem:[%s22213_s4 + $0x668] ss:$8 sps:$4 sm:$0xff]  }
 0x857   : > { %15227 = vmatpush3.bf16.msra.mxu1 %v16441_v12 }
 0x858   : > { %15203 = vmatmul.mubr.bf16.gmra.mrb[4].mxu1 %v7011_v57  ;;  %8393 = vmatmul.mubr.bf16.gmra.mrb[124].mxu0 %v16428_v59 }
 0x859   : > { %8709 = vmatpush1.bf16.msra.mxu0 %v18324_v3  ;;  %15206 = vmatprep.mubr.msk.bf16.mxu1 %vm17184_vm2, %v17182_v1 }
 0x85a   : > { %8710 = vmatprep.subr.bf16.mxu0 %v17185_v10  ;;  %13139 = vmatprep.mubr.msk.bf16.mxu0 %vm3005_vm5, %v16435_v43 }
 0x85b   : > { %v5730_v38 = vpop.f32.mrb[156].mxu1  ;;  %v6986_v4 = vpop.f32.mrb[20].mxu0  ;;  %15228 = vmatprep.subr.bf16.mxu1 %v17182_v1 }
 0x85c   : > { %v20398_v30 = vadd.f32 %v5730_v38, %v20241_v29  ;;  %v15036_v6 = vpop.f32.mrb[157].mxu1  ;;  %v6988_v58 = vpop.f32.mrb[21].mxu0  ;;  %15229 = vmatpush3.bf16.msra.mxu1 %v16442_v26 }
 0x85d   : > { %8711 = vmatpush1.bf16.msra.mxu0 %v18332_v61  ;;  %v5733_v14 = vpop.f32.mrb[158].mxu1  ;;  %v6989_v22 = vpop.f32.mrb[22].mxu0  ;;  %15230 = vmatprep.subr.bf16.mxu1 %v17182_v1 }
 0x85e   : > { %v20406_v15 = vadd.f32 %v5733_v14, %v20249_v48  ;;  %v7012_v63 = vpack.c.bf16 %v6989_v22, %v6986_v4  ;;  %8712 = vmatprep.subr.bf16.mxu0 %v17185_v10  ;;  %v15037_v29 = vpop.f32.mrb[159].mxu1  ;;  %v6991_v37 = vpop.f32.mrb[23].mxu0  ;;  %v13134_v14 = vcombine.low %v13121_v33, %v13121_v33 }
 0x860   : > { %15207 = vmatmul.mubr.bf16.gmra.mrb[8].mxu1 %v7012_v63  ;;  %8401 = vmatmul.mubr.bf16.gmra.mrb[128].mxu0 %v16433_v39 }
 0x861   : > { %8713 = vmatpush1.bf16.msra.mxu0 %v18344_v62  ;;  %15210 = vmatprep.mubr.msk.bf16.mxu1 %vm17184_vm2, %v17182_v1 }
 0x862   : > { %8714 = vmatprep.subr.bf16.mxu0 %v17185_v10  ;;  %13140 = vmatprep.mubr.msk.bf16.mxu0 %vm3005_vm5, %v16440_v56 }
 0x863   : > { %v5738_v48 = vpop.f32.mrb[160].mxu1  ;;  %v6994_v55 = vpop.f32.mrb[24].mxu0  ;;  %15231 = vmatpush3.bf16.msra.mxu1 %v16446_v25 }
 0x864   : > { %v20424_v13 = vadd.f32 %v5738_v48, %v20267_v24  ;;  %v6996_v42 = vpop.f32.mrb[25].mxu0  ;;  %v15040_v23 = vpop.f32.mrb[161].mxu1  ;;  %15232 = vmatprep.subr.bf16.mxu1 %v17182_v1  ;;  %v16445_v24 = vld [vmem:[%s22213_s4 + $0x66c] ss:$8 sps:$4 sm:$0xff]   ;;  %v16459_v48 = vld [vmem:[%s22214_s5 + $0x340] sm:$0xff]  }
 0x865   : > { %8715 = vmatpush1.bf16.msra.mxu0 %v18352_v46  ;;  %v6997_v60 = vpop.f32.mrb[26].mxu0  ;;  %v5741_v18 = vpop.f32.mrb[162].mxu1 }
 0x866   : > { %v7013_v53 = vpack.c.bf16 %v6997_v60, %v6994_v55  ;;  %8716 = vmatprep.subr.bf16.mxu0 %v17185_v10  ;;  %v15041_v40 = vpop.f32.mrb[163].mxu1  ;;  %v6999_v16 = vpop.f32.mrb[27].mxu0  ;;  %v16450_v60 = vld [vmem:[%s22213_s4 + $0x680] ss:$8 sps:$4 sm:$0xff]  }
 0x867   : > { %15233 = vmatpush3.bf16.msra.mxu1 %v16447_v51  ;;  %v16460_v51 = vld [vmem:[%s22214_s5 + $0x348] sm:$0xff]  }
 0x868   : > { %15211 = vmatmul.mubr.bf16.gmra.mrb[12].mxu1 %v7013_v53  ;;  %8409 = vmatmul.mubr.bf16.gmra.mrb[132].mxu0 %v16438_v50 }
 0x869   : > { %8717 = vmatpush1.bf16.msra.mxu0 %v18360_v28  ;;  %15214 = vmatprep.mubr.msk.bf16.mxu1 %vm17184_vm2, %v17182_v1 }
 0x86a   : > { %8718 = vmatprep.subr.bf16.mxu0 %v17185_v10  ;;  %13141 = vmatprep.mubr.msk.bf16.mxu0 %vm3005_vm5, %v16445_v24 }
 0x86b   : > { %v6046_v2 = vpop.f32.mrb[164].mxu1  ;;  %v7002_v12 = vpop.f32.mrb[28].mxu0  ;;  %15262 = vmatprep.subr.bf16.mxu1 %v17182_v1 }
 0x86c   : > { %v20445_v9 = vadd.f32 %v6046_v2, %v20288_v34  ;;  %v15060_v59 = vpop.f32.mrb[165].mxu1  ;;  %v7004_v49 = vpop.f32.mrb[29].mxu0  ;;  %v7014_v43 = vpack.c.bf16 %v7002_v12, %v7002_v12  ;;  %v13135_v34 = vcombine.high %v13121_v33, %v13121_v33  ;;  %v16464_v12 = vld [vmem:[%s22214_s5 + $0x350] sm:$0xff]  }
 0x86d   : > { %8719 = vmatpush1.bf16.msra.mxu0 %v18368_v54  ;;  %v6049_v57 = vpop.f32.mrb[166].mxu1  ;;  %v7005_v32 = vpop.f32.mrb[30].mxu0 }
 0x86e   : > { %v20452_v44 = vadd.f32 %v6049_v57, %v20295_v5  ;;  %8720 = vmatprep.subr.bf16.mxu0 %v17185_v10  ;;  %v15061_v26 = vpop.f32.mrb[167].mxu1  ;;  %v7006_v38 = vpop.f32.mrb[31].mxu0  ;;  %v16453_v57 = vld [vmem:[%s22213_s4 + $0x690] ss:$8 sps:$4 sm:$0xff]  }
 0x870   : > { %15215 = vmatmul.mubr.bf16.gmra.mrb[16].mxu1 %v7014_v43  ;;  %8417 = vmatmul.mubr.bf16.gmra.mrb[136].mxu0 %v16443_v52 }
 0x871   : > { %8721 = vmatpush1.bf16.msra.mxu0 %v18376_v31  ;;  %15234 = vmatprep.mubr.msk.bf16.mxu1 %vm17184_vm2, %v17182_v1 }
 0x872   : > { %8722 = vmatprep.subr.bf16.mxu0 %v17185_v10  ;;  %13142 = vmatprep.mubr.msk.bf16.mxu0 %vm3005_vm5, %v13135_v34 }
 0x873   : > { %v6054_v4 = vpop.f32.mrb[168].mxu1  ;;  %v7310_v5 = vpop.f32.mrb[32].mxu0 }
 0x874   : > { %v20461_v6 = vadd.f32 %v6054_v4, %v20304_v27  ;;  %v15064_v58 = vpop.f32.mrb[169].mxu1  ;;  %v7312_v39 = vpop.f32.mrb[33].mxu0  ;;  %v16452_v27 = vld [vmem:[%s22213_s4 + $0x684] ss:$8 sps:$4 sm:$0xff]  }
 0x875   : > { %8723 = vmatpush1.bf16.msra.mxu0 %v18384_v7  ;;  %v6057_v22 = vpop.f32.mrb[170].mxu1  ;;  %v7313_v63 = vpop.f32.mrb[34].mxu0  ;;  %v16458_v4 = vld [vmem:[%s22213_s4 + $0x6a4] ss:$8 sps:$4 sm:$0xff]  }
 0x876   : > { %v20465_v29 = vadd.f32 %v6057_v22, %v20308_v20  ;;  %v7364_v37 = vpack.c.bf16 %v7313_v63, %v7310_v5  ;;  %8724 = vmatprep.subr.bf16.mxu0 %v17185_v10  ;;  %v15065_v56 = vpop.f32.mrb[171].mxu1  ;;  %v7315_v25 = vpop.f32.mrb[35].mxu0  ;;  %v16465_v5 = vld [vmem:[%s22214_s5 + $0x358] sm:$0xff]   ;;  %v16469_v39 = vld [vmem:[%s22214_s5 + $0x360] sm:$0xff]  }
 0x878   : > { %15235 = vmatmul.mubr.bf16.vlgmr.msra.gmra.mrb[20].mxu1 %v7364_v37  ;;  %8425 = vmatmul.mubr.bf16.gmra.mrb[140].mxu0 %v13134_v14  ;;  %v16456_v37 = vld [vmem:[%s22213_s4 + $0x6a0] ss:$8 sps:$4 sm:$0xff]  }
 0x879   : > { %8725 = vmatpush1.bf16.msra.mxu0 %v18392_v36  ;;  %15238 = vmatprep.mubr.msk.bf16.mxu1 %vm17184_vm2, %v17182_v1 }
 0x87a   : > { %13194 = vmatprep.mubr.msk.bf16.mxu0 %vm3005_vm5, %v16452_v27  ;;  %9056 = vmatprep.subr.bf16.mxu0 %v17185_v10 }
 0x87b   : > { %v6062_v20 = vpop.f32.mrb[172].mxu1  ;;  %v7318_v55 = vpop.f32.mrb[36].mxu0  ;;  %15263 = vmatpush3.bf16.msra.mxu1 %v16459_v48 }
 0x87c   : > { %v20483_v42 = vadd.f32 %v6062_v20, %v20326_v45  ;;  %v15068_v50 = vpop.f32.mrb[173].mxu1  ;;  %v7320_v23 = vpop.f32.mrb[37].mxu0  ;;  %15264 = vmatprep.subr.bf16.mxu1 %v17182_v1  ;;  %v16455_v45 = vld [vmem:[%s22213_s4 + $0x694] ss:$8 sps:$4 sm:$0xff]  }
 0x87d   : > { %v6065_v18 = vpop.f32.mrb[174].mxu1  ;;  %v7321_v53 = vpop.f32.mrb[38].mxu0 }
 0x87e   : > { %v20490_v40 = vadd.f32 %v6065_v18, %v20333_v8  ;;  %v7365_v16 = vpack.c.bf16 %v7321_v53, %v7318_v55  ;;  %v15069_v24 = vpop.f32.mrb[175].mxu1  ;;  %v7323_v2 = vpop.f32.mrb[39].mxu0  ;;  %v16463_v55 = vld [vmem:[%s22213_s4 + $0x6b4] ss:$8 sps:$4 sm:$0xff]   ;;  %v16461_v53 = vld [vmem:[%s22213_s4 + $0x6b0] ss:$8 sps:$4 sm:$0xff]  }
 0x87f   : > { %15265 = vmatpush3.bf16.msra.mxu1 %v16460_v51  ;;  %v16470_v51 = vld [vmem:[%s22214_s5 + $0x368] sm:$0xff]  }
 0x880   : > { %15239 = vmatmul.mubr.bf16.gmra.mrb[24].mxu1 %v7365_v16  ;;  %8733 = vmatmul.mubr.bf16.vlgmr.msra.gmra.mrb[144].mxu0 %v16450_v60 }
 0x881   : > { %9057 = vmatpush1.bf16.msra.mxu0 %v18292_v17  ;;  %15242 = vmatprep.mubr.msk.bf16.mxu1 %vm17184_vm2, %v17182_v1 }
 0x882   : > { %9058 = vmatprep.subr.bf16.mxu0 %v17185_v10  ;;  %13195 = vmatprep.mubr.msk.bf16.mxu0 %vm3005_vm5, %v16455_v45 }
 0x883   : > { %v6070_v8 = vpop.f32.mrb[176].mxu1  ;;  %v7326_v33 = vpop.f32.mrb[40].mxu0  ;;  %15266 = vmatprep.subr.bf16.mxu1 %v17182_v1 }
 0x884   : > { %v20505_v59 = vadd.f32 %v6070_v8, %v20348_v11  ;;  %v15072_v52 = vpop.f32.mrb[177].mxu1  ;;  %v7328_v49 = vpop.f32.mrb[41].mxu0  ;;  %15267 = vmatpush3.bf16.msra.mxu1 %v16464_v12  ;;  %v16468_v8 = vld [vmem:[%s22213_s4 + $0x6c4] ss:$8 sps:$4 sm:$0xff]  }
 0x885   : > { %9059 = vmatpush1.bf16.msra.mxu0 %v18300_v0  ;;  %v6073_v32 = vpop.f32.mrb[178].mxu1  ;;  %v7329_v43 = vpop.f32.mrb[42].mxu0  ;;  %15268 = vmatprep.subr.bf16.mxu1 %v17182_v1  ;;  %v16475_v49 = vld [vmem:[%s22214_s5 + $0x378] sm:$0xff]  }
 0x886   : > { %v20513_v26 = vadd.f32 %v6073_v32, %v20356_v19  ;;  %v7366_v38 = vpack.c.bf16 %v7329_v43, %v7326_v33  ;;  %9060 = vmatprep.subr.bf16.mxu0 %v17185_v10  ;;  %v15073_v11 = vpop.f32.mrb[179].mxu1  ;;  %v7331_v34 = vpop.f32.mrb[43].mxu0  ;;  %v16474_v33 = vld [vmem:[%s22214_s5 + $0x370] sm:$0xff]   ;;  %v16466_v43 = vld [vmem:[%s22213_s4 + $0x6c0] ss:$8 sps:$4 sm:$0xff]  }
 0x888   : > { %15243 = vmatmul.mubr.bf16.gmra.mrb[28].mxu1 %v7366_v38  ;;  %8741 = vmatmul.mubr.bf16.gmra.mrb[148].mxu0 %v16453_v57 }
 0x889   : > { %9061 = vmatpush1.bf16.msra.mxu0 %v18308_v41  ;;  %15246 = vmatprep.mubr.msk.bf16.mxu1 %vm17184_vm2, %v17182_v1 }
 0x88a   : > { %9062 = vmatprep.subr.bf16.mxu0 %v17185_v10  ;;  %13196 = vmatprep.mubr.msk.bf16.mxu0 %vm3005_vm5, %v16458_v4 }
 0x88b   : > { %v6078_v19 = vpop.f32.mrb[180].mxu1  ;;  %v7334_v58 = vpop.f32.mrb[44].mxu0  ;;  %15269 = vmatpush3.bf16.msra.mxu1 %v16465_v5 }
 0x88c   : > { %v20531_v14 = vadd.f32 %v6078_v19, %v20374_v35  ;;  %v15076_v22 = vpop.f32.mrb[181].mxu1  ;;  %v7336_v63 = vpop.f32.mrb[45].mxu0  ;;  %15270 = vmatprep.subr.bf16.mxu1 %v17182_v1 }
 0x88d   : > { %9063 = vmatpush1.bf16.msra.mxu0 %v18316_v47  ;;  %v6081_v56 = vpop.f32.mrb[182].mxu1  ;;  %v7337_v25 = vpop.f32.mrb[46].mxu0  ;;  %v13179_v22 = vld [vmem:[%s22213_s4 + $0x6e0] sm:$0x33] }
 0x88e   : > { %v20539_v27 = vadd.f32 %v6081_v56, %v20382_v21  ;;  %v7367_v48 = vpack.c.bf16 %v7337_v25, %v7334_v58  ;;  %9064 = vmatprep.subr.bf16.mxu0 %v17185_v10  ;;  %v15077_v35 = vpop.f32.mrb[183].mxu1  ;;  %v7339_v20 = vpop.f32.mrb[47].mxu0  ;;  %v16471_v56 = vld [vmem:[%s22213_s4 + $0x6d0] ss:$8 sps:$4 sm:$0xff]  }
 0x88f   : > { %15271 = vmatpush3.bf16.msra.mxu1 %v16469_v39 }
 0x890   : > { %15247 = vmatmul.mubr.bf16.gmra.mrb[32].mxu1 %v7367_v48  ;;  %8749 = vmatmul.mubr.bf16.gmra.mrb[152].mxu0 %v16456_v37 }
 0x891   : > { %9065 = vmatpush1.bf16.msra.mxu0 %v18324_v3  ;;  %15250 = vmatprep.mubr.msk.bf16.mxu1 %vm17184_vm2, %v17182_v1 }
 0x892   : > { %9066 = vmatprep.subr.bf16.mxu0 %v17185_v10  ;;  %13197 = vmatprep.mubr.msk.bf16.mxu0 %vm3005_vm5, %v16463_v55 }
 0x893   : > { %v6086_v21 = vpop.f32.mrb[184].mxu1  ;;  %v7342_v50 = vpop.f32.mrb[48].mxu0  ;;  %15272 = vmatprep.subr.bf16.mxu1 %v17182_v1 }
 0x894   : > { %v20555_v23 = vadd.f32 %v6086_v21, %v20398_v30  ;;  %v15080_v60 = vpop.f32.mrb[185].mxu1  ;;  %v7344_v18 = vpop.f32.mrb[49].mxu0  ;;  %15273 = vmatpush3.bf16.msra.mxu1 %v16470_v51 }
 0x895   : > { %9067 = vmatpush1.bf16.msra.mxu0 %v18332_v61  ;;  %v6089_v16 = vpop.f32.mrb[186].mxu1  ;;  %v7345_v24 = vpop.f32.mrb[50].mxu0  ;;  %15274 = vmatprep.subr.bf16.mxu1 %v17182_v1 }
 0x896   : > { %v20563_v2 = vadd.f32 %v6089_v16, %v20406_v15  ;;  %v7368_v45 = vpack.c.bf16 %v7345_v24, %v7342_v50  ;;  %9068 = vmatprep.subr.bf16.mxu0 %v17185_v10  ;;  %v15081_v30 = vpop.f32.mrb[187].mxu1  ;;  %v7347_v12 = vpop.f32.mrb[51].mxu0  ;;  %v13192_v16 = vcombine.low %v13179_v22, %v13179_v22 }
 0x898   : > { %15251 = vmatmul.mubr.bf16.gmra.mrb[36].mxu1 %v7368_v45  ;;  %8757 = vmatmul.mubr.bf16.gmra.mrb[156].mxu0 %v16461_v53 }
 0x899   : > { %9069 = vmatpush1.bf16.msra.mxu0 %v18344_v62  ;;  %15254 = vmatprep.mubr.msk.bf16.mxu1 %vm17184_vm2, %v17182_v1 }
 0x89a   : > { %9070 = vmatprep.subr.bf16.mxu0 %v17185_v10  ;;  %13198 = vmatprep.mubr.msk.bf16.mxu0 %vm3005_vm5, %v16468_v8 }
 0x89b   : > { %v6094_v15 = vpop.f32.mrb[188].mxu1  ;;  %v7350_v52 = vpop.f32.mrb[52].mxu0  ;;  %15275 = vmatpush3.bf16.msra.mxu1 %v16474_v33 }
 0x89c   : > { %v20581_v57 = vadd.f32 %v6094_v15, %v20424_v13  ;;  %v7352_v32 = vpop.f32.mrb[53].mxu0  ;;  %v15084_v38 = vpop.f32.mrb[189].mxu1  ;;  %15276 = vmatprep.subr.bf16.mxu1 %v17182_v1  ;;  %v16473_v13 = vld [vmem:[%s22213_s4 + $0x6d4] ss:$8 sps:$4 sm:$0xff]   ;;  %v16487_v15 = vld [vmem:[%s22214_s5 + $0x380] sm:$0xff]  }
 0x89d   : > { %9071 = vmatpush1.bf16.msra.mxu0 %v18352_v46  ;;  %v7353_v11 = vpop.f32.mrb[54].mxu0  ;;  %v6097_v34 = vpop.f32.mrb[190].mxu1 }
 0x89e   : > { %v7369_v4 = vpack.c.bf16 %v7353_v11, %v7350_v52  ;;  %9072 = vmatprep.subr.bf16.mxu0 %v17185_v10  ;;  %v15085_v5 = vpop.f32.mrb[191].mxu1  ;;  %v7355_v19 = vpop.f32.mrb[55].mxu0  ;;  %v16478_v11 = vld [vmem:[%s22213_s4 + $0x6e8] ss:$8 sps:$4 sm:$0xff]  }
 0x89f   : > { %15277 = vmatpush3.bf16.msra.mxu1 %v16475_v49  ;;  %v16488_v49 = vld [vmem:[%s22214_s5 + $0x388] sm:$0xff]  }
 0x8a0   : > { %15255 = vmatmul.mubr.bf16.gmra.mrb[40].mxu1 %v7369_v4  ;;  %8765 = vmatmul.mubr.bf16.gmra.mrb[160].mxu0 %v16466_v43 }
 0x8a1   : > { %9073 = vmatpush1.bf16.msra.mxu0 %v18360_v28  ;;  %15258 = vmatprep.mubr.msk.bf16.mxu1 %vm17184_vm2, %v17182_v1 }
 0x8a2   : > { %9074 = vmatprep.subr.bf16.mxu0 %v17185_v10  ;;  %13199 = vmatprep.mubr.msk.bf16.mxu0 %vm3005_vm5, %v16473_v13 }
 0x8a3   : > { %v6402_v58 = vpop.f32.mrb[192].mxu1  ;;  %v7358_v39 = vpop.f32.mrb[56].mxu0  ;;  %15306 = vmatprep.subr.bf16.mxu1 %v17182_v1 }
 0x8a4   : > { %v20602_v63 = vadd.f32 %v6402_v58, %v20445_v9  ;;  %v15104_v37 = vpop.f32.mrb[193].mxu1  ;;  %v7360_v25 = vpop.f32.mrb[57].mxu0  ;;  %v7370_v55 = vpack.c.bf16 %v7358_v39, %v7358_v39  ;;  %v13193_v9 = vcombine.high %v13179_v22, %v13179_v22  ;;  %v16492_v39 = vld [vmem:[%s22214_s5 + $0x390] sm:$0xff]  }
 0x8a5   : > { %9075 = vmatpush1.bf16.msra.mxu0 %v18368_v54  ;;  %v6405_v48 = vpop.f32.mrb[194].mxu1  ;;  %v7361_v35 = vpop.f32.mrb[58].mxu0 }
 0x8a6   : > { %v20609_v20 = vadd.f32 %v6405_v48, %v20452_v44  ;;  %9076 = vmatprep.subr.bf16.mxu0 %v17185_v10  ;;  %v15105_v51 = vpop.f32.mrb[195].mxu1  ;;  %v7362_v21 = vpop.f32.mrb[59].mxu0  ;;  %v16481_v48 = vld [vmem:[%s22213_s4 + $0x6f8] ss:$8 sps:$4 sm:$0xff]  }
 0x8a8   : > { %15259 = vmatmul.mubr.bf16.gmra.mrb[44].mxu1 %v7370_v55  ;;  %8773 = vmatmul.mubr.bf16.gmra.mrb[164].mxu0 %v16471_v56 }
 0x8a9   : > { %9077 = vmatpush1.bf16.msra.mxu0 %v18376_v31  ;;  %15278 = vmatprep.mubr.msk.bf16.mxu1 %vm17184_vm2, %v17182_v1 }
 0x8aa   : > { %9078 = vmatprep.subr.bf16.mxu0 %v17185_v10  ;;  %13200 = vmatprep.mubr.msk.bf16.mxu0 %vm3005_vm5, %v13193_v9 }
 0x8ab   : > { %v6410_v50 = vpop.f32.mrb[196].mxu1  ;;  %v7666_v44 = vpop.f32.mrb[60].mxu0 }
 0x8ac   : > { %v20618_v60 = vadd.f32 %v6410_v50, %v20461_v6  ;;  %v15108_v18 = vpop.f32.mrb[197].mxu1  ;;  %v7668_v53 = vpop.f32.mrb[61].mxu0  ;;  %v16480_v6 = vld [vmem:[%s22213_s4 + $0x6ec] ss:$8 sps:$4 sm:$0xff]  }
 0x8ad   : > { %9079 = vmatpush1.bf16.msra.mxu0 %v18384_v7  ;;  %v6413_v24 = vpop.f32.mrb[198].mxu1  ;;  %v7669_v45 = vpop.f32.mrb[62].mxu0  ;;  %v16486_v50 = vld [vmem:[%s22213_s4 + $0x70c] ss:$8 sps:$4 sm:$0xff]   ;;  %v16497_v53 = vld [vmem:[%s22214_s5 + $0x3a0] sm:$0xff]  }
 0x8ae   : > { %v20622_v30 = vadd.f32 %v6413_v24, %v20465_v29  ;;  %v7720_v12 = vpack.c.bf16 %v7669_v45, %v7666_v44  ;;  %9080 = vmatprep.subr.bf16.mxu0 %v17185_v10  ;;  %v15109_v8 = vpop.f32.mrb[199].mxu1  ;;  %v7671_v33 = vpop.f32.mrb[63].mxu0  ;;  %v16493_v44 = vld [vmem:[%s22214_s5 + $0x398] sm:$0xff]  }
 0x8b0   : > { %15279 = vmatmul.mubr.bf16.vlgmr.msra.gmra.mrb[48].mxu1 %v7720_v12  ;;  %8781 = vmatmul.mubr.bf16.gmra.mrb[168].mxu0 %v13192_v16  ;;  %v16484_v12 = vld [vmem:[%s22213_s4 + $0x708] ss:$8 sps:$4 sm:$0xff]  }
 0x8b1   : > { %9081 = vmatpush1.bf16.msra.mxu0 %v18392_v36  ;;  %15282 = vmatprep.mubr.msk.bf16.mxu1 %vm17184_vm2, %v17182_v1 }
 0x8b2   : > { %13252 = vmatprep.mubr.msk.bf16.mxu0 %vm3005_vm5, %v16480_v6  ;;  %9412 = vmatprep.subr.bf16.mxu0 %v17185_v10 }
 0x8b3   : > { %v6418_v29 = vpop.f32.mrb[200].mxu1  ;;  %v7674_v52 = vpop.f32.mrb[64].mxu0  ;;  %15307 = vmatpush3.bf16.msra.mxu1 %v16487_v15 }
 0x8b4   : > { %v20640_v32 = vadd.f32 %v6418_v29, %v20483_v42  ;;  %v15112_v43 = vpop.f32.mrb[201].mxu1  ;;  %v7676_v38 = vpop.f32.mrb[65].mxu0  ;;  %15308 = vmatprep.subr.bf16.mxu1 %v17182_v1  ;;  %v16483_v42 = vld [vmem:[%s22213_s4 + $0x6fc] ss:$8 sps:$4 sm:$0xff]  }
 0x8b5   : > { %v6421_v34 = vpop.f32.mrb[202].mxu1  ;;  %v7677_v4 = vpop.f32.mrb[66].mxu0 }
 0x8b6   : > { %v20647_v5 = vadd.f32 %v6421_v34, %v20490_v40  ;;  %v7721_v19 = vpack.c.bf16 %v7677_v4, %v7674_v52  ;;  %v15113_v13 = vpop.f32.mrb[203].mxu1  ;;  %v7679_v58 = vpop.f32.mrb[67].mxu0  ;;  %v16491_v52 = vld [vmem:[%s22213_s4 + $0x71c] ss:$8 sps:$4 sm:$0xff]   ;;  %v16489_v4 = vld [vmem:[%s22213_s4 + $0x718] ss:$8 sps:$4 sm:$0xff]  }
 0x8b7   : > { %15309 = vmatpush3.bf16.msra.mxu1 %v16488_v49  ;;  %v16498_v49 = vld [vmem:[%s22214_s5 + $0x3a8] sm:$0xff]  }
 0x8b8   : > { %15283 = vmatmul.mubr.bf16.gmra.mrb[52].mxu1 %v7721_v19  ;;  %9089 = vmatmul.mubr.bf16.vlgmr.msra.gmra.mrb[172].mxu0 %v16478_v11 }
 0x8b9   : > { %9413 = vmatpush1.bf16.msra.mxu0 %v18292_v17  ;;  %15286 = vmatprep.mubr.msk.bf16.mxu1 %vm17184_vm2, %v17182_v1 }
 0x8ba   : > { %9414 = vmatprep.subr.bf16.mxu0 %v17185_v10  ;;  %13253 = vmatprep.mubr.msk.bf16.mxu0 %vm3005_vm5, %v16483_v42 }
 0x8bb   : > { %v6426_v40 = vpop.f32.mrb[204].mxu1  ;;  %v7682_v22 = vpop.f32.mrb[68].mxu0  ;;  %15310 = vmatprep.subr.bf16.mxu1 %v17182_v1 }
 0x8bc   : > { %v20662_v37 = vadd.f32 %v6426_v40, %v20505_v59  ;;  %v15116_v56 = vpop.f32.mrb[205].mxu1  ;;  %v7684_v25 = vpop.f32.mrb[69].mxu0  ;;  %15311 = vmatpush3.bf16.msra.mxu1 %v16492_v39  ;;  %v16496_v40 = vld [vmem:[%s22213_s4 + $0x72c] ss:$8 sps:$4 sm:$0xff]  }
 0x8bd   : > { %9415 = vmatpush1.bf16.msra.mxu0 %v18300_v0  ;;  %v6429_v35 = vpop.f32.mrb[206].mxu1  ;;  %v7685_v55 = vpop.f32.mrb[70].mxu0  ;;  %15312 = vmatprep.subr.bf16.mxu1 %v17182_v1  ;;  %v16503_v25 = vld [vmem:[%s22214_s5 + $0x3b8] sm:$0xff]  }
 0x8be   : > { %v20670_v51 = vadd.f32 %v6429_v35, %v20513_v26  ;;  %v7722_v21 = vpack.c.bf16 %v7685_v55, %v7682_v22  ;;  %9416 = vmatprep.subr.bf16.mxu0 %v17185_v10  ;;  %v15117_v59 = vpop.f32.mrb[207].mxu1  ;;  %v7687_v9 = vpop.f32.mrb[71].mxu0  ;;  %v16502_v22 = vld [vmem:[%s22214_s5 + $0x3b0] sm:$0xff]  }
 0x8bf   : > { %v16494_v55 = vld [vmem:[%s22213_s4 + $0x728] ss:$8 sps:$4 sm:$0xff]  }
 0x8c0   : > { %15287 = vmatmul.mubr.bf16.gmra.mrb[56].mxu1 %v7722_v21  ;;  %9097 = vmatmul.mubr.bf16.gmra.mrb[176].mxu0 %v16481_v48 }
 0x8c1   : > { %9417 = vmatpush1.bf16.msra.mxu0 %v18308_v41  ;;  %15290 = vmatprep.mubr.msk.bf16.mxu1 %vm17184_vm2, %v17182_v1 }
 0x8c2   : > { %9418 = vmatprep.subr.bf16.mxu0 %v17185_v10  ;;  %13254 = vmatprep.mubr.msk.bf16.mxu0 %vm3005_vm5, %v16486_v50 }
 0x8c3   : > { %v6434_v26 = vpop.f32.mrb[208].mxu1  ;;  %v7690_v18 = vpop.f32.mrb[72].mxu0  ;;  %15313 = vmatpush3.bf16.msra.mxu1 %v16493_v44 }
 0x8c4   : > { %v20688_v16 = vadd.f32 %v6434_v26, %v20531_v14  ;;  %v15120_v24 = vpop.f32.mrb[209].mxu1  ;;  %v7692_v45 = vpop.f32.mrb[73].mxu0  ;;  %15314 = vmatprep.subr.bf16.mxu1 %v17182_v1 }
 0x8c5   : > { %9419 = vmatpush1.bf16.msra.mxu0 %v18316_v47  ;;  %v6437_v8 = vpop.f32.mrb[210].mxu1  ;;  %v7693_v33 = vpop.f32.mrb[74].mxu0  ;;  %v13237_v24 = vld [vmem:[%s22213_s4 + $0x748] sm:$0x33] }
 0x8c6   : > { %v20696_v6 = vadd.f32 %v6437_v8, %v20539_v27  ;;  %v7723_v15 = vpack.c.bf16 %v7693_v33, %v7690_v18  ;;  %9420 = vmatprep.subr.bf16.mxu0 %v17185_v10  ;;  %v15121_v14 = vpop.f32.mrb[211].mxu1  ;;  %v7695_v29 = vpop.f32.mrb[75].mxu0  ;;  %v16499_v8 = vld [vmem:[%s22213_s4 + $0x738] ss:$8 sps:$4 sm:$0xff]  }
 0x8c7   : > { %15315 = vmatpush3.bf16.msra.mxu1 %v16497_v53 }
 0x8c8   : > { %15291 = vmatmul.mubr.bf16.gmra.mrb[60].mxu1 %v7723_v15  ;;  %9105 = vmatmul.mubr.bf16.gmra.mrb[180].mxu0 %v16484_v12 }
 0x8c9   : > { %9421 = vmatpush1.bf16.msra.mxu0 %v18324_v3  ;;  %15294 = vmatprep.mubr.msk.bf16.mxu1 %vm17184_vm2, %v17182_v1 }
 0x8ca   : > { %9422 = vmatprep.subr.bf16.mxu0 %v17185_v10  ;;  %13255 = vmatprep.mubr.msk.bf16.mxu0 %vm3005_vm5, %v16491_v52 }
 0x8cb   : > { %v6442_v27 = vpop.f32.mrb[212].mxu1  ;;  %v7698_v43 = vpop.f32.mrb[76].mxu0  ;;  %15316 = vmatprep.subr.bf16.mxu1 %v17182_v1 }
 0x8cc   : > { %v20712_v38 = vadd.f32 %v6442_v27, %v20555_v23  ;;  %v15124_v11 = vpop.f32.mrb[213].mxu1  ;;  %v7700_v34 = vpop.f32.mrb[77].mxu0  ;;  %15317 = vmatpush3.bf16.msra.mxu1 %v16498_v49 }
 0x8cd   : > { %9423 = vmatpush1.bf16.msra.mxu0 %v18332_v61  ;;  %v6445_v19 = vpop.f32.mrb[214].mxu1  ;;  %v7701_v13 = vpop.f32.mrb[78].mxu0  ;;  %15318 = vmatprep.subr.bf16.mxu1 %v17182_v1 }
 0x8ce   : > { %v20720_v58 = vadd.f32 %v6445_v19, %v20563_v2  ;;  %v7724_v42 = vpack.c.bf16 %v7701_v13, %v7698_v43  ;;  %9424 = vmatprep.subr.bf16.mxu0 %v17185_v10  ;;  %v15125_v23 = vpop.f32.mrb[215].mxu1  ;;  %v7703_v39 = vpop.f32.mrb[79].mxu0  ;;  %v13250_v19 = vcombine.low %v13237_v24, %v13237_v24 }
 0x8d0   : > { %15295 = vmatmul.mubr.bf16.gmra.mrb[64].mxu1 %v7724_v42  ;;  %9113 = vmatmul.mubr.bf16.gmra.mrb[184].mxu0 %v16489_v4 }
 0x8d1   : > { %9425 = vmatpush1.bf16.msra.mxu0 %v18344_v62  ;;  %15298 = vmatprep.mubr.msk.bf16.mxu1 %vm17184_vm2, %v17182_v1 }
 0x8d2   : > { %9426 = vmatprep.subr.bf16.mxu0 %v17185_v10  ;;  %13256 = vmatprep.mubr.msk.bf16.mxu0 %vm3005_vm5, %v16496_v40 }
 0x8d3   : > { %v6450_v2 = vpop.f32.mrb[216].mxu1  ;;  %v7706_v56 = vpop.f32.mrb[80].mxu0  ;;  %15319 = vmatpush3.bf16.msra.mxu1 %v16502_v22 }
 0x8d4   : > { %v20738_v48 = vadd.f32 %v6450_v2, %v20581_v57  ;;  %v7708_v35 = vpop.f32.mrb[81].mxu0  ;;  %v15128_v21 = vpop.f32.mrb[217].mxu1  ;;  %15320 = vmatprep.subr.bf16.mxu1 %v17182_v1  ;;  %v16501_v57 = vld [vmem:[%s22213_s4 + $0x73c] ss:$8 sps:$4 sm:$0xff]  }
 0x8d5   : > { %9427 = vmatpush1.bf16.msra.mxu0 %v18352_v46  ;;  %v7709_v59 = vpop.f32.mrb[82].mxu0  ;;  %v6453_v9 = vpop.f32.mrb[218].mxu1  ;;  %v16515_v2 = vld [vmem:[%s22214_s5 + $0x3c0] sm:$0xff]  }
 0x8d6   : > { %v7725_v50 = vpack.c.bf16 %v7709_v59, %v7706_v56  ;;  %9428 = vmatprep.subr.bf16.mxu0 %v17185_v10  ;;  %v15129_v44 = vpop.f32.mrb[219].mxu1  ;;  %v7711_v26 = vpop.f32.mrb[83].mxu0  ;;  %v16506_v59 = vld [vmem:[%s22213_s4 + $0x750] ss:$8 sps:$4 sm:$0xff]  }
 0x8d7   : > { %15321 = vmatpush3.bf16.msra.mxu1 %v16503_v25  ;;  %v16516_v25 = vld [vmem:[%s22214_s5 + $0x3c8] sm:$0xff]  }
 0x8d8   : > { %15299 = vmatmul.mubr.bf16.gmra.mrb[68].mxu1 %v7725_v50  ;;  %9121 = vmatmul.mubr.bf16.gmra.mrb[188].mxu0 %v16494_v55 }
 0x8d9   : > { %9429 = vmatpush1.bf16.msra.mxu0 %v18360_v28  ;;  %15302 = vmatprep.mubr.msk.bf16.mxu1 %vm17184_vm2, %v17182_v1 }
 0x8da   : > { %9430 = vmatprep.subr.bf16.mxu0 %v17185_v10  ;;  %13257 = vmatprep.mubr.msk.bf16.mxu0 %vm3005_vm5, %v16501_v57 }
 0x8db   : > { %v6758_v18 = vpop.f32.mrb[220].mxu1  ;;  %v7714_v53 = vpop.f32.mrb[84].mxu0  ;;  %15350 = vmatprep.subr.bf16.mxu1 %v17182_v1 }
 0x8dc   : > { %v20759_v45 = vadd.f32 %v6758_v18, %v20602_v63  ;;  %v15148_v12 = vpop.f32.mrb[221].mxu1  ;;  %v7716_v33 = vpop.f32.mrb[85].mxu0  ;;  %v7726_v52 = vpack.c.bf16 %v7714_v53, %v7714_v53  ;;  %v13251_v63 = vcombine.high %v13237_v24, %v13237_v24  ;;  %v16520_v53 = vld [vmem:[%s22214_s5 + $0x3d0] sm:$0xff]  }
 0x8dd   : > { %9431 = vmatpush1.bf16.msra.mxu0 %v18368_v54  ;;  %v6761_v15 = vpop.f32.mrb[222].mxu1  ;;  %v7717_v14 = vpop.f32.mrb[86].mxu0 }
 0x8de   : > { %v20766_v29 = vadd.f32 %v6761_v15, %v20609_v20  ;;  %9432 = vmatprep.subr.bf16.mxu0 %v17185_v10  ;;  %v15149_v49 = vpop.f32.mrb[223].mxu1  ;;  %v7718_v27 = vpop.f32.mrb[87].mxu0  ;;  %v16509_v15 = vld [vmem:[%s22213_s4 + $0x760] ss:$8 sps:$4 sm:$0xff]  }
 0x8e0   : > { %15303 = vmatmul.mubr.bf16.gmra.mrb[72].mxu1 %v7726_v52  ;;  %9129 = vmatmul.mubr.bf16.gmra.mrb[192].mxu0 %v16499_v8 }
 0x8e1   : > { %9433 = vmatpush1.bf16.msra.mxu0 %v18376_v31  ;;  %15322 = vmatprep.mubr.msk.bf16.mxu1 %vm17184_vm2, %v17182_v1 }
 0x8e2   : > { %9434 = vmatprep.subr.bf16.mxu0 %v17185_v10  ;;  %13258 = vmatprep.mubr.msk.bf16.mxu0 %vm3005_vm5, %v13251_v63 }
 0x8e3   : > { %v6766_v43 = vpop.f32.mrb[224].mxu1  ;;  %v8022_v20 = vpop.f32.mrb[88].mxu0 }
 0x8e4   : > { %v20775_v11 = vadd.f32 %v6766_v43, %v20618_v60  ;;  %v15152_v34 = vpop.f32.mrb[225].mxu1  ;;  %v8024_v4 = vpop.f32.mrb[89].mxu0  ;;  %v16508_v60 = vld [vmem:[%s22213_s4 + $0x754] ss:$8 sps:$4 sm:$0xff]  }
 0x8e5   : > { %9435 = vmatpush1.bf16.msra.mxu0 %v18384_v7  ;;  %v6769_v13 = vpop.f32.mrb[226].mxu1  ;;  %v8025_v42 = vpop.f32.mrb[90].mxu0  ;;  %v16514_v43 = vld [vmem:[%s22213_s4 + $0x774] ss:$8 sps:$4 sm:$0xff]   ;;  %v16525_v4 = vld [vmem:[%s22214_s5 + $0x3e0] sm:$0xff]  }
 0x8e6   : > { %v20779_v23 = vadd.f32 %v6769_v13, %v20622_v30  ;;  %v8076_v39 = vpack.c.bf16 %v8025_v42, %v8022_v20  ;;  %9436 = vmatprep.subr.bf16.mxu0 %v17185_v10  ;;  %v15153_v40 = vpop.f32.mrb[227].mxu1  ;;  %v8027_v22 = vpop.f32.mrb[91].mxu0  ;;  %v16521_v20 = vld [vmem:[%s22214_s5 + $0x3d8] sm:$0xff]  }
 0x8e8   : > { %15323 = vmatmul.mubr.bf16.vlgmr.msra.gmra.mrb[76].mxu1 %v8076_v39  ;;  %9137 = vmatmul.mubr.bf16.gmra.mrb[196].mxu0 %v13250_v19  ;;  %v16512_v39 = vld [vmem:[%s22213_s4 + $0x770] ss:$8 sps:$4 sm:$0xff]  }
 0x8e9   : > { %9437 = vmatpush1.bf16.msra.mxu0 %v18392_v36  ;;  %15326 = vmatprep.mubr.msk.bf16.mxu1 %vm17184_vm2, %v17182_v1 }
 0x8ea   : > { %13310 = vmatprep.mubr.msk.bf16.mxu0 %vm3005_vm5, %v16508_v60  ;;  %9768 = vmatprep.subr.bf16.mxu0 %v17185_v10 }
 0x8eb   : > { %v6774_v30 = vpop.f32.mrb[228].mxu1  ;;  %v8030_v56 = vpop.f32.mrb[92].mxu0  ;;  %15351 = vmatpush3.bf16.msra.mxu1 %v16515_v2 }
 0x8ec   : > { %v20797_v35 = vadd.f32 %v6774_v30, %v20640_v32  ;;  %v15156_v55 = vpop.f32.mrb[229].mxu1  ;;  %v8032_v21 = vpop.f32.mrb[93].mxu0  ;;  %15352 = vmatprep.subr.bf16.mxu1 %v17182_v1  ;;  %v16511_v32 = vld [vmem:[%s22213_s4 + $0x764] ss:$8 sps:$4 sm:$0xff]  }
 0x8ed   : > { %v6777_v9 = vpop.f32.mrb[230].mxu1  ;;  %v8033_v50 = vpop.f32.mrb[94].mxu0 }
 0x8ee   : > { %v20804_v44 = vadd.f32 %v6777_v9, %v20647_v5  ;;  %v8077_v26 = vpack.c.bf16 %v8033_v50, %v8030_v56  ;;  %v15157_v57 = vpop.f32.mrb[231].mxu1  ;;  %v8035_v18 = vpop.f32.mrb[95].mxu0  ;;  %v16519_v56 = vld [vmem:[%s22213_s4 + $0x784] ss:$8 sps:$4 sm:$0xff]   ;;  %v16517_v50 = vld [vmem:[%s22213_s4 + $0x780] ss:$8 sps:$4 sm:$0xff]  }
 0x8ef   : > { %15353 = vmatpush3.bf16.msra.mxu1 %v16516_v25  ;;  %v16526_v25 = vld [vmem:[%s22214_s5 + $0x3e8] sm:$0xff]  }
 0x8f0   : > { %15327 = vmatmul.mubr.bf16.gmra.mrb[80].mxu1 %v8077_v26  ;;  %9445 = vmatmul.mubr.bf16.vlgmr.msra.gmra.mrb[200].mxu0 %v16506_v59 }
 0x8f1   : > { %9769 = vmatpush1.bf16.msra.mxu0 %v18292_v17  ;;  %15330 = vmatprep.mubr.msk.bf16.mxu1 %vm17184_vm2, %v17182_v1 }
 0x8f2   : > { %9770 = vmatprep.subr.bf16.mxu0 %v17185_v10  ;;  %13311 = vmatprep.mubr.msk.bf16.mxu0 %vm3005_vm5, %v16511_v32 }
 0x8f3   : > { %v6782_v5 = vpop.f32.mrb[232].mxu1  ;;  %v8038_v24 = vpop.f32.mrb[96].mxu0  ;;  %15354 = vmatprep.subr.bf16.mxu1 %v17182_v1 }
 0x8f4   : > { %v20819_v12 = vadd.f32 %v6782_v5, %v20662_v37  ;;  %v15160_v8 = vpop.f32.mrb[233].mxu1  ;;  %v8040_v33 = vpop.f32.mrb[97].mxu0  ;;  %15355 = vmatpush3.bf16.msra.mxu1 %v16520_v53  ;;  %v16524_v5 = vld [vmem:[%s22213_s4 + $0x794] ss:$8 sps:$4 sm:$0xff]  }
 0x8f5   : > { %9771 = vmatpush1.bf16.msra.mxu0 %v18300_v0  ;;  %v6785_v14 = vpop.f32.mrb[234].mxu1  ;;  %v8041_v52 = vpop.f32.mrb[98].mxu0  ;;  %15356 = vmatprep.subr.bf16.mxu1 %v17182_v1  ;;  %v16531_v33 = vld [vmem:[%s22214_s5 + $0x3f8] sm:$0xff]  }
 0x8f6   : > { %v20827_v49 = vadd.f32 %v6785_v14, %v20670_v51  ;;  %v8078_v27 = vpack.c.bf16 %v8041_v52, %v8038_v24  ;;  %9772 = vmatprep.subr.bf16.mxu0 %v17185_v10  ;;  %v15161_v37 = vpop.f32.mrb[235].mxu1  ;;  %v8043_v63 = vpop.f32.mrb[99].mxu0  ;;  %v16530_v24 = vld [vmem:[%s22214_s5 + $0x3f0] sm:$0xff]  }
 0x8f7   : > { %v16522_v52 = vld [vmem:[%s22213_s4 + $0x790] ss:$8 sps:$4 sm:$0xff]  }
 0x8f8   : > { %15331 = vmatmul.mubr.bf16.gmra.mrb[84].mxu1 %v8078_v27  ;;  %9453 = vmatmul.mubr.bf16.gmra.mrb[204].mxu0 %v16509_v15 }
 0x8f9   : > { %9773 = vmatpush1.bf16.msra.mxu0 %v18308_v41  ;;  %15334 = vmatprep.mubr.msk.bf16.mxu1 %vm17184_vm2, %v17182_v1 }
 0x8fa   : > { %9774 = vmatprep.subr.bf16.mxu0 %v17185_v10  ;;  %13312 = vmatprep.mubr.msk.bf16.mxu0 %vm3005_vm5, %v16514_v43 }
 0x8fb   : > { %v6790_v51 = vpop.f32.mrb[236].mxu1  ;;  %v8046_v34 = vpop.f32.mrb[100].mxu0  ;;  %15357 = vmatpush3.bf16.msra.mxu1 %v16521_v20 }
 0x8fc   : > { %v20845_v19 = vadd.f32 %v6790_v51, %v20688_v16  ;;  %v15164_v13 = vpop.f32.mrb[237].mxu1  ;;  %v8048_v42 = vpop.f32.mrb[101].mxu0  ;;  %15358 = vmatprep.subr.bf16.mxu1 %v17182_v1 }
 0x8fd   : > { %9775 = vmatpush1.bf16.msra.mxu0 %v18316_v47  ;;  %v6793_v40 = vpop.f32.mrb[238].mxu1  ;;  %v8049_v22 = vpop.f32.mrb[102].mxu0  ;;  %v13295_v13 = vld [vmem:[%s22213_s4 + $0x7b0] sm:$0x33] }
 0x8fe   : > { %v20853_v60 = vadd.f32 %v6793_v40, %v20696_v6  ;;  %v8079_v2 = vpack.c.bf16 %v8049_v22, %v8046_v34  ;;  %9776 = vmatprep.subr.bf16.mxu0 %v17185_v10  ;;  %v15165_v16 = vpop.f32.mrb[239].mxu1  ;;  %v8051_v30 = vpop.f32.mrb[103].mxu0  ;;  %v16527_v40 = vld [vmem:[%s22213_s4 + $0x7a0] ss:$8 sps:$4 sm:$0xff]  }
 0x8ff   : > { %15359 = vmatpush3.bf16.msra.mxu1 %v16525_v4 }
 0x900   : > { %15335 = vmatmul.mubr.bf16.gmra.mrb[88].mxu1 %v8079_v2  ;;  %9461 = vmatmul.mubr.bf16.gmra.mrb[208].mxu0 %v16512_v39 }
 0x901   : > { %9777 = vmatpush1.bf16.msra.mxu0 %v18324_v3  ;;  %15338 = vmatprep.mubr.msk.bf16.mxu1 %vm17184_vm2, %v17182_v1 }
 0x902   : > { %9778 = vmatprep.subr.bf16.mxu0 %v17185_v10  ;;  %13313 = vmatprep.mubr.msk.bf16.mxu0 %vm3005_vm5, %v16519_v56 }
 0x903   : > { %v6798_v6 = vpop.f32.mrb[240].mxu1  ;;  %v8054_v55 = vpop.f32.mrb[104].mxu0  ;;  %15360 = vmatprep.subr.bf16.mxu1 %v17182_v1 }
 0x904   : > { %v20869_v21 = vadd.f32 %v6798_v6, %v20712_v38  ;;  %v15168_v59 = vpop.f32.mrb[241].mxu1  ;;  %v8056_v9 = vpop.f32.mrb[105].mxu0  ;;  %15361 = vmatpush3.bf16.msra.mxu1 %v16526_v25 }
 0x905   : > { %9779 = vmatpush1.bf16.msra.mxu0 %v18332_v61  ;;  %v6801_v26 = vpop.f32.mrb[242].mxu1  ;;  %v8057_v57 = vpop.f32.mrb[106].mxu0  ;;  %15362 = vmatprep.subr.bf16.mxu1 %v17182_v1 }
 0x906   : > { %v20877_v18 = vadd.f32 %v6801_v26, %v20720_v58  ;;  %v8080_v32 = vpack.c.bf16 %v8057_v57, %v8054_v55  ;;  %9780 = vmatprep.subr.bf16.mxu0 %v17185_v10  ;;  %v15169_v38 = vpop.f32.mrb[243].mxu1  ;;  %v8059_v53 = vpop.f32.mrb[107].mxu0  ;;  %v13308_v26 = vcombine.low %v13295_v13, %v13295_v13 }
 0x908   : > { %15339 = vmatmul.mubr.bf16.gmra.mrb[92].mxu1 %v8080_v32  ;;  %9469 = vmatmul.mubr.bf16.gmra.mrb[212].mxu0 %v16517_v50 }
 0x909   : > { %9781 = vmatpush1.bf16.msra.mxu0 %v18344_v62  ;;  %15342 = vmatprep.mubr.msk.bf16.mxu1 %vm17184_vm2, %v17182_v1 }
 0x90a   : > { %9782 = vmatprep.subr.bf16.mxu0 %v17185_v10  ;;  %13314 = vmatprep.mubr.msk.bf16.mxu0 %vm3005_vm5, %v16524_v5 }
 0x90b   : > { %v6806_v58 = vpop.f32.mrb[244].mxu1  ;;  %v8062_v8 = vpop.f32.mrb[108].mxu0  ;;  %15363 = vmatpush3.bf16.msra.mxu1 %v16530_v24 }
 0x90c   : > { %v20895_v15 = vadd.f32 %v6806_v58, %v20738_v48  ;;  %v8064_v14 = vpop.f32.mrb[109].mxu0  ;;  %v15172_v27 = vpop.f32.mrb[245].mxu1  ;;  %15364 = vmatprep.subr.bf16.mxu1 %v17182_v1  ;;  %v16529_v48 = vld [vmem:[%s22213_s4 + $0x7a4] ss:$8 sps:$4 sm:$0xff]  }
 0x90d   : > { %9783 = vmatpush1.bf16.msra.mxu0 %v18352_v46  ;;  %v8065_v37 = vpop.f32.mrb[110].mxu0  ;;  %v6809_v63 = vpop.f32.mrb[246].mxu1  ;;  %v16543_v58 = vld [vmem:[%s22214_s5 + $0x400] sm:$0xff]  }
 0x90e   : > { %v8081_v43 = vpack.c.bf16 %v8065_v37, %v8062_v8  ;;  %9784 = vmatprep.subr.bf16.mxu0 %v17185_v10  ;;  %v15173_v20 = vpop.f32.mrb[247].mxu1  ;;  %v8067_v51 = vpop.f32.mrb[111].mxu0  ;;  %v16534_v37 = vld [vmem:[%s22213_s4 + $0x7b8] ss:$8 sps:$4 sm:$0xff]  }
 0x90f   : > { %15365 = vmatpush3.bf16.msra.mxu1 %v16531_v33  ;;  %v16544_v33 = vld [vmem:[%s22214_s5 + $0x408] sm:$0xff]  }
 0x910   : > { %15343 = vmatmul.mubr.bf16.gmra.mrb[96].mxu1 %v8081_v43  ;;  %9477 = vmatmul.mubr.bf16.gmra.mrb[216].mxu0 %v16522_v52 }
 0x911   : > { %9785 = vmatpush1.bf16.msra.mxu0 %v18360_v28  ;;  %15346 = vmatprep.mubr.msk.bf16.mxu1 %vm17184_vm2, %v17182_v1 }
 0x912   : > { %9786 = vmatprep.subr.bf16.mxu0 %v17185_v10  ;;  %13315 = vmatprep.mubr.msk.bf16.mxu0 %vm3005_vm5, %v16529_v48 }
 0x913   : > { %v7114_v34 = vpop.f32.mrb[248].mxu1  ;;  %v8070_v4 = vpop.f32.mrb[112].mxu0  ;;  %15394 = vmatprep.subr.bf16.mxu1 %v17182_v1 }
 0x914   : > { %v20916_v42 = vadd.f32 %v7114_v34, %v20759_v45  ;;  %v15192_v39 = vpop.f32.mrb[249].mxu1  ;;  %v8072_v22 = vpop.f32.mrb[113].mxu0  ;;  %v8082_v56 = vpack.c.bf16 %v8070_v4, %v8070_v4  ;;  %v13309_v45 = vcombine.high %v13295_v13, %v13295_v13  ;;  %v16548_v4 = vld [vmem:[%s22214_s5 + $0x410] sm:$0xff]  }
 0x915   : > { %9787 = vmatpush1.bf16.msra.mxu0 %v18368_v54  ;;  %v7117_v2 = vpop.f32.mrb[250].mxu1  ;;  %v8073_v16 = vpop.f32.mrb[114].mxu0 }
 0x916   : > { %v20923_v30 = vadd.f32 %v7117_v2, %v20766_v29  ;;  %9788 = vmatprep.subr.bf16.mxu0 %v17185_v10  ;;  %v15193_v25 = vpop.f32.mrb[251].mxu1  ;;  %v8074_v6 = vpop.f32.mrb[115].mxu0  ;;  %v16537_v2 = vld [vmem:[%s22213_s4 + $0x7c8] ss:$8 sps:$4 sm:$0xff]  }
 0x918   : > { %15347 = vmatmul.mubr.bf16.gmra.mrb[100].mxu1 %v8082_v56  ;;  %9485 = vmatmul.mubr.bf16.gmra.mrb[220].mxu0 %v16527_v40 }
 0x919   : > { %9789 = vmatpush1.bf16.msra.mxu0 %v18376_v31  ;;  %15366 = vmatprep.mubr.msk.bf16.mxu1 %vm17184_vm2, %v17182_v1 }
 0x91a   : > { %9790 = vmatprep.subr.bf16.mxu0 %v17185_v10  ;;  %13316 = vmatprep.mubr.msk.bf16.mxu0 %vm3005_vm5, %v13309_v45 }
 0x91b   : > { %v7122_v55 = vpop.f32.mrb[252].mxu1  ;;  %v8378_v29 = vpop.f32.mrb[116].mxu0 }
 0x91c   : > { %v20932_v59 = vadd.f32 %v7122_v55, %v20775_v11  ;;  %v15196_v9 = vpop.f32.mrb[253].mxu1  ;;  %v8380_v50 = vpop.f32.mrb[117].mxu0  ;;  %v16536_v11 = vld [vmem:[%s22213_s4 + $0x7bc] ss:$8 sps:$4 sm:$0xff]  }
 0x91d   : > { %9791 = vmatpush1.bf16.msra.mxu0 %v18384_v7  ;;  %v7125_v57 = vpop.f32.mrb[254].mxu1  ;;  %v8381_v32 = vpop.f32.mrb[118].mxu0  ;;  %v16542_v55 = vld [vmem:[%s22213_s4 + $0x7dc] ss:$8 sps:$4 sm:$0xff]  }
 0x91e   : > { %v20936_v38 = vadd.f32 %v7125_v57, %v20779_v23  ;;  %v8432_v53 = vpack.c.bf16 %v8381_v32, %v8378_v29  ;;  %9792 = vmatprep.subr.bf16.mxu0 %v17185_v10  ;;  %v15197_v5 = vpop.f32.mrb[255].mxu1  ;;  %v8383_v24 = vpop.f32.mrb[119].mxu0  ;;  %v16549_v29 = vld [vmem:[%s22214_s5 + $0x418] sm:$0xff]   ;;  %v16553_v50 = vld [vmem:[%s22214_s5 + $0x420] sm:$0xff]  }
 0x920   : > { %15367 = vmatmul.mubr.bf16.vlgmr.msra.gmra.mrb[104].mxu1 %v8432_v53  ;;  %9493 = vmatmul.mubr.bf16.gmra.mrb[224].mxu0 %v13308_v26  ;;  %v16540_v53 = vld [vmem:[%s22213_s4 + $0x7d8] ss:$8 sps:$4 sm:$0xff]  }
 0x921   : > { %9793 = vmatpush1.bf16.msra.mxu0 %v18392_v36  ;;  %15370 = vmatprep.mubr.msk.bf16.mxu1 %vm17184_vm2, %v17182_v1 }
 0x922   : > { %13368 = vmatprep.mubr.msk.bf16.mxu0 %vm3005_vm5, %v16536_v11  ;;  %10124 = vmatprep.subr.bf16.mxu0 %v17185_v10 }
 0x923   : > { %v7130_v23 = vpop.f32.mrb[0].mxu1  ;;  %v8386_v8 = vpop.f32.mrb[120].mxu0  ;;  %15395 = vmatpush3.bf16.msra.mxu1 %v16543_v58 }
 0x924   : > { %v20954_v14 = vadd.f32 %v7130_v23, %v20797_v35  ;;  %v15200_v52 = vpop.f32.mrb[1].mxu1  ;;  %v8388_v27 = vpop.f32.mrb[121].mxu0  ;;  %15396 = vmatprep.subr.bf16.mxu1 %v17182_v1  ;;  %v16539_v35 = vld [vmem:[%s22213_s4 + $0x7cc] ss:$8 sps:$4 sm:$0xff]  }
 0x925   : > { %v7133_v63 = vpop.f32.mrb[2].mxu1  ;;  %v8389_v43 = vpop.f32.mrb[122].mxu0 }
 0x926   : > { %v20961_v20 = vadd.f32 %v7133_v63, %v20804_v44  ;;  %v8433_v51 = vpack.c.bf16 %v8389_v43, %v8386_v8  ;;  %v15201_v48 = vpop.f32.mrb[3].mxu1  ;;  %v8391_v34 = vpop.f32.mrb[123].mxu0  ;;  %v16547_v8 = vld [vmem:[%s22213_s4 + $0x7ec] ss:$8 sps:$4 sm:$0xff]   ;;  %v16545_v43 = vld [vmem:[%s22213_s4 + $0x7e8] ss:$8 sps:$4 sm:$0xff]  }
 0x927   : > { %15397 = vmatpush3.bf16.msra.mxu1 %v16544_v33  ;;  %v16554_v33 = vld [vmem:[%s22214_s5 + $0x428] sm:$0xff]  }
 0x928   : > { %15371 = vmatmul.mubr.bf16.gmra.mrb[108].mxu1 %v8433_v51  ;;  %9801 = vmatmul.mubr.bf16.vlgmr.msra.gmra.mrb[228].mxu0 %v16534_v37 }
 0x929   : > { %10125 = vmatpush1.bf16.msra.mxu0 %v18292_v17  ;;  %15374 = vmatprep.mubr.msk.bf16.mxu1 %vm17184_vm2, %v17182_v1 }
 0x92a   : > { %10126 = vmatprep.subr.bf16.mxu0 %v17185_v10  ;;  %13369 = vmatprep.mubr.msk.bf16.mxu0 %vm3005_vm5, %v16539_v35 }
 0x92b   : > { %v7138_v44 = vpop.f32.mrb[4].mxu1  ;;  %v8394_v13 = vpop.f32.mrb[124].mxu0  ;;  %15398 = vmatprep.subr.bf16.mxu1 %v17182_v1 }
 0x92c   : > { %v20976_v39 = vadd.f32 %v7138_v44, %v20819_v12  ;;  %v15204_v40 = vpop.f32.mrb[5].mxu1  ;;  %v8396_v22 = vpop.f32.mrb[125].mxu0  ;;  %15399 = vmatpush3.bf16.msra.mxu1 %v16548_v4  ;;  %v16552_v44 = vld [vmem:[%s22213_s4 + $0x7fc] ss:$8 sps:$4 sm:$0xff]  }
 0x92d   : > { %10127 = vmatpush1.bf16.msra.mxu0 %v18300_v0  ;;  %v7141_v16 = vpop.f32.mrb[6].mxu1  ;;  %v8397_v56 = vpop.f32.mrb[126].mxu0  ;;  %15400 = vmatprep.subr.bf16.mxu1 %v17182_v1  ;;  %v16559_v22 = vld [vmem:[%s22214_s5 + $0x438] sm:$0xff]  }
 0x92e   : > { %v20984_v25 = vadd.f32 %v7141_v16, %v20827_v49  ;;  %v8434_v6 = vpack.c.bf16 %v8397_v56, %v8394_v13  ;;  %10128 = vmatprep.subr.bf16.mxu0 %v17185_v10  ;;  %v15205_v12 = vpop.f32.mrb[7].mxu1  ;;  %v8399_v45 = vpop.f32.mrb[127].mxu0  ;;  %v16558_v13 = vld [vmem:[%s22214_s5 + $0x430] sm:$0xff]   ;;  %v16550_v56 = vld [vmem:[%s22213_s4 + $0x7f8] ss:$8 sps:$4 sm:$0xff]  }
 0x930   : > { %15375 = vmatmul.mubr.bf16.gmra.mrb[112].mxu1 %v8434_v6  ;;  %9809 = vmatmul.mubr.bf16.gmra.mrb[232].mxu0 %v16537_v2 }
 0x931   : > { %10129 = vmatpush1.bf16.msra.mxu0 %v18308_v41  ;;  %15378 = vmatprep.mubr.msk.bf16.mxu1 %vm17184_vm2, %v17182_v1 }
 0x932   : > { %10130 = vmatprep.subr.bf16.mxu0 %v17185_v10  ;;  %13370 = vmatprep.mubr.msk.bf16.mxu0 %vm3005_vm5, %v16542_v55 }
 0x933   : > { %v7146_v49 = vpop.f32.mrb[8].mxu1  ;;  %v8402_v9 = vpop.f32.mrb[128].mxu0  ;;  %15401 = vmatpush3.bf16.msra.mxu1 %v16549_v29 }
 0x934   : > { %v21002_v26 = vadd.f32 %v7146_v49, %v20845_v19  ;;  %v15208_v57 = vpop.f32.mrb[9].mxu1  ;;  %v8404_v32 = vpop.f32.mrb[129].mxu0  ;;  %15402 = vmatprep.subr.bf16.mxu1 %v17182_v1 }
 0x935   : > { %10131 = vmatpush1.bf16.msra.mxu0 %v18316_v47  ;;  %v7149_v5 = vpop.f32.mrb[10].mxu1  ;;  %v8405_v24 = vpop.f32.mrb[130].mxu0  ;;  %v13353_v57 = vld [vmem:[%s22213_s4 + $0x818] sm:$0x33] }
 0x936   : > { %v21010_v11 = vadd.f32 %v7149_v5, %v20853_v60  ;;  %v8435_v58 = vpack.c.bf16 %v8405_v24, %v8402_v9  ;;  %10132 = vmatprep.subr.bf16.mxu0 %v17185_v10  ;;  %v15209_v19 = vpop.f32.mrb[11].mxu1  ;;  %v8407_v23 = vpop.f32.mrb[131].mxu0  ;;  %v16555_v5 = vld [vmem:[%s22213_s4 + $0x808] ss:$8 sps:$4 sm:$0xff]  }
 0x937   : > { %15403 = vmatpush3.bf16.msra.mxu1 %v16553_v50 }
 0x938   : > { %15379 = vmatmul.mubr.bf16.gmra.mrb[116].mxu1 %v8435_v58  ;;  %9817 = vmatmul.mubr.bf16.gmra.mrb[236].mxu0 %v16540_v53 }
 0x939   : > { %10133 = vmatpush1.bf16.msra.mxu0 %v18324_v3  ;;  %15382 = vmatprep.mubr.msk.bf16.mxu1 %vm17184_vm2, %v17182_v1 }
 0x93a   : > { %10134 = vmatprep.subr.bf16.mxu0 %v17185_v10  ;;  %13371 = vmatprep.mubr.msk.bf16.mxu0 %vm3005_vm5, %v16547_v8 }
 0x93b   : > { %v7154_v60 = vpop.f32.mrb[12].mxu1  ;;  %v8410_v52 = vpop.f32.mrb[132].mxu0  ;;  %15404 = vmatprep.subr.bf16.mxu1 %v17182_v1 }
 0x93c   : > { %v21026_v27 = vadd.f32 %v7154_v60, %v20869_v21  ;;  %v15212_v37 = vpop.f32.mrb[13].mxu1  ;;  %v8412_v63 = vpop.f32.mrb[133].mxu0  ;;  %15405 = vmatpush3.bf16.msra.mxu1 %v16554_v33 }
 0x93d   : > { %10135 = vmatpush1.bf16.msra.mxu0 %v18332_v61  ;;  %v7157_v51 = vpop.f32.mrb[14].mxu1  ;;  %v8413_v48 = vpop.f32.mrb[134].mxu0  ;;  %15406 = vmatprep.subr.bf16.mxu1 %v17182_v1 }
 0x93e   : > { %v21034_v34 = vadd.f32 %v7157_v51, %v20877_v18  ;;  %v8436_v35 = vpack.c.bf16 %v8413_v48, %v8410_v52  ;;  %10136 = vmatprep.subr.bf16.mxu0 %v17185_v10  ;;  %v15213_v21 = vpop.f32.mrb[15].mxu1  ;;  %v8415_v4 = vpop.f32.mrb[135].mxu0  ;;  %v13366_v51 = vcombine.low %v13353_v57, %v13353_v57 }
 0x940   : > { %15383 = vmatmul.mubr.bf16.gmra.mrb[120].mxu1 %v8436_v35  ;;  %9825 = vmatmul.mubr.bf16.gmra.mrb[240].mxu0 %v16545_v43 }
 0x941   : > { %10137 = vmatpush1.bf16.msra.mxu0 %v18344_v62  ;;  %15386 = vmatprep.mubr.msk.bf16.mxu1 %vm17184_vm2, %v17182_v1 }
 0x942   : > { %10138 = vmatprep.subr.bf16.mxu0 %v17185_v10  ;;  %13372 = vmatprep.mubr.msk.bf16.mxu0 %vm3005_vm5, %v16552_v44 }
 0x943   : > { %v7162_v18 = vpop.f32.mrb[16].mxu1  ;;  %v8418_v40 = vpop.f32.mrb[136].mxu0  ;;  %15407 = vmatpush3.bf16.msra.mxu1 %v16558_v13 }
 0x944   : > { %v21052_v2 = vadd.f32 %v7162_v18, %v20895_v15  ;;  %v8420_v16 = vpop.f32.mrb[137].mxu0  ;;  %v15216_v6 = vpop.f32.mrb[17].mxu1  ;;  %15408 = vmatprep.subr.bf16.mxu1 %v17182_v1  ;;  %v16557_v15 = vld [vmem:[%s22213_s4 + $0x80c] ss:$8 sps:$4 sm:$0xff]   ;;  %v16571_v18 = vld [vmem:[%s22214_s5 + $0x440] sm:$0xff]  }
 0x945   : > { %10139 = vmatpush1.bf16.msra.mxu0 %v18352_v46  ;;  %v8421_v12 = vpop.f32.mrb[138].mxu0  ;;  %v7165_v45 = vpop.f32.mrb[18].mxu1 }
 0x946   : > { %v8437_v55 = vpack.c.bf16 %v8421_v12, %v8418_v40  ;;  %10140 = vmatprep.subr.bf16.mxu0 %v17185_v10  ;;  %v15217_v29 = vpop.f32.mrb[19].mxu1  ;;  %v8423_v49 = vpop.f32.mrb[139].mxu0  ;;  %v16562_v12 = vld [vmem:[%s22213_s4 + $0x820] ss:$8 sps:$4 sm:$0xff]  }
 0x947   : > { %15409 = vmatpush3.bf16.msra.mxu1 %v16559_v22  ;;  %v16572_v22 = vld [vmem:[%s22214_s5 + $0x448] sm:$0xff]  }
 0x948   : > { %15387 = vmatmul.mubr.bf16.gmra.mrb[124].mxu1 %v8437_v55  ;;  %9833 = vmatmul.mubr.bf16.gmra.mrb[244].mxu0 %v16550_v56 }
 0x949   : > { %10141 = vmatpush1.bf16.msra.mxu0 %v18360_v28  ;;  %15390 = vmatprep.mubr.msk.bf16.mxu1 %vm17184_vm2, %v17182_v1 }
 0x94a   : > { %10142 = vmatprep.subr.bf16.mxu0 %v17185_v10  ;;  %13373 = vmatprep.mubr.msk.bf16.mxu0 %vm3005_vm5, %v16557_v15 }
 0x94b   : > { %v7470_v9 = vpop.f32.mrb[20].mxu1  ;;  %v8426_v50 = vpop.f32.mrb[140].mxu0  ;;  %15438 = vmatprep.subr.bf16.mxu1 %v17182_v1 }
 0x94c   : > { %v21073_v32 = vadd.f32 %v7470_v9, %v20916_v42  ;;  %v15236_v53 = vpop.f32.mrb[21].mxu1  ;;  %v8428_v24 = vpop.f32.mrb[141].mxu0  ;;  %v8438_v8 = vpack.c.bf16 %v8426_v50, %v8426_v50  ;;  %v13367_v42 = vcombine.high %v13353_v57, %v13353_v57  ;;  %v16576_v50 = vld [vmem:[%s22214_s5 + $0x450] sm:$0xff]  }
 0x94d   : > { %10143 = vmatpush1.bf16.msra.mxu0 %v18368_v54  ;;  %v7473_v58 = vpop.f32.mrb[22].mxu1  ;;  %v8429_v19 = vpop.f32.mrb[142].mxu0 }
 0x94e   : > { %v21080_v23 = vadd.f32 %v7473_v58, %v20923_v30  ;;  %10144 = vmatprep.subr.bf16.mxu0 %v17185_v10  ;;  %v15237_v33 = vpop.f32.mrb[23].mxu1  ;;  %v8430_v60 = vpop.f32.mrb[143].mxu0  ;;  %v16565_v58 = vld [vmem:[%s22213_s4 + $0x830] ss:$8 sps:$4 sm:$0xff]  }
 0x950   : > { %15391 = vmatmul.mubr.bf16.gmra.mrb[128].mxu1 %v8438_v8  ;;  %9841 = vmatmul.mubr.bf16.gmra.mrb[248].mxu0 %v16555_v5 }
 0x951   : > { %10145 = vmatpush1.bf16.msra.mxu0 %v18376_v31  ;;  %15410 = vmatprep.mubr.msk.bf16.mxu1 %vm17184_vm2, %v17182_v1 }
 0x952   : > { %10146 = vmatprep.subr.bf16.mxu0 %v17185_v10  ;;  %13374 = vmatprep.mubr.msk.bf16.mxu0 %vm3005_vm5, %v13367_v42 }
 0x953   : > { %v7478_v52 = vpop.f32.mrb[24].mxu1  ;;  %v8734_v30 = vpop.f32.mrb[144].mxu0 }
 0x954   : > { %v21089_v37 = vadd.f32 %v7478_v52, %v20932_v59  ;;  %v15240_v63 = vpop.f32.mrb[25].mxu1  ;;  %v8736_v43 = vpop.f32.mrb[145].mxu0  ;;  %v16564_v59 = vld [vmem:[%s22213_s4 + $0x824] ss:$8 sps:$4 sm:$0xff]  }
 0x955   : > { %10147 = vmatpush1.bf16.msra.mxu0 %v18384_v7  ;;  %v7481_v48 = vpop.f32.mrb[26].mxu1  ;;  %v8737_v35 = vpop.f32.mrb[146].mxu0  ;;  %v16570_v52 = vld [vmem:[%s22213_s4 + $0x844] ss:$8 sps:$4 sm:$0xff]  }
 0x956   : > { %v21093_v21 = vadd.f32 %v7481_v48, %v20936_v38  ;;  %v8788_v4 = vpack.c.bf16 %v8737_v35, %v8734_v30  ;;  %10148 = vmatprep.subr.bf16.mxu0 %v17185_v10  ;;  %v15241_v44 = vpop.f32.mrb[27].mxu1  ;;  %v8739_v13 = vpop.f32.mrb[147].mxu0  ;;  %v16577_v30 = vld [vmem:[%s22214_s5 + $0x458] sm:$0xff]   ;;  %v16581_v43 = vld [vmem:[%s22214_s5 + $0x460] sm:$0xff]  }
 0x958   : > { %15411 = vmatmul.mubr.bf16.vlgmr.msra.gmra.mrb[132].mxu1 %v8788_v4  ;;  %9849 = vmatmul.mubr.bf16.gmra.mrb[252].mxu0 %v13366_v51  ;;  %v16568_v4 = vld [vmem:[%s22213_s4 + $0x840] ss:$8 sps:$4 sm:$0xff]  }
 0x959   : > { %10149 = vmatpush1.bf16.msra.mxu0 %v18392_v36  ;;  %15414 = vmatprep.mubr.msk.bf16.mxu1 %vm17184_vm2, %v17182_v1 }
 0x95a   : > { %13426 = vmatprep.mubr.msk.bf16.mxu0 %vm3005_vm5, %v16564_v59  ;;  %10480 = vmatprep.subr.bf16.mxu0 %v17185_v10 }
 0x95b   : > { %v7486_v38 = vpop.f32.mrb[28].mxu1  ;;  %v8742_v40 = vpop.f32.mrb[148].mxu0  ;;  %15439 = vmatpush3.bf16.msra.mxu1 %v16571_v18 }
 0x95c   : > { %v21111_v16 = vadd.f32 %v7486_v38, %v20954_v14  ;;  %v15244_v56 = vpop.f32.mrb[29].mxu1  ;;  %v8744_v6 = vpop.f32.mrb[149].mxu0  ;;  %15440 = vmatprep.subr.bf16.mxu1 %v17182_v1  ;;  %v16567_v14 = vld [vmem:[%s22213_s4 + $0x834] ss:$8 sps:$4 sm:$0xff]  }
 0x95d   : > { %v7489_v45 = vpop.f32.mrb[30].mxu1  ;;  %v8745_v55 = vpop.f32.mrb[150].mxu0 }
 0x95e   : > { %v21118_v29 = vadd.f32 %v7489_v45, %v20961_v20  ;;  %v8789_v49 = vpack.c.bf16 %v8745_v55, %v8742_v40  ;;  %v15245_v15 = vpop.f32.mrb[31].mxu1  ;;  %v8747_v9 = vpop.f32.mrb[151].mxu0  ;;  %v16575_v40 = vld [vmem:[%s22213_s4 + $0x854] ss:$8 sps:$4 sm:$0xff]   ;;  %v16573_v55 = vld [vmem:[%s22213_s4 + $0x850] ss:$8 sps:$4 sm:$0xff]  }
 0x95f   : > { %15441 = vmatpush3.bf16.msra.mxu1 %v16572_v22  ;;  %v16582_v22 = vld [vmem:[%s22214_s5 + $0x468] sm:$0xff]  }
 0x960   : > { %15415 = vmatmul.mubr.bf16.gmra.mrb[136].mxu1 %v8789_v49  ;;  %10157 = vmatmul.mubr.bf16.vlgmr.msra.gmra.mrb[0].mxu0 %v16562_v12 }
 0x961   : > { %10481 = vmatpush1.bf16.msra.mxu0 %v18292_v17  ;;  %15418 = vmatprep.mubr.msk.bf16.mxu1 %vm17184_vm2, %v17182_v1 }
 0x962   : > { %10482 = vmatprep.subr.bf16.mxu0 %v17185_v10  ;;  %13427 = vmatprep.mubr.msk.bf16.mxu0 %vm3005_vm5, %v16567_v14 }
 0x963   : > { %v7494_v20 = vpop.f32.mrb[32].mxu1  ;;  %v8750_v57 = vpop.f32.mrb[152].mxu0  ;;  %15442 = vmatprep.subr.bf16.mxu1 %v17182_v1 }
 0x964   : > { %v21133_v53 = vadd.f32 %v7494_v20, %v20976_v39  ;;  %v15248_v5 = vpop.f32.mrb[33].mxu1  ;;  %v8752_v24 = vpop.f32.mrb[153].mxu0  ;;  %15443 = vmatpush3.bf16.msra.mxu1 %v16576_v50  ;;  %v16580_v20 = vld [vmem:[%s22213_s4 + $0x864] ss:$8 sps:$4 sm:$0xff]  }
 0x965   : > { %10483 = vmatpush1.bf16.msra.mxu0 %v18300_v0  ;;  %v7497_v19 = vpop.f32.mrb[34].mxu1  ;;  %v8753_v8 = vpop.f32.mrb[154].mxu0  ;;  %15444 = vmatprep.subr.bf16.mxu1 %v17182_v1  ;;  %v16587_v24 = vld [vmem:[%s22214_s5 + $0x478] sm:$0xff]  }
 0x966   : > { %v21141_v33 = vadd.f32 %v7497_v19, %v20984_v25  ;;  %v8790_v60 = vpack.c.bf16 %v8753_v8, %v8750_v57  ;;  %10484 = vmatprep.subr.bf16.mxu0 %v17185_v10  ;;  %v15249_v39 = vpop.f32.mrb[35].mxu1  ;;  %v8755_v42 = vpop.f32.mrb[155].mxu0  ;;  %v16586_v57 = vld [vmem:[%s22214_s5 + $0x470] sm:$0xff]   ;;  %v16578_v8 = vld [vmem:[%s22213_s4 + $0x860] ss:$8 sps:$4 sm:$0xff]  }
 0x968   : > { %15419 = vmatmul.mubr.bf16.gmra.mrb[140].mxu1 %v8790_v60  ;;  %10165 = vmatmul.mubr.bf16.gmra.mrb[4].mxu0 %v16565_v58 }
 0x969   : > { %10485 = vmatpush1.bf16.msra.mxu0 %v18308_v41  ;;  %15422 = vmatprep.mubr.msk.bf16.mxu1 %vm17184_vm2, %v17182_v1 }
 0x96a   : > { %10486 = vmatprep.subr.bf16.mxu0 %v17185_v10  ;;  %13428 = vmatprep.mubr.msk.bf16.mxu0 %vm3005_vm5, %v16570_v52 }
 0x96b   : > { %v7502_v25 = vpop.f32.mrb[36].mxu1  ;;  %v8758_v63 = vpop.f32.mrb[156].mxu0  ;;  %15445 = vmatpush3.bf16.msra.mxu1 %v16577_v30 }
 0x96c   : > { %v21159_v51 = vadd.f32 %v7502_v25, %v21002_v26  ;;  %v15252_v48 = vpop.f32.mrb[37].mxu1  ;;  %v8760_v35 = vpop.f32.mrb[157].mxu0  ;;  %15446 = vmatprep.subr.bf16.mxu1 %v17182_v1 }
 0x96d   : > { %10487 = vmatpush1.bf16.msra.mxu0 %v18316_v47  ;;  %v7505_v44 = vpop.f32.mrb[38].mxu1  ;;  %v8761_v13 = vpop.f32.mrb[158].mxu0  ;;  %v13411_v48 = vld [vmem:[%s22213_s4 + $0x880] sm:$0x33] }
 0x96e   : > { %v21167_v59 = vadd.f32 %v7505_v44, %v21010_v11  ;;  %v8791_v18 = vpack.c.bf16 %v8761_v13, %v8758_v63  ;;  %10488 = vmatprep.subr.bf16.mxu0 %v17185_v10  ;;  %v15253_v26 = vpop.f32.mrb[39].mxu1  ;;  %v8763_v38 = vpop.f32.mrb[159].mxu0  ;;  %v16583_v44 = vld [vmem:[%s22213_s4 + $0x870] ss:$8 sps:$4 sm:$0xff]  }
 0x96f   : > { %15447 = vmatpush3.bf16.msra.mxu1 %v16581_v43 }
 0x970   : > { %15423 = vmatmul.mubr.bf16.gmra.mrb[144].mxu1 %v8791_v18  ;;  %10173 = vmatmul.mubr.bf16.gmra.mrb[8].mxu0 %v16568_v4 }
 0x971   : > { %10489 = vmatpush1.bf16.msra.mxu0 %v18324_v3  ;;  %15426 = vmatprep.mubr.msk.bf16.mxu1 %vm17184_vm2, %v17182_v1 }
 0x972   : > { %10490 = vmatprep.subr.bf16.mxu0 %v17185_v10  ;;  %13429 = vmatprep.mubr.msk.bf16.mxu0 %vm3005_vm5, %v16575_v40 }
 0x973   : > { %v7510_v11 = vpop.f32.mrb[40].mxu1  ;;  %v8766_v56 = vpop.f32.mrb[160].mxu0  ;;  %15448 = vmatprep.subr.bf16.mxu1 %v17182_v1 }
 0x974   : > { %v21183_v6 = vadd.f32 %v7510_v11, %v21026_v27  ;;  %v15256_v12 = vpop.f32.mrb[41].mxu1  ;;  %v8768_v45 = vpop.f32.mrb[161].mxu0  ;;  %15449 = vmatpush3.bf16.msra.mxu1 %v16582_v22 }
 0x975   : > { %10491 = vmatpush1.bf16.msra.mxu0 %v18332_v61  ;;  %v7513_v49 = vpop.f32.mrb[42].mxu1  ;;  %v8769_v15 = vpop.f32.mrb[162].mxu0  ;;  %15450 = vmatprep.subr.bf16.mxu1 %v17182_v1 }
 0x976   : > { %v21191_v9 = vadd.f32 %v7513_v49, %v21034_v34  ;;  %v8792_v14 = vpack.c.bf16 %v8769_v15, %v8766_v56  ;;  %10492 = vmatprep.subr.bf16.mxu0 %v17185_v10  ;;  %v15257_v27 = vpop.f32.mrb[43].mxu1  ;;  %v8771_v50 = vpop.f32.mrb[163].mxu0  ;;  %v13424_v49 = vcombine.low %v13411_v48, %v13411_v48 }
 0x978   : > { %15427 = vmatmul.mubr.bf16.gmra.mrb[148].mxu1 %v8792_v14  ;;  %10181 = vmatmul.mubr.bf16.gmra.mrb[12].mxu0 %v16573_v55 }
 0x979   : > { %10493 = vmatpush1.bf16.msra.mxu0 %v18344_v62  ;;  %15430 = vmatprep.mubr.msk.bf16.mxu1 %vm17184_vm2, %v17182_v1 }
 0x97a   : > { %10494 = vmatprep.subr.bf16.mxu0 %v17185_v10  ;;  %13430 = vmatprep.mubr.msk.bf16.mxu0 %vm3005_vm5, %v16580_v20 }
 0x97b   : > { %v7518_v34 = vpop.f32.mrb[44].mxu1  ;;  %v8774_v5 = vpop.f32.mrb[164].mxu0  ;;  %15451 = vmatpush3.bf16.msra.mxu1 %v16586_v57 }
 0x97c   : > { %v21209_v58 = vadd.f32 %v7518_v34, %v21052_v2  ;;  %v8776_v19 = vpop.f32.mrb[165].mxu0  ;;  %v15260_v60 = vpop.f32.mrb[45].mxu1  ;;  %15452 = vmatprep.subr.bf16.mxu1 %v17182_v1  ;;  %v16585_v2 = vld [vmem:[%s22213_s4 + $0x874] ss:$8 sps:$4 sm:$0xff]   ;;  %v16599_v34 = vld [vmem:[%s22214_s5 + $0x480] sm:$0xff]  }
 0x97d   : > { %10495 = vmatpush1.bf16.msra.mxu0 %v18352_v46  ;;  %v8777_v39 = vpop.f32.mrb[166].mxu0  ;;  %v7521_v42 = vpop.f32.mrb[46].mxu1 }
 0x97e   : > { %v8793_v52 = vpack.c.bf16 %v8777_v39, %v8774_v5  ;;  %10496 = vmatprep.subr.bf16.mxu0 %v17185_v10  ;;  %v15261_v30 = vpop.f32.mrb[47].mxu1  ;;  %v8779_v25 = vpop.f32.mrb[167].mxu0  ;;  %v16590_v39 = vld [vmem:[%s22213_s4 + $0x888] ss:$8 sps:$4 sm:$0xff]  }
 0x97f   : > { %15453 = vmatpush3.bf16.msra.mxu1 %v16587_v24  ;;  %v16600_v24 = vld [vmem:[%s22214_s5 + $0x488] sm:$0xff]  }
 0x980   : > { %15431 = vmatmul.mubr.bf16.gmra.mrb[152].mxu1 %v8793_v52  ;;  %10189 = vmatmul.mubr.bf16.gmra.mrb[16].mxu0 %v16578_v8 }
 0x981   : > { %10497 = vmatpush1.bf16.msra.mxu0 %v18360_v28  ;;  %15434 = vmatprep.mubr.msk.bf16.mxu1 %vm17184_vm2, %v17182_v1 }
 0x982   : > { %10498 = vmatprep.subr.bf16.mxu0 %v17185_v10  ;;  %13431 = vmatprep.mubr.msk.bf16.mxu0 %vm3005_vm5, %v16585_v2 }
 0x983   : > { %v7826_v63 = vpop.f32.mrb[48].mxu1  ;;  %v8782_v43 = vpop.f32.mrb[168].mxu0  ;;  %15482 = vmatprep.subr.bf16.mxu1 %v17182_v1 }
 0x984   : > { %v21230_v35 = vadd.f32 %v7826_v63, %v21073_v32  ;;  %v15280_v4 = vpop.f32.mrb[49].mxu1  ;;  %v8784_v13 = vpop.f32.mrb[169].mxu0  ;;  %v8794_v40 = vpack.c.bf16 %v8782_v43, %v8782_v43  ;;  %v13425_v32 = vcombine.high %v13411_v48, %v13411_v48  ;;  %v16604_v43 = vld [vmem:[%s22214_s5 + $0x490] sm:$0xff]  }
 0x985   : > { %10499 = vmatpush1.bf16.msra.mxu0 %v18368_v54  ;;  %v7829_v18 = vpop.f32.mrb[50].mxu1  ;;  %v8785_v26 = vpop.f32.mrb[170].mxu0 }
 0x986   : > { %v21237_v38 = vadd.f32 %v7829_v18, %v21080_v23  ;;  %10500 = vmatprep.subr.bf16.mxu0 %v17185_v10  ;;  %v15281_v22 = vpop.f32.mrb[51].mxu1  ;;  %v8786_v11 = vpop.f32.mrb[171].mxu0  ;;  %v16593_v18 = vld [vmem:[%s22213_s4 + $0x898] ss:$8 sps:$4 sm:$0xff]  }
 0x988   : > { %15435 = vmatmul.mubr.bf16.gmra.mrb[156].mxu1 %v8794_v40  ;;  %10197 = vmatmul.mubr.bf16.gmra.mrb[20].mxu0 %v16583_v44 }
 0x989   : > { %10501 = vmatpush1.bf16.msra.mxu0 %v18376_v31  ;;  %15454 = vmatprep.mubr.msk.bf16.mxu1 %vm17184_vm2, %v17182_v1 }
 0x98a   : > { %10502 = vmatprep.subr.bf16.mxu0 %v17185_v10  ;;  %13432 = vmatprep.mubr.msk.bf16.mxu0 %vm3005_vm5, %v13425_v32 }
 0x98b   : > { %v7834_v56 = vpop.f32.mrb[52].mxu1  ;;  %v9090_v23 = vpop.f32.mrb[172].mxu0 }
 0x98c   : > { %v21246_v12 = vadd.f32 %v7834_v56, %v21089_v37  ;;  %v15284_v45 = vpop.f32.mrb[53].mxu1  ;;  %v9092_v55 = vpop.f32.mrb[173].mxu0  ;;  %v16592_v37 = vld [vmem:[%s22213_s4 + $0x88c] ss:$8 sps:$4 sm:$0xff]  }
 0x98d   : > { %10503 = vmatpush1.bf16.msra.mxu0 %v18384_v7  ;;  %v7837_v15 = vpop.f32.mrb[54].mxu1  ;;  %v9093_v14 = vpop.f32.mrb[174].mxu0  ;;  %v16598_v56 = vld [vmem:[%s22213_s4 + $0x8ac] ss:$8 sps:$4 sm:$0xff]   ;;  %v16609_v55 = vld [vmem:[%s22214_s5 + $0x4a0] sm:$0xff]  }
 0x98e   : > { %v21250_v27 = vadd.f32 %v7837_v15, %v21093_v21  ;;  %v9144_v50 = vpack.c.bf16 %v9093_v14, %v9090_v23  ;;  %10504 = vmatprep.subr.bf16.mxu0 %v17185_v10  ;;  %v15285_v20 = vpop.f32.mrb[55].mxu1  ;;  %v9095_v57 = vpop.f32.mrb[175].mxu0  ;;  %v16605_v23 = vld [vmem:[%s22214_s5 + $0x498] sm:$0xff]  }
 0x990   : > { %15455 = vmatmul.mubr.bf16.vlgmr.msra.gmra.mrb[160].mxu1 %v9144_v50  ;;  %10205 = vmatmul.mubr.bf16.gmra.mrb[24].mxu0 %v13424_v49  ;;  %v16596_v50 = vld [vmem:[%s22213_s4 + $0x8a8] ss:$8 sps:$4 sm:$0xff]  }
 0x991   : > { %10505 = vmatpush1.bf16.msra.mxu0 %v18392_v36  ;;  %15458 = vmatprep.mubr.msk.bf16.mxu1 %vm17184_vm2, %v17182_v1 }
 0x992   : > { %13484 = vmatprep.mubr.msk.bf16.mxu0 %vm3005_vm5, %v16592_v37  ;;  %10836 = vmatprep.subr.bf16.mxu0 %v17185_v10 }
 0x993   : > { %v7842_v21 = vpop.f32.mrb[56].mxu1  ;;  %v9098_v5 = vpop.f32.mrb[176].mxu0  ;;  %15483 = vmatpush3.bf16.msra.mxu1 %v16599_v34 }
 0x994   : > { %v21268_v19 = vadd.f32 %v7842_v21, %v21111_v16  ;;  %v15288_v8 = vpop.f32.mrb[57].mxu1  ;;  %v9100_v60 = vpop.f32.mrb[177].mxu0  ;;  %15484 = vmatprep.subr.bf16.mxu1 %v17182_v1  ;;  %v16595_v16 = vld [vmem:[%s22213_s4 + $0x89c] ss:$8 sps:$4 sm:$0xff]  }
 0x995   : > { %v7845_v42 = vpop.f32.mrb[58].mxu1  ;;  %v9101_v52 = vpop.f32.mrb[178].mxu0 }
 0x996   : > { %v21275_v30 = vadd.f32 %v7845_v42, %v21118_v29  ;;  %v9145_v25 = vpack.c.bf16 %v9101_v52, %v9098_v5  ;;  %v15289_v2 = vpop.f32.mrb[59].mxu1  ;;  %v9103_v63 = vpop.f32.mrb[179].mxu0  ;;  %v16603_v5 = vld [vmem:[%s22213_s4 + $0x8bc] ss:$8 sps:$4 sm:$0xff]   ;;  %v16601_v52 = vld [vmem:[%s22213_s4 + $0x8b8] ss:$8 sps:$4 sm:$0xff]  }
 0x997   : > { %15485 = vmatpush3.bf16.msra.mxu1 %v16600_v24  ;;  %v16610_v24 = vld [vmem:[%s22214_s5 + $0x4a8] sm:$0xff]  }
 0x998   : > { %15459 = vmatmul.mubr.bf16.gmra.mrb[164].mxu1 %v9145_v25  ;;  %10513 = vmatmul.mubr.bf16.vlgmr.msra.gmra.mrb[28].mxu0 %v16590_v39 }
 0x999   : > { %10837 = vmatpush1.bf16.msra.mxu0 %v18292_v17  ;;  %15462 = vmatprep.mubr.msk.bf16.mxu1 %vm17184_vm2, %v17182_v1 }
 0x99a   : > { %10838 = vmatprep.subr.bf16.mxu0 %v17185_v10  ;;  %13485 = vmatprep.mubr.msk.bf16.mxu0 %vm3005_vm5, %v16595_v16 }
 0x99b   : > { %v7850_v29 = vpop.f32.mrb[60].mxu1  ;;  %v9106_v48 = vpop.f32.mrb[180].mxu0  ;;  %15486 = vmatprep.subr.bf16.mxu1 %v17182_v1 }
 0x99c   : > { %v21290_v4 = vadd.f32 %v7850_v29, %v21133_v53  ;;  %v15292_v44 = vpop.f32.mrb[61].mxu1  ;;  %v9108_v13 = vpop.f32.mrb[181].mxu0  ;;  %15487 = vmatpush3.bf16.msra.mxu1 %v16604_v43  ;;  %v16608_v29 = vld [vmem:[%s22213_s4 + $0x8cc] ss:$8 sps:$4 sm:$0xff]  }
 0x99d   : > { %10839 = vmatpush1.bf16.msra.mxu0 %v18300_v0  ;;  %v7853_v26 = vpop.f32.mrb[62].mxu1  ;;  %v9109_v40 = vpop.f32.mrb[182].mxu0  ;;  %15488 = vmatprep.subr.bf16.mxu1 %v17182_v1  ;;  %v16615_v13 = vld [vmem:[%s22214_s5 + $0x4b8] sm:$0xff]  }
 0x99e   : > { %v21298_v22 = vadd.f32 %v7853_v26, %v21141_v33  ;;  %v9146_v11 = vpack.c.bf16 %v9109_v40, %v9106_v48  ;;  %10840 = vmatprep.subr.bf16.mxu0 %v17185_v10  ;;  %v15293_v53 = vpop.f32.mrb[63].mxu1  ;;  %v9111_v32 = vpop.f32.mrb[183].mxu0  ;;  %v16614_v48 = vld [vmem:[%s22214_s5 + $0x4b0] sm:$0xff]  }
 0x99f   : > { %v16606_v40 = vld [vmem:[%s22213_s4 + $0x8c8] ss:$8 sps:$4 sm:$0xff]  }
 0x9a0   : > { %15463 = vmatmul.mubr.bf16.gmra.mrb[168].mxu1 %v9146_v11  ;;  %10521 = vmatmul.mubr.bf16.gmra.mrb[32].mxu0 %v16593_v18 }
 0x9a1   : > { %10841 = vmatpush1.bf16.msra.mxu0 %v18308_v41  ;;  %15466 = vmatprep.mubr.msk.bf16.mxu1 %vm17184_vm2, %v17182_v1 }
 0x9a2   : > { %10842 = vmatprep.subr.bf16.mxu0 %v17185_v10  ;;  %13486 = vmatprep.mubr.msk.bf16.mxu0 %vm3005_vm5, %v16598_v56 }
 0x9a3   : > { %v7858_v33 = vpop.f32.mrb[64].mxu1  ;;  %v9114_v45 = vpop.f32.mrb[184].mxu0  ;;  %15489 = vmatpush3.bf16.msra.mxu1 %v16605_v23 }
 0x9a4   : > { %v21316_v49 = vadd.f32 %v7858_v33, %v21159_v51  ;;  %v15296_v15 = vpop.f32.mrb[65].mxu1  ;;  %v9116_v14 = vpop.f32.mrb[185].mxu0  ;;  %15490 = vmatprep.subr.bf16.mxu1 %v17182_v1 }
 0x9a5   : > { %10843 = vmatpush1.bf16.msra.mxu0 %v18316_v47  ;;  %v7861_v20 = vpop.f32.mrb[66].mxu1  ;;  %v9117_v57 = vpop.f32.mrb[186].mxu0  ;;  %v13469_v15 = vld [vmem:[%s22213_s4 + $0x8e8] sm:$0x33] }
 0x9a6   : > { %v21324_v37 = vadd.f32 %v7861_v20, %v21167_v59  ;;  %v9147_v34 = vpack.c.bf16 %v9117_v57, %v9114_v45  ;;  %10844 = vmatprep.subr.bf16.mxu0 %v17185_v10  ;;  %v15297_v51 = vpop.f32.mrb[67].mxu1  ;;  %v9119_v21 = vpop.f32.mrb[187].mxu0  ;;  %v16611_v20 = vld [vmem:[%s22213_s4 + $0x8d8] ss:$8 sps:$4 sm:$0xff]  }
 0x9a7   : > { %15491 = vmatpush3.bf16.msra.mxu1 %v16609_v55 }
 0x9a8   : > { %15467 = vmatmul.mubr.bf16.gmra.mrb[172].mxu1 %v9147_v34  ;;  %10529 = vmatmul.mubr.bf16.gmra.mrb[36].mxu0 %v16596_v50 }
 0x9a9   : > { %10845 = vmatpush1.bf16.msra.mxu0 %v18324_v3  ;;  %15470 = vmatprep.mubr.msk.bf16.mxu1 %vm17184_vm2, %v17182_v1 }
 0x9aa   : > { %10846 = vmatprep.subr.bf16.mxu0 %v17185_v10  ;;  %13487 = vmatprep.mubr.msk.bf16.mxu0 %vm3005_vm5, %v16603_v5 }
 0x9ab   : > { %v7866_v59 = vpop.f32.mrb[68].mxu1  ;;  %v9122_v8 = vpop.f32.mrb[188].mxu0  ;;  %15492 = vmatprep.subr.bf16.mxu1 %v17182_v1 }
 0x9ac   : > { %v21340_v60 = vadd.f32 %v7866_v59, %v21183_v6  ;;  %v15300_v39 = vpop.f32.mrb[69].mxu1  ;;  %v9124_v42 = vpop.f32.mrb[189].mxu0  ;;  %15493 = vmatpush3.bf16.msra.mxu1 %v16610_v24 }
 0x9ad   : > { %10847 = vmatpush1.bf16.msra.mxu0 %v18332_v61  ;;  %v7869_v25 = vpop.f32.mrb[70].mxu1  ;;  %v9125_v2 = vpop.f32.mrb[190].mxu0  ;;  %15494 = vmatprep.subr.bf16.mxu1 %v17182_v1 }
 0x9ae   : > { %v21348_v63 = vadd.f32 %v7869_v25, %v21191_v9  ;;  %v9148_v16 = vpack.c.bf16 %v9125_v2, %v9122_v8  ;;  %10848 = vmatprep.subr.bf16.mxu0 %v17185_v10  ;;  %v15301_v6 = vpop.f32.mrb[71].mxu1  ;;  %v9127_v43 = vpop.f32.mrb[191].mxu0  ;;  %v13482_v25 = vcombine.low %v13469_v15, %v13469_v15 }
 0x9b0   : > { %15471 = vmatmul.mubr.bf16.gmra.mrb[176].mxu1 %v9148_v16  ;;  %10537 = vmatmul.mubr.bf16.gmra.mrb[40].mxu0 %v16601_v52 }
 0x9b1   : > { %10849 = vmatpush1.bf16.msra.mxu0 %v18344_v62  ;;  %15474 = vmatprep.mubr.msk.bf16.mxu1 %vm17184_vm2, %v17182_v1 }
 0x9b2   : > { %10850 = vmatprep.subr.bf16.mxu0 %v17185_v10  ;;  %13488 = vmatprep.mubr.msk.bf16.mxu0 %vm3005_vm5, %v16608_v29 }
 0x9b3   : > { %v7874_v9 = vpop.f32.mrb[72].mxu1  ;;  %v9130_v44 = vpop.f32.mrb[192].mxu0  ;;  %15495 = vmatpush3.bf16.msra.mxu1 %v16614_v48 }
 0x9b4   : > { %v21366_v18 = vadd.f32 %v7874_v9, %v21209_v58  ;;  %v9132_v26 = vpop.f32.mrb[193].mxu0  ;;  %v15304_v11 = vpop.f32.mrb[73].mxu1  ;;  %15496 = vmatprep.subr.bf16.mxu1 %v17182_v1  ;;  %v16613_v58 = vld [vmem:[%s22213_s4 + $0x8dc] ss:$8 sps:$4 sm:$0xff]  }
 0x9b5   : > { %10851 = vmatpush1.bf16.msra.mxu0 %v18352_v46  ;;  %v9133_v53 = vpop.f32.mrb[194].mxu0  ;;  %v7877_v32 = vpop.f32.mrb[74].mxu1  ;;  %v16627_v9 = vld [vmem:[%s22214_s5 + $0x4c0] sm:$0xff]  }
 0x9b6   : > { %v9149_v56 = vpack.c.bf16 %v9133_v53, %v9130_v44  ;;  %10852 = vmatprep.subr.bf16.mxu0 %v17185_v10  ;;  %v15305_v23 = vpop.f32.mrb[75].mxu1  ;;  %v9135_v33 = vpop.f32.mrb[195].mxu0  ;;  %v16618_v53 = vld [vmem:[%s22213_s4 + $0x8f0] ss:$8 sps:$4 sm:$0xff]  }
 0x9b7   : > { %15497 = vmatpush3.bf16.msra.mxu1 %v16615_v13  ;;  %v16628_v13 = vld [vmem:[%s22214_s5 + $0x4c8] sm:$0xff]  }
 0x9b8   : > { %15475 = vmatmul.mubr.bf16.gmra.mrb[180].mxu1 %v9149_v56  ;;  %10545 = vmatmul.mubr.bf16.gmra.mrb[44].mxu0 %v16606_v40 }
 0x9b9   : > { %10853 = vmatpush1.bf16.msra.mxu0 %v18360_v28  ;;  %15478 = vmatprep.mubr.msk.bf16.mxu1 %vm17184_vm2, %v17182_v1 }
 0x9ba   : > { %10854 = vmatprep.subr.bf16.mxu0 %v17185_v10  ;;  %13489 = vmatprep.mubr.msk.bf16.mxu0 %vm3005_vm5, %v16613_v58 }
 0x9bb   : > { %v8182_v45 = vpop.f32.mrb[76].mxu1  ;;  %v9138_v55 = vpop.f32.mrb[196].mxu0  ;;  %15526 = vmatprep.subr.bf16.mxu1 %v17182_v1 }
 0x9bc   : > { %v21387_v14 = vadd.f32 %v8182_v45, %v21230_v35  ;;  %v15324_v50 = vpop.f32.mrb[77].mxu1  ;;  %v9140_v57 = vpop.f32.mrb[197].mxu0  ;;  %v9150_v5 = vpack.c.bf16 %v9138_v55, %v9138_v55  ;;  %v13483_v35 = vcombine.high %v13469_v15, %v13469_v15  ;;  %v16632_v55 = vld [vmem:[%s22214_s5 + $0x4d0] sm:$0xff]  }
 0x9bd   : > { %10855 = vmatpush1.bf16.msra.mxu0 %v18368_v54  ;;  %v8185_v34 = vpop.f32.mrb[78].mxu1  ;;  %v9141_v51 = vpop.f32.mrb[198].mxu0 }
 0x9be   : > { %v21394_v21 = vadd.f32 %v8185_v34, %v21237_v38  ;;  %10856 = vmatprep.subr.bf16.mxu0 %v17185_v10  ;;  %v15325_v24 = vpop.f32.mrb[79].mxu1  ;;  %v9142_v59 = vpop.f32.mrb[199].mxu0  ;;  %v16621_v34 = vld [vmem:[%s22213_s4 + $0x900] ss:$8 sps:$4 sm:$0xff]  }
 0x9c0   : > { %15479 = vmatmul.mubr.bf16.gmra.mrb[184].mxu1 %v9150_v5  ;;  %10553 = vmatmul.mubr.bf16.gmra.mrb[48].mxu0 %v16611_v20 }
 0x9c1   : > { %10857 = vmatpush1.bf16.msra.mxu0 %v18376_v31  ;;  %15498 = vmatprep.mubr.msk.bf16.mxu1 %vm17184_vm2, %v17182_v1 }
 0x9c2   : > { %10858 = vmatprep.subr.bf16.mxu0 %v17185_v10  ;;  %13490 = vmatprep.mubr.msk.bf16.mxu0 %vm3005_vm5, %v13483_v35 }
 0x9c3   : > { %v8190_v8 = vpop.f32.mrb[80].mxu1  ;;  %v9446_v38 = vpop.f32.mrb[200].mxu0 }
 0x9c4   : > { %v21403_v39 = vadd.f32 %v8190_v8, %v21246_v12  ;;  %v15328_v42 = vpop.f32.mrb[81].mxu1  ;;  %v9448_v52 = vpop.f32.mrb[201].mxu0  ;;  %v16620_v12 = vld [vmem:[%s22213_s4 + $0x8f4] ss:$8 sps:$4 sm:$0xff]  }
 0x9c5   : > { %10859 = vmatpush1.bf16.msra.mxu0 %v18384_v7  ;;  %v8193_v2 = vpop.f32.mrb[82].mxu1  ;;  %v9449_v16 = vpop.f32.mrb[202].mxu0  ;;  %v16626_v8 = vld [vmem:[%s22213_s4 + $0x914] ss:$8 sps:$4 sm:$0xff]   ;;  %v16637_v52 = vld [vmem:[%s22214_s5 + $0x4e0] sm:$0xff]  }
 0x9c6   : > { %v21407_v6 = vadd.f32 %v8193_v2, %v21250_v27  ;;  %v9500_v43 = vpack.c.bf16 %v9449_v16, %v9446_v38  ;;  %10860 = vmatprep.subr.bf16.mxu0 %v17185_v10  ;;  %v15329_v29 = vpop.f32.mrb[83].mxu1  ;;  %v9451_v48 = vpop.f32.mrb[203].mxu0  ;;  %v16633_v38 = vld [vmem:[%s22214_s5 + $0x4d8] sm:$0xff]  }
 0x9c8   : > { %15499 = vmatmul.mubr.bf16.vlgmr.msra.gmra.mrb[188].mxu1 %v9500_v43  ;;  %10561 = vmatmul.mubr.bf16.gmra.mrb[52].mxu0 %v13482_v25  ;;  %v16624_v43 = vld [vmem:[%s22213_s4 + $0x910] ss:$8 sps:$4 sm:$0xff]  }
 0x9c9   : > { %10861 = vmatpush1.bf16.msra.mxu0 %v18392_v36  ;;  %15502 = vmatprep.mubr.msk.bf16.mxu1 %vm17184_vm2, %v17182_v1 }
 0x9ca   : > { %13542 = vmatprep.mubr.msk.bf16.mxu0 %vm3005_vm5, %v16620_v12  ;;  %11192 = vmatprep.subr.bf16.mxu0 %v17185_v10 }
 0x9cb   : > { %v8198_v27 = vpop.f32.mrb[84].mxu1  ;;  %v9454_v44 = vpop.f32.mrb[204].mxu0  ;;  %15527 = vmatpush3.bf16.msra.mxu1 %v16627_v9 }
 0x9cc   : > { %v21425_v26 = vadd.f32 %v8198_v27, %v21268_v19  ;;  %v15332_v40 = vpop.f32.mrb[85].mxu1  ;;  %v9456_v11 = vpop.f32.mrb[205].mxu0  ;;  %15528 = vmatprep.subr.bf16.mxu1 %v17182_v1  ;;  %v16623_v19 = vld [vmem:[%s22213_s4 + $0x904] ss:$8 sps:$4 sm:$0xff]  }
 0x9cd   : > { %v8201_v32 = vpop.f32.mrb[86].mxu1  ;;  %v9457_v56 = vpop.f32.mrb[206].mxu0 }
 0x9ce   : > { %v21432_v23 = vadd.f32 %v8201_v32, %v21275_v30  ;;  %v9501_v33 = vpack.c.bf16 %v9457_v56, %v9454_v44  ;;  %v15333_v58 = vpop.f32.mrb[87].mxu1  ;;  %v9459_v45 = vpop.f32.mrb[207].mxu0  ;;  %v16631_v44 = vld [vmem:[%s22213_s4 + $0x924] ss:$8 sps:$4 sm:$0xff]   ;;  %v16629_v56 = vld [vmem:[%s22213_s4 + $0x920] ss:$8 sps:$4 sm:$0xff]  }
 0x9cf   : > { %15529 = vmatpush3.bf16.msra.mxu1 %v16628_v13  ;;  %v16638_v13 = vld [vmem:[%s22214_s5 + $0x4e8] sm:$0xff]  }
 0x9d0   : > { %15503 = vmatmul.mubr.bf16.gmra.mrb[192].mxu1 %v9501_v33  ;;  %10869 = vmatmul.mubr.bf16.vlgmr.msra.gmra.mrb[56].mxu0 %v16618_v53 }
 0x9d1   : > { %11193 = vmatpush1.bf16.msra.mxu0 %v18292_v17  ;;  %15506 = vmatprep.mubr.msk.bf16.mxu1 %vm17184_vm2, %v17182_v1 }
 0x9d2   : > { %11194 = vmatprep.subr.bf16.mxu0 %v17185_v10  ;;  %13543 = vmatprep.mubr.msk.bf16.mxu0 %vm3005_vm5, %v16623_v19 }
 0x9d3   : > { %v8206_v30 = vpop.f32.mrb[88].mxu1  ;;  %v9462_v15 = vpop.f32.mrb[208].mxu0  ;;  %15530 = vmatprep.subr.bf16.mxu1 %v17182_v1 }
 0x9d4   : > { %v21447_v50 = vadd.f32 %v8206_v30, %v21290_v4  ;;  %v15336_v20 = vpop.f32.mrb[89].mxu1  ;;  %v9464_v57 = vpop.f32.mrb[209].mxu0  ;;  %15531 = vmatpush3.bf16.msra.mxu1 %v16632_v55  ;;  %v16636_v30 = vld [vmem:[%s22213_s4 + $0x934] ss:$8 sps:$4 sm:$0xff]  }
 0x9d5   : > { %11195 = vmatpush1.bf16.msra.mxu0 %v18300_v0  ;;  %v8209_v51 = vpop.f32.mrb[90].mxu1  ;;  %v9465_v5 = vpop.f32.mrb[210].mxu0  ;;  %15532 = vmatprep.subr.bf16.mxu1 %v17182_v1  ;;  %v16643_v57 = vld [vmem:[%s22214_s5 + $0x4f8] sm:$0xff]  }
 0x9d6   : > { %v21455_v24 = vadd.f32 %v8209_v51, %v21298_v22  ;;  %v9502_v59 = vpack.c.bf16 %v9465_v5, %v9462_v15  ;;  %11196 = vmatprep.subr.bf16.mxu0 %v17185_v10  ;;  %v15337_v4 = vpop.f32.mrb[91].mxu1  ;;  %v9467_v35 = vpop.f32.mrb[211].mxu0  ;;  %v16642_v15 = vld [vmem:[%s22214_s5 + $0x4f0] sm:$0xff]  }
 0x9d7   : > { %v16634_v5 = vld [vmem:[%s22213_s4 + $0x930] ss:$8 sps:$4 sm:$0xff]  }
 0x9d8   : > { %15507 = vmatmul.mubr.bf16.gmra.mrb[196].mxu1 %v9502_v59  ;;  %10877 = vmatmul.mubr.bf16.gmra.mrb[60].mxu0 %v16621_v34 }
 0x9d9   : > { %11197 = vmatpush1.bf16.msra.mxu0 %v18308_v41  ;;  %15510 = vmatprep.mubr.msk.bf16.mxu1 %vm17184_vm2, %v17182_v1 }
 0x9da   : > { %11198 = vmatprep.subr.bf16.mxu0 %v17185_v10  ;;  %13544 = vmatprep.mubr.msk.bf16.mxu0 %vm3005_vm5, %v16626_v8 }
 0x9db   : > { %v8214_v22 = vpop.f32.mrb[92].mxu1  ;;  %v9470_v42 = vpop.f32.mrb[212].mxu0  ;;  %15533 = vmatpush3.bf16.msra.mxu1 %v16633_v38 }
 0x9dc   : > { %v21473_v25 = vadd.f32 %v8214_v22, %v21316_v49  ;;  %v15340_v2 = vpop.f32.mrb[93].mxu1  ;;  %v9472_v16 = vpop.f32.mrb[213].mxu0  ;;  %15534 = vmatprep.subr.bf16.mxu1 %v17182_v1 }
 0x9dd   : > { %11199 = vmatpush1.bf16.msra.mxu0 %v18316_v47  ;;  %v8217_v29 = vpop.f32.mrb[94].mxu1  ;;  %v9473_v48 = vpop.f32.mrb[214].mxu0  ;;  %v13527_v2 = vld [vmem:[%s22213_s4 + $0x950] sm:$0x33] }
 0x9de   : > { %v21481_v12 = vadd.f32 %v8217_v29, %v21324_v37  ;;  %v9503_v9 = vpack.c.bf16 %v9473_v48, %v9470_v42  ;;  %11200 = vmatprep.subr.bf16.mxu0 %v17185_v10  ;;  %v15341_v49 = vpop.f32.mrb[95].mxu1  ;;  %v9475_v27 = vpop.f32.mrb[215].mxu0 }
 0x9df   : > { %15535 = vmatpush3.bf16.msra.mxu1 %v16637_v52 }
 0x9e0   : > { %15511 = vmatmul.mubr.bf16.gmra.mrb[200].mxu1 %v9503_v9  ;;  %10885 = vmatmul.mubr.bf16.gmra.mrb[64].mxu0 %v16624_v43  ;;  %v16639_v43 = vld [vmem:[%s22213_s4 + $0x940] ss:$8 sps:$4 sm:$0xff]  }
 0x9e1   : > { %11201 = vmatpush1.bf16.msra.mxu0 %v18324_v3  ;;  %15514 = vmatprep.mubr.msk.bf16.mxu1 %vm17184_vm2, %v17182_v1 }
 0x9e2   : > { %11202 = vmatprep.subr.bf16.mxu0 %v17185_v10  ;;  %13545 = vmatprep.mubr.msk.bf16.mxu0 %vm3005_vm5, %v16631_v44 }
 0x9e3   : > { %v8222_v37 = vpop.f32.mrb[96].mxu1  ;;  %v9478_v40 = vpop.f32.mrb[216].mxu0  ;;  %15536 = vmatprep.subr.bf16.mxu1 %v17182_v1 }
 0x9e4   : > { %v21497_v11 = vadd.f32 %v8222_v37, %v21340_v60  ;;  %v15344_v53 = vpop.f32.mrb[97].mxu1  ;;  %v9480_v32 = vpop.f32.mrb[217].mxu0  ;;  %15537 = vmatpush3.bf16.msra.mxu1 %v16638_v13  ;;  %v13541_v37 = vcombine.high %v13527_v2, %v13527_v2 }
 0x9e5   : > { %11203 = vmatpush1.bf16.msra.mxu0 %v18332_v61  ;;  %v8225_v33 = vpop.f32.mrb[98].mxu1  ;;  %v9481_v58 = vpop.f32.mrb[218].mxu0  ;;  %15538 = vmatprep.subr.bf16.mxu1 %v17182_v1 }
 0x9e6   : > { %v21505_v45 = vadd.f32 %v8225_v33, %v21348_v63  ;;  %v9504_v19 = vpack.c.bf16 %v9481_v58, %v9478_v40  ;;  %11204 = vmatprep.subr.bf16.mxu0 %v17185_v10  ;;  %v15345_v60 = vpop.f32.mrb[99].mxu1  ;;  %v9483_v55 = vpop.f32.mrb[219].mxu0  ;;  %v13540_v33 = vcombine.low %v13527_v2, %v13527_v2 }
 0x9e8   : > { %15515 = vmatmul.mubr.bf16.gmra.mrb[204].mxu1 %v9504_v19  ;;  %10893 = vmatmul.mubr.bf16.gmra.mrb[68].mxu0 %v16629_v56 }
 0x9e9   : > { %11205 = vmatpush1.bf16.msra.mxu0 %v18344_v62  ;;  %15518 = vmatprep.mubr.msk.bf16.mxu1 %vm17184_vm2, %v17182_v1 }
 0x9ea   : > { %11206 = vmatprep.subr.bf16.mxu0 %v17185_v10  ;;  %13546 = vmatprep.mubr.msk.bf16.mxu0 %vm3005_vm5, %v16636_v30 }
 0x9eb   : > { %v8230_v63 = vpop.f32.mrb[100].mxu1  ;;  %v9486_v20 = vpop.f32.mrb[220].mxu0  ;;  %15539 = vmatpush3.bf16.msra.mxu1 %v16642_v15  ;;  %v16648_v15 = vld [vmem:[%s22213_s4 + $0x95c] ss:$8 sps:$4 sm:$0xff]  }
 0x9ec   : > { %v21523_v34 = vadd.f32 %v8230_v63, %v21366_v18  ;;  %v9488_v51 = vpop.f32.mrb[221].mxu0  ;;  %v15348_v59 = vpop.f32.mrb[101].mxu1  ;;  %15540 = vmatprep.subr.bf16.mxu1 %v17182_v1  ;;  %v16641_v18 = vld [vmem:[%s22213_s4 + $0x944] ss:$8 sps:$4 sm:$0xff]  }
 0x9ed   : > { %11207 = vmatpush1.bf16.msra.mxu0 %v18352_v46  ;;  %v9489_v4 = vpop.f32.mrb[222].mxu0  ;;  %v8233_v35 = vpop.f32.mrb[102].mxu1  ;;  %v16646_v59 = vld [vmem:[%s22213_s4 + $0x958] ss:$8 sps:$4 sm:$0xff]  }
 0x9ee   : > { %v9505_v8 = vpack.c.bf16 %v9489_v4, %v9486_v20  ;;  %11208 = vmatprep.subr.bf16.mxu0 %v17185_v10  ;;  %v15349_v38 = vpop.f32.mrb[103].mxu1  ;;  %v9491_v22 = vpop.f32.mrb[223].mxu0 }
 0x9ef   : > { %15541 = vmatpush3.bf16.msra.mxu1 %v16643_v57 }
 0x9f0   : > { %15519 = vmatmul.mubr.bf16.gmra.mrb[208].mxu1 %v9505_v8  ;;  %10901 = vmatmul.mubr.bf16.gmra.mrb[72].mxu0 %v16634_v5 }
 0x9f1   : > { %11209 = vmatpush1.bf16.msra.mxu0 %v18360_v28  ;;  %15522 = vmatprep.mubr.msk.bf16.mxu1 %vm17184_vm2, %v17182_v1 }
 0x9f2   : > { %11210 = vmatprep.subr.bf16.mxu0 %v17185_v10  ;;  %13547 = vmatprep.mubr.msk.bf16.mxu0 %vm3005_vm5, %v16641_v18 }
 0x9f3   : > { %v8538_v42 = vpop.f32.mrb[104].mxu1  ;;  %v9494_v52 = vpop.f32.mrb[224].mxu0  ;;  %15570 = vmatprep.subr.bf16.mxu1 %v17182_v1 }
 0x9f4   : > { %v15368_v16 = vpop.f32.mrb[105].mxu1  ;;  %v9496_v29 = vpop.f32.mrb[225].mxu0  ;;  %v21547_v48 = vadd.f32 %v8538_v42, %v21387_v14  ;;  %v9506_v27 = vpack.c.bf16 %v9494_v52, %v9494_v52  ;;  %v16651_v42 = vld [vmem:[%s22213_s4 + $0x96c] ss:$8 sps:$4 sm:$0xff]  }
 0x9f5   : > { %11211 = vmatpush1.bf16.msra.mxu0 %v18368_v54  ;;  %v8541_v9 = vpop.f32.mrb[106].mxu1  ;;  %v9497_v49 = vpop.f32.mrb[226].mxu0  ;;  %v16649_v29 = vld [vmem:[%s22213_s4 + $0x968] ss:$8 sps:$4 sm:$0xff]  }
 0x9f6   : > { %11212 = vmatprep.subr.bf16.mxu0 %v17185_v10  ;;  %v15369_v44 = vpop.f32.mrb[107].mxu1  ;;  %v9498_v13 = vpop.f32.mrb[227].mxu0  ;;  %v21552_v40 = vadd.f32 %v8541_v9, %v21394_v21 }
 0x9f8   : > { %15523 = vmatmul.mubr.bf16.gmra.mrb[212].mxu1 %v9506_v27  ;;  %10909 = vmatmul.mubr.bf16.gmra.mrb[76].mxu0 %v16639_v43 }
 0x9f9   : > { %11213 = vmatpush1.bf16.msra.mxu0 %v18376_v31  ;;  %15542 = vmatprep.mubr.msk.bf16.mxu1 %vm17184_vm2, %v17182_v1 }
 0x9fa   : > { %11214 = vmatprep.subr.bf16.mxu0 %v17185_v10  ;;  %13548 = vmatprep.mubr.msk.bf16.mxu0 %vm3005_vm5, %v13541_v37  ;;  %v16654_v37 = vld [vmem:[%s22213_s4 + $0x97c] ss:$8 sps:$4 sm:$0xff]  }
 0x9fb   : > { %v8546_v14 = vpop.f32.mrb[108].mxu1  ;;  %v9802_v53 = vpop.f32.mrb[228].mxu0 }
 0x9fc   : > { %v15372_v32 = vpop.f32.mrb[109].mxu1  ;;  %v9804_v56 = vpop.f32.mrb[229].mxu0  ;;  %v21560_v58 = vadd.f32 %v8546_v14, %v21403_v39  ;;  %v16655_v39 = vld [vmem:[%s22214_s5 + $0x500] sm:$0xff]  }
 0x9fd   : > { %11215 = vmatpush1.bf16.msra.mxu0 %v18384_v7  ;;  %v8549_v21 = vpop.f32.mrb[110].mxu1  ;;  %v9805_v19 = vpop.f32.mrb[230].mxu0 }
 0x9fe   : > { %v9856_v60 = vpack.c.bf16 %v9805_v19, %v9802_v53  ;;  %11216 = vmatprep.subr.bf16.mxu0 %v17185_v10  ;;  %v15373_v55 = vpop.f32.mrb[111].mxu1  ;;  %v9807_v30 = vpop.f32.mrb[231].mxu0  ;;  %v21568_v63 = vadd.f32 %v8549_v21, %v21407_v6  ;;  %v16656_v6 = vld [vmem:[%s22214_s5 + $0x508] sm:$0xff]  }
 0xa00   : > { %15543 = vmatmul.mubr.bf16.vlgmr.msra.gmra.mrb[216].mxu1 %v9856_v60  ;;  %10917 = vmatmul.mubr.bf16.gmra.mrb[80].mxu0 %v13540_v33 }
 0xa01   : > { %11217 = vmatpush1.bf16.msra.mxu0 %v18392_v36  ;;  %15546 = vmatprep.mubr.msk.bf16.mxu1 %vm17184_vm2, %v17182_v1 }
 0xa02   : > { %13600 = vmatprep.mubr.msk.bf16.mxu0 %vm3005_vm5, %v16648_v15  ;;  %11548 = vmatprep.subr.bf16.mxu0 %v17185_v10  ;;  %v16659_v15 = vld [vmem:[%s22213_s4 + $0x98c] ss:$8 sps:$4 sm:$0xff]  }
 0xa03   : > { %v8554_v20 = vpop.f32.mrb[112].mxu1  ;;  %v9810_v57 = vpop.f32.mrb[232].mxu0  ;;  %15571 = vmatpush3.bf16.msra.mxu1 %v16655_v39 }
 0xa04   : > { %v15376_v51 = vpop.f32.mrb[113].mxu1  ;;  %v9812_v5 = vpop.f32.mrb[233].mxu0  ;;  %15572 = vmatprep.subr.bf16.mxu1 %v17182_v1  ;;  %v21586_v4 = vadd.f32 %v8554_v20, %v21425_v26  ;;  %v16660_v26 = vld [vmem:[%s22214_s5 + $0x510] sm:$0xff]  }
 0xa05   : > { %v8557_v35 = vpop.f32.mrb[114].mxu1  ;;  %v9813_v8 = vpop.f32.mrb[234].mxu0 }
 0xa06   : > { %v9857_v38 = vpack.c.bf16 %v9813_v8, %v9810_v57  ;;  %v15377_v22 = vpop.f32.mrb[115].mxu1  ;;  %v9815_v18 = vpop.f32.mrb[235].mxu0  ;;  %v21592_v52 = vadd.f32 %v8557_v35, %v21432_v23 }
 0xa07   : > { %15573 = vmatpush3.bf16.msra.mxu1 %v16656_v6  ;;  %v16657_v6 = vld [vmem:[%s22213_s4 + $0x988] ss:$8 sps:$4 sm:$0xff]  }
 0xa08   : > { %15547 = vmatmul.mubr.bf16.gmra.mrb[220].mxu1 %v9857_v38  ;;  %11225 = vmatmul.mubr.bf16.vlgmr.msra.gmra.mrb[84].mxu0 %v16646_v59  ;;  %v16664_v38 = vld [vmem:[%s22213_s4 + $0x99c] ss:$8 sps:$4 sm:$0xff]  }
 0xa09   : > { %11549 = vmatpush1.bf16.msra.mxu0 %v18292_v17  ;;  %15550 = vmatprep.mubr.msk.bf16.mxu1 %vm17184_vm2, %v17182_v1 }
 0xa0a   : > { %11550 = vmatprep.subr.bf16.mxu0 %v17185_v10  ;;  %13601 = vmatprep.mubr.msk.bf16.mxu0 %vm3005_vm5, %v16651_v42 }
 0xa0b   : > { %v8562_v2 = vpop.f32.mrb[116].mxu1  ;;  %v9818_v16 = vpop.f32.mrb[236].mxu0  ;;  %15574 = vmatprep.subr.bf16.mxu1 %v17182_v1 }
 0xa0c   : > { %v15380_v23 = vpop.f32.mrb[117].mxu1  ;;  %v9820_v43 = vpop.f32.mrb[237].mxu0  ;;  %15575 = vmatpush3.bf16.msra.mxu1 %v16660_v26  ;;  %v21607_v17 = vadd.f32 %v8562_v2, %v21447_v50  ;;  %v16662_v26 = vld [vmem:[%s22213_s4 + $0x998] ss:$8 sps:$4 sm:$0xff]  }
 0xa0d   : > { %11551 = vmatpush1.bf16.msra.mxu0 %v18300_v0  ;;  %v8565_v9 = vpop.f32.mrb[118].mxu1  ;;  %v9821_v49 = vpop.f32.mrb[238].mxu0  ;;  %15576 = vmatprep.subr.bf16.mxu1 %v17182_v1  ;;  %v16661_v0 = vld [vmem:[%s22214_s5 + $0x518] sm:$0xff]  }
 0xa0e   : > { %v9858_v27 = vpack.c.bf16 %v9821_v49, %v9818_v16  ;;  %11552 = vmatprep.subr.bf16.mxu0 %v17185_v10  ;;  %v15381_v44 = vpop.f32.mrb[119].mxu1  ;;  %v9823_v13 = vpop.f32.mrb[239].mxu0  ;;  %v21616_v14 = vadd.f32 %v8565_v9, %v21455_v24  ;;  %v16665_v24 = vld [vmem:[%s22214_s5 + $0x520] sm:$0xff]   ;;  %v16669_v49 = vld [vmem:[%s22213_s4 + $0x9ac] ss:$8 sps:$4 sm:$0xff]  }
 0xa10   : > { %15551 = vmatmul.mubr.bf16.gmra.mrb[224].mxu1 %v9858_v27  ;;  %11233 = vmatmul.mubr.bf16.gmra.mrb[88].mxu0 %v16649_v29  ;;  %v13585_v27 = vld [vmem:[%s22213_s4 + $0x9b8] sm:$0x33] }
 0xa11   : > { %11553 = vmatpush1.bf16.msra.mxu0 %v18308_v41  ;;  %15554 = vmatprep.mubr.msk.bf16.mxu1 %vm17184_vm2, %v17182_v1  ;;  %v16652_v41 = vld [vmem:[%s22213_s4 + $0x978] ss:$8 sps:$4 sm:$0xff]  }
 0xa12   : > { %11554 = vmatprep.subr.bf16.mxu0 %v17185_v10  ;;  %13602 = vmatprep.mubr.msk.bf16.mxu0 %vm3005_vm5, %v16654_v37 }
 0xa13   : > { %v8570_v50 = vpop.f32.mrb[120].mxu1  ;;  %v9826_v53 = vpop.f32.mrb[240].mxu0  ;;  %15577 = vmatpush3.bf16.msra.mxu1 %v16661_v0 }
 0xa14   : > { %v15384_v32 = vpop.f32.mrb[121].mxu1  ;;  %v9828_v56 = vpop.f32.mrb[241].mxu0  ;;  %15578 = vmatprep.subr.bf16.mxu1 %v17182_v1  ;;  %v21634_v33 = vadd.f32 %v8570_v50, %v21473_v25 }
 0xa15   : > { %11555 = vmatpush1.bf16.msra.mxu0 %v18316_v47  ;;  %v8573_v21 = vpop.f32.mrb[122].mxu1  ;;  %v9829_v19 = vpop.f32.mrb[242].mxu0  ;;  %v16666_v47 = vld [vmem:[%s22214_s5 + $0x528] sm:$0xff]  }
 0xa16   : > { %v9859_v60 = vpack.c.bf16 %v9829_v19, %v9826_v53  ;;  %11556 = vmatprep.subr.bf16.mxu0 %v17185_v10  ;;  %v15385_v55 = vpop.f32.mrb[123].mxu1  ;;  %v9831_v30 = vpop.f32.mrb[243].mxu0  ;;  %v21642_v39 = vadd.f32 %v8573_v21, %v21481_v12 }
 0xa17   : > { %15579 = vmatpush3.bf16.msra.mxu1 %v16665_v24 }
 0xa18   : > { %15555 = vmatmul.mubr.bf16.gmra.mrb[228].mxu1 %v9859_v60  ;;  %11241 = vmatmul.mubr.bf16.gmra.mrb[92].mxu0 %v16652_v41  ;;  %v13598_v60 = vcombine.low %v13585_v27, %v13585_v27 }
 0xa19   : > { %11557 = vmatpush1.bf16.msra.mxu0 %v18324_v3  ;;  %15558 = vmatprep.mubr.msk.bf16.mxu1 %vm17184_vm2, %v17182_v1 }
 0xa1a   : > { %11558 = vmatprep.subr.bf16.mxu0 %v17185_v10  ;;  %13603 = vmatprep.mubr.msk.bf16.mxu0 %vm3005_vm5, %v16659_v15 }
 0xa1b   : > { %v8578_v25 = vpop.f32.mrb[124].mxu1  ;;  %v9834_v20 = vpop.f32.mrb[244].mxu0  ;;  %15580 = vmatprep.subr.bf16.mxu1 %v17182_v1 }
 0xa1c   : > { %v15388_v12 = vpop.f32.mrb[125].mxu1  ;;  %v9836_v57 = vpop.f32.mrb[245].mxu0  ;;  %15581 = vmatpush3.bf16.msra.mxu1 %v16666_v47  ;;  %v21657_v3 = vadd.f32 %v8578_v25, %v21497_v11 }
 0xa1d   : > { %11559 = vmatpush1.bf16.msra.mxu0 %v18332_v61  ;;  %v8581_v51 = vpop.f32.mrb[126].mxu1  ;;  %v9837_v5 = vpop.f32.mrb[246].mxu0  ;;  %15582 = vmatprep.subr.bf16.mxu1 %v17182_v1  ;;  %v16670_v61 = vld [vmem:[%s22214_s5 + $0x530] sm:$0xff]  }
 0xa1e   : > { %v9860_v59 = vpack.c.bf16 %v9837_v5, %v9834_v20  ;;  %11560 = vmatprep.subr.bf16.mxu0 %v17185_v10  ;;  %v15389_v35 = vpop.f32.mrb[127].mxu1  ;;  %v9839_v8 = vpop.f32.mrb[247].mxu0  ;;  %v21666_v22 = vadd.f32 %v8581_v51, %v21505_v45  ;;  %v16671_v45 = vld [vmem:[%s22214_s5 + $0x538] sm:$0xff]   ;;  %v16683_v20 = vld [vmem:[%s22214_s5 + $0x540] sm:$0xff]  }
 0xa20   : > { %15559 = vmatmul.mubr.bf16.gmra.mrb[232].mxu1 %v9860_v59  ;;  %11249 = vmatmul.mubr.bf16.gmra.mrb[96].mxu0 %v16657_v6  ;;  %v16679_v59 = vld [vmem:[%s22213_s4 + $0x9d4] ss:$8 sps:$4 sm:$0xff]  }
 0xa21   : > { %11561 = vmatpush1.bf16.msra.mxu0 %v18344_v62  ;;  %15562 = vmatprep.mubr.msk.bf16.mxu1 %vm17184_vm2, %v17182_v1 }
 0xa22   : > { %11562 = vmatprep.subr.bf16.mxu0 %v17185_v10  ;;  %13604 = vmatprep.mubr.msk.bf16.mxu0 %vm3005_vm5, %v16664_v38 }
 0xa23   : > { %v8586_v11 = vpop.f32.mrb[128].mxu1  ;;  %v9842_v18 = vpop.f32.mrb[248].mxu0  ;;  %15583 = vmatpush3.bf16.msra.mxu1 %v16670_v61 }
 0xa24   : > { %v9844_v42 = vpop.f32.mrb[249].mxu0  ;;  %v15392_v62 = vpop.f32.mrb[129].mxu1  ;;  %15584 = vmatprep.subr.bf16.mxu1 %v17182_v1  ;;  %v21684_v2 = vadd.f32 %v8586_v11, %v21523_v34 }
 0xa25   : > { %11563 = vmatpush1.bf16.msra.mxu0 %v18352_v46  ;;  %v9845_v16 = vpop.f32.mrb[250].mxu0  ;;  %v8589_v23 = vpop.f32.mrb[130].mxu1  ;;  %v16677_v62 = vld [vmem:[%s22213_s4 + $0x9d0] ss:$8 sps:$4 sm:$0xff]  }
 0xa26   : > { %v9861_v43 = vpack.c.bf16 %v9845_v16, %v9842_v18  ;;  %11564 = vmatprep.subr.bf16.mxu0 %v17185_v10  ;;  %v15393_v29 = vpop.f32.mrb[131].mxu1  ;;  %v9847_v9 = vpop.f32.mrb[251].mxu0 }
 0xa27   : > { %15585 = vmatpush3.bf16.msra.mxu1 %v16671_v45 }
 0xa28   : > { %15563 = vmatmul.mubr.bf16.gmra.mrb[236].mxu1 %v9861_v43  ;;  %11257 = vmatmul.mubr.bf16.gmra.mrb[100].mxu0 %v16662_v26  ;;  %v16682_v43 = vld [vmem:[%s22213_s4 + $0x9e4] ss:$8 sps:$4 sm:$0xff]  }
 0xa29   : > { %11565 = vmatpush1.bf16.msra.mxu0 %v18360_v28  ;;  %15566 = vmatprep.mubr.msk.bf16.mxu1 %vm17184_vm2, %v17182_v1  ;;  %v16667_v28 = vld [vmem:[%s22213_s4 + $0x9a8] ss:$8 sps:$4 sm:$0xff]  }
 0xa2a   : > { %11566 = vmatprep.subr.bf16.mxu0 %v17185_v10  ;;  %13605 = vmatprep.mubr.msk.bf16.mxu0 %vm3005_vm5, %v16669_v49 }
 0xa2b   : > { %v8894_v46 = vpop.f32.mrb[132].mxu1  ;;  %v9850_v34 = vpop.f32.mrb[252].mxu0  ;;  %15614 = vmatprep.subr.bf16.mxu1 %v17182_v1 }
 0xa2c   : > { %v21701_v44 = vadd.f32 %v8894_v46, %v21547_v48  ;;  %v15412_v13 = vpop.f32.mrb[133].mxu1  ;;  %v9852_v37 = vpop.f32.mrb[253].mxu0  ;;  %v9862_v24 = vpack.c.bf16 %v9850_v34, %v9850_v34  ;;  %v13599_v48 = vcombine.high %v13585_v27, %v13585_v27 }
 0xa2d   : > { %11567 = vmatpush1.bf16.msra.mxu0 %v18368_v54  ;;  %v8897_v0 = vpop.f32.mrb[134].mxu1  ;;  %v9853_v50 = vpop.f32.mrb[254].mxu0 }
 0xa2e   : > { %v21708_v53 = vadd.f32 %v8897_v0, %v21552_v40  ;;  %11568 = vmatprep.subr.bf16.mxu0 %v17185_v10  ;;  %v15413_v32 = vpop.f32.mrb[135].mxu1  ;;  %v9854_v56 = vpop.f32.mrb[255].mxu0  ;;  %v16680_v0 = vld [vmem:[%s22213_s4 + $0x9e0] ss:$8 sps:$4 sm:$0xff]  }
 0xa2f   : > { %v16687_v32 = vld [vmem:[%s22213_s4 + $0x9f4] ss:$8 sps:$4 sm:$0xff]  }
 0xa30   : > { %15567 = vmatmul.mubr.bf16.gmra.mrb[240].mxu1 %v9862_v24  ;;  %11265 = vmatmul.mubr.bf16.gmra.mrb[104].mxu0 %v16667_v28 }
 0xa31   : > { %11569 = vmatpush1.bf16.msra.mxu0 %v18376_v31  ;;  %15586 = vmatprep.mubr.msk.bf16.mxu1 %vm17184_vm2, %v17182_v1 }
 0xa32   : > { %11570 = vmatprep.subr.bf16.mxu0 %v17185_v10  ;;  %13606 = vmatprep.mubr.msk.bf16.mxu0 %vm3005_vm5, %v13599_v48 }
 0xa33   : > { %v8902_v54 = vpop.f32.mrb[136].mxu1  ;;  %v10158_v40 = vpop.f32.mrb[0].mxu0 }
 0xa34   : > { %v21717_v41 = vadd.f32 %v8902_v54, %v21560_v58  ;;  %v15416_v21 = vpop.f32.mrb[137].mxu1  ;;  %v10160_v19 = vpop.f32.mrb[1].mxu0  ;;  %v16676_v58 = vld [vmem:[%s22213_s4 + $0x9c4] ss:$8 sps:$4 sm:$0xff]  }
 0xa35   : > { %11571 = vmatpush1.bf16.msra.mxu0 %v18384_v7  ;;  %v8905_v55 = vpop.f32.mrb[138].mxu1  ;;  %v10161_v30 = vpop.f32.mrb[2].mxu0 }
 0xa36   : > { %v21721_v31 = vadd.f32 %v8905_v55, %v21568_v63  ;;  %v10212_v15 = vpack.c.bf16 %v10161_v30, %v10158_v40  ;;  %11572 = vmatprep.subr.bf16.mxu0 %v17185_v10  ;;  %v15417_v47 = vpop.f32.mrb[139].mxu1  ;;  %v10163_v25 = vpop.f32.mrb[3].mxu0  ;;  %v16684_v10 = vld [vmem:[%s22214_s5 + $0x548] sm:$0xff]  }
 0xa38   : > { %15587 = vmatmul.mubr.bf16.vlgmr.msra.gmra.mrb[244].mxu1 %v10212_v15  ;;  %11273 = vmatmul.mubr.bf16.gmra.mrb[108].mxu0 %v13598_v60  ;;  %v16685_v15 = vld [vmem:[%s22213_s4 + $0x9f0] ss:$8 sps:$4 sm:$0xff]  }
 0xa39   : > { %11573 = vmatpush1.bf16.msra.mxu0 %v18392_v36  ;;  %15590 = vmatprep.mubr.msk.bf16.mxu1 %vm17184_vm2, %v17182_v1  ;;  %v16674_v36 = vld [vmem:[%s22213_s4 + $0x9c0] ss:$8 sps:$4 sm:$0xff]  }
 0xa3a   : > { %13658 = vmatprep.mubr.msk.bf16.mxu0 %vm3005_vm5, %v16676_v58  ;;  %15615 = vmatpush3.bf16.msra.mxu1 %v16683_v20  ;;  %v16692_v58 = vld [vmem:[%s22213_s4 + $0xa04] ss:$8 sps:$4 sm:$0xff]  }
 0xa3b   : > { %v8910_v7 = vpop.f32.mrb[140].mxu1  ;;  %v10166_v63 = vpop.f32.mrb[4].mxu0  ;;  %15616 = vmatprep.subr.bf16.mxu1 %v17182_v1 }
 0xa3c   : > { %v21739_v12 = vadd.f32 %v8910_v7, %v21586_v4  ;;  %v15420_v57 = vpop.f32.mrb[141].mxu1  ;;  %v10168_v6 = vpop.f32.mrb[5].mxu0  ;;  %v16688_v4 = vld [vmem:[%s22214_s5 + $0x550] sm:$0xff]  }
 0xa3d   : > { %v8913_v51 = vpop.f32.mrb[142].mxu1  ;;  %v10169_v5 = vpop.f32.mrb[6].mxu0 }
 0xa3e   : > { %v21748_v35 = vadd.f32 %v8913_v51, %v21592_v52  ;;  %v10213_v8 = vpack.c.bf16 %v10169_v5, %v10166_v63  ;;  %v15421_v38 = vpop.f32.mrb[143].mxu1  ;;  %v10171_v61 = vpop.f32.mrb[7].mxu0  ;;  %15617 = vmatpush3.bf16.msra.mxu1 %v16684_v10  ;;  %v16689_v52 = vld [vmem:[%s22214_s5 + $0x558] sm:$0xff]  }
 0xa3f   : > { %15618 = vmatprep.subr.bf16.mxu1 %v17182_v1 }
 0xa40   : > { %15591 = vmatmul.mubr.bf16.gmra.mrb[248].mxu1 %v10213_v8  ;;  %11581 = vmatmul.mubr.bf16.vlgmr.msra.gmra.mrb[112].mxu0 %v16674_v36  ;;  %v16690_v36 = vld [vmem:[%s22213_s4 + $0xa00] ss:$8 sps:$4 sm:$0xff]   ;;  %v16697_v8 = vld [vmem:[%s22213_s4 + $0xa14] ss:$8 sps:$4 sm:$0xff]  }
 0xa41   : > { %15594 = vmatprep.mubr.msk.bf16.mxu1 %vm17184_vm2, %v17182_v1  ;;  %13659 = vmatprep.mubr.msk.bf16.mxu0 %vm3005_vm5, %v16679_v59 }
 0xa42   : > { %15619 = vmatpush3.bf16.msra.mxu1 %v16688_v4 }
 0xa43   : > { %v8918_v11 = vpop.f32.mrb[144].mxu1  ;;  %v10174_v18 = vpop.f32.mrb[8].mxu0  ;;  %15620 = vmatprep.subr.bf16.mxu1 %v17182_v1 }
 0xa44   : > { %v21762_v45 = vadd.f32 %v8918_v11, %v21607_v17  ;;  %v15424_v42 = vpop.f32.mrb[145].mxu1  ;;  %v10176_v26 = vpop.f32.mrb[9].mxu0  ;;  %v16693_v17 = vld [vmem:[%s22214_s5 + $0x560] sm:$0xff]  }
 0xa45   : > { %v8921_v16 = vpop.f32.mrb[146].mxu1  ;;  %v10177_v23 = vpop.f32.mrb[10].mxu0  ;;  %v16695_v26 = vld [vmem:[%s22213_s4 + $0xa10] ss:$8 sps:$4 sm:$0xff]  }
 0xa46   : > { %v21771_v29 = vadd.f32 %v8921_v16, %v21616_v14  ;;  %v10214_v9 = vpack.c.bf16 %v10177_v23, %v10174_v18  ;;  %v15425_v49 = vpop.f32.mrb[147].mxu1  ;;  %v10179_v46 = vpop.f32.mrb[11].mxu0  ;;  %15621 = vmatpush3.bf16.msra.mxu1 %v16689_v52  ;;  %v16694_v14 = vld [vmem:[%s22214_s5 + $0x568] sm:$0xff]  }
 0xa47   : > { %15622 = vmatprep.subr.bf16.mxu1 %v17182_v1 }
 0xa48   : > { %15595 = vmatmul.mubr.bf16.gmra.mrb[252].mxu1 %v10214_v9  ;;  %11589 = vmatmul.mubr.bf16.gmra.mrb[116].mxu0 %v16677_v62 }
 0xa49   : > { %15598 = vmatprep.mubr.msk.bf16.mxu1 %vm17184_vm2, %v17182_v1  ;;  %13660 = vmatprep.mubr.msk.bf16.mxu0 %vm3005_vm5, %v16682_v43 }
 0xa4a   : > { %15623 = vmatpush3.bf16.msra.mxu1 %v16693_v17 }
 0xa4b   : > { %v8926_v34 = vpop.f32.mrb[148].mxu1  ;;  %v10182_v27 = vpop.f32.mrb[12].mxu0  ;;  %15624 = vmatprep.subr.bf16.mxu1 %v17182_v1 }
 0xa4c   : > { %v21785_v13 = vadd.f32 %v8926_v34, %v21634_v33  ;;  %v15428_v28 = vpop.f32.mrb[149].mxu1  ;;  %v10184_v37 = vpop.f32.mrb[13].mxu0  ;;  %v16698_v33 = vld [vmem:[%s22214_s5 + $0x570] sm:$0xff]  }
 0xa4d   : > { %v8929_v50 = vpop.f32.mrb[150].mxu1  ;;  %v10185_v24 = vpop.f32.mrb[14].mxu0 }
 0xa4e   : > { %v21794_v56 = vadd.f32 %v8929_v50, %v21642_v39  ;;  %v10215_v48 = vpack.c.bf16 %v10185_v24, %v10182_v27  ;;  %v15429_v54 = vpop.f32.mrb[151].mxu1  ;;  %v10187_v40 = vpop.f32.mrb[15].mxu0  ;;  %15625 = vmatpush3.bf16.msra.mxu1 %v16694_v14  ;;  %v16699_v39 = vld [vmem:[%s22214_s5 + $0x578] sm:$0xff]   ;;  %v16702_v50 = vld [vmem:[%s22214_s5 + $0x580] sm:$0xff]  }
 0xa4f   : > { %15626 = vmatprep.subr.bf16.mxu1 %v17182_v1 }
 0xa50   : > { %15599 = vmatmul.mubr.bf16.gmra.mrb[0].mxu1 %v10215_v48  ;;  %11597 = vmatmul.mubr.bf16.gmra.mrb[120].mxu0 %v16680_v0 }
 0xa51   : > { %15602 = vmatprep.mubr.msk.bf16.mxu1 %vm17184_vm2, %v17182_v1  ;;  %13661 = vmatprep.mubr.msk.bf16.mxu0 %vm3005_vm5, %v16687_v32 }
 0xa52   : > { %15627 = vmatpush3.bf16.msra.mxu1 %v16698_v33 }
 0xa53   : > { %v8934_v21 = vpop.f32.mrb[152].mxu1  ;;  %v10190_v19 = vpop.f32.mrb[16].mxu0  ;;  %15628 = vmatprep.subr.bf16.mxu1 %v17182_v1 }
 0xa54   : > { %v21808_v60 = vadd.f32 %v8934_v21, %v21657_v3  ;;  %v15432_v55 = vpop.f32.mrb[153].mxu1  ;;  %v10192_v30 = vpop.f32.mrb[17].mxu0 }
 0xa55   : > { %v8937_v47 = vpop.f32.mrb[154].mxu1  ;;  %v10193_v25 = vpop.f32.mrb[18].mxu0  ;;  %v16704_v30 = vld [vmem:[%s22214_s5 + $0x590] sm:$0xff]  }
 0xa56   : > { %v21817_v20 = vadd.f32 %v8937_v47, %v21666_v22  ;;  %v10216_v10 = vpack.c.bf16 %v10193_v25, %v10190_v19  ;;  %v15433_v7 = vpop.f32.mrb[155].mxu1  ;;  %v10195_v63 = vpop.f32.mrb[19].mxu0  ;;  %15629 = vmatpush3.bf16.msra.mxu1 %v16699_v39 }
 0xa57   : > { %15658 = vmatprep.subr.bf16.mxu1 %v17182_v1 }
 0xa58   : > { %15603 = vmatmul.mubr.bf16.gmra.mrb[4].mxu1 %v10216_v10  ;;  %11605 = vmatmul.mubr.bf16.gmra.mrb[124].mxu0 %v16685_v15 }
 0xa59   : > { %15606 = vmatprep.mubr.msk.bf16.mxu1 %vm17184_vm2, %v17182_v1  ;;  %13662 = vmatprep.mubr.msk.bf16.mxu0 %vm3005_vm5, %v16692_v58 }
 0xa5b   : > { %v8942_v3 = vpop.f32.mrb[156].mxu1  ;;  %v10198_v57 = vpop.f32.mrb[20].mxu0 }
 0xa5c   : > { %v21824_v6 = vadd.f32 %v8942_v3, %v21684_v2  ;;  %v10200_v22 = vpop.f32.mrb[21].mxu0  ;;  %v15436_v51 = vpop.f32.mrb[157].mxu1  ;;  %v13643_v2 = vld [vmem:[%s22213_s4 + $0xa20] sm:$0x33] }
 0xa5d   : > { %v10201_v5 = vpop.f32.mrb[22].mxu0  ;;  %v8945_v59 = vpop.f32.mrb[158].mxu1  ;;  %v13657_v43 = vcombine.high %v13643_v2, %v13643_v2  ;;  %v13656_v37 = vcombine.low %v13643_v2, %v13643_v2 }
 0xa5e   : > { %v10217_v38 = vpack.c.bf16 %v10201_v5, %v10198_v57  ;;  %v15437_v61 = vpop.f32.mrb[159].mxu1  ;;  %v10203_v4 = vpop.f32.mrb[23].mxu0 }
 0xa60   : > { %15607 = vmatmul.mubr.bf16.gmra.mrb[8].mxu1 %v10217_v38  ;;  %11613 = vmatmul.mubr.bf16.gmra.mrb[128].mxu0 %v16690_v36  ;;  %v16706_v36 = vld [vmem:[%s22214_s5 + $0x5a0] sm:$0xff]  }
 0xa61   : > { %15610 = vmatprep.mubr.msk.bf16.mxu1 %vm17184_vm2, %v17182_v1  ;;  %13663 = vmatprep.mubr.msk.bf16.mxu0 %vm3005_vm5, %v16697_v8 }
 0xa63   : > { %v9250_v52 = vpop.f32.mrb[160].mxu1  ;;  %v10206_v11 = vpop.f32.mrb[24].mxu0 }
 0xa64   : > { %v21839_v18 = vadd.f32 %v9250_v52, %v21701_v44  ;;  %v15456_v42 = vpop.f32.mrb[161].mxu1  ;;  %v10208_v62 = vpop.f32.mrb[25].mxu0  ;;  %v10218_v49 = vpack.c.bf16 %v10206_v11, %v10206_v11 }
 0xa65   : > { %v9253_v16 = vpop.f32.mrb[162].mxu1  ;;  %v10209_v23 = vpop.f32.mrb[26].mxu0  ;;  %v16708_v42 = vld [vmem:[%s22214_s5 + $0x5b0] sm:$0xff]  }
 0xa66   : > { %v21845_v9 = vadd.f32 %v9253_v16, %v21708_v53  ;;  %v15457_v46 = vpop.f32.mrb[163].mxu1  ;;  %v10210_v17 = vpop.f32.mrb[27].mxu0 }
 0xa68   : > { %15611 = vmatmul.mubr.bf16.gmra.mrb[12].mxu1 %v10218_v49  ;;  %11621 = vmatmul.mubr.bf16.gmra.mrb[132].mxu0 %v16695_v26 }
 0xa69   : > { %15630 = vmatprep.mubr.msk.bf16.mxu1 %vm17184_vm2, %v17182_v1  ;;  %13664 = vmatprep.mubr.msk.bf16.mxu0 %vm3005_vm5, %v13657_v43 }
 0xa6b   : > { %v9258_v44 = vpop.f32.mrb[164].mxu1  ;;  %v10514_v14 = vpop.f32.mrb[28].mxu0 }
 0xa6c   : > { %v21851_v34 = vadd.f32 %v9258_v44, %v21717_v41  ;;  %v15460_v27 = vpop.f32.mrb[165].mxu1  ;;  %v10516_v28 = vpop.f32.mrb[29].mxu0  ;;  %v16703_v41 = vld [vmem:[%s22214_s5 + $0x588] sm:$0xff]  }
 0xa6d   : > { %v9261_v53 = vpop.f32.mrb[166].mxu1  ;;  %v10517_v0 = vpop.f32.mrb[30].mxu0 }
 0xa6e   : > { %v21857_v24 = vadd.f32 %v9261_v53, %v21721_v31  ;;  %v10568_v32 = vpack.c.bf16 %v10517_v0, %v10514_v14  ;;  %v15461_v48 = vpop.f32.mrb[167].mxu1  ;;  %v10519_v54 = vpop.f32.mrb[31].mxu0 }
 0xa70   : > { %15631 = vmatmul.mubr.bf16.vlgmr.msra.gmra.mrb[16].mxu1 %v10568_v32  ;;  %11629 = vmatmul.mubr.bf16.gmra.mrb[136].mxu0 %v13656_v37 }
 0xa71   : > { %15634 = vmatprep.mubr.msk.bf16.mxu1 %vm17184_vm2, %v17182_v1  ;;  %15659 = vmatpush3.bf16.msra.mxu1 %v16702_v50 }
 0xa72   : > { %15660 = vmatprep.subr.bf16.mxu1 %v17182_v1 }
 0xa73   : > { %v9266_v40 = vpop.f32.mrb[168].mxu1  ;;  %v10522_v33 = vpop.f32.mrb[32].mxu0 }
 0xa74   : > { %v21866_v31 = vadd.f32 %v9266_v40, %v21739_v12  ;;  %v15464_v39 = vpop.f32.mrb[169].mxu1  ;;  %v10524_v21 = vpop.f32.mrb[33].mxu0  ;;  %v16705_v12 = vld [vmem:[%s22214_s5 + $0x598] sm:$0xff]  }
 0xa75   : > { %v9269_v19 = vpop.f32.mrb[170].mxu1  ;;  %v10525_v55 = vpop.f32.mrb[34].mxu0  ;;  %15661 = vmatpush3.bf16.msra.mxu1 %v16703_v41 }
 0xa76   : > { %v21872_v15 = vadd.f32 %v9269_v19, %v21748_v35  ;;  %v10569_v47 = vpack.c.bf16 %v10525_v55, %v10522_v33  ;;  %v15465_v25 = vpop.f32.mrb[171].mxu1  ;;  %v10527_v58 = vpop.f32.mrb[35].mxu0  ;;  %15662 = vmatprep.subr.bf16.mxu1 %v17182_v1 }
 0xa78   : > { %15635 = vmatmul.mubr.bf16.gmra.mrb[20].mxu1 %v10569_v47 }
 0xa79   : > { %15638 = vmatprep.mubr.msk.bf16.mxu1 %vm17184_vm2, %v17182_v1  ;;  %15663 = vmatpush3.bf16.msra.mxu1 %v16704_v30 }
 0xa7a   : > { %15664 = vmatprep.subr.bf16.mxu1 %v17182_v1 }
 0xa7b   : > { %v9274_v10 = vpop.f32.mrb[172].mxu1  ;;  %v10530_v7 = vpop.f32.mrb[36].mxu0 }
 0xa7c   : > { %v21882_v35 = vadd.f32 %v9274_v10, %v21762_v45  ;;  %v15468_v63 = vpop.f32.mrb[173].mxu1  ;;  %v10532_v3 = vpop.f32.mrb[37].mxu0  ;;  %v16707_v45 = vld [vmem:[%s22214_s5 + $0x5a8] sm:$0xff]  }
 0xa7d   : > { %v9277_v57 = vpop.f32.mrb[174].mxu1  ;;  %v10533_v22 = vpop.f32.mrb[38].mxu0  ;;  %15665 = vmatpush3.bf16.msra.mxu1 %v16705_v12 }
 0xa7e   : > { %v21888_v51 = vadd.f32 %v9277_v57, %v21771_v29  ;;  %v10570_v5 = vpack.c.bf16 %v10533_v22, %v10530_v7  ;;  %v15469_v59 = vpop.f32.mrb[175].mxu1  ;;  %v10535_v8 = vpop.f32.mrb[39].mxu0  ;;  %15666 = vmatprep.subr.bf16.mxu1 %v17182_v1 }
 0xa80   : > { %15639 = vmatmul.mubr.bf16.gmra.mrb[24].mxu1 %v10570_v5 }
 0xa81   : > { %15642 = vmatprep.mubr.msk.bf16.mxu1 %vm17184_vm2, %v17182_v1  ;;  %15667 = vmatpush3.bf16.msra.mxu1 %v16706_v36 }
 0xa82   : > { %15668 = vmatprep.subr.bf16.mxu1 %v17182_v1 }
 0xa83   : > { %v9282_v38 = vpop.f32.mrb[176].mxu1  ;;  %v10538_v61 = vpop.f32.mrb[40].mxu0 }
 0xa84   : > { %v21898_v29 = vadd.f32 %v9282_v38, %v21785_v13  ;;  %v15472_v4 = vpop.f32.mrb[177].mxu1  ;;  %v10540_v2 = vpop.f32.mrb[41].mxu0  ;;  %v16709_v13 = vld [vmem:[%s22214_s5 + $0x5b8] sm:$0xff]  }
 0xa85   : > { %v9285_v52 = vpop.f32.mrb[178].mxu1  ;;  %v10541_v11 = vpop.f32.mrb[42].mxu0  ;;  %15669 = vmatpush3.bf16.msra.mxu1 %v16707_v45 }
 0xa86   : > { %v21904_v26 = vadd.f32 %v9285_v52, %v21794_v56  ;;  %v10571_v62 = vpack.c.bf16 %v10541_v11, %v10538_v61  ;;  %v15473_v16 = vpop.f32.mrb[179].mxu1  ;;  %v10543_v23 = vpop.f32.mrb[43].mxu0  ;;  %15670 = vmatprep.subr.bf16.mxu1 %v17182_v1 }
 0xa88   : > { %15643 = vmatmul.mubr.bf16.gmra.mrb[28].mxu1 %v10571_v62 }
 0xa89   : > { %15646 = vmatprep.mubr.msk.bf16.mxu1 %vm17184_vm2, %v17182_v1  ;;  %15671 = vmatpush3.bf16.msra.mxu1 %v16708_v42  ;;  %v16712_v42 = vld [vmem:[%s22214_s5 + $0x5d0] sm:$0xff]  }
 0xa8a   : > { %15672 = vmatprep.subr.bf16.mxu1 %v17182_v1 }
 0xa8b   : > { %v9290_v43 = vpop.f32.mrb[180].mxu1  ;;  %v10546_v49 = vpop.f32.mrb[44].mxu0 }
 0xa8c   : > { %v21914_v56 = vadd.f32 %v9290_v43, %v21808_v60  ;;  %v15476_v46 = vpop.f32.mrb[181].mxu1  ;;  %v10548_v17 = vpop.f32.mrb[45].mxu0 }
 0xa8d   : > { %v9293_v44 = vpop.f32.mrb[182].mxu1  ;;  %v10549_v14 = vpop.f32.mrb[46].mxu0  ;;  %15673 = vmatpush3.bf16.msra.mxu1 %v16709_v13 }
 0xa8e   : > { %v21917_v27 = vadd.f32 %v9293_v44, %v21817_v20  ;;  %v10572_v28 = vpack.c.bf16 %v10549_v14, %v10546_v49  ;;  %v15477_v37 = vpop.f32.mrb[183].mxu1  ;;  %v10551_v53 = vpop.f32.mrb[47].mxu0  ;;  %15702 = vmatprep.subr.bf16.mxu1 %v17182_v1 }
 0xa90   : > { %15647 = vmatmul.mubr.bf16.gmra.mrb[32].mxu1 %v10572_v28  ;;  %v16714_v28 = vld [vmem:[%s22214_s5 + $0x5e0] sm:$0xff]  }
 0xa91   : > { %15650 = vmatprep.mubr.msk.bf16.mxu1 %vm17184_vm2, %v17182_v1 }
 0xa93   : > { %v9298_v0 = vpop.f32.mrb[184].mxu1  ;;  %v10554_v60 = vpop.f32.mrb[48].mxu0 }
 0xa94   : > { %v21923_v50 = vadd.f32 %v9298_v0, %v21824_v6  ;;  %v10556_v32 = vpop.f32.mrb[49].mxu0  ;;  %v15480_v48 = vpop.f32.mrb[185].mxu1 }
 0xa95   : > { %v10557_v54 = vpop.f32.mrb[50].mxu0  ;;  %v9301_v41 = vpop.f32.mrb[186].mxu1 }
 0xa96   : > { %v10573_v20 = vpack.c.bf16 %v10557_v54, %v10554_v60  ;;  %v15481_v40 = vpop.f32.mrb[187].mxu1  ;;  %v10559_v33 = vpop.f32.mrb[51].mxu0 }
 0xa97   : > { %v16716_v33 = vld [vmem:[%s22214_s5 + $0x5f0] sm:$0xff]  }
 0xa98   : > { %15651 = vmatmul.mubr.bf16.gmra.mrb[36].mxu1 %v10573_v20 }
 0xa99   : > { %15654 = vmatprep.mubr.msk.bf16.mxu1 %vm17184_vm2, %v17182_v1 }
 0xa9b   : > { %v9606_v39 = vpop.f32.mrb[188].mxu1  ;;  %v10562_v21 = vpop.f32.mrb[52].mxu0 }
 0xa9c   : > { %v21928_v19 = vadd.f32 %v9606_v39, %v21839_v18  ;;  %v15500_v55 = vpop.f32.mrb[189].mxu1  ;;  %v10564_v30 = vpop.f32.mrb[53].mxu0  ;;  %v10574_v58 = vpack.c.bf16 %v10562_v21, %v10562_v21 }
 0xa9d   : > { %v9609_v6 = vpop.f32.mrb[190].mxu1  ;;  %v10565_v47 = vpop.f32.mrb[54].mxu0 }
 0xa9e   : > { %v21931_v25 = vadd.f32 %v9609_v6, %v21845_v9  ;;  %v15501_v12 = vpop.f32.mrb[191].mxu1  ;;  %v10566_v10 = vpop.f32.mrb[55].mxu0  ;;  %v16710_v9 = vld [vmem:[%s22214_s5 + $0x5c0] sm:$0xff]  }
 0xaa0   : > { %15655 = vmatmul.mubr.bf16.gmra.mrb[40].mxu1 %v10574_v58 }
 0xaa1   : > { %15674 = vmatprep.mubr.msk.bf16.mxu1 %vm17184_vm2, %v17182_v1 }
 0xaa3   : > { %v9614_v7 = vpop.f32.mrb[192].mxu1  ;;  %v10870_v63 = vpop.f32.mrb[56].mxu0 }
 0xaa4   : > { %v21936_v3 = vadd.f32 %v9614_v7, %v21851_v34  ;;  %v15504_v18 = vpop.f32.mrb[193].mxu1  ;;  %v10872_v57 = vpop.f32.mrb[57].mxu0  ;;  %v16711_v34 = vld [vmem:[%s22214_s5 + $0x5c8] sm:$0xff]  }
 0xaa5   : > { %v9617_v22 = vpop.f32.mrb[194].mxu1  ;;  %v10873_v36 = vpop.f32.mrb[58].mxu0 }
 0xaa6   : > { %v21942_v5 = vadd.f32 %v9617_v22, %v21857_v24  ;;  %v10924_v59 = vpack.c.bf16 %v10873_v36, %v10870_v63  ;;  %v15505_v8 = vpop.f32.mrb[195].mxu1  ;;  %v10875_v45 = vpop.f32.mrb[59].mxu0 }
 0xaa8   : > { %15675 = vmatmul.mubr.bf16.vlgmr.msra.gmra.mrb[44].mxu1 %v10924_v59 }
 0xaa9   : > { %15678 = vmatprep.mubr.msk.bf16.mxu1 %vm17184_vm2, %v17182_v1  ;;  %15703 = vmatpush3.bf16.msra.mxu1 %v16710_v9 }
 0xaaa   : > { %15704 = vmatprep.subr.bf16.mxu1 %v17182_v1 }
 0xaab   : > { %v9622_v38 = vpop.f32.mrb[196].mxu1  ;;  %v10878_v61 = vpop.f32.mrb[60].mxu0 }
 0xaac   : > { %v21951_v4 = vadd.f32 %v9622_v38, %v21866_v31  ;;  %v15508_v24 = vpop.f32.mrb[197].mxu1  ;;  %v10880_v2 = vpop.f32.mrb[61].mxu0  ;;  %v16713_v31 = vld [vmem:[%s22214_s5 + $0x5d8] sm:$0xff]  }
 0xaad   : > { %v9625_v52 = vpop.f32.mrb[198].mxu1  ;;  %v10881_v11 = vpop.f32.mrb[62].mxu0  ;;  %15705 = vmatpush3.bf16.msra.mxu1 %v16711_v34 }
 0xaae   : > { %v21957_v62 = vadd.f32 %v9625_v52, %v21872_v15  ;;  %v10925_v16 = vpack.c.bf16 %v10881_v11, %v10878_v61  ;;  %v15509_v23 = vpop.f32.mrb[199].mxu1  ;;  %v10883_v13 = vpop.f32.mrb[63].mxu0  ;;  %15706 = vmatprep.subr.bf16.mxu1 %v17182_v1 }
 0xab0   : > { %15679 = vmatmul.mubr.bf16.gmra.mrb[48].mxu1 %v10925_v16 }
 0xab1   : > { %15682 = vmatprep.mubr.msk.bf16.mxu1 %vm17184_vm2, %v17182_v1  ;;  %15707 = vmatpush3.bf16.msra.mxu1 %v16712_v42 }
 0xab2   : > { %15708 = vmatprep.subr.bf16.mxu1 %v17182_v1 }
 0xab3   : > { %v9630_v43 = vpop.f32.mrb[200].mxu1  ;;  %v10886_v49 = vpop.f32.mrb[64].mxu0 }
 0xab4   : > { %v21967_v15 = vadd.f32 %v9630_v43, %v21882_v35  ;;  %v15512_v46 = vpop.f32.mrb[201].mxu1  ;;  %v10888_v17 = vpop.f32.mrb[65].mxu0  ;;  %v16715_v35 = vld [vmem:[%s22214_s5 + $0x5e8] sm:$0xff]  }
 0xab5   : > { %v9633_v44 = vpop.f32.mrb[202].mxu1  ;;  %v10889_v14 = vpop.f32.mrb[66].mxu0  ;;  %15709 = vmatpush3.bf16.msra.mxu1 %v16713_v31 }
 0xab6   : > { %v21973_v37 = vadd.f32 %v9633_v44, %v21888_v51  ;;  %v10926_v53 = vpack.c.bf16 %v10889_v14, %v10886_v49  ;;  %v15513_v0 = vpop.f32.mrb[203].mxu1  ;;  %v10891_v60 = vpop.f32.mrb[67].mxu0  ;;  %15710 = vmatprep.subr.bf16.mxu1 %v17182_v1 }
 0xab8   : > { %15683 = vmatmul.mubr.bf16.gmra.mrb[52].mxu1 %v10926_v53 }
 0xab9   : > { %15686 = vmatprep.mubr.msk.bf16.mxu1 %vm17184_vm2, %v17182_v1  ;;  %15711 = vmatpush3.bf16.msra.mxu1 %v16714_v28 }
 0xaba   : > { %15712 = vmatprep.subr.bf16.mxu1 %v17182_v1 }
 0xabb   : > { %v9638_v32 = vpop.f32.mrb[204].mxu1  ;;  %v10894_v48 = vpop.f32.mrb[68].mxu0 }
 0xabc   : > { %v21983_v51 = vadd.f32 %v9638_v32, %v21898_v29  ;;  %v15516_v54 = vpop.f32.mrb[205].mxu1  ;;  %v10896_v41 = vpop.f32.mrb[69].mxu0  ;;  %v16717_v29 = vld [vmem:[%s22214_s5 + $0x5f8] sm:$0xff]  }
 0xabd   : > { %v9641_v20 = vpop.f32.mrb[206].mxu1  ;;  %v10897_v40 = vpop.f32.mrb[70].mxu0  ;;  %15713 = vmatpush3.bf16.msra.mxu1 %v16715_v35 }
 0xabe   : > { %v21989_v39 = vadd.f32 %v9641_v20, %v21904_v26  ;;  %v10927_v21 = vpack.c.bf16 %v10897_v40, %v10894_v48  ;;  %v15517_v55 = vpop.f32.mrb[207].mxu1  ;;  %v10899_v30 = vpop.f32.mrb[71].mxu0  ;;  %15714 = vmatprep.subr.bf16.mxu1 %v17182_v1 }
 0xac0   : > { %15687 = vmatmul.mubr.bf16.gmra.mrb[56].mxu1 %v10927_v21 }
 0xac1   : > { %15690 = vmatprep.mubr.msk.bf16.mxu1 %vm17184_vm2, %v17182_v1  ;;  %15715 = vmatpush3.bf16.msra.mxu1 %v16716_v33  ;;  %v16720_v33 = vld [vmem:[%s22214_s5 + $0x610] sm:$0xff]  }
 0xac2   : > { %15716 = vmatprep.subr.bf16.mxu1 %v17182_v1 }
 0xac3   : > { %v9646_v6 = vpop.f32.mrb[208].mxu1  ;;  %v10902_v47 = vpop.f32.mrb[72].mxu0 }
 0xac4   : > { %v21999_v26 = vadd.f32 %v9646_v6, %v21914_v56  ;;  %v15520_v58 = vpop.f32.mrb[209].mxu1  ;;  %v10904_v12 = vpop.f32.mrb[73].mxu0 }
 0xac5   : > { %v9649_v10 = vpop.f32.mrb[210].mxu1  ;;  %v10905_v7 = vpop.f32.mrb[74].mxu0  ;;  %15717 = vmatpush3.bf16.msra.mxu1 %v16717_v29 }
 0xac6   : > { %v22002_v63 = vadd.f32 %v9649_v10, %v21917_v27  ;;  %v10928_v18 = vpack.c.bf16 %v10905_v7, %v10902_v47  ;;  %v15521_v57 = vpop.f32.mrb[211].mxu1  ;;  %v10907_v22 = vpop.f32.mrb[75].mxu0  ;;  %15746 = vmatprep.subr.bf16.mxu1 %v17182_v1 }
 0xac8   : > { %15691 = vmatmul.mubr.bf16.gmra.mrb[60].mxu1 %v10928_v18  ;;  %v16722_v18 = vld [vmem:[%s22214_s5 + $0x620] sm:$0xff]  }
 0xac9   : > { %15694 = vmatprep.mubr.msk.bf16.mxu1 %vm17184_vm2, %v17182_v1 }
 0xacb   : > { %v9654_v36 = vpop.f32.mrb[212].mxu1  ;;  %v10910_v56 = vpop.f32.mrb[76].mxu0 }
 0xacc   : > { %v22008_v9 = vadd.f32 %v9654_v36, %v21923_v50  ;;  %v10912_v59 = vpop.f32.mrb[77].mxu0  ;;  %v15524_v8 = vpop.f32.mrb[213].mxu1 }
 0xacd   : > { %v10913_v45 = vpop.f32.mrb[78].mxu0  ;;  %v9657_v34 = vpop.f32.mrb[214].mxu1 }
 0xace   : > { %v10929_v27 = vpack.c.bf16 %v10913_v45, %v10910_v56  ;;  %v15525_v38 = vpop.f32.mrb[215].mxu1  ;;  %v10915_v61 = vpop.f32.mrb[79].mxu0 }
 0xacf   : > { %v16724_v61 = vld [vmem:[%s22214_s5 + $0x630] sm:$0xff]  }
 0xad0   : > { %15695 = vmatmul.mubr.bf16.gmra.mrb[64].mxu1 %v10929_v27 }
 0xad1   : > { %15698 = vmatprep.mubr.msk.bf16.mxu1 %vm17184_vm2, %v17182_v1 }
 0xad3   : > { %v9962_v24 = vpop.f32.mrb[216].mxu1  ;;  %v10918_v2 = vpop.f32.mrb[80].mxu0 }
 0xad4   : > { %v22013_v52 = vadd.f32 %v9962_v24, %v21928_v19  ;;  %v15544_v11 = vpop.f32.mrb[217].mxu1  ;;  %v10920_v42 = vpop.f32.mrb[81].mxu0  ;;  %v10930_v13 = vpack.c.bf16 %v10918_v2, %v10918_v2 }
 0xad5   : > { %v9965_v50 = vpop.f32.mrb[218].mxu1  ;;  %v10921_v16 = vpop.f32.mrb[82].mxu0 }
 0xad6   : > { %v22016_v23 = vadd.f32 %v9965_v50, %v21931_v25  ;;  %v15545_v31 = vpop.f32.mrb[219].mxu1  ;;  %v10922_v43 = vpop.f32.mrb[83].mxu0  ;;  %v16718_v25 = vld [vmem:[%s22214_s5 + $0x600] sm:$0xff]  }
 0xad8   : > { %15699 = vmatmul.mubr.bf16.gmra.mrb[68].mxu1 %v10930_v13 }
 0xad9   : > { %15718 = vmatprep.mubr.msk.bf16.mxu1 %vm17184_vm2, %v17182_v1 }
 0xadb   : > { %v9970_v49 = vpop.f32.mrb[220].mxu1  ;;  %v11226_v46 = vpop.f32.mrb[84].mxu0 }
 0xadc   : > { %v22021_v17 = vadd.f32 %v9970_v49, %v21936_v3  ;;  %v15548_v19 = vpop.f32.mrb[221].mxu1  ;;  %v11228_v44 = vpop.f32.mrb[85].mxu0  ;;  %v16719_v3 = vld [vmem:[%s22214_s5 + $0x608] sm:$0xff]  }
 0xadd   : > { %v9973_v14 = vpop.f32.mrb[222].mxu1  ;;  %v11229_v28 = vpop.f32.mrb[86].mxu0 }
 0xade   : > { %v22027_v53 = vadd.f32 %v9973_v14, %v21942_v5  ;;  %v11280_v0 = vpack.c.bf16 %v11229_v28, %v11226_v46  ;;  %v15549_v60 = vpop.f32.mrb[223].mxu1  ;;  %v11231_v35 = vpop.f32.mrb[87].mxu0 }
 0xae0   : > { %15719 = vmatmul.mubr.bf16.vlgmr.msra.gmra.mrb[72].mxu1 %v11280_v0 }
 0xae1   : > { %15722 = vmatprep.mubr.msk.bf16.mxu1 %vm17184_vm2, %v17182_v1  ;;  %15747 = vmatpush3.bf16.msra.mxu1 %v16718_v25 }
 0xae2   : > { %15748 = vmatprep.subr.bf16.mxu1 %v17182_v1 }
 0xae3   : > { %v9978_v32 = vpop.f32.mrb[224].mxu1  ;;  %v11234_v48 = vpop.f32.mrb[88].mxu0 }
 0xae4   : > { %v22036_v54 = vadd.f32 %v9978_v32, %v21951_v4  ;;  %v15552_v5 = vpop.f32.mrb[225].mxu1  ;;  %v11236_v41 = vpop.f32.mrb[89].mxu0  ;;  %v16721_v4 = vld [vmem:[%s22214_s5 + $0x618] sm:$0xff]  }
 0xae5   : > { %v9981_v20 = vpop.f32.mrb[226].mxu1  ;;  %v11237_v40 = vpop.f32.mrb[90].mxu0  ;;  %15749 = vmatpush3.bf16.msra.mxu1 %v16719_v3 }
 0xae6   : > { %v22042_v21 = vadd.f32 %v9981_v20, %v21957_v62  ;;  %v11281_v55 = vpack.c.bf16 %v11237_v40, %v11234_v48  ;;  %v15553_v30 = vpop.f32.mrb[227].mxu1  ;;  %v11239_v29 = vpop.f32.mrb[91].mxu0  ;;  %15750 = vmatprep.subr.bf16.mxu1 %v17182_v1 }
 0xae8   : > { %15723 = vmatmul.mubr.bf16.gmra.mrb[76].mxu1 %v11281_v55 }
 0xae9   : > { %15726 = vmatprep.mubr.msk.bf16.mxu1 %vm17184_vm2, %v17182_v1  ;;  %15751 = vmatpush3.bf16.msra.mxu1 %v16720_v33 }
 0xaea   : > { %15752 = vmatprep.subr.bf16.mxu1 %v17182_v1 }
 0xaeb   : > { %v9986_v6 = vpop.f32.mrb[228].mxu1  ;;  %v11242_v47 = vpop.f32.mrb[92].mxu0 }
 0xaec   : > { %v22052_v62 = vadd.f32 %v9986_v6, %v21967_v15  ;;  %v15556_v58 = vpop.f32.mrb[229].mxu1  ;;  %v11244_v12 = vpop.f32.mrb[93].mxu0  ;;  %v16723_v15 = vld [vmem:[%s22214_s5 + $0x628] sm:$0xff]  }
 0xaed   : > { %v9989_v10 = vpop.f32.mrb[230].mxu1  ;;  %v11245_v7 = vpop.f32.mrb[94].mxu0  ;;  %15753 = vmatpush3.bf16.msra.mxu1 %v16721_v4 }
 0xaee   : > { %v22058_v57 = vadd.f32 %v9989_v10, %v21973_v37  ;;  %v11282_v22 = vpack.c.bf16 %v11245_v7, %v11242_v47  ;;  %v15557_v36 = vpop.f32.mrb[231].mxu1  ;;  %v11247_v56 = vpop.f32.mrb[95].mxu0  ;;  %15754 = vmatprep.subr.bf16.mxu1 %v17182_v1 }
 0xaf0   : > { %15727 = vmatmul.mubr.bf16.gmra.mrb[80].mxu1 %v11282_v22 }
 0xaf1   : > { %15730 = vmatprep.mubr.msk.bf16.mxu1 %vm17184_vm2, %v17182_v1  ;;  %15755 = vmatpush3.bf16.msra.mxu1 %v16722_v18 }
 0xaf2   : > { %15756 = vmatprep.subr.bf16.mxu1 %v17182_v1 }
 0xaf3   : > { %v9994_v59 = vpop.f32.mrb[232].mxu1  ;;  %v11250_v8 = vpop.f32.mrb[96].mxu0 }
 0xaf4   : > { %v22068_v37 = vadd.f32 %v9994_v59, %v21983_v51  ;;  %v15560_v45 = vpop.f32.mrb[233].mxu1  ;;  %v11252_v34 = vpop.f32.mrb[97].mxu0  ;;  %v16725_v51 = vld [vmem:[%s22214_s5 + $0x638] sm:$0xff]  }
 0xaf5   : > { %v9997_v27 = vpop.f32.mrb[234].mxu1  ;;  %v11253_v38 = vpop.f32.mrb[98].mxu0  ;;  %15757 = vmatpush3.bf16.msra.mxu1 %v16723_v15 }
 0xaf6   : > { %v22074_v24 = vadd.f32 %v9997_v27, %v21989_v39  ;;  %v11283_v2 = vpack.c.bf16 %v11253_v38, %v11250_v8  ;;  %v15561_v11 = vpop.f32.mrb[235].mxu1  ;;  %v11255_v42 = vpop.f32.mrb[99].mxu0  ;;  %15758 = vmatprep.subr.bf16.mxu1 %v17182_v1 }
 0xaf8   : > { %15731 = vmatmul.mubr.bf16.gmra.mrb[84].mxu1 %v11283_v2 }
 0xaf9   : > { %15734 = vmatprep.mubr.msk.bf16.mxu1 %vm17184_vm2, %v17182_v1  ;;  %15759 = vmatpush3.bf16.msra.mxu1 %v16724_v61 }
 0xafa   : > { %15760 = vmatprep.subr.bf16.mxu1 %v17182_v1 }
 0xafb   : > { %v10002_v50 = vpop.f32.mrb[236].mxu1  ;;  %v11258_v16 = vpop.f32.mrb[100].mxu0 }
 0xafc   : > { %v22084_v39 = vadd.f32 %v10002_v50, %v21999_v26  ;;  %v15564_v13 = vpop.f32.mrb[237].mxu1  ;;  %v11260_v31 = vpop.f32.mrb[101].mxu0 }
 0xafd   : > { %v10005_v43 = vpop.f32.mrb[238].mxu1  ;;  %v11261_v49 = vpop.f32.mrb[102].mxu0  ;;  %15761 = vmatpush3.bf16.msra.mxu1 %v16725_v51 }
 0xafe   : > { %v22087_v46 = vadd.f32 %v10005_v43, %v22002_v63  ;;  %v11284_v19 = vpack.c.bf16 %v11261_v49, %v11258_v16  ;;  %v15565_v44 = vpop.f32.mrb[239].mxu1  ;;  %v11263_v14 = vpop.f32.mrb[103].mxu0 }
 0xb00   : > { %15735 = vmatmul.mubr.bf16.gmra.mrb[88].mxu1 %v11284_v19 }
 0xb01   : > { %15738 = vmatprep.mubr.msk.bf16.mxu1 %vm17184_vm2, %v17182_v1 }
 0xb03   : > { %v10010_v28 = vpop.f32.mrb[240].mxu1  ;;  %v11266_v25 = vpop.f32.mrb[104].mxu0 }
 0xb04   : > { %v22092_v26 = vadd.f32 %v10010_v28, %v22008_v9  ;;  %v11268_v0 = vpop.f32.mrb[105].mxu0  ;;  %v15568_v60 = vpop.f32.mrb[241].mxu1 }
 0xb05   : > { %v11269_v35 = vpop.f32.mrb[106].mxu0  ;;  %v10013_v3 = vpop.f32.mrb[242].mxu1 }
 0xb06   : > { %v11285_v32 = vpack.c.bf16 %v11269_v35, %v11266_v25  ;;  %v15569_v48 = vpop.f32.mrb[243].mxu1  ;;  %v11271_v63 = vpop.f32.mrb[107].mxu0 }
 0xb08   : > { %15739 = vmatmul.mubr.bf16.gmra.mrb[92].mxu1 %v11285_v32 }
 0xb09   : > { %15742 = vmatprep.mubr.msk.bf16.mxu1 %vm17184_vm2, %v17182_v1 }
 0xb0b   : > { %v10318_v5 = vpop.f32.mrb[244].mxu1  ;;  %v11274_v41 = vpop.f32.mrb[108].mxu0 }
 0xb0c   : > { %v22097_v20 = vadd.f32 %v10318_v5, %v22013_v52  ;;  %v15588_v40 = vpop.f32.mrb[245].mxu1  ;;  %v11276_v33 = vpop.f32.mrb[109].mxu0  ;;  %v11286_v29 = vpack.c.bf16 %v11274_v41, %v11274_v41 }
 0xb0d   : > { %v10321_v9 = vpop.f32.mrb[246].mxu1  ;;  %v11277_v55 = vpop.f32.mrb[110].mxu0 }
 0xb0e   : > { %v22100_v30 = vadd.f32 %v10321_v9, %v22016_v23  ;;  %v15589_v4 = vpop.f32.mrb[247].mxu1  ;;  %v11278_v6 = vpop.f32.mrb[111].mxu0 }
 0xb10   : > { %15743 = vmatmul.mubr.bf16.gmra.mrb[96].mxu1 %v11286_v29 }
 0xb11   : > { %15762 = vmatprep.mubr.msk.bf16.mxu1 %vm17184_vm2, %v17182_v1 }
 0xb13   : > { %v10326_v47 = vpop.f32.mrb[248].mxu1  ;;  %v11582_v58 = vpop.f32.mrb[112].mxu0 }
 0xb14   : > { %v22105_v12 = vadd.f32 %v10326_v47, %v22021_v17  ;;  %v15592_v52 = vpop.f32.mrb[249].mxu1  ;;  %v11584_v10 = vpop.f32.mrb[113].mxu0 }
 0xb15   : > { %v10329_v7 = vpop.f32.mrb[250].mxu1  ;;  %v11585_v18 = vpop.f32.mrb[114].mxu0 }
 0xb16   : > { %v22108_v22 = vadd.f32 %v10329_v7, %v22027_v53  ;;  %v11636_v23 = vpack.c.bf16 %v11585_v18, %v11582_v58  ;;  %v15593_v36 = vpop.f32.mrb[251].mxu1  ;;  %v11587_v56 = vpop.f32.mrb[115].mxu0 }
 0xb18   : > { %15763 = vmatmul.mubr.bf16.vlgmr.msra.gmra.mrb[100].mxu1 %v11636_v23 }
 0xb19   : > { %15766 = vmatprep.mubr.msk.bf16.mxu1 %vm17184_vm2, %v17182_v1 }
 0xb1b   : > { %v10334_v15 = vpop.f32.mrb[252].mxu1  ;;  %v11590_v59 = vpop.f32.mrb[116].mxu0 }
 0xb1c   : > { %v22113_v8 = vadd.f32 %v10334_v15, %v22036_v54  ;;  %v15596_v17 = vpop.f32.mrb[253].mxu1  ;;  %v11592_v45 = vpop.f32.mrb[117].mxu0 }
 0xb1d   : > { %v10337_v34 = vpop.f32.mrb[254].mxu1  ;;  %v11593_v27 = vpop.f32.mrb[118].mxu0 }
 0xb1e   : > { %v22116_v38 = vadd.f32 %v10337_v34, %v22042_v21  ;;  %v11637_v53 = vpack.c.bf16 %v11593_v27, %v11590_v59  ;;  %v15597_v61 = vpop.f32.mrb[255].mxu1  ;;  %v11595_v2 = vpop.f32.mrb[119].mxu0 }
 0xb20   : > { %15767 = vmatmul.mubr.bf16.gmra.mrb[104].mxu1 %v11637_v53 }
 0xb21   : > { %15770 = vmatprep.mubr.msk.bf16.mxu1 %vm17184_vm2, %v17182_v1 }
 0xb23   : > { %v10342_v11 = vpop.f32.mrb[0].mxu1  ;;  %v11598_v42 = vpop.f32.mrb[120].mxu0 }
 0xb24   : > { %v22121_v51 = vadd.f32 %v10342_v11, %v22052_v62  ;;  %v15600_v54 = vpop.f32.mrb[1].mxu1  ;;  %v11600_v50 = vpop.f32.mrb[121].mxu0 }
 0xb25   : > { %v10345_v16 = vpop.f32.mrb[2].mxu1  ;;  %v11601_v13 = vpop.f32.mrb[122].mxu0 }
 0xb26   : > { %v22124_v31 = vadd.f32 %v10345_v16, %v22058_v57  ;;  %v11638_v21 = vpack.c.bf16 %v11601_v13, %v11598_v42  ;;  %v15601_v43 = vpop.f32.mrb[3].mxu1  ;;  %v11603_v49 = vpop.f32.mrb[123].mxu0 }
 0xb28   : > { %15771 = vmatmul.mubr.bf16.gmra.mrb[108].mxu1 %v11638_v21 }
 0xb29   : > { %15774 = vmatprep.mubr.msk.bf16.mxu1 %vm17184_vm2, %v17182_v1 }
 0xb2b   : > { %v10350_v19 = vpop.f32.mrb[4].mxu1  ;;  %v11606_v44 = vpop.f32.mrb[124].mxu0 }
 0xb2c   : > { %v22129_v14 = vadd.f32 %v10350_v19, %v22068_v37  ;;  %v15604_v62 = vpop.f32.mrb[5].mxu1  ;;  %v11608_v28 = vpop.f32.mrb[125].mxu0 }
 0xb2d   : > { %v10353_v25 = vpop.f32.mrb[6].mxu1  ;;  %v11609_v0 = vpop.f32.mrb[126].mxu0 }
 0xb2e   : > { %v22132_v60 = vadd.f32 %v10353_v25, %v22074_v24  ;;  %v11639_v57 = vpack.c.bf16 %v11609_v0, %v11606_v44  ;;  %v15605_v35 = vpop.f32.mrb[7].mxu1  ;;  %v11611_v3 = vpop.f32.mrb[127].mxu0 }
 0xb30   : > { %15775 = vmatmul.mubr.bf16.gmra.mrb[112].mxu1 %v11639_v57 }
 0xb31   : > { %15778 = vmatprep.mubr.msk.bf16.mxu1 %vm17184_vm2, %v17182_v1 }
 0xb33   : > { %v10358_v32 = vpop.f32.mrb[8].mxu1  ;;  %v11614_v48 = vpop.f32.mrb[128].mxu0 }
 0xb34   : > { %v10382_v63 = vadd.f32 %v10358_v32, %v22084_v39  ;;  %v15608_v37 = vpop.f32.mrb[9].mxu1  ;;  %v11616_v5 = vpop.f32.mrb[129].mxu0 }
 0xb35   : > { %v10361_v41 = vpop.f32.mrb[10].mxu1  ;;  %v11617_v40 = vpop.f32.mrb[130].mxu0 }
 0xb36   : > { %v10383_v33 = vadd.f32 %v10361_v41, %v22087_v46  ;;  %v11640_v9 = vpack.c.bf16 %v11617_v40, %v11614_v48  ;;  %v15609_v24 = vpop.f32.mrb[11].mxu1  ;;  %v11619_v55 = vpop.f32.mrb[131].mxu0 }
 0xb38   : > { %15779 = vmatmul.mubr.bf16.gmra.mrb[116].mxu1 %v11640_v9 }
 0xb39   : > { %15782 = vmatprep.mubr.msk.bf16.mxu1 %vm17184_vm2, %v17182_v1 }
 0xb3b   : > { %v10366_v29 = vpop.f32.mrb[12].mxu1  ;;  %v11622_v4 = vpop.f32.mrb[132].mxu0 }
 0xb3c   : > { %v10384_v6 = vadd.f32 %v10366_v29, %v22092_v26  ;;  %v11624_v47 = vpop.f32.mrb[133].mxu0  ;;  %v15612_v58 = vpop.f32.mrb[13].mxu1 }
 0xb3d   : > { %v11625_v39 = vpop.f32.mrb[134].mxu0  ;;  %v10369_v52 = vpop.f32.mrb[14].mxu1 }
 0xb3e   : > { %v11641_v10 = vpack.c.bf16 %v11625_v39, %v11622_v4  ;;  %v15613_v7 = vpop.f32.mrb[15].mxu1  ;;  %v11627_v18 = vpop.f32.mrb[135].mxu0 }
 0xb40   : > { %15783 = vmatmul.mubr.bf16.gmra.mrb[120].mxu1 %v11641_v10 }
 0xb41   : > { %15786 = vmatprep.mubr.msk.bf16.mxu1 %vm17184_vm2, %v17182_v1 }
 0xb43   : > { %v10674_v46 = vpop.f32.mrb[16].mxu1  ;;  %v11630_v23 = vpop.f32.mrb[136].mxu0 }
 0xb44   : > { %v10728_v36 = vadd.f32 %v10674_v46, %v22097_v20  ;;  %v15632_v56 = vpop.f32.mrb[17].mxu1  ;;  %v11642_v15 = vpack.c.bf16 %v11630_v23, %v11630_v23  ;;  %v11632_v59 = vpop.f32.mrb[137].mxu0 }
 0xb45   : > { %v10677_v17 = vpop.f32.mrb[18].mxu1  ;;  %v11633_v26 = vpop.f32.mrb[138].mxu0 }
 0xb46   : > { %v10729_v45 = vadd.f32 %v10677_v17, %v22100_v30  ;;  %v15633_v34 = vpop.f32.mrb[19].mxu1  ;;  %v11634_v27 = vpop.f32.mrb[139].mxu0 }
 0xb48   : > { %15787 = vmatmul.mubr.bf16.gmra.mrb[124].mxu1 %v11642_v15 }
 0xb4b   : > { %v10682_v53 = vpop.f32.mrb[20].mxu1 }
 0xb4c   : > { %v10730_v61 = vadd.f32 %v10682_v53, %v22105_v12  ;;  %v15636_v2 = vpop.f32.mrb[21].mxu1 }
 0xb4d   : > { %v10685_v11 = vpop.f32.mrb[22].mxu1 }
 0xb4e   : > { %v10731_v1 = vadd.f32 %v10685_v11, %v22108_v22  ;;  %v15637_v42 = vpop.f32.mrb[23].mxu1 }
 0xb53   : > { %v10690_v54 = vpop.f32.mrb[24].mxu1 }
 0xb54   : > { %v10732_v20 = vadd.f32 %v10690_v54, %v22113_v8  ;;  %v15640_v50 = vpop.f32.mrb[25].mxu1 }
 0xb55   : > { %v10693_v16 = vpop.f32.mrb[26].mxu1 }
 0xb56   : > { %v10733_v13 = vadd.f32 %v10693_v16, %v22116_v38  ;;  %v15641_v21 = vpop.f32.mrb[27].mxu1 }
 0xb5b   : > { %v10698_v30 = vpop.f32.mrb[28].mxu1 }
 0xb5c   : > { %v10734_v43 = vadd.f32 %v10698_v30, %v22121_v51  ;;  %v15644_v49 = vpop.f32.mrb[29].mxu1 }
 0xb5d   : > { %v10701_v19 = vpop.f32.mrb[30].mxu1 }
 0xb5e   : > { %v10735_v12 = vadd.f32 %v10701_v19, %v22124_v31  ;;  %v15645_v44 = vpop.f32.mrb[31].mxu1 }
 0xb63   : > { %v10706_v62 = vpop.f32.mrb[32].mxu1 }
 0xb64   : > { %v10736_v22 = vadd.f32 %v10706_v62, %v22129_v14  ;;  %v15648_v28 = vpop.f32.mrb[33].mxu1 }
 0xb65   : > { %v10709_v25 = vpop.f32.mrb[34].mxu1 }
 0xb66   : > { %v10737_v8 = vadd.f32 %v10709_v25, %v22132_v60  ;;  %v15649_v0 = vpop.f32.mrb[35].mxu1 }
 0xb6b   : > { %v10714_v57 = vpop.f32.mrb[36].mxu1 }
 0xb6c   : > { %v10738_v35 = vadd.f32 %v10714_v57, %v10382_v63  ;;  %v15652_v38 = vpop.f32.mrb[37].mxu1  ;;  %v16726_v57 = vld [vmem:[%s22216_s7] sm:$0xff]  }
 0xb6d   : > { %v10717_v3 = vpop.f32.mrb[38].mxu1  ;;  %15804 = vmatprep.mubr.msk.bf16.mxu1 %vm11915_vm7, %v16726_v57 }
 0xb6e   : > { %v10739_v32 = vadd.f32 %v10717_v3, %v10383_v33  ;;  %v15653_v48 = vpop.f32.mrb[39].mxu1 }
 0xb73   : > { %v10722_v51 = vpop.f32.mrb[40].mxu1 }
 0xb74   : > { %v10740_v37 = vadd.f32 %v10722_v51, %v10384_v6  ;;  %v15656_v5 = vpop.f32.mrb[41].mxu1 }
 0xb75   : > { %v10725_v41 = vpop.f32.mrb[42].mxu1 }
 0xb76   : > { %v15657_v31 = vpop.f32.mrb[43].mxu1 }
 0xb7b   : > { %v11030_v40 = vpop.f32.mrb[44].mxu1 }
 0xb7c   : > { %v11084_v9 = vadd.f32 %v11030_v40, %v10728_v36  ;;  %v15676_v24 = vpop.f32.mrb[45].mxu1 }
 0xb7d   : > { %v11033_v14 = vpop.f32.mrb[46].mxu1 }
 0xb7e   : > { %v11085_v55 = vadd.f32 %v11033_v14, %v10729_v45  ;;  %v15677_v29 = vpop.f32.mrb[47].mxu1 }
 0xb83   : > { %v11038_v4 = vpop.f32.mrb[48].mxu1 }
 0xb84   : > { %v11086_v60 = vadd.f32 %v11038_v4, %v10730_v61  ;;  %v15680_v47 = vpop.f32.mrb[49].mxu1 }
 0xb85   : > { %v11041_v58 = vpop.f32.mrb[50].mxu1 }
 0xb86   : > { %v11087_v63 = vadd.f32 %v11041_v58, %v10731_v1  ;;  %v15681_v39 = vpop.f32.mrb[51].mxu1 }
 0xb8b   : > { %v11046_v52 = vpop.f32.mrb[52].mxu1 }
 0xb8c   : > { %v11088_v33 = vadd.f32 %v11046_v52, %v10732_v20  ;;  %v15684_v10 = vpop.f32.mrb[53].mxu1 }
 0xb8d   : > { %v11049_v7 = vpop.f32.mrb[54].mxu1 }
 0xb8e   : > { %v11089_v6 = vadd.f32 %v11049_v7, %v10733_v13  ;;  %v15685_v18 = vpop.f32.mrb[55].mxu1 }
 0xb93   : > { %v11054_v46 = vpop.f32.mrb[56].mxu1 }
 0xb94   : > { %v11090_v23 = vadd.f32 %v11054_v46, %v10734_v43  ;;  %v15688_v56 = vpop.f32.mrb[57].mxu1 }
 0xb95   : > { %v11057_v36 = vpop.f32.mrb[58].mxu1  ;;  %v22174_v56 = vld [vmem:[%s22215_s6] ss:$0 sm:$0xff] }
 0xb96   : > { %v11091_v15 = vadd.f32 %v11057_v36, %v10735_v12  ;;  %v15689_v59 = vpop.f32.mrb[59].mxu1 }
 0xb9b   : > { %v11062_v17 = vpop.f32.mrb[60].mxu1 }
 0xb9c   : > { %v11092_v26 = vadd.f32 %v11062_v17, %v10736_v22  ;;  %v15692_v45 = vpop.f32.mrb[61].mxu1 }
 0xb9d   : > { %v11065_v34 = vpop.f32.mrb[62].mxu1 }
 0xb9e   : > { %v11093_v27 = vadd.f32 %v11065_v34, %v10737_v8  ;;  %v15693_v53 = vpop.f32.mrb[63].mxu1 }
 0xba3   : > { %v11070_v61 = vpop.f32.mrb[64].mxu1 }
 0xba4   : > { %v11094_v2 = vadd.f32 %v11070_v61, %v10738_v35  ;;  %v15696_v11 = vpop.f32.mrb[65].mxu1 }
 0xba5   : > { %v11073_v1 = vpop.f32.mrb[66].mxu1 }
 0xba6   : > { %v11095_v42 = vadd.f32 %v11073_v1, %v10739_v32  ;;  %v15697_v54 = vpop.f32.mrb[67].mxu1 }
 0xbab   : > { %v11078_v20 = vpop.f32.mrb[68].mxu1 }
 0xbac   : > { %v11096_v50 = vadd.f32 %v11078_v20, %v10740_v37  ;;  %v15700_v16 = vpop.f32.mrb[69].mxu1 }
 0xbad   : > { %v11081_v13 = vpop.f32.mrb[70].mxu1 }
 0xbae   : > { %v15701_v21 = vpop.f32.mrb[71].mxu1 }
 0xbb3   : > { %v11386_v30 = vpop.f32.mrb[72].mxu1 }
 0xbb4   : > { %v11440_v43 = vadd.f32 %v11386_v30, %v11084_v9  ;;  %v15720_v49 = vpop.f32.mrb[73].mxu1 }
 0xbb5   : > { %v11389_v19 = vpop.f32.mrb[74].mxu1 }
 0xbb6   : > { %v11441_v12 = vadd.f32 %v11389_v19, %v11085_v55  ;;  %v15721_v44 = vpop.f32.mrb[75].mxu1 }
 0xbbb   : > { %v11394_v62 = vpop.f32.mrb[76].mxu1 }
 0xbbc   : > { %v11442_v22 = vadd.f32 %v11394_v62, %v11086_v60  ;;  %v15724_v28 = vpop.f32.mrb[77].mxu1 }
 0xbbd   : > { %v11397_v25 = vpop.f32.mrb[78].mxu1 }
 0xbbe   : > { %v11443_v8 = vadd.f32 %v11397_v25, %v11087_v63  ;;  %v15725_v0 = vpop.f32.mrb[79].mxu1 }
 0xbc3   : > { %v11402_v35 = vpop.f32.mrb[80].mxu1 }
 0xbc4   : > { %v11444_v38 = vadd.f32 %v11402_v35, %v11088_v33  ;;  %v15728_v3 = vpop.f32.mrb[81].mxu1 }
 0xbc5   : > { %v11405_v32 = vpop.f32.mrb[82].mxu1 }
 0xbc6   : > { %v11445_v48 = vadd.f32 %v11405_v32, %v11089_v6  ;;  %v15729_v51 = vpop.f32.mrb[83].mxu1 }
 0xbcb   : > { %v11410_v37 = vpop.f32.mrb[84].mxu1 }
 0xbcc   : > { %v22157_v5 = vadd.f32 %v11410_v37, %v11090_v23  ;;  %v15732_v41 = vpop.f32.mrb[85].mxu1 }
 0xbcd   : > { %v11413_v31 = vpop.f32.mrb[86].mxu1 }
 0xbce   : > { %v22159_v40 = vadd.f32 %v11413_v31, %v11091_v15  ;;  %v15733_v9 = vpop.f32.mrb[87].mxu1 }
 0xbd3   : > { %v11418_v24 = vpop.f32.mrb[88].mxu1 }
 0xbd4   : > { %v22161_v14 = vadd.f32 %v11418_v24, %v11092_v26  ;;  %v15736_v55 = vpop.f32.mrb[89].mxu1 }
 0xbd5   : > { %v11421_v29 = vpop.f32.mrb[90].mxu1 }
 0xbd6   : > { %v22163_v4 = vadd.f32 %v11421_v29, %v11093_v27  ;;  %v15737_v60 = vpop.f32.mrb[91].mxu1 }
 0xbdb   : > { %v11426_v47 = vpop.f32.mrb[92].mxu1 }
 0xbdc   : > { %v22165_v58 = vadd.f32 %v11426_v47, %v11094_v2  ;;  %v15740_v63 = vpop.f32.mrb[93].mxu1 }
 0xbdd   : > { %v11429_v39 = vpop.f32.mrb[94].mxu1 }
 0xbde   : > { %v22167_v52 = vadd.f32 %v11429_v39, %v11095_v42  ;;  %v15741_v33 = vpop.f32.mrb[95].mxu1 }
 0xbe3   : > { %v11434_v10 = vpop.f32.mrb[96].mxu1 }
 0xbe4   : > { %v22169_v7 = vadd.f32 %v11434_v10, %v11096_v50  ;;  %v15744_v6 = vpop.f32.mrb[97].mxu1 }
 0xbe5   : > { %v11437_v18 = vpop.f32.mrb[98].mxu1 }
 0xbe6   : > { %v15745_v46 = vpop.f32.mrb[99].mxu1 }
 0xbeb   : > { %v11742_v23 = vpop.f32.mrb[100].mxu1 }
 0xbec   : > { %v11796_v36 = vadd.f32 %v11742_v23, %v11440_v43  ;;  %v15764_v15 = vpop.f32.mrb[101].mxu1 }
 0xbed   : > { %v11745_v59 = vpop.f32.mrb[102].mxu1 }
 0xbee   : > { %v11816_v17 = vadd.f32 %v22174_v56, %v11796_v36  ;;  %v11797_v26 = vadd.f32 %v11745_v59, %v11441_v12  ;;  %v15765_v45 = vpop.f32.mrb[103].mxu1 }
 0xbf0   : > { %v11829_v34 = vsub.f32 0.0, %v11816_v17  ;;  %v11817_v27 = vadd.f32 %v22174_v56, %v11797_v26 }
 0xbf2   : > { %v11842_v53 = vmul.f32 1.442695, %v11829_v34  ;;  %v11830_v61 = vsub.f32 0.0, %v11817_v27 }
 0xbf3   : > { %v11750_v2 = vpop.f32.mrb[104].mxu1 }
 0xbf4   : > { %17120 = vpow2.f32 %v11842_v53  ;;  %v11844_v11 = vmul.f32 1.442695, %v11830_v61  ;;  %v11798_v1 = vadd.f32 %v11750_v2, %v11442_v22  ;;  %v15768_v42 = vpop.f32.mrb[105].mxu1 }
 0xbf5   : > { %v11753_v54 = vpop.f32.mrb[106].mxu1 }
 0xbf6   : > { %17122 = vpow2.f32 %v11844_v11  ;;  %v11818_v20 = vadd.f32 %v22174_v56, %v11798_v1  ;;  %v11799_v50 = vadd.f32 %v11753_v54, %v11443_v8  ;;  %v15769_v16 = vpop.f32.mrb[107].mxu1 }
 0xbf8   : > { %v11831_v13 = vsub.f32 0.0, %v11818_v20  ;;  %v11819_v21 = vadd.f32 %v22174_v56, %v11799_v50 }
 0xbfa   : > { %v11846_v30 = vmul.f32 1.442695, %v11831_v13  ;;  %v11832_v43 = vsub.f32 0.0, %v11819_v21 }
 0xbfb   : > { %v11758_v49 = vpop.f32.mrb[108].mxu1 }
 0xbfc   : > { %17124 = vpow2.f32 %v11846_v30  ;;  %v11848_v19 = vmul.f32 1.442695, %v11832_v43  ;;  %v11800_v12 = vadd.f32 %v11758_v49, %v11444_v38  ;;  %v15772_v44 = vpop.f32.mrb[109].mxu1 }
 0xbfd   : > { %v11761_v62 = vpop.f32.mrb[110].mxu1 }
 0xbfe   : > { %v17121_v28 = vpop.eup %17120  ;;  %17126 = vpow2.f32 %v11848_v19  ;;  %v11820_v22 = vadd.f32 %v22174_v56, %v11800_v12  ;;  %v11801_v25 = vadd.f32 %v11761_v62, %v11445_v48  ;;  %v15773_v0 = vpop.f32.mrb[111].mxu1 }
 0xbff   : > { %v11868_v57 = vadd.f32 1.0, %v17121_v28 }
 0xc00   : > { %v17123_v8 = vpop.eup %17122  ;;  %v11833_v35 = vsub.f32 0.0, %v11820_v22  ;;  %v11821_v3 = vadd.f32 %v22174_v56, %v11801_v25 }
 0xc01   : > { %v11869_v32 = vadd.f32 1.0, %v17123_v8  ;;  %17128 = vrcp.f32 %v11868_v57 }
 0xc02   : > { %v11850_v51 = vmul.f32 1.442695, %v11833_v35  ;;  %v11834_v37 = vsub.f32 0.0, %v11821_v3 }
 0xc03   : > { %17130 = vrcp.f32 %v11869_v32  ;;  %v11766_v41 = vpop.f32.mrb[112].mxu1 }
 0xc04   : > { %17132 = vpow2.f32 %v11850_v51  ;;  %v11852_v38 = vmul.f32 1.442695, %v11834_v37  ;;  %v11802_v31 = vadd.f32 %v11766_v41, %v22157_v5  ;;  %v15776_v9 = vpop.f32.mrb[113].mxu1 }
 0xc05   : > { %v11769_v24 = vpop.f32.mrb[114].mxu1 }
 0xc06   : > { %v17125_v55 = vpop.eup %17124  ;;  %17134 = vpow2.f32 %v11852_v38  ;;  %v11822_v48 = vadd.f32 %v22174_v56, %v11802_v31  ;;  %v11803_v29 = vadd.f32 %v11769_v24, %v22159_v40  ;;  %v15777_v60 = vpop.f32.mrb[115].mxu1 }
 0xc07   : > { %v11870_v47 = vadd.f32 1.0, %v17125_v55 }
 0xc08   : > { %v17127_v63 = vpop.eup %17126  ;;  %v11835_v39 = vsub.f32 0.0, %v11822_v48  ;;  %v11823_v33 = vadd.f32 %v22174_v56, %v11803_v29 }
 0xc09   : > { %v11871_v10 = vadd.f32 1.0, %v17127_v63  ;;  %17136 = vrcp.f32 %v11870_v47 }
 0xc0a   : > { %v11854_v6 = vmul.f32 1.442695, %v11835_v39  ;;  %v11836_v18 = vsub.f32 0.0, %v11823_v33 }
 0xc0b   : > { %17138 = vrcp.f32 %v11871_v10  ;;  %v11774_v5 = vpop.f32.mrb[116].mxu1  ;;  %v17129_v46 = vpop.eup %17128 }
 0xc0c   : > { %17140 = vpow2.f32 %v11854_v6  ;;  %v11856_v23 = vmul.f32 1.442695, %v11836_v18  ;;  %v11804_v36 = vadd.f32 %v11774_v5, %v22161_v14  ;;  %v15780_v15 = vpop.f32.mrb[117].mxu1 }
 0xc0d   : > { %v17131_v59 = vpop.eup %17130  ;;  %v11777_v40 = vpop.f32.mrb[118].mxu1 }
 0xc0e   : > { %v17133_v17 = vpop.eup %17132  ;;  %17142 = vpow2.f32 %v11856_v23  ;;  %v11824_v26 = vadd.f32 %v22174_v56, %v11804_v36  ;;  %v11805_v45 = vadd.f32 %v11777_v40, %v22163_v4  ;;  %v11898_v34 = vpack.c.bf16 %v17131_v59, %v17129_v46  ;;  %v15781_v27 = vpop.f32.mrb[119].mxu1 }
 0xc0f   : > { %v11872_v53 = vadd.f32 1.0, %v17133_v17 }
 0xc10   : > { %v17135_v61 = vpop.eup %17134  ;;  %v11837_v2 = vsub.f32 0.0, %v11824_v26  ;;  %v11825_v11 = vadd.f32 %v22174_v56, %v11805_v45  ;;  %15790 = vmatprep.subr.bf16.mxu1 %v11898_v34  ;;  %v16727_v26 = vld [vmem:[%s22216_s7 + $0x8] sm:$0x1f]  }
 0xc11   : > { %v11873_v1 = vadd.f32 1.0, %v17135_v61  ;;  %15791 = vmatpush3.bf16.msra.mxu1 %v11898_v34  ;;  %17144 = vrcp.f32 %v11872_v53 }
 0xc12   : > { %v11858_v14 = vmul.f32 1.442695, %v11837_v2  ;;  %v11838_v42 = vsub.f32 0.0, %v11825_v11  ;;  %v11997_v2 = vld [vmem:[%s305_s16 + $0xc] sm:$0x1] }
 0xc13   : > { %17146 = vrcp.f32 %v11873_v1  ;;  %v11782_v54 = vpop.f32.mrb[120].mxu1  ;;  %v17137_v20 = vpop.eup %17136 }
 0xc14   : > { %17148 = vpow2.f32 %v11858_v14  ;;  %v11860_v50 = vmul.f32 1.442695, %v11838_v42  ;;  %v11806_v4 = vadd.f32 %v11782_v54, %v22165_v58  ;;  %v15784_v16 = vpop.f32.mrb[121].mxu1 }
 0xc15   : > { %v17139_v13 = vpop.eup %17138  ;;  %v11785_v21 = vpop.f32.mrb[122].mxu1 }
 0xc16   : > { %v17141_v30 = vpop.eup %17140  ;;  %17150 = vpow2.f32 %v11860_v50  ;;  %v11826_v43 = vadd.f32 %v22174_v56, %v11806_v4  ;;  %v11807_v49 = vadd.f32 %v11785_v21, %v22167_v52  ;;  %v11899_v19 = vpack.c.bf16 %v17139_v13, %v17137_v20  ;;  %v15785_v12 = vpop.f32.mrb[123].mxu1 }
 0xc17   : > { %v11874_v44 = vadd.f32 1.0, %v17141_v30 }
 0xc18   : > { %v17143_v62 = vpop.eup %17142  ;;  %v11839_v28 = vsub.f32 0.0, %v11826_v43  ;;  %v11827_v22 = vadd.f32 %v22174_v56, %v11807_v49  ;;  %15792 = vmatprep.subr.bf16.mxu1 %v11899_v19 }
 0xc19   : > { %v11875_v25 = vadd.f32 1.0, %v17143_v62  ;;  %15793 = vmatpush3.bf16.msra.mxu1 %v11899_v19  ;;  %17152 = vrcp.f32 %v11874_v44 }
 0xc1a   : > { %v11862_v58 = vmul.f32 1.442695, %v11839_v28  ;;  %v11840_v0 = vsub.f32 0.0, %v11827_v22 }
 0xc1b   : > { %17154 = vrcp.f32 %v11875_v25  ;;  %v11790_v57 = vpop.f32.mrb[124].mxu1  ;;  %v17145_v8 = vpop.eup %17144 }
 0xc1c   : > { %17156 = vpow2.f32 %v11862_v58  ;;  %v11864_v35 = vmul.f32 1.442695, %v11840_v0  ;;  %v11808_v52 = vadd.f32 %v11790_v57, %v22169_v7  ;;  %v15788_v3 = vpop.f32.mrb[125].mxu1 }
 0xc1d   : > { %v17147_v32 = vpop.eup %17146  ;;  %v11793_v51 = vpop.f32.mrb[126].mxu1 }
 0xc1e   : > { %v17149_v37 = vpop.eup %17148  ;;  %17158 = vpow2.f32 %v11864_v35  ;;  %v11828_v41 = vadd.f32 %v22174_v56, %v11808_v52  ;;  %v11900_v38 = vpack.c.bf16 %v17147_v32, %v17145_v8  ;;  %v15789_v31 = vpop.f32.mrb[127].mxu1 }
 0xc1f   : > { %v11876_v9 = vadd.f32 1.0, %v17149_v37 }
 0xc20   : > { %v17151_v24 = vpop.eup %17150  ;;  %v11841_v55 = vsub.f32 0.0, %v11828_v41  ;;  %15794 = vmatprep.subr.bf16.mxu1 %v11900_v38 }
 0xc21   : > { %v11877_v48 = vadd.f32 1.0, %v17151_v24  ;;  %15795 = vmatpush3.bf16.msra.mxu1 %v11900_v38  ;;  %17160 = vrcp.f32 %v11876_v9 }
 0xc22   : > { %v11866_v29 = vmul.f32 1.442695, %v11841_v55 }
 0xc23   : > { %17162 = vrcp.f32 %v11877_v48  ;;  %v17153_v60 = vpop.eup %17152 }
 0xc24   : > { %17164 = vpow2.f32 %v11866_v29 }
 0xc25   : > { %v17155_v7 = vpop.eup %17154 }
 0xc26   : > { %v17157_v47 = vpop.eup %17156  ;;  %v11901_v63 = vpack.c.bf16 %v17155_v7, %v17153_v60 }
 0xc27   : > { %v11878_v39 = vadd.f32 1.0, %v17157_v47 }
 0xc28   : > { %v17159_v33 = vpop.eup %17158  ;;  %15796 = vmatprep.subr.bf16.mxu1 %v11901_v63 }
 0xc29   : > { %v11879_v56 = vadd.f32 1.0, %v17159_v33  ;;  %15797 = vmatpush3.bf16.msra.mxu1 %v11901_v63  ;;  %17166 = vrcp.f32 %v11878_v39 }
 0xc2b   : > { %17168 = vrcp.f32 %v11879_v56  ;;  %v17161_v10 = vpop.eup %17160 }
 0xc2d   : > { %v17163_v6 = vpop.eup %17162 }
 0xc2e   : > { %v17165_v18 = vpop.eup %17164  ;;  %v11902_v5 = vpack.c.bf16 %v17163_v6, %v17161_v10 }
 0xc2f   : > { %v11880_v46 = vadd.f32 1.0, %v17165_v18 }
 0xc30   : > { %15798 = vmatprep.subr.bf16.mxu1 %v11902_v5 }
 0xc31   : > { %17170 = vrcp.f32 %v11880_v46  ;;  %15799 = vmatpush3.bf16.msra.mxu1 %v11902_v5 }
 0xc33   : > { %v17167_v23 = vpop.eup %17166 }
 0xc35   : > { %v17169_v36 = vpop.eup %17168 }
 0xc36   : > { %v11903_v15 = vpack.c.bf16 %v17169_v36, %v17167_v23 }
 0xc38   : > { %15800 = vmatprep.subr.bf16.mxu1 %v11903_v15 }
 0xc39   : > { %15801 = vmatpush3.bf16.msra.mxu1 %v11903_v15 }
 0xc3b   : > { %v17171_v59 = vpop.eup %17170 }
 0xc3c   : > { %v11904_v40 = vpack.c.bf16 %v17171_v59, %v17171_v59 }
 0xc3e   : > { %15834 = vmatprep.subr.msk.bf16.mxu1 %vm3027_vm6, %v11904_v40  ;;  %v11923_v17 = vsel %vm3027_vm6, %v11904_v40, 0 }
 0xc3f   : > { %15803 = vmatpush3.bf16.msra.mxu1 %v11923_v17 }
 0xc42   : > { %15805 = vmatmul.mubr.msk.bf16.vlgmr.msra.gmra.mrb[128].mxu1 %vm11915_vm7, %v16727_v26 }
 0xd15   : > { %v15806_v45 = vpop.f32.mrb[128].mxu1 }
 0xd16   : > { %v13703_v34 = vpack.c.bf16 %v15806_v45, %v15806_v45  ;;  %v11959_v27 = vpop.f32.mrb[129].mxu1 }
 0xd17   : > { %v13701_v53 = vpack.c.bf16 %v11959_v27, %v11959_v27  ;;  %v15807_v61 = vpop.f32.mrb[130].mxu1 }
 0xd18   : > { %11993 = vst.msk [vmem:[%s305_s16 + $0x8] sm:$0xf] %vm11990_vm10, %v13703_v34  ;;  %v13704_v11 = vpack.c.bf16 %v15807_v61, %v15807_v61  ;;  %v11962_v1 = vpop.f32.mrb[131].mxu1 }
 0xd19   : > { %11991 = vst.msk [vmem:[%s305_s16] sm:$0xf] %vm11990_vm10, %v13701_v53  ;;  %v13702_v14 = vpack.c.bf16 %v11962_v1, %v11962_v1 }
 0xd1a   : > { %v11998_v42 = vsel %vm11996_vm11, %v13704_v11, %v11997_v2 }
 0xd1b   : > { %11999 = vst [vmem:[%s305_s16 + $0xc] sm:$0x1] %v11998_v42  ;;  %11992 = vst.msk [vmem:[%s305_s16 + $0x4] sm:$0xf] %vm11990_vm10, %v13702_v14 }
 0xd1c PF: > { %s18_s27 = sadd.s32 1, %s17180_s27  }
 0xd1d   : > { %p15_p4 = scmp.ge.s32.totalorder %s18_s27, 4  }
 0xd1f   :  { %17 = sbr.rel (!%p15_p4) target bundleno = 1 (0x1), region = 130 }

</bundles_post_ra>
